<compile_context>
chip_gen: v6e
topology: v6e:2x2x1
jax: 0.10.0
libtpu: 0.0.40
codegen_flags: <defaults>
</compile_context>

<pallas_src>
import numpy as np

import jax
import jax.numpy as jnp
from jax.experimental import pallas as pl
from jax.experimental.pallas import tpu as pltpu


# ----------------------------------------------------------------------------
# Pallas kernels
# ----------------------------------------------------------------------------
def _conv_block(x, wl_ref, sr_ref, b_ref):
    """One conv layer:  sum_kw  WL[kw] @ (x @ SR[kw])  + bias.

    x:        (Cin*Hin, Win)   channel-stacked planes, W on lanes
    WL[kw]:   (Cout*OH, Cin*Hin) banded weights (channel + kh taps + pad + stride)
    SR[kw]:   (Win, OW)        0/1 column tap selection (pad + stride)
    bias:     (Cout*OH, 1)
    returns   (Cout*OH, OW)
    """
    ktaps = wl_ref.shape[0]
    acc = None
    for kw in range(ktaps):
        y = jnp.dot(x, sr_ref[kw], preferred_element_type=jnp.float32)
        t = jnp.dot(wl_ref[kw], y, preferred_element_type=jnp.float32)
        acc = t if acc is None else acc + t
    return acc + b_ref[...]


def _conv_stack_kernel(x_ref, wl0, sr0, b0, plr, pls, wl1, sr1, b1,
                       wl2, sr2, b2, wl3, sr3, b3, o_ref):
    """Fused conv0+relu+maxpool(2,2)+conv1+conv2+conv3 (+relu) for one image."""
    x = x_ref[0]                                                 # (3*64, 64)

    # conv0 (3->3, k3, s1, p1) + relu
    a0 = jnp.maximum(_conv_block(x, wl0, sr0, b0), 0.0)          # (3*64, 64)

    # maxpool 2x2: four selection-matmul taps, elementwise max
    z0 = jnp.dot(a0, pls[0], preferred_element_type=jnp.float32)   # (192, 32)
    z1 = jnp.dot(a0, pls[1], preferred_element_type=jnp.float32)
    t00 = jnp.dot(plr[0], z0, preferred_element_type=jnp.float32)  # (96, 32)
    t01 = jnp.dot(plr[0], z1, preferred_element_type=jnp.float32)
    t10 = jnp.dot(plr[1], z0, preferred_element_type=jnp.float32)
    t11 = jnp.dot(plr[1], z1, preferred_element_type=jnp.float32)
    p = jnp.maximum(jnp.maximum(t00, t01), jnp.maximum(t10, t11))  # (3*32, 32)

    # conv1 (3->6, k5, s1, p1) + relu
    a1 = jnp.maximum(_conv_block(p, wl1, sr1, b1), 0.0)          # (6*30, 30)
    # conv2 (6->12, k5, s2, p1) + relu
    a2 = jnp.maximum(_conv_block(a1, wl2, sr2, b2), 0.0)         # (12*14, 14)
    # conv3 (12->24, k3, s2, p1) + relu
    a3 = jnp.maximum(_conv_block(a2, wl3, sr3, b3), 0.0)         # (24*7, 7)

    o_ref[0] = a3.astype(o_ref.dtype)


def _fc_stack_kernel(x_ref, w1, b1, w2, b2, w3, b3, o_ref):
    """Fused fc1+relu, fc2+relu, fc3 (weights pre-transposed to (K, N), hidden
    dims zero-padded to multiples of 128 for lane-dense intermediates)."""
    h = jnp.dot(x_ref[...], w1[...], preferred_element_type=jnp.float32) + b1[...]
    h = jnp.maximum(h, 0.0)
    # TODO(synk): Dropout(0.3) treated as inference-mode identity (no RNG mask).
    h = jnp.dot(h, w2[...], preferred_element_type=jnp.float32) + b2[...]
    h = jnp.maximum(h, 0.0)
    o_ref[...] = (jnp.dot(h, w3[...], preferred_element_type=jnp.float32)
                  + b3[...]).astype(o_ref.dtype)


# ----------------------------------------------------------------------------
# pallas_call wrappers
# ----------------------------------------------------------------------------
def conv_stack_forward(x2, conv_mats):
    """x2: (B, 3*64, 64) channel-stacked input planes -> (B, 24*7, 7)."""
    B = x2.shape[0]
    idx_batch = lambda i: (i, 0, 0)
    const3 = lambda i: (0, 0, 0)
    const2 = lambda i: (0, 0)

    def _const_spec(a):
        return pl.BlockSpec(a.shape, const3 if a.ndim == 3 else const2)

    in_specs = [pl.BlockSpec((1, 192, 64), idx_batch)] + [_const_spec(a) for a in conv_mats]

    return pl.pallas_call(
        _conv_stack_kernel,
        out_shape=jax.ShapeDtypeStruct((B, 168, 7), jnp.float32),
        grid=(B,),
        in_specs=in_specs,
        out_specs=pl.BlockSpec((1, 168, 7), idx_batch),
        compiler_params=pltpu.CompilerParams(dimension_semantics=("parallel",)),
    )(x2, *conv_mats)


def fc_stack_forward(xf, fc_mats, block_rows=256):
    """xf: (B, 1176) -> (B, 133)."""
    B, K = xf.shape
    w1, b1, w2, b2, w3, b3 = fc_mats
    n_out = w3.shape[1]
    bt = B if B <= block_rows else block_rows
    const2 = lambda i: (0, 0)

    in_specs = [pl.BlockSpec((bt, K), lambda i: (i, 0))] + \
               [pl.BlockSpec(a.shape, const2) for a in fc_mats]

    return pl.pallas_call(
        _fc_stack_kernel,
        out_shape=jax.ShapeDtypeStruct((B, n_out), jnp.float32),
        grid=(pl.cdiv(B, bt),),
        in_specs=in_specs,
        out_specs=pl.BlockSpec((bt, n_out), lambda i: (i, 0)),
        compiler_params=pltpu.CompilerParams(dimension_semantics=("parallel",)),
    )(xf, *fc_mats)


# ----------------------------------------------------------------------------
# Host-side weight packing (done once, outside the hot path)
# ----------------------------------------------------------------------------
def _build_conv_mats(w, b, hin, win, stride, pad):
    """Pack Conv2d weights into per-kw banded/selection matrices."""
    w = np.asarray(w, np.float32)
    b = np.asarray(b, np.float32)
    cout, cin, k, _ = w.shape
    oh = (hin + 2 * pad - k) // stride + 1
    ow = (win + 2 * pad - k) // stride + 1

    wl = np.zeros((k, cout, oh, cin, hin), np.float32)
    for kw in range(k):
        for kh in range(k):
            for o in range(oh):
                h = stride * o + kh - pad
                if 0 <= h < hin:
                    wl[kw, :, o, :, h] += w[:, :, kh, kw]
    wl = wl.reshape(k, cout * oh, cin * hin)

    sr = np.zeros((k, win, ow), np.float32)
    for kw in range(k):
        for o in range(ow):
            wc = stride * o + kw - pad
            if 0 <= wc < win:
                sr[kw, wc, o] = 1.0

    bcol = np.repeat(b, oh).reshape(cout * oh, 1).astype(np.float32)
    return wl, sr, bcol


def _build_pool_mats(c, hin, win):
    """MaxPool2d(2, 2) as 4 (row-select @ X @ col-select) taps."""
    oh, ow = hin // 2, win // 2
    rl = np.zeros((2, c * oh, c * hin), np.float32)
    sr = np.zeros((2, win, ow), np.float32)
    for d in range(2):
        for ch in range(c):
            for a in range(oh):
                rl[d, ch * oh + a, ch * hin + 2 * a + d] = 1.0
        for col in range(ow):
            sr[d, 2 * col + d, col] = 1.0
    return rl, sr


def _pad_to(a, rows, cols):
    """Zero-pad a 2-D array to (rows, cols) -- exactness-preserving."""
    out = np.zeros((rows, cols), np.float32)
    out[:a.shape[0], :a.shape[1]] = a
    return out


def pack_params(params):
    wl0, sr0, b0 = _build_conv_mats(params["conv0_w"], params["conv0_b"], 64, 64, 1, 1)
    plr, pls = _build_pool_mats(3, 64, 64)
    wl1, sr1, b1 = _build_conv_mats(params["conv1_w"], params["conv1_b"], 32, 32, 1, 1)
    wl2, sr2, b2 = _build_conv_mats(params["conv2_w"], params["conv2_b"], 30, 30, 2, 1)
    wl3, sr3, b3 = _build_conv_mats(params["conv3_w"], params["conv3_b"], 14, 14, 2, 1)

    conv = tuple(jnp.asarray(a) for a in
                 (wl0, sr0, b0, plr, pls, wl1, sr1, b1, wl2, sr2, b2, wl3, sr3, b3))

    # FC weights: pre-transposed to (K, N); hidden dims zero-padded to 128-lane
    # multiples (200 -> 256, 500 -> 512) so intermediate activations are
    # lane-dense. Padded columns/rows/biases are zero -> result is exact.
    w1t = np.asarray(params["fc1_w"], np.float32).T          # (1176, 200)
    b1f = np.asarray(params["fc1_b"], np.float32)[None, :]   # (1, 200)
    w2t = np.asarray(params["fc2_w"], np.float32).T          # (200, 500)
    b2f = np.asarray(params["fc2_b"], np.float32)[None, :]   # (1, 500)
    w3t = np.asarray(params["fc3_w"], np.float32).T          # (500, 133)
    b3f = np.asarray(params["fc3_b"], np.float32)[None, :]   # (1, 133)

    h1p, h2p = 256, 512
    fc = (
        jnp.asarray(_pad_to(w1t, w1t.shape[0], h1p)),   # (1176, 256)
        jnp.asarray(_pad_to(b1f, 1, h1p)),              # (1, 256)
        jnp.asarray(_pad_to(w2t, h1p, h2p)),            # (256, 512)
        jnp.asarray(_pad_to(b2f, 1, h2p)),              # (1, 512)
        jnp.asarray(_pad_to(w3t, h2p, w3t.shape[1])),   # (512, 133)
        jnp.asarray(b3f),                               # (1, 133)
    )
    return {"conv": conv, "fc": fc}


# ----------------------------------------------------------------------------
# Parameter init (deterministic, PyTorch-default-style U(-1/sqrt(fan_in), ...))
# ----------------------------------------------------------------------------
def _uniform(key, shape, fan_in):
    bound = 1.0 / jnp.sqrt(jnp.float32(fan_in))
    return jax.random.uniform(key, shape, jnp.float32, -bound, bound)


def init_params(key):
    ks = jax.random.split(key, 14)
    p = {}
    p["conv0_w"] = _uniform(ks[0], (3, 3, 3, 3), 3 * 3 * 3)
    p["conv0_b"] = _uniform(ks[1], (3,), 3 * 3 * 3)
    p["conv1_w"] = _uniform(ks[2], (6, 3, 5, 5), 3 * 5 * 5)
    p["conv1_b"] = _uniform(ks[3], (6,), 3 * 5 * 5)
    p["conv2_w"] = _uniform(ks[4], (12, 6, 5, 5), 6 * 5 * 5)
    p["conv2_b"] = _uniform(ks[5], (12,), 6 * 5 * 5)
    p["conv3_w"] = _uniform(ks[6], (24, 12, 3, 3), 12 * 3 * 3)
    p["conv3_b"] = _uniform(ks[7], (24,), 12 * 3 * 3)
    p["fc1_w"] = _uniform(ks[8], (200, 24 * 7 * 7), 24 * 7 * 7)
    p["fc1_b"] = _uniform(ks[9], (200,), 24 * 7 * 7)
    p["fc2_w"] = _uniform(ks[10], (500, 200), 200)
    p["fc2_b"] = _uniform(ks[11], (500,), 200)
    p["fc3_w"] = _uniform(ks[12], (133, 500), 500)
    p["fc3_b"] = _uniform(ks[13], (133,), 500)
    return p


# ----------------------------------------------------------------------------
# Forward pass (mirrors Net.forward) -- two fused Pallas kernels
# ----------------------------------------------------------------------------
def net_forward(packed, x):
    x = x.reshape(-1, 3, 64, 64).astype(jnp.float32)
    B = x.shape[0]
    x2 = x.reshape(B, 3 * 64, 64)                 # channel-stacked planes (free reshape)
    conv_out = conv_stack_forward(x2, packed["conv"])   # (B, 24*7, 7)
    xf = conv_out.reshape(B, 24 * 7 * 7)          # matches PyTorch (C,H,W) flatten order
    return fc_stack_forward(xf, packed["fc"])     # (B, 133)


# ----------------------------------------------------------------------------
# Pure-JAX reference (for correctness check)
# ----------------------------------------------------------------------------
def reference_forward(params, x):
    hi = jax.lax.Precision.HIGHEST
    x = x.reshape(-1, 3, 64, 64).astype(jnp.float32)

    def conv(y, w, b, stride, pad):
        out = jax.lax.conv_general_dilated(
            y, w, (stride, stride), [(pad, pad), (pad, pad)],
            dimension_numbers=("NCHW", "OIHW", "NCHW"), precision=hi)
        return out + b[None, :, None, None]

    y = jax.nn.relu(conv(x, params["conv0_w"], params["conv0_b"], 1, 1))
    y = jax.lax.reduce_window(y, -jnp.inf, jax.lax.max, (1, 1, 2, 2), (1, 1, 2, 2), "VALID")
    y = jax.nn.relu(conv(y, params["conv1_w"], params["conv1_b"], 1, 1))
    y = jax.nn.relu(conv(y, params["conv2_w"], params["conv2_b"], 2, 1))
    y = jax.nn.relu(conv(y, params["conv3_w"], params["conv3_b"], 2, 1))
    B = y.shape[0]
    y = y.reshape(B, -1)
    y = jax.nn.relu(jnp.dot(y, params["fc1_w"].T, precision=hi) + params["fc1_b"])
    y = jax.nn.relu(jnp.dot(y, params["fc2_w"].T, precision=hi) + params["fc2_b"])
    return jnp.dot(y, params["fc3_w"].T, precision=hi) + params["fc3_b"]


if __name__ == "__main__":
    key = jax.random.PRNGKey(0)
    pkey, xkey = jax.random.split(key)
    params = init_params(pkey)
    packed = pack_params(params)
    x = jax.random.normal(xkey, (2, 3, 64, 64), jnp.float32)

    out = jax.jit(net_forward)(packed, x)
    out = jax.block_until_ready(out)
    assert out.shape == (2, 133), out.shape
    assert bool(jnp.all(jnp.isfinite(out)))

    ref = jax.block_until_ready(reference_forward(params, x))
    err = float(jnp.max(jnp.abs(out - ref)))
    scale = float(jnp.max(jnp.abs(ref))) + 1e-6
    assert err <= 1e-2 + 3e-2 * scale, f"mismatch: max_abs_err={err}, ref_scale={scale}"

    print("KERNEL_OK")
</pallas_src>

<mosaic_0001>
module attributes {stable_mosaic.version = 11 : i64} {
  func.func @_fc_stack_kernel(%arg0: i32, %arg1: memref<2x1176xf32, #tpu.memory_space<vmem>>, %arg2: memref<1176x256xf32, #tpu.memory_space<vmem>>, %arg3: memref<1x256xf32, #tpu.memory_space<vmem>>, %arg4: memref<256x512xf32, #tpu.memory_space<vmem>>, %arg5: memref<1x512xf32, #tpu.memory_space<vmem>>, %arg6: memref<512x133xf32, #tpu.memory_space<vmem>>, %arg7: memref<1x133xf32, #tpu.memory_space<vmem>>, %arg8: memref<2x133xf32, #tpu.memory_space<vmem>>) attributes {dimension_semantics = [#tpu.dimension_semantics<parallel>], iteration_bounds = array<i64: 1>, scalar_prefetch = 0 : i64, scratch_operands = 0 : i64, tpu.core_type = #tpu.core_type<tc>, window_params = [{transform_indices = @transform_0, window_bounds = array<i64: 2, 1176>}, {pipeline_mode = #tpu.pipeline_mode<synchronous>, transform_indices = @transform_1, window_bounds = array<i64: 1176, 256>}, {pipeline_mode = #tpu.pipeline_mode<synchronous>, transform_indices = @transform_2, window_bounds = array<i64: 1, 256>}, {pipeline_mode = #tpu.pipeline_mode<synchronous>, transform_indices = @transform_3, window_bounds = array<i64: 256, 512>}, {pipeline_mode = #tpu.pipeline_mode<synchronous>, transform_indices = @transform_4, window_bounds = array<i64: 1, 512>}, {pipeline_mode = #tpu.pipeline_mode<synchronous>, transform_indices = @transform_5, window_bounds = array<i64: 512, 133>}, {pipeline_mode = #tpu.pipeline_mode<synchronous>, transform_indices = @transform_6, window_bounds = array<i64: 1, 133>}, {transform_indices = @transform_7, window_bounds = array<i64: 2, 133>}]} {
    %c0 = arith.constant 0 : index
    %c0_0 = arith.constant 0 : index
    %0 = vector.load %arg1[%c0, %c0_0] : memref<2x1176xf32, #tpu.memory_space<vmem>>, vector<2x1176xf32>
    %c0_1 = arith.constant 0 : index
    %c0_2 = arith.constant 0 : index
    %1 = vector.load %arg2[%c0_1, %c0_2] : memref<1176x256xf32, #tpu.memory_space<vmem>>, vector<1176x256xf32>
    %cst = arith.constant dense<0.000000e+00> : vector<2x256xf32>
    %2 = tpu.matmul %0, %1, %cst {dimension_numbers = #tpu.dot_dimension_numbers<[1], [0], [0], [1], [0, 0, 1, 1], [], []>} : vector<2x1176xf32>, vector<1176x256xf32>, vector<2x256xf32> -> vector<2x256xf32>
    %c0_3 = arith.constant 0 : index
    %c0_4 = arith.constant 0 : index
    %3 = vector.load %arg3[%c0_3, %c0_4] : memref<1x256xf32, #tpu.memory_space<vmem>>, vector<1x256xf32>
    %4 = vector.broadcast %3 : vector<1x256xf32> to vector<2x256xf32>
    %5 = arith.addf %2, %4 : vector<2x256xf32>
    %cst_5 = arith.constant 0.000000e+00 : f32
    %6 = vector.broadcast %cst_5 : f32 to vector<2x256xf32>
    %7 = arith.maximumf %5, %6 : vector<2x256xf32>
    %c0_6 = arith.constant 0 : index
    %c0_7 = arith.constant 0 : index
    %8 = vector.load %arg4[%c0_6, %c0_7] : memref<256x512xf32, #tpu.memory_space<vmem>>, vector<256x512xf32>
    %cst_8 = arith.constant dense<0.000000e+00> : vector<2x512xf32>
    %9 = tpu.matmul %7, %8, %cst_8 {dimension_numbers = #tpu.dot_dimension_numbers<[1], [0], [0], [1], [0, 0, 1, 1], [], []>} : vector<2x256xf32>, vector<256x512xf32>, vector<2x512xf32> -> vector<2x512xf32>
    %c0_9 = arith.constant 0 : index
    %c0_10 = arith.constant 0 : index
    %10 = vector.load %arg5[%c0_9, %c0_10] : memref<1x512xf32, #tpu.memory_space<vmem>>, vector<1x512xf32>
    %11 = vector.broadcast %10 : vector<1x512xf32> to vector<2x512xf32>
    %12 = arith.addf %9, %11 : vector<2x512xf32>
    %cst_11 = arith.constant 0.000000e+00 : f32
    %13 = vector.broadcast %cst_11 : f32 to vector<2x512xf32>
    %14 = arith.maximumf %12, %13 : vector<2x512xf32>
    %c0_12 = arith.constant 0 : index
    %c0_13 = arith.constant 0 : index
    %15 = vector.load %arg6[%c0_12, %c0_13] : memref<512x133xf32, #tpu.memory_space<vmem>>, vector<512x133xf32>
    %cst_14 = arith.constant dense<0.000000e+00> : vector<2x133xf32>
    %16 = tpu.matmul %14, %15, %cst_14 {dimension_numbers = #tpu.dot_dimension_numbers<[1], [0], [0], [1], [0, 0, 1, 1], [], []>} : vector<2x512xf32>, vector<512x133xf32>, vector<2x133xf32> -> vector<2x133xf32>
    %c0_15 = arith.constant 0 : index
    %c0_16 = arith.constant 0 : index
    %17 = vector.load %arg7[%c0_15, %c0_16] : memref<1x133xf32, #tpu.memory_space<vmem>>, vector<1x133xf32>
    %18 = vector.broadcast %17 : vector<1x133xf32> to vector<2x133xf32>
    %19 = arith.addf %16, %18 : vector<2x133xf32>
    %c0_17 = arith.constant 0 : index
    %c0_18 = arith.constant 0 : index
    %20 = vector.load %arg8[%c0_17, %c0_18] : memref<2x133xf32, #tpu.memory_space<vmem>>, vector<2x133xf32>
    tpu.vector_store %arg8[%c0_17, %c0_18], %19 {strides = array<i32>} : memref<2x133xf32, #tpu.memory_space<vmem>>, vector<2x133xf32>,
    return
  }
  func.func @transform_0(%arg0: i32) -> (i32, i32) {
    %c0_i32 = arith.constant 0 : i32
    %c0_i32_0 = arith.constant 0 : i32
    return %arg0, %c0_i32 : i32, i32
  }
  func.func @transform_1(%arg0: i32) -> (i32, i32) {
    %c0_i32 = arith.constant 0 : i32
    %c0_i32_0 = arith.constant 0 : i32
    %c0_i32_1 = arith.constant 0 : i32
    return %c0_i32, %c0_i32_0 : i32, i32
  }
  func.func @transform_2(%arg0: i32) -> (i32, i32) {
    %c0_i32 = arith.constant 0 : i32
    %c0_i32_0 = arith.constant 0 : i32
    %c0_i32_1 = arith.constant 0 : i32
    return %c0_i32, %c0_i32_0 : i32, i32
  }
  func.func @transform_3(%arg0: i32) -> (i32, i32) {
    %c0_i32 = arith.constant 0 : i32
    %c0_i32_0 = arith.constant 0 : i32
    %c0_i32_1 = arith.constant 0 : i32
    return %c0_i32, %c0_i32_0 : i32, i32
  }
  func.func @transform_4(%arg0: i32) -> (i32, i32) {
    %c0_i32 = arith.constant 0 : i32
    %c0_i32_0 = arith.constant 0 : i32
    %c0_i32_1 = arith.constant 0 : i32
    return %c0_i32, %c0_i32_0 : i32, i32
  }
  func.func @transform_5(%arg0: i32) -> (i32, i32) {
    %c0_i32 = arith.constant 0 : i32
    %c0_i32_0 = arith.constant 0 : i32
    %c0_i32_1 = arith.constant 0 : i32
    return %c0_i32, %c0_i32_0 : i32, i32
  }
  func.func @transform_6(%arg0: i32) -> (i32, i32) {
    %c0_i32 = arith.constant 0 : i32
    %c0_i32_0 = arith.constant 0 : i32
    %c0_i32_1 = arith.constant 0 : i32
    return %c0_i32, %c0_i32_0 : i32, i32
  }
  func.func @transform_7(%arg0: i32) -> (i32, i32) {
    %c0_i32 = arith.constant 0 : i32
    %c0_i32_0 = arith.constant 0 : i32
    return %arg0, %c0_i32 : i32, i32
  }
}

module attributes {stable_mosaic.version = 11 : i64} {
  func.func @_conv_stack_kernel(%arg0: i32, %arg1: memref<1x192x64xf32, #tpu.memory_space<vmem>>, %arg2: memref<3x192x192xf32, #tpu.memory_space<vmem>>, %arg3: memref<3x64x64xf32, #tpu.memory_space<vmem>>, %arg4: memref<192x1xf32, #tpu.memory_space<vmem>>, %arg5: memref<2x96x192xf32, #tpu.memory_space<vmem>>, %arg6: memref<2x64x32xf32, #tpu.memory_space<vmem>>, %arg7: memref<5x180x96xf32, #tpu.memory_space<vmem>>, %arg8: memref<5x32x30xf32, #tpu.memory_space<vmem>>, %arg9: memref<180x1xf32, #tpu.memory_space<vmem>>, %arg10: memref<5x168x180xf32, #tpu.memory_space<vmem>>, %arg11: memref<5x30x14xf32, #tpu.memory_space<vmem>>, %arg12: memref<168x1xf32, #tpu.memory_space<vmem>>, %arg13: memref<3x168x168xf32, #tpu.memory_space<vmem>>, %arg14: memref<3x14x7xf32, #tpu.memory_space<vmem>>, %arg15: memref<168x1xf32, #tpu.memory_space<vmem>>, %arg16: memref<1x168x7xf32, #tpu.memory_space<vmem>>) attributes {dimension_semantics = [#tpu.dimension_semantics<parallel>], iteration_bounds = array<i64: 2>, scalar_prefetch = 0 : i64, scratch_operands = 0 : i64, tpu.core_type = #tpu.core_type<tc>, window_params = [{transform_indices = @transform_0, window_bounds = array<i64: 1, 192, 64>}, {pipeline_mode = #tpu.pipeline_mode<synchronous>, transform_indices = @transform_1, window_bounds = array<i64: 3, 192, 192>}, {pipeline_mode = #tpu.pipeline_mode<synchronous>, transform_indices = @transform_2, window_bounds = array<i64: 3, 64, 64>}, {pipeline_mode = #tpu.pipeline_mode<synchronous>, transform_indices = @transform_3, window_bounds = array<i64: 192, 1>}, {pipeline_mode = #tpu.pipeline_mode<synchronous>, transform_indices = @transform_4, window_bounds = array<i64: 2, 96, 192>}, {pipeline_mode = #tpu.pipeline_mode<synchronous>, transform_indices = @transform_5, window_bounds = array<i64: 2, 64, 32>}, {pipeline_mode = #tpu.pipeline_mode<synchronous>, transform_indices = @transform_6, window_bounds = array<i64: 5, 180, 96>}, {pipeline_mode = #tpu.pipeline_mode<synchronous>, transform_indices = @transform_7, window_bounds = array<i64: 5, 32, 30>}, {pipeline_mode = #tpu.pipeline_mode<synchronous>, transform_indices = @transform_8, window_bounds = array<i64: 180, 1>}, {pipeline_mode = #tpu.pipeline_mode<synchronous>, transform_indices = @transform_9, window_bounds = array<i64: 5, 168, 180>}, {pipeline_mode = #tpu.pipeline_mode<synchronous>, transform_indices = @transform_10, window_bounds = array<i64: 5, 30, 14>}, {pipeline_mode = #tpu.pipeline_mode<synchronous>, transform_indices = @transform_11, window_bounds = array<i64: 168, 1>}, {pipeline_mode = #tpu.pipeline_mode<synchronous>, transform_indices = @transform_12, window_bounds = array<i64: 3, 168, 168>}, {pipeline_mode = #tpu.pipeline_mode<synchronous>, transform_indices = @transform_13, window_bounds = array<i64: 3, 14, 7>}, {pipeline_mode = #tpu.pipeline_mode<synchronous>, transform_indices = @transform_14, window_bounds = array<i64: 168, 1>}, {transform_indices = @transform_15, window_bounds = array<i64: 1, 168, 7>}]} {
    %c0 = arith.constant 0 : index
    %c0_0 = arith.constant 0 : index
    %c0_1 = arith.constant 0 : index
    %0 = vector.load %arg1[%c0, %c0_0, %c0_1] : memref<1x192x64xf32, #tpu.memory_space<vmem>>, vector<1x192x64xf32>
    %1 = vector.shape_cast %0 : vector<1x192x64xf32> to vector<192x64xf32>
    %c0_2 = arith.constant 0 : index
    %c0_3 = arith.constant 0 : index
    %c0_4 = arith.constant 0 : index
    %2 = vector.load %arg3[%c0_2, %c0_3, %c0_4] : memref<3x64x64xf32, #tpu.memory_space<vmem>>, vector<1x64x64xf32>
    %3 = vector.shape_cast %2 : vector<1x64x64xf32> to vector<64x64xf32>
    %cst = arith.constant dense<0.000000e+00> : vector<192x64xf32>
    %4 = tpu.matmul %1, %3, %cst {dimension_numbers = #tpu.dot_dimension_numbers<[1], [0], [0], [1], [0, 0, 1, 1], [], []>} : vector<192x64xf32>, vector<64x64xf32>, vector<192x64xf32> -> vector<192x64xf32>
    %c0_5 = arith.constant 0 : index
    %c0_6 = arith.constant 0 : index
    %c0_7 = arith.constant 0 : index
    %5 = vector.load %arg2[%c0_5, %c0_6, %c0_7] : memref<3x192x192xf32, #tpu.memory_space<vmem>>, vector<1x192x192xf32>
    %6 = vector.shape_cast %5 : vector<1x192x192xf32> to vector<192x192xf32>
    %cst_8 = arith.constant dense<0.000000e+00> : vector<192x64xf32>
    %7 = tpu.matmul %6, %4, %cst_8 {dimension_numbers = #tpu.dot_dimension_numbers<[1], [0], [0], [1], [0, 0, 1, 1], [], []>} : vector<192x192xf32>, vector<192x64xf32>, vector<192x64xf32> -> vector<192x64xf32>
    %c1 = arith.constant 1 : index
    %c0_9 = arith.constant 0 : index
    %c0_10 = arith.constant 0 : index
    %8 = vector.load %arg3[%c1, %c0_9, %c0_10] : memref<3x64x64xf32, #tpu.memory_space<vmem>>, vector<1x64x64xf32>
    %9 = vector.shape_cast %8 : vector<1x64x64xf32> to vector<64x64xf32>
    %cst_11 = arith.constant dense<0.000000e+00> : vector<192x64xf32>
    %10 = tpu.matmul %1, %9, %cst_11 {dimension_numbers = #tpu.dot_dimension_numbers<[1], [0], [0], [1], [0, 0, 1, 1], [], []>} : vector<192x64xf32>, vector<64x64xf32>, vector<192x64xf32> -> vector<192x64xf32>
    %c1_12 = arith.constant 1 : index
    %c0_13 = arith.constant 0 : index
    %c0_14 = arith.constant 0 : index
    %11 = vector.load %arg2[%c1_12, %c0_13, %c0_14] : memref<3x192x192xf32, #tpu.memory_space<vmem>>, vector<1x192x192xf32>
    %12 = vector.shape_cast %11 : vector<1x192x192xf32> to vector<192x192xf32>
    %cst_15 = arith.constant dense<0.000000e+00> : vector<192x64xf32>
    %13 = tpu.matmul %12, %10, %cst_15 {dimension_numbers = #tpu.dot_dimension_numbers<[1], [0], [0], [1], [0, 0, 1, 1], [], []>} : vector<192x192xf32>, vector<192x64xf32>, vector<192x64xf32> -> vector<192x64xf32>
    %14 = arith.addf %7, %13 : vector<192x64xf32>
    %c2 = arith.constant 2 : index
    %c0_16 = arith.constant 0 : index
    %c0_17 = arith.constant 0 : index
    %15 = vector.load %arg3[%c2, %c0_16, %c0_17] : memref<3x64x64xf32, #tpu.memory_space<vmem>>, vector<1x64x64xf32>
    %16 = vector.shape_cast %15 : vector<1x64x64xf32> to vector<64x64xf32>
    %cst_18 = arith.constant dense<0.000000e+00> : vector<192x64xf32>
    %17 = tpu.matmul %1, %16, %cst_18 {dimension_numbers = #tpu.dot_dimension_numbers<[1], [0], [0], [1], [0, 0, 1, 1], [], []>} : vector<192x64xf32>, vector<64x64xf32>, vector<192x64xf32> -> vector<192x64xf32>
    %c2_19 = arith.constant 2 : index
    %c0_20 = arith.constant 0 : index
    %c0_21 = arith.constant 0 : index
    %18 = vector.load %arg2[%c2_19, %c0_20, %c0_21] : memref<3x192x192xf32, #tpu.memory_space<vmem>>, vector<1x192x192xf32>
    %19 = vector.shape_cast %18 : vector<1x192x192xf32> to vector<192x192xf32>
    %cst_22 = arith.constant dense<0.000000e+00> : vector<192x64xf32>
    %20 = tpu.matmul %19, %17, %cst_22 {dimension_numbers = #tpu.dot_dimension_numbers<[1], [0], [0], [1], [0, 0, 1, 1], [], []>} : vector<192x192xf32>, vector<192x64xf32>, vector<192x64xf32> -> vector<192x64xf32>
    %21 = arith.addf %14, %20 : vector<192x64xf32>
    %c0_23 = arith.constant 0 : index
    %c0_24 = arith.constant 0 : index
    %22 = vector.load %arg4[%c0_23, %c0_24] : memref<192x1xf32, #tpu.memory_space<vmem>>, vector<192x1xf32>
    %23 = vector.broadcast %22 : vector<192x1xf32> to vector<192x64xf32>
    %24 = arith.addf %21, %23 : vector<192x64xf32>
    %cst_25 = arith.constant 0.000000e+00 : f32
    %25 = vector.broadcast %cst_25 : f32 to vector<192x64xf32>
    %26 = arith.maximumf %24, %25 : vector<192x64xf32>
    %c0_26 = arith.constant 0 : index
    %c0_27 = arith.constant 0 : index
    %c0_28 = arith.constant 0 : index
    %27 = vector.load %arg6[%c0_26, %c0_27, %c0_28] : memref<2x64x32xf32, #tpu.memory_space<vmem>>, vector<1x64x32xf32>
    %28 = vector.shape_cast %27 : vector<1x64x32xf32> to vector<64x32xf32>
    %cst_29 = arith.constant dense<0.000000e+00> : vector<192x32xf32>
    %29 = tpu.matmul %26, %28, %cst_29 {dimension_numbers = #tpu.dot_dimension_numbers<[1], [0], [0], [1], [0, 0, 1, 1], [], []>} : vector<192x64xf32>, vector<64x32xf32>, vector<192x32xf32> -> vector<192x32xf32>
    %c1_30 = arith.constant 1 : index
    %c0_31 = arith.constant 0 : index
    %c0_32 = arith.constant 0 : index
    %30 = vector.load %arg6[%c1_30, %c0_31, %c0_32] : memref<2x64x32xf32, #tpu.memory_space<vmem>>, vector<1x64x32xf32>
    %31 = vector.shape_cast %30 : vector<1x64x32xf32> to vector<64x32xf32>
    %cst_33 = arith.constant dense<0.000000e+00> : vector<192x32xf32>
    %32 = tpu.matmul %26, %31, %cst_33 {dimension_numbers = #tpu.dot_dimension_numbers<[1], [0], [0], [1], [0, 0, 1, 1], [], []>} : vector<192x64xf32>, vector<64x32xf32>, vector<192x32xf32> -> vector<192x32xf32>
    %c0_34 = arith.constant 0 : index
    %c0_35 = arith.constant 0 : index
    %c0_36 = arith.constant 0 : index
    %33 = vector.load %arg5[%c0_34, %c0_35, %c0_36] : memref<2x96x192xf32, #tpu.memory_space<vmem>>, vector<1x96x192xf32>
    %34 = vector.shape_cast %33 : vector<1x96x192xf32> to vector<96x192xf32>
    %cst_37 = arith.constant dense<0.000000e+00> : vector<96x32xf32>
    %35 = tpu.matmul %34, %29, %cst_37 {dimension_numbers = #tpu.dot_dimension_numbers<[1], [0], [0], [1], [0, 0, 1, 1], [], []>} : vector<96x192xf32>, vector<192x32xf32>, vector<96x32xf32> -> vector<96x32xf32>
    %c0_38 = arith.constant 0 : index
    %c0_39 = arith.constant 0 : index
    %c0_40 = arith.constant 0 : index
    %36 = vector.load %arg5[%c0_38, %c0_39, %c0_40] : memref<2x96x192xf32, #tpu.memory_space<vmem>>, vector<1x96x192xf32>
    %37 = vector.shape_cast %36 : vector<1x96x192xf32> to vector<96x192xf32>
    %cst_41 = arith.constant dense<0.000000e+00> : vector<96x32xf32>
    %38 = tpu.matmul %37, %32, %cst_41 {dimension_numbers = #tpu.dot_dimension_numbers<[1], [0], [0], [1], [0, 0, 1, 1], [], []>} : vector<96x192xf32>, vector<192x32xf32>, vector<96x32xf32> -> vector<96x32xf32>
    %c1_42 = arith.constant 1 : index
    %c0_43 = arith.constant 0 : index
    %c0_44 = arith.constant 0 : index
    %39 = vector.load %arg5[%c1_42, %c0_43, %c0_44] : memref<2x96x192xf32, #tpu.memory_space<vmem>>, vector<1x96x192xf32>
    %40 = vector.shape_cast %39 : vector<1x96x192xf32> to vector<96x192xf32>
    %cst_45 = arith.constant dense<0.000000e+00> : vector<96x32xf32>
    %41 = tpu.matmul %40, %29, %cst_45 {dimension_numbers = #tpu.dot_dimension_numbers<[1], [0], [0], [1], [0, 0, 1, 1], [], []>} : vector<96x192xf32>, vector<192x32xf32>, vector<96x32xf32> -> vector<96x32xf32>
    %c1_46 = arith.constant 1 : index
    %c0_47 = arith.constant 0 : index
    %c0_48 = arith.constant 0 : index
    %42 = vector.load %arg5[%c1_46, %c0_47, %c0_48] : memref<2x96x192xf32, #tpu.memory_space<vmem>>, vector<1x96x192xf32>
    %43 = vector.shape_cast %42 : vector<1x96x192xf32> to vector<96x192xf32>
    %cst_49 = arith.constant dense<0.000000e+00> : vector<96x32xf32>
    %44 = tpu.matmul %43, %32, %cst_49 {dimension_numbers = #tpu.dot_dimension_numbers<[1], [0], [0], [1], [0, 0, 1, 1], [], []>} : vector<96x192xf32>, vector<192x32xf32>, vector<96x32xf32> -> vector<96x32xf32>
    %45 = arith.maximumf %35, %38 : vector<96x32xf32>
    %46 = arith.maximumf %41, %44 : vector<96x32xf32>
    %47 = arith.maximumf %45, %46 : vector<96x32xf32>
    %c0_50 = arith.constant 0 : index
    %c0_51 = arith.constant 0 : index
    %c0_52 = arith.constant 0 : index
    %48 = vector.load %arg8[%c0_50, %c0_51, %c0_52] : memref<5x32x30xf32, #tpu.memory_space<vmem>>, vector<1x32x30xf32>
    %49 = vector.shape_cast %48 : vector<1x32x30xf32> to vector<32x30xf32>
    %cst_53 = arith.constant dense<0.000000e+00> : vector<96x30xf32>
    %50 = tpu.matmul %47, %49, %cst_53 {dimension_numbers = #tpu.dot_dimension_numbers<[1], [0], [0], [1], [0, 0, 1, 1], [], []>} : vector<96x32xf32>, vector<32x30xf32>, vector<96x30xf32> -> vector<96x30xf32>
    %c0_54 = arith.constant 0 : index
    %c0_55 = arith.constant 0 : index
    %c0_56 = arith.constant 0 : index
    %51 = vector.load %arg7[%c0_54, %c0_55, %c0_56] : memref<5x180x96xf32, #tpu.memory_space<vmem>>, vector<1x180x96xf32>
    %52 = vector.shape_cast %51 : vector<1x180x96xf32> to vector<180x96xf32>
    %cst_57 = arith.constant dense<0.000000e+00> : vector<180x30xf32>
    %53 = tpu.matmul %52, %50, %cst_57 {dimension_numbers = #tpu.dot_dimension_numbers<[1], [0], [0], [1], [0, 0, 1, 1], [], []>} : vector<180x96xf32>, vector<96x30xf32>, vector<180x30xf32> -> vector<180x30xf32>
    %c1_58 = arith.constant 1 : index
    %c0_59 = arith.constant 0 : index
    %c0_60 = arith.constant 0 : index
    %54 = vector.load %arg8[%c1_58, %c0_59, %c0_60] : memref<5x32x30xf32, #tpu.memory_space<vmem>>, vector<1x32x30xf32>
    %55 = vector.shape_cast %54 : vector<1x32x30xf32> to vector<32x30xf32>
    %cst_61 = arith.constant dense<0.000000e+00> : vector<96x30xf32>
    %56 = tpu.matmul %47, %55, %cst_61 {dimension_numbers = #tpu.dot_dimension_numbers<[1], [0], [0], [1], [0, 0, 1, 1], [], []>} : vector<96x32xf32>, vector<32x30xf32>, vector<96x30xf32> -> vector<96x30xf32>
    %c1_62 = arith.constant 1 : index
    %c0_63 = arith.constant 0 : index
    %c0_64 = arith.constant 0 : index
    %57 = vector.load %arg7[%c1_62, %c0_63, %c0_64] : memref<5x180x96xf32, #tpu.memory_space<vmem>>, vector<1x180x96xf32>
    %58 = vector.shape_cast %57 : vector<1x180x96xf32> to vector<180x96xf32>
    %cst_65 = arith.constant dense<0.000000e+00> : vector<180x30xf32>
    %59 = tpu.matmul %58, %56, %cst_65 {dimension_numbers = #tpu.dot_dimension_numbers<[1], [0], [0], [1], [0, 0, 1, 1], [], []>} : vector<180x96xf32>, vector<96x30xf32>, vector<180x30xf32> -> vector<180x30xf32>
    %60 = arith.addf %53, %59 : vector<180x30xf32>
    %c2_66 = arith.constant 2 : index
    %c0_67 = arith.constant 0 : index
    %c0_68 = arith.constant 0 : index
    %61 = vector.load %arg8[%c2_66, %c0_67, %c0_68] : memref<5x32x30xf32, #tpu.memory_space<vmem>>, vector<1x32x30xf32>
    %62 = vector.shape_cast %61 : vector<1x32x30xf32> to vector<32x30xf32>
    %cst_69 = arith.constant dense<0.000000e+00> : vector<96x30xf32>
    %63 = tpu.matmul %47, %62, %cst_69 {dimension_numbers = #tpu.dot_dimension_numbers<[1], [0], [0], [1], [0, 0, 1, 1], [], []>} : vector<96x32xf32>, vector<32x30xf32>, vector<96x30xf32> -> vector<96x30xf32>
    %c2_70 = arith.constant 2 : index
    %c0_71 = arith.constant 0 : index
    %c0_72 = arith.constant 0 : index
    %64 = vector.load %arg7[%c2_70, %c0_71, %c0_72] : memref<5x180x96xf32, #tpu.memory_space<vmem>>, vector<1x180x96xf32>
    %65 = vector.shape_cast %64 : vector<1x180x96xf32> to vector<180x96xf32>
    %cst_73 = arith.constant dense<0.000000e+00> : vector<180x30xf32>
    %66 = tpu.matmul %65, %63, %cst_73 {dimension_numbers = #tpu.dot_dimension_numbers<[1], [0], [0], [1], [0, 0, 1, 1], [], []>} : vector<180x96xf32>, vector<96x30xf32>, vector<180x30xf32> -> vector<180x30xf32>
    %67 = arith.addf %60, %66 : vector<180x30xf32>
    %c3 = arith.constant 3 : index
    %c0_74 = arith.constant 0 : index
    %c0_75 = arith.constant 0 : index
    %68 = vector.load %arg8[%c3, %c0_74, %c0_75] : memref<5x32x30xf32, #tpu.memory_space<vmem>>, vector<1x32x30xf32>
    %69 = vector.shape_cast %68 : vector<1x32x30xf32> to vector<32x30xf32>
    %cst_76 = arith.constant dense<0.000000e+00> : vector<96x30xf32>
    %70 = tpu.matmul %47, %69, %cst_76 {dimension_numbers = #tpu.dot_dimension_numbers<[1], [0], [0], [1], [0, 0, 1, 1], [], []>} : vector<96x32xf32>, vector<32x30xf32>, vector<96x30xf32> -> vector<96x30xf32>
    %c3_77 = arith.constant 3 : index
    %c0_78 = arith.constant 0 : index
    %c0_79 = arith.constant 0 : index
    %71 = vector.load %arg7[%c3_77, %c0_78, %c0_79] : memref<5x180x96xf32, #tpu.memory_space<vmem>>, vector<1x180x96xf32>
    %72 = vector.shape_cast %71 : vector<1x180x96xf32> to vector<180x96xf32>
    %cst_80 = arith.constant dense<0.000000e+00> : vector<180x30xf32>
    %73 = tpu.matmul %72, %70, %cst_80 {dimension_numbers = #tpu.dot_dimension_numbers<[1], [0], [0], [1], [0, 0, 1, 1], [], []>} : vector<180x96xf32>, vector<96x30xf32>, vector<180x30xf32> -> vector<180x30xf32>
    %74 = arith.addf %67, %73 : vector<180x30xf32>
    %c4 = arith.constant 4 : index
    %c0_81 = arith.constant 0 : index
    %c0_82 = arith.constant 0 : index
    %75 = vector.load %arg8[%c4, %c0_81, %c0_82] : memref<5x32x30xf32, #tpu.memory_space<vmem>>, vector<1x32x30xf32>
    %76 = vector.shape_cast %75 : vector<1x32x30xf32> to vector<32x30xf32>
    %cst_83 = arith.constant dense<0.000000e+00> : vector<96x30xf32>
    %77 = tpu.matmul %47, %76, %cst_83 {dimension_numbers = #tpu.dot_dimension_numbers<[1], [0], [0], [1], [0, 0, 1, 1], [], []>} : vector<96x32xf32>, vector<32x30xf32>, vector<96x30xf32> -> vector<96x30xf32>
    %c4_84 = arith.constant 4 : index
    %c0_85 = arith.constant 0 : index
    %c0_86 = arith.constant 0 : index
    %78 = vector.load %arg7[%c4_84, %c0_85, %c0_86] : memref<5x180x96xf32, #tpu.memory_space<vmem>>, vector<1x180x96xf32>
    %79 = vector.shape_cast %78 : vector<1x180x96xf32> to vector<180x96xf32>
    %cst_87 = arith.constant dense<0.000000e+00> : vector<180x30xf32>
    %80 = tpu.matmul %79, %77, %cst_87 {dimension_numbers = #tpu.dot_dimension_numbers<[1], [0], [0], [1], [0, 0, 1, 1], [], []>} : vector<180x96xf32>, vector<96x30xf32>, vector<180x30xf32> -> vector<180x30xf32>
    %81 = arith.addf %74, %80 : vector<180x30xf32>
    %c0_88 = arith.constant 0 : index
    %c0_89 = arith.constant 0 : index
    %82 = vector.load %arg9[%c0_88, %c0_89] : memref<180x1xf32, #tpu.memory_space<vmem>>, vector<180x1xf32>
    %83 = vector.broadcast %82 : vector<180x1xf32> to vector<180x30xf32>
    %84 = arith.addf %81, %83 : vector<180x30xf32>
    %cst_90 = arith.constant 0.000000e+00 : f32
    %85 = vector.broadcast %cst_90 : f32 to vector<180x30xf32>
    %86 = arith.maximumf %84, %85 : vector<180x30xf32>
    %c0_91 = arith.constant 0 : index
    %c0_92 = arith.constant 0 : index
    %c0_93 = arith.constant 0 : index
    %87 = vector.load %arg11[%c0_91, %c0_92, %c0_93] : memref<5x30x14xf32, #tpu.memory_space<vmem>>, vector<1x30x14xf32>
    %88 = vector.shape_cast %87 : vector<1x30x14xf32> to vector<30x14xf32>
    %cst_94 = arith.constant dense<0.000000e+00> : vector<180x14xf32>
    %89 = tpu.matmul %86, %88, %cst_94 {dimension_numbers = #tpu.dot_dimension_numbers<[1], [0], [0], [1], [0, 0, 1, 1], [], []>} : vector<180x30xf32>, vector<30x14xf32>, vector<180x14xf32> -> vector<180x14xf32>
    %c0_95 = arith.constant 0 : index
    %c0_96 = arith.constant 0 : index
    %c0_97 = arith.constant 0 : index
    %90 = vector.load %arg10[%c0_95, %c0_96, %c0_97] : memref<5x168x180xf32, #tpu.memory_space<vmem>>, vector<1x168x180xf32>
    %91 = vector.shape_cast %90 : vector<1x168x180xf32> to vector<168x180xf32>
    %cst_98 = arith.constant dense<0.000000e+00> : vector<168x14xf32>
    %92 = tpu.matmul %91, %89, %cst_98 {dimension_numbers = #tpu.dot_dimension_numbers<[1], [0], [0], [1], [0, 0, 1, 1], [], []>} : vector<168x180xf32>, vector<180x14xf32>, vector<168x14xf32> -> vector<168x14xf32>
    %c1_99 = arith.constant 1 : index
    %c0_100 = arith.constant 0 : index
    %c0_101 = arith.constant 0 : index
    %93 = vector.load %arg11[%c1_99, %c0_100, %c0_101] : memref<5x30x14xf32, #tpu.memory_space<vmem>>, vector<1x30x14xf32>
    %94 = vector.shape_cast %93 : vector<1x30x14xf32> to vector<30x14xf32>
    %cst_102 = arith.constant dense<0.000000e+00> : vector<180x14xf32>
    %95 = tpu.matmul %86, %94, %cst_102 {dimension_numbers = #tpu.dot_dimension_numbers<[1], [0], [0], [1], [0, 0, 1, 1], [], []>} : vector<180x30xf32>, vector<30x14xf32>, vector<180x14xf32> -> vector<180x14xf32>
    %c1_103 = arith.constant 1 : index
    %c0_104 = arith.constant 0 : index
    %c0_105 = arith.constant 0 : index
    %96 = vector.load %arg10[%c1_103, %c0_104, %c0_105] : memref<5x168x180xf32, #tpu.memory_space<vmem>>, vector<1x168x180xf32>
    %97 = vector.shape_cast %96 : vector<1x168x180xf32> to vector<168x180xf32>
    %cst_106 = arith.constant dense<0.000000e+00> : vector<168x14xf32>
    %98 = tpu.matmul %97, %95, %cst_106 {dimension_numbers = #tpu.dot_dimension_numbers<[1], [0], [0], [1], [0, 0, 1, 1], [], []>} : vector<168x180xf32>, vector<180x14xf32>, vector<168x14xf32> -> vector<168x14xf32>
    %99 = arith.addf %92, %98 : vector<168x14xf32>
    %c2_107 = arith.constant 2 : index
    %c0_108 = arith.constant 0 : index
    %c0_109 = arith.constant 0 : index
    %100 = vector.load %arg11[%c2_107, %c0_108, %c0_109] : memref<5x30x14xf32, #tpu.memory_space<vmem>>, vector<1x30x14xf32>
    %101 = vector.shape_cast %100 : vector<1x30x14xf32> to vector<30x14xf32>
    %cst_110 = arith.constant dense<0.000000e+00> : vector<180x14xf32>
    %102 = tpu.matmul %86, %101, %cst_110 {dimension_numbers = #tpu.dot_dimension_numbers<[1], [0], [0], [1], [0, 0, 1, 1], [], []>} : vector<180x30xf32>, vector<30x14xf32>, vector<180x14xf32> -> vector<180x14xf32>
    %c2_111 = arith.constant 2 : index
    %c0_112 = arith.constant 0 : index
    %c0_113 = arith.constant 0 : index
    %103 = vector.load %arg10[%c2_111, %c0_112, %c0_113] : memref<5x168x180xf32, #tpu.memory_space<vmem>>, vector<1x168x180xf32>
    %104 = vector.shape_cast %103 : vector<1x168x180xf32> to vector<168x180xf32>
    %cst_114 = arith.constant dense<0.000000e+00> : vector<168x14xf32>
    %105 = tpu.matmul %104, %102, %cst_114 {dimension_numbers = #tpu.dot_dimension_numbers<[1], [0], [0], [1], [0, 0, 1, 1], [], []>} : vector<168x180xf32>, vector<180x14xf32>, vector<168x14xf32> -> vector<168x14xf32>
    %106 = arith.addf %99, %105 : vector<168x14xf32>
    %c3_115 = arith.constant 3 : index
    %c0_116 = arith.constant 0 : index
    %c0_117 = arith.constant 0 : index
    %107 = vector.load %arg11[%c3_115, %c0_116, %c0_117] : memref<5x30x14xf32, #tpu.memory_space<vmem>>, vector<1x30x14xf32>
    %108 = vector.shape_cast %107 : vector<1x30x14xf32> to vector<30x14xf32>
    %cst_118 = arith.constant dense<0.000000e+00> : vector<180x14xf32>
    %109 = tpu.matmul %86, %108, %cst_118 {dimension_numbers = #tpu.dot_dimension_numbers<[1], [0], [0], [1], [0, 0, 1, 1], [], []>} : vector<180x30xf32>, vector<30x14xf32>, vector<180x14xf32> -> vector<180x14xf32>
    %c3_119 = arith.constant 3 : index
    %c0_120 = arith.constant 0 : index
    %c0_121 = arith.constant 0 : index
    %110 = vector.load %arg10[%c3_119, %c0_120, %c0_121] : memref<5x168x180xf32, #tpu.memory_space<vmem>>, vector<1x168x180xf32>
    %111 = vector.shape_cast %110 : vector<1x168x180xf32> to vector<168x180xf32>
    %cst_122 = arith.constant dense<0.000000e+00> : vector<168x14xf32>
    %112 = tpu.matmul %111, %109, %cst_122 {dimension_numbers = #tpu.dot_dimension_numbers<[1], [0], [0], [1], [0, 0, 1, 1], [], []>} : vector<168x180xf32>, vector<180x14xf32>, vector<168x14xf32> -> vector<168x14xf32>
    %113 = arith.addf %106, %112 : vector<168x14xf32>
    %c4_123 = arith.constant 4 : index
    %c0_124 = arith.constant 0 : index
    %c0_125 = arith.constant 0 : index
    %114 = vector.load %arg11[%c4_123, %c0_124, %c0_125] : memref<5x30x14xf32, #tpu.memory_space<vmem>>, vector<1x30x14xf32>
    %115 = vector.shape_cast %114 : vector<1x30x14xf32> to vector<30x14xf32>
    %cst_126 = arith.constant dense<0.000000e+00> : vector<180x14xf32>
    %116 = tpu.matmul %86, %115, %cst_126 {dimension_numbers = #tpu.dot_dimension_numbers<[1], [0], [0], [1], [0, 0, 1, 1], [], []>} : vector<180x30xf32>, vector<30x14xf32>, vector<180x14xf32> -> vector<180x14xf32>
    %c4_127 = arith.constant 4 : index
    %c0_128 = arith.constant 0 : index
    %c0_129 = arith.constant 0 : index
    %117 = vector.load %arg10[%c4_127, %c0_128, %c0_129] : memref<5x168x180xf32, #tpu.memory_space<vmem>>, vector<1x168x180xf32>
    %118 = vector.shape_cast %117 : vector<1x168x180xf32> to vector<168x180xf32>
    %cst_130 = arith.constant dense<0.000000e+00> : vector<168x14xf32>
    %119 = tpu.matmul %118, %116, %cst_130 {dimension_numbers = #tpu.dot_dimension_numbers<[1], [0], [0], [1], [0, 0, 1, 1], [], []>} : vector<168x180xf32>, vector<180x14xf32>, vector<168x14xf32> -> vector<168x14xf32>
    %120 = arith.addf %113, %119 : vector<168x14xf32>
    %c0_131 = arith.constant 0 : index
    %c0_132 = arith.constant 0 : index
    %121 = vector.load %arg12[%c0_131, %c0_132] : memref<168x1xf32, #tpu.memory_space<vmem>>, vector<168x1xf32>
    %122 = vector.broadcast %121 : vector<168x1xf32> to vector<168x14xf32>
    %123 = arith.addf %120, %122 : vector<168x14xf32>
    %cst_133 = arith.constant 0.000000e+00 : f32
    %124 = vector.broadcast %cst_133 : f32 to vector<168x14xf32>
    %125 = arith.maximumf %123, %124 : vector<168x14xf32>
    %c0_134 = arith.constant 0 : index
    %c0_135 = arith.constant 0 : index
    %c0_136 = arith.constant 0 : index
    %126 = vector.load %arg14[%c0_134, %c0_135, %c0_136] : memref<3x14x7xf32, #tpu.memory_space<vmem>>, vector<1x14x7xf32>
    %127 = vector.shape_cast %126 : vector<1x14x7xf32> to vector<14x7xf32>
    %cst_137 = arith.constant dense<0.000000e+00> : vector<168x7xf32>
    %128 = tpu.matmul %125, %127, %cst_137 {dimension_numbers = #tpu.dot_dimension_numbers<[1], [0], [0], [1], [0, 0, 1, 1], [], []>} : vector<168x14xf32>, vector<14x7xf32>, vector<168x7xf32> -> vector<168x7xf32>
    %c0_138 = arith.constant 0 : index
    %c0_139 = arith.constant 0 : index
    %c0_140 = arith.constant 0 : index
    %129 = vector.load %arg13[%c0_138, %c0_139, %c0_140] : memref<3x168x168xf32, #tpu.memory_space<vmem>>, vector<1x168x168xf32>
    %130 = vector.shape_cast %129 : vector<1x168x168xf32> to vector<168x168xf32>
    %cst_141 = arith.constant dense<0.000000e+00> : vector<168x7xf32>
    %131 = tpu.matmul %130, %128, %cst_141 {dimension_numbers = #tpu.dot_dimension_numbers<[1], [0], [0], [1], [0, 0, 1, 1], [], []>} : vector<168x168xf32>, vector<168x7xf32>, vector<168x7xf32> -> vector<168x7xf32>
    %c1_142 = arith.constant 1 : index
    %c0_143 = arith.constant 0 : index
    %c0_144 = arith.constant 0 : index
    %132 = vector.load %arg14[%c1_142, %c0_143, %c0_144] : memref<3x14x7xf32, #tpu.memory_space<vmem>>, vector<1x14x7xf32>
    %133 = vector.shape_cast %132 : vector<1x14x7xf32> to vector<14x7xf32>
    %cst_145 = arith.constant dense<0.000000e+00> : vector<168x7xf32>
    %134 = tpu.matmul %125, %133, %cst_145 {dimension_numbers = #tpu.dot_dimension_numbers<[1], [0], [0], [1], [0, 0, 1, 1], [], []>} : vector<168x14xf32>, vector<14x7xf32>, vector<168x7xf32> -> vector<168x7xf32>
    %c1_146 = arith.constant 1 : index
    %c0_147 = arith.constant 0 : index
    %c0_148 = arith.constant 0 : index
    %135 = vector.load %arg13[%c1_146, %c0_147, %c0_148] : memref<3x168x168xf32, #tpu.memory_space<vmem>>, vector<1x168x168xf32>
    %136 = vector.shape_cast %135 : vector<1x168x168xf32> to vector<168x168xf32>
    %cst_149 = arith.constant dense<0.000000e+00> : vector<168x7xf32>
    %137 = tpu.matmul %136, %134, %cst_149 {dimension_numbers = #tpu.dot_dimension_numbers<[1], [0], [0], [1], [0, 0, 1, 1], [], []>} : vector<168x168xf32>, vector<168x7xf32>, vector<168x7xf32> -> vector<168x7xf32>
    %138 = arith.addf %131, %137 : vector<168x7xf32>
    %c2_150 = arith.constant 2 : index
    %c0_151 = arith.constant 0 : index
    %c0_152 = arith.constant 0 : index
    %139 = vector.load %arg14[%c2_150, %c0_151, %c0_152] : memref<3x14x7xf32, #tpu.memory_space<vmem>>, vector<1x14x7xf32>
    %140 = vector.shape_cast %139 : vector<1x14x7xf32> to vector<14x7xf32>
    %cst_153 = arith.constant dense<0.000000e+00> : vector<168x7xf32>
    %141 = tpu.matmul %125, %140, %cst_153 {dimension_numbers = #tpu.dot_dimension_numbers<[1], [0], [0], [1], [0, 0, 1, 1], [], []>} : vector<168x14xf32>, vector<14x7xf32>, vector<168x7xf32> -> vector<168x7xf32>
    %c2_154 = arith.constant 2 : index
    %c0_155 = arith.constant 0 : index
    %c0_156 = arith.constant 0 : index
    %142 = vector.load %arg13[%c2_154, %c0_155, %c0_156] : memref<3x168x168xf32, #tpu.memory_space<vmem>>, vector<1x168x168xf32>
    %143 = vector.shape_cast %142 : vector<1x168x168xf32> to vector<168x168xf32>
    %cst_157 = arith.constant dense<0.000000e+00> : vector<168x7xf32>
    %144 = tpu.matmul %143, %141, %cst_157 {dimension_numbers = #tpu.dot_dimension_numbers<[1], [0], [0], [1], [0, 0, 1, 1], [], []>} : vector<168x168xf32>, vector<168x7xf32>, vector<168x7xf32> -> vector<168x7xf32>
    %145 = arith.addf %138, %144 : vector<168x7xf32>
    %c0_158 = arith.constant 0 : index
    %c0_159 = arith.constant 0 : index
    %146 = vector.load %arg15[%c0_158, %c0_159] : memref<168x1xf32, #tpu.memory_space<vmem>>, vector<168x1xf32>
    %147 = vector.broadcast %146 : vector<168x1xf32> to vector<168x7xf32>
    %148 = arith.addf %145, %147 : vector<168x7xf32>
    %cst_160 = arith.constant 0.000000e+00 : f32
    %149 = vector.broadcast %cst_160 : f32 to vector<168x7xf32>
    %150 = arith.maximumf %148, %149 : vector<168x7xf32>
    %c0_161 = arith.constant 0 : index
    %c0_162 = arith.constant 0 : index
    %c0_163 = arith.constant 0 : index
    %151 = vector.load %arg16[%c0_161, %c0_162, %c0_163] : memref<1x168x7xf32, #tpu.memory_space<vmem>>, vector<1x168x7xf32>
    %152 = vector.shape_cast %151 : vector<1x168x7xf32> to vector<168x7xf32>
    %153 = vector.shape_cast %150 : vector<168x7xf32> to vector<1x168x7xf32>
    tpu.vector_store %arg16[%c0_161, %c0_162, %c0_163], %153 {strides = array<i32>} : memref<1x168x7xf32, #tpu.memory_space<vmem>>, vector<1x168x7xf32>,
    return
  }
  func.func @transform_0(%arg0: i32) -> (i32, i32, i32) {
    %c0_i32 = arith.constant 0 : i32
    %c0_i32_0 = arith.constant 0 : i32
    %c0_i32_1 = arith.constant 0 : i32
    return %arg0, %c0_i32, %c0_i32_0 : i32, i32, i32
  }
  func.func @transform_1(%arg0: i32) -> (i32, i32, i32) {
    %c0_i32 = arith.constant 0 : i32
    %c0_i32_0 = arith.constant 0 : i32
    %c0_i32_1 = arith.constant 0 : i32
    %c0_i32_2 = arith.constant 0 : i32
    return %c0_i32, %c0_i32_0, %c0_i32_1 : i32, i32, i32
  }
  func.func @transform_2(%arg0: i32) -> (i32, i32, i32) {
    %c0_i32 = arith.constant 0 : i32
    %c0_i32_0 = arith.constant 0 : i32
    %c0_i32_1 = arith.constant 0 : i32
    %c0_i32_2 = arith.constant 0 : i32
    return %c0_i32, %c0_i32_0, %c0_i32_1 : i32, i32, i32
  }
  func.func @transform_3(%arg0: i32) -> (i32, i32) {
    %c0_i32 = arith.constant 0 : i32
    %c0_i32_0 = arith.constant 0 : i32
    %c0_i32_1 = arith.constant 0 : i32
    return %c0_i32, %c0_i32_0 : i32, i32
  }
  func.func @transform_4(%arg0: i32) -> (i32, i32, i32) {
    %c0_i32 = arith.constant 0 : i32
    %c0_i32_0 = arith.constant 0 : i32
    %c0_i32_1 = arith.constant 0 : i32
    %c0_i32_2 = arith.constant 0 : i32
    return %c0_i32, %c0_i32_0, %c0_i32_1 : i32, i32, i32
  }
  func.func @transform_5(%arg0: i32) -> (i32, i32, i32) {
    %c0_i32 = arith.constant 0 : i32
    %c0_i32_0 = arith.constant 0 : i32
    %c0_i32_1 = arith.constant 0 : i32
    %c0_i32_2 = arith.constant 0 : i32
    return %c0_i32, %c0_i32_0, %c0_i32_1 : i32, i32, i32
  }
  func.func @transform_6(%arg0: i32) -> (i32, i32, i32) {
    %c0_i32 = arith.constant 0 : i32
    %c0_i32_0 = arith.constant 0 : i32
    %c0_i32_1 = arith.constant 0 : i32
    %c0_i32_2 = arith.constant 0 : i32
    return %c0_i32, %c0_i32_0, %c0_i32_1 : i32, i32, i32
  }
  func.func @transform_7(%arg0: i32) -> (i32, i32, i32) {
    %c0_i32 = arith.constant 0 : i32
    %c0_i32_0 = arith.constant 0 : i32
    %c0_i32_1 = arith.constant 0 : i32
    %c0_i32_2 = arith.constant 0 : i32
    return %c0_i32, %c0_i32_0, %c0_i32_1 : i32, i32, i32
  }
  func.func @transform_8(%arg0: i32) -> (i32, i32) {
    %c0_i32 = arith.constant 0 : i32
    %c0_i32_0 = arith.constant 0 : i32
    %c0_i32_1 = arith.constant 0 : i32
    return %c0_i32, %c0_i32_0 : i32, i32
  }
  func.func @transform_9(%arg0: i32) -> (i32, i32, i32) {
    %c0_i32 = arith.constant 0 : i32
    %c0_i32_0 = arith.constant 0 : i32
    %c0_i32_1 = arith.constant 0 : i32
    %c0_i32_2 = arith.constant 0 : i32
    return %c0_i32, %c0_i32_0, %c0_i32_1 : i32, i32, i32
  }
  func.func @transform_10(%arg0: i32) -> (i32, i32, i32) {
    %c0_i32 = arith.constant 0 : i32
    %c0_i32_0 = arith.constant 0 : i32
    %c0_i32_1 = arith.constant 0 : i32
    %c0_i32_2 = arith.constant 0 : i32
    return %c0_i32, %c0_i32_0, %c0_i32_1 : i32, i32, i32
  }
  func.func @transform_11(%arg0: i32) -> (i32, i32) {
    %c0_i32 = arith.constant 0 : i32
    %c0_i32_0 = arith.constant 0 : i32
    %c0_i32_1 = arith.constant 0 : i32
    return %c0_i32, %c0_i32_0 : i32, i32
  }
  func.func @transform_12(%arg0: i32) -> (i32, i32, i32) {
    %c0_i32 = arith.constant 0 : i32
    %c0_i32_0 = arith.constant 0 : i32
    %c0_i32_1 = arith.constant 0 : i32
    %c0_i32_2 = arith.constant 0 : i32
    return %c0_i32, %c0_i32_0, %c0_i32_1 : i32, i32, i32
  }
  func.func @transform_13(%arg0: i32) -> (i32, i32, i32) {
    %c0_i32 = arith.constant 0 : i32
    %c0_i32_0 = arith.constant 0 : i32
    %c0_i32_1 = arith.constant 0 : i32
    %c0_i32_2 = arith.constant 0 : i32
    return %c0_i32, %c0_i32_0, %c0_i32_1 : i32, i32, i32
  }
  func.func @transform_14(%arg0: i32) -> (i32, i32) {
    %c0_i32 = arith.constant 0 : i32
    %c0_i32_0 = arith.constant 0 : i32
    %c0_i32_1 = arith.constant 0 : i32
    return %c0_i32, %c0_i32_0 : i32, i32
  }
  func.func @transform_15(%arg0: i32) -> (i32, i32, i32) {
    %c0_i32 = arith.constant 0 : i32
    %c0_i32_0 = arith.constant 0 : i32
    %c0_i32_1 = arith.constant 0 : i32
    return %arg0, %c0_i32, %c0_i32_0 : i32, i32, i32
  }
}

</mosaic_0001>

<bundles_post_ra>
// kernel: net_forward.3
= control target key start
LH: loop header
LB: loop body
LE: loop exit
PB: predicated region body
PF: predicated region fallthrough
CT: control target
= control target key end

     0   :  { %s3127_s0 = inlined_call_operand.vmem [shape: f32[2,1176], index: 0, kind: input, shape index: {}]   ;;  %s3128_s1 = inlined_call_operand.vmem [shape: f32[1176,256], index: 1, kind: input, shape index: {}]   ;;  %s3129_s2 = inlined_call_operand.vmem [shape: f32[1,256], index: 2, kind: input, shape index: {}]   ;;  %s3130_s3 = inlined_call_operand.vmem [shape: f32[256,512], index: 3, kind: input, shape index: {}]   ;;  %s3131_s4 = inlined_call_operand.vmem [shape: f32[1,512], index: 4, kind: input, shape index: {}]   ;;  %s3132_s5 = inlined_call_operand.vmem [shape: f32[512,133], index: 5, kind: input, shape index: {}]   ;;  %s3133_s6 = inlined_call_operand.vmem [shape: f32[1,133], index: 6, kind: input, shape index: {}]   ;;  %s3134_s7 = inlined_call_operand.hbm [shape: f32[2,133], index: 7, kind: output, shape index: {}]  }
   0x1   :  { %v61_v0 = vld [vmem:[%s3128_s1 + $0xf8] sm:$0xff]  ;;  %v60_v1 = vld [vmem:[%s3128_s1 + $0xf0] sm:$0xff]  ;;  %v59_v2 = vld [vmem:[%s3128_s1 + $0xe8] sm:$0xff] }
   0x2   :  { %393 = vmatprep.subr.mxu0 %v61_v0  ;;  %v125_v3 = vld [vmem:[%s3128_s1 + $0x2f8] sm:$0xff]  ;;  %v58_v4 = vld [vmem:[%s3128_s1 + $0xe0] sm:$0xff]  ;;  %v124_v5 = vld [vmem:[%s3128_s1 + $0x2f0] sm:$0xff] }
   0x3   :  { %394 = vmatpush1.msra.mxu0 %v60_v1  ;;  %464 = vmatprep.subr.mxu1 %v125_v3  ;;  %v57_v6 = vld [vmem:[%s3128_s1 + $0xd8] sm:$0xff]  ;;  %v123_v7 = vld [vmem:[%s3128_s1 + $0x2e8] sm:$0xff]  ;;  %v56_v8 = vld [vmem:[%s3128_s1 + $0xd0] sm:$0xff] }
   0x4   :  { %395 = vmatprep.subr.mxu0 %v59_v2  ;;  %465 = vmatpush1.msra.mxu1 %v124_v5  ;;  %v122_v9 = vld [vmem:[%s3128_s1 + $0x2e0] sm:$0xff]  ;;  %v121_v10 = vld [vmem:[%s3128_s1 + $0x2d8] sm:$0xff]  ;;  %v55_v11 = vld [vmem:[%s3128_s1 + $0xc8] sm:$0xff] }
   0x5   :  { %396 = vmatpush1.msra.mxu0 %v58_v4  ;;  %466 = vmatprep.subr.mxu1 %v123_v7  ;;  %v120_v12 = vld [vmem:[%s3128_s1 + $0x2d0] sm:$0xff]  ;;  %v54_v13 = vld [vmem:[%s3128_s1 + $0xc0] sm:$0xff]  ;;  %v119_v14 = vld [vmem:[%s3128_s1 + $0x2c8] sm:$0xff] }
   0x6   :  { %397 = vmatprep.subr.mxu0 %v57_v6  ;;  %467 = vmatpush1.msra.mxu1 %v122_v9  ;;  %v53_v15 = vld [vmem:[%s3128_s1 + $0xb8] sm:$0xff]  ;;  %v118_v16 = vld [vmem:[%s3128_s1 + $0x2c0] sm:$0xff]  ;;  %v52_v17 = vld [vmem:[%s3128_s1 + $0xb0] sm:$0xff] }
   0x7   :  { %398 = vmatpush1.msra.mxu0 %v56_v8  ;;  %468 = vmatprep.subr.mxu1 %v121_v10  ;;  %v117_v18 = vld [vmem:[%s3128_s1 + $0x2b8] sm:$0xff]  ;;  %v51_v19 = vld [vmem:[%s3128_s1 + $0xa8] sm:$0xff]  ;;  %v116_v20 = vld [vmem:[%s3128_s1 + $0x2b0] sm:$0xff] }
   0x8   :  { %399 = vmatprep.subr.mxu0 %v55_v11  ;;  %469 = vmatpush1.msra.mxu1 %v120_v12  ;;  %v50_v21 = vld [vmem:[%s3128_s1 + $0xa0] sm:$0xff]  ;;  %v115_v22 = vld [vmem:[%s3128_s1 + $0x2a8] sm:$0xff]  ;;  %v49_v23 = vld [vmem:[%s3128_s1 + $0x98] sm:$0xff] }
   0x9   :  { %400 = vmatpush1.msra.mxu0 %v54_v13  ;;  %470 = vmatprep.subr.mxu1 %v119_v14  ;;  %v114_v24 = vld [vmem:[%s3128_s1 + $0x2a0] sm:$0xff]  ;;  %v48_v25 = vld [vmem:[%s3128_s1 + $0x90] sm:$0xff]  ;;  %v113_v26 = vld [vmem:[%s3128_s1 + $0x298] sm:$0xff] }
   0xa   :  { %401 = vmatprep.subr.mxu0 %v53_v15  ;;  %471 = vmatpush1.msra.mxu1 %v118_v16  ;;  %v47_v27 = vld [vmem:[%s3128_s1 + $0x88] sm:$0xff]  ;;  %v112_v28 = vld [vmem:[%s3128_s1 + $0x290] sm:$0xff]  ;;  %v46_v29 = vld [vmem:[%s3128_s1 + $0x80] sm:$0xff] }
   0xb   :  { %402 = vmatpush1.msra.mxu0 %v52_v17  ;;  %472 = vmatprep.subr.mxu1 %v117_v18  ;;  %v111_v30 = vld [vmem:[%s3128_s1 + $0x288] sm:$0xff]  ;;  %v45_v31 = vld [vmem:[%s3128_s1 + $0x78] sm:$0xff]  ;;  %v110_v32 = vld [vmem:[%s3128_s1 + $0x280] sm:$0xff] }
   0xc   :  { %403 = vmatprep.subr.mxu0 %v51_v19  ;;  %473 = vmatpush1.msra.mxu1 %v116_v20  ;;  %v44_v33 = vld [vmem:[%s3128_s1 + $0x70] sm:$0xff]  ;;  %v109_v34 = vld [vmem:[%s3128_s1 + $0x278] sm:$0xff]  ;;  %v43_v35 = vld [vmem:[%s3128_s1 + $0x68] sm:$0xff] }
   0xd   :  { %404 = vmatpush1.msra.mxu0 %v50_v21  ;;  %474 = vmatprep.subr.mxu1 %v115_v22  ;;  %v108_v36 = vld [vmem:[%s3128_s1 + $0x270] sm:$0xff]  ;;  %v42_v37 = vld [vmem:[%s3128_s1 + $0x60] sm:$0xff]  ;;  %v107_v38 = vld [vmem:[%s3128_s1 + $0x268] sm:$0xff] }
   0xe   :  { %405 = vmatprep.subr.mxu0 %v49_v23  ;;  %475 = vmatpush1.msra.mxu1 %v114_v24  ;;  %v41_v39 = vld [vmem:[%s3128_s1 + $0x58] sm:$0xff]  ;;  %v106_v40 = vld [vmem:[%s3128_s1 + $0x260] sm:$0xff]  ;;  %v40_v41 = vld [vmem:[%s3128_s1 + $0x50] sm:$0xff] }
   0xf   :  { %406 = vmatpush1.msra.mxu0 %v48_v25  ;;  %476 = vmatprep.subr.mxu1 %v113_v26  ;;  %v105_v42 = vld [vmem:[%s3128_s1 + $0x258] sm:$0xff]  ;;  %v39_v43 = vld [vmem:[%s3128_s1 + $0x48] sm:$0xff]  ;;  %v104_v44 = vld [vmem:[%s3128_s1 + $0x250] sm:$0xff] }
  0x10   :  { %407 = vmatprep.subr.mxu0 %v47_v27  ;;  %477 = vmatpush1.msra.mxu1 %v112_v28  ;;  %v38_v45 = vld [vmem:[%s3128_s1 + $0x40] sm:$0xff]  ;;  %v103_v46 = vld [vmem:[%s3128_s1 + $0x248] sm:$0xff]  ;;  %v37_v47 = vld [vmem:[%s3128_s1 + $0x38] sm:$0xff]  ;;  %v326_v27 = vlaneseq  ;;  %v1385_v28 = vmov 1983009808  }
  0x11   :  { %408 = vmatpush1.msra.mxu0 %v46_v29  ;;  %478 = vmatprep.subr.mxu1 %v111_v30  ;;  %v102_v48 = vld [vmem:[%s3128_s1 + $0x240] sm:$0xff]  ;;  %v36_v49 = vld [vmem:[%s3128_s1 + $0x30] sm:$0xff]  ;;  %v101_v50 = vld [vmem:[%s3128_s1 + $0x238] sm:$0xff]  ;;  %v341_v29 = vunpack.c.l.s4 %v1385_v28 }
  0x12   :  { %409 = vmatprep.subr.mxu0 %v45_v31  ;;  %479 = vmatpush1.msra.mxu1 %v110_v32  ;;  %v35_v51 = vld [vmem:[%s3128_s1 + $0x28] sm:$0xff]  ;;  %v100_v52 = vld [vmem:[%s3128_s1 + $0x230] sm:$0xff]  ;;  %v34_v53 = vld [vmem:[%s3128_s1 + $0x20] sm:$0xff] }
  0x13   :  { %410 = vmatpush1.msra.mxu0 %v44_v33  ;;  %480 = vmatprep.subr.mxu1 %v109_v34  ;;  %v99_v54 = vld [vmem:[%s3128_s1 + $0x228] sm:$0xff]  ;;  %v33_v55 = vld [vmem:[%s3128_s1 + $0x18] sm:$0xff]  ;;  %v98_v56 = vld [vmem:[%s3128_s1 + $0x220] sm:$0xff] }
  0x14   :  { %411 = vmatprep.subr.mxu0 %v43_v35  ;;  %481 = vmatpush1.msra.mxu1 %v108_v36  ;;  %v32_v57 = vld [vmem:[%s3128_s1 + $0x10] sm:$0xff]  ;;  %v97_v58 = vld [vmem:[%s3128_s1 + $0x218] sm:$0xff]  ;;  %v31_v59 = vld [vmem:[%s3128_s1 + $0x8] sm:$0xff] }
  0x15   :  { %412 = vmatpush1.msra.mxu0 %v42_v37  ;;  %482 = vmatprep.subr.mxu1 %v107_v38  ;;  %v96_v60 = vld [vmem:[%s3128_s1 + $0x210] sm:$0xff]  ;;  %v30_v61 = vld [vmem:[%s3128_s1] sm:$0xff]  ;;  %v95_v62 = vld [vmem:[%s3128_s1 + $0x208] sm:$0xff]  ;;  %v1724_v38 = vshrl.u32 %v326_v27, 7 }
  0x16   :  { %413 = vmatprep.subr.mxu0 %v41_v39  ;;  %483 = vmatpush1.msra.mxu1 %v106_v40  ;;  %v93_v63 = vld [vmem:[%s3128_s1 + $0x1f8] sm:$0xff]  ;;  %v94_v0 = vld [vmem:[%s3128_s1 + $0x200] sm:$0xff]  ;;  %v92_v1 = vld [vmem:[%s3128_s1 + $0x1f0] sm:$0xff]  ;;  %v342_v39 = vunpack.c.0.s8 %v341_v29 }
  0x17   :  { %414 = vmatpush1.msra.mxu0 %v40_v41  ;;  %484 = vmatprep.subr.mxu1 %v105_v42  ;;  %v157_v2 = vld [vmem:[%s3128_s1 + $0x3f8] sm:$0xff]  ;;  %v91_v3 = vld [vmem:[%s3128_s1 + $0x1e8] sm:$0xff]  ;;  %v156_v4 = vld [vmem:[%s3128_s1 + $0x3f0] sm:$0xff] }
  0x18   :  { %415 = vmatprep.subr.mxu0 %v39_v43  ;;  %485 = vmatpush1.msra.mxu1 %v104_v44  ;;  %v90_v5 = vld [vmem:[%s3128_s1 + $0x1e0] sm:$0xff]  ;;  %v155_v6 = vld [vmem:[%s3128_s1 + $0x3e8] sm:$0xff]  ;;  %v89_v7 = vld [vmem:[%s3128_s1 + $0x1d8] sm:$0xff] }
  0x19   :  { %416 = vmatpush1.msra.mxu0 %v38_v45  ;;  %486 = vmatprep.subr.mxu1 %v103_v46  ;;  %v154_v8 = vld [vmem:[%s3128_s1 + $0x3e0] sm:$0xff]  ;;  %v88_v9 = vld [vmem:[%s3128_s1 + $0x1d0] sm:$0xff]  ;;  %v153_v10 = vld [vmem:[%s3128_s1 + $0x3d8] sm:$0xff] }
  0x1a   :  { %417 = vmatprep.subr.mxu0 %v37_v47  ;;  %487 = vmatpush1.msra.mxu1 %v102_v48  ;;  %v87_v11 = vld [vmem:[%s3128_s1 + $0x1c8] sm:$0xff]  ;;  %v152_v12 = vld [vmem:[%s3128_s1 + $0x3d0] sm:$0xff]  ;;  %v86_v13 = vld [vmem:[%s3128_s1 + $0x1c0] sm:$0xff]  ;;  %v1751_v48 = vsub.s32 %v342_v39, %v1724_v38 }
  0x1b   :  { %418 = vmatpush1.msra.mxu0 %v36_v49  ;;  %488 = vmatprep.subr.mxu1 %v101_v50  ;;  %v151_v14 = vld [vmem:[%s3128_s1 + $0x3c8] sm:$0xff]  ;;  %v85_v15 = vld [vmem:[%s3128_s1 + $0x1b8] sm:$0xff]  ;;  %v150_v16 = vld [vmem:[%s3128_s1 + $0x3c0] sm:$0xff] }
  0x1c   :  { %419 = vmatprep.subr.mxu0 %v35_v51  ;;  %489 = vmatpush1.msra.mxu1 %v100_v52  ;;  %v84_v17 = vld [vmem:[%s3128_s1 + $0x1b0] sm:$0xff]  ;;  %v149_v18 = vld [vmem:[%s3128_s1 + $0x3b8] sm:$0xff]  ;;  %v83_v19 = vld [vmem:[%s3128_s1 + $0x1a8] sm:$0xff] }
  0x1d   :  { %420 = vmatpush1.msra.mxu0 %v34_v53  ;;  %490 = vmatprep.subr.mxu1 %v99_v54  ;;  %v148_v20 = vld [vmem:[%s3128_s1 + $0x3b0] sm:$0xff]  ;;  %v82_v21 = vld [vmem:[%s3128_s1 + $0x1a0] sm:$0xff]  ;;  %v147_v22 = vld [vmem:[%s3128_s1 + $0x3a8] sm:$0xff] }
  0x1e   :  { %421 = vmatprep.subr.mxu0 %v33_v55  ;;  %491 = vmatpush1.msra.mxu1 %v98_v56  ;;  %v81_v23 = vld [vmem:[%s3128_s1 + $0x198] sm:$0xff]  ;;  %v146_v24 = vld [vmem:[%s3128_s1 + $0x3a0] sm:$0xff]  ;;  %v80_v25 = vld [vmem:[%s3128_s1 + $0x190] sm:$0xff] }
  0x1f   :  { %422 = vmatpush1.msra.mxu0 %v32_v57  ;;  %492 = vmatprep.subr.mxu1 %v97_v58  ;;  %v145_v26 = vld [vmem:[%s3128_s1 + $0x398] sm:$0xff]  ;;  %v79_v30 = vld [vmem:[%s3128_s1 + $0x188] sm:$0xff]  ;;  %v144_v31 = vld [vmem:[%s3128_s1 + $0x390] sm:$0xff] }
  0x20   :  { %423 = vmatprep.subr.mxu0 %v31_v59  ;;  %493 = vmatpush1.msra.mxu1 %v96_v60  ;;  %v78_v32 = vld [vmem:[%s3128_s1 + $0x180] sm:$0xff]  ;;  %v143_v33 = vld [vmem:[%s3128_s1 + $0x388] sm:$0xff]  ;;  %v77_v34 = vld [vmem:[%s3128_s1 + $0x178] sm:$0xff] }
  0x21   :  { %424 = vmatpush1.msra.mxu0 %v30_v61  ;;  %494 = vmatprep.subr.mxu1 %v95_v62  ;;  %v142_v35 = vld [vmem:[%s3128_s1 + $0x380] sm:$0xff]  ;;  %v76_v36 = vld [vmem:[%s3128_s1 + $0x170] sm:$0xff]  ;;  %v141_v37 = vld [vmem:[%s3128_s1 + $0x378] sm:$0xff] }
  0x22   :  { %425 = vmatprep.subr.mxu0 %v93_v63  ;;  %495 = vmatpush1.msra.mxu1 %v94_v0  ;;  %v75_v40 = vld [vmem:[%s3128_s1 + $0x168] sm:$0xff]  ;;  %v140_v41 = vld [vmem:[%s3128_s1 + $0x370] sm:$0xff]  ;;  %v74_v42 = vld [vmem:[%s3128_s1 + $0x160] sm:$0xff] }
  0x23   :  { %426 = vmatpush2.msra.mxu0 %v92_v1  ;;  %496 = vmatprep.subr.mxu1 %v157_v2  ;;  %v139_v43 = vld [vmem:[%s3128_s1 + $0x368] sm:$0xff]  ;;  %v73_v44 = vld [vmem:[%s3128_s1 + $0x158] sm:$0xff]  ;;  %v138_v45 = vld [vmem:[%s3128_s1 + $0x360] sm:$0xff] }
  0x24   :  { %427 = vmatprep.subr.mxu0 %v91_v3  ;;  %497 = vmatpush2.msra.mxu1 %v156_v4  ;;  %v72_v46 = vld [vmem:[%s3128_s1 + $0x150] sm:$0xff]  ;;  %v137_v47 = vld [vmem:[%s3128_s1 + $0x358] sm:$0xff]  ;;  %v71_v49 = vld [vmem:[%s3128_s1 + $0x148] sm:$0xff] }
  0x25   :  { %428 = vmatpush2.msra.mxu0 %v90_v5  ;;  %498 = vmatprep.subr.mxu1 %v155_v6  ;;  %v136_v50 = vld [vmem:[%s3128_s1 + $0x350] sm:$0xff]  ;;  %v27_v51 = vld [vmem:[%s3127_s0] sm:$0xff]  ;;  %v135_v53 = vld [vmem:[%s3128_s1 + $0x348] sm:$0xff] }
  0x26   :  { %429 = vmatprep.subr.mxu0 %v89_v7  ;;  %499 = vmatpush2.msra.mxu1 %v154_v8  ;;  %v70_v52 = vld [vmem:[%s3128_s1 + $0x140] sm:$0xff]  ;;  %v69_v54 = vld [vmem:[%s3128_s1 + $0x138] sm:$0xff]  ;;  %v68_v56 = vld [vmem:[%s3128_s1 + $0x130] sm:$0xff]  ;;  %v346_v58 = vrot.slane %v27_v51, %v1751_v48  ;;  %v339_v59 = vcombine.high %v27_v51, %v27_v51 }
  0x27   :  { %430 = vmatpush2.msra.mxu0 %v88_v9  ;;  %500 = vmatprep.subr.mxu1 %v153_v10  ;;  %v134_v55 = vld [vmem:[%s3128_s1 + $0x340] sm:$0xff]  ;;  %v133_v57 = vld [vmem:[%s3128_s1 + $0x338] sm:$0xff]  ;;  %v67_v60 = vld [vmem:[%s3128_s1 + $0x128] sm:$0xff] }
  0x28   :  { %431 = vmatprep.subr.mxu0 %v87_v11  ;;  %501 = vmatpush2.msra.mxu1 %v152_v12  ;;  %v132_v61 = vld [vmem:[%s3128_s1 + $0x330] sm:$0xff]  ;;  %v66_v62 = vld [vmem:[%s3128_s1 + $0x120] sm:$0xff]  ;;  %v131_v63 = vld [vmem:[%s3128_s1 + $0x328] sm:$0xff]  ;;  %v354_v4 = vcombine.high %v346_v58, %v346_v58  ;;  %v353_v5 = vrot.slane %v339_v59, %v1751_v48 }
  0x29   :  { %432 = vmatpush2.msra.mxu0 %v86_v13  ;;  %502 = vmatprep.subr.mxu1 %v151_v14  ;;  %v65_v0 = vld [vmem:[%s3128_s1 + $0x118] sm:$0xff]  ;;  %v130_v1 = vld [vmem:[%s3128_s1 + $0x320] sm:$0xff]  ;;  %v64_v2 = vld [vmem:[%s3128_s1 + $0x110] sm:$0xff] }
  0x2a   :  { %433 = vmatprep.subr.mxu0 %v85_v15  ;;  %503 = vmatpush2.msra.mxu1 %v150_v16  ;;  %v129_v3 = vld [vmem:[%s3128_s1 + $0x318] sm:$0xff]  ;;  %v63_v6 = vld [vmem:[%s3128_s1 + $0x108] sm:$0xff]  ;;  %v62_v7 = vld [vmem:[%s3128_s1 + $0x100] sm:$0xff]  ;;  %v355_v12 = vcombine.high %v353_v5, %v353_v5 }
  0x2b   :  { %434 = vmatpush2.msra.mxu0 %v84_v17  ;;  %504 = vmatprep.subr.mxu1 %v149_v18  ;;  %v128_v8 = vld [vmem:[%s3128_s1 + $0x310] sm:$0xff]  ;;  %v127_v9 = vld [vmem:[%s3128_s1 + $0x308] sm:$0xff]  ;;  %v189_v10 = vld [vmem:[%s3128_s1 + $0x4f8] sm:$0xff] }
  0x2c   :  { %435 = vmatprep.subr.mxu0 %v83_v19  ;;  %505 = vmatpush2.msra.mxu1 %v148_v20  ;;  %v126_v11 = vld [vmem:[%s3128_s1 + $0x300] sm:$0xff]  ;;  %v188_v13 = vld [vmem:[%s3128_s1 + $0x4f0] sm:$0xff]  ;;  %v187_v14 = vld [vmem:[%s3128_s1 + $0x4e8] sm:$0xff] }
  0x2d   :  { %436 = vmatpush2.msra.mxu0 %v82_v21  ;;  %506 = vmatprep.subr.mxu1 %v147_v22  ;;  %v253_v15 = vld [vmem:[%s3128_s1 + $0x6f8] sm:$0xff]  ;;  %v186_v16 = vld [vmem:[%s3128_s1 + $0x4e0] sm:$0xff]  ;;  %v252_v17 = vld [vmem:[%s3128_s1 + $0x6f0] sm:$0xff] }
  0x2e   :  { %437 = vmatprep.subr.mxu0 %v81_v23  ;;  %507 = vmatpush2.msra.mxu1 %v146_v24  ;;  %v185_v18 = vld [vmem:[%s3128_s1 + $0x4d8] sm:$0xff]  ;;  %v251_v19 = vld [vmem:[%s3128_s1 + $0x6e8] sm:$0xff]  ;;  %v184_v20 = vld [vmem:[%s3128_s1 + $0x4d0] sm:$0xff] }
  0x2f   :  { %438 = vmatpush2.msra.mxu0 %v80_v25  ;;  %508 = vmatprep.subr.mxu1 %v145_v26  ;;  %v250_v21 = vld [vmem:[%s3128_s1 + $0x6e0] sm:$0xff]  ;;  %v183_v22 = vld [vmem:[%s3128_s1 + $0x4c8] sm:$0xff]  ;;  %v249_v23 = vld [vmem:[%s3128_s1 + $0x6d8] sm:$0xff] }
  0x30   :  { %439 = vmatprep.subr.mxu0 %v79_v30  ;;  %509 = vmatpush2.msra.mxu1 %v144_v31  ;;  %v182_v24 = vld [vmem:[%s3128_s1 + $0x4c0] sm:$0xff]  ;;  %v248_v25 = vld [vmem:[%s3128_s1 + $0x6d0] sm:$0xff]  ;;  %v181_v26 = vld [vmem:[%s3128_s1 + $0x4b8] sm:$0xff] }
  0x31   :  { %440 = vmatpush2.msra.mxu0 %v78_v32  ;;  %510 = vmatprep.subr.mxu1 %v143_v33  ;;  %v247_v27 = vld [vmem:[%s3128_s1 + $0x6c8] sm:$0xff]  ;;  %v180_v28 = vld [vmem:[%s3128_s1 + $0x4b0] sm:$0xff]  ;;  %v246_v29 = vld [vmem:[%s3128_s1 + $0x6c0] sm:$0xff] }
  0x32   :  { %441 = vmatprep.subr.mxu0 %v77_v34  ;;  %511 = vmatpush2.msra.mxu1 %v142_v35  ;;  %v179_v30 = vld [vmem:[%s3128_s1 + $0x4a8] sm:$0xff]  ;;  %v245_v31 = vld [vmem:[%s3128_s1 + $0x6b8] sm:$0xff]  ;;  %v178_v32 = vld [vmem:[%s3128_s1 + $0x4a0] sm:$0xff] }
  0x33   :  { %442 = vmatpush2.msra.mxu0 %v76_v36  ;;  %512 = vmatprep.subr.mxu1 %v141_v37  ;;  %v244_v33 = vld [vmem:[%s3128_s1 + $0x6b0] sm:$0xff]  ;;  %v177_v34 = vld [vmem:[%s3128_s1 + $0x498] sm:$0xff]  ;;  %v243_v35 = vld [vmem:[%s3128_s1 + $0x6a8] sm:$0xff] }
  0x34   :  { %443 = vmatprep.subr.mxu0 %v75_v40  ;;  %513 = vmatpush2.msra.mxu1 %v140_v41  ;;  %v176_v36 = vld [vmem:[%s3128_s1 + $0x490] sm:$0xff]  ;;  %v242_v37 = vld [vmem:[%s3128_s1 + $0x6a0] sm:$0xff]  ;;  %v175_v39 = vld [vmem:[%s3128_s1 + $0x488] sm:$0xff] }
  0x35   :  { %444 = vmatpush2.msra.mxu0 %v74_v42  ;;  %514 = vmatprep.subr.mxu1 %v139_v43  ;;  %v241_v40 = vld [vmem:[%s3128_s1 + $0x698] sm:$0xff]  ;;  %v174_v41 = vld [vmem:[%s3128_s1 + $0x480] sm:$0xff]  ;;  %v240_v42 = vld [vmem:[%s3128_s1 + $0x690] sm:$0xff] }
  0x36   :  { %445 = vmatprep.subr.mxu0 %v73_v44  ;;  %515 = vmatpush2.msra.mxu1 %v138_v45  ;;  %v173_v43 = vld [vmem:[%s3128_s1 + $0x478] sm:$0xff]  ;;  %v239_v44 = vld [vmem:[%s3128_s1 + $0x688] sm:$0xff]  ;;  %v172_v45 = vld [vmem:[%s3128_s1 + $0x470] sm:$0xff] }
  0x37   :  { %446 = vmatpush2.msra.mxu0 %v72_v46  ;;  %516 = vmatprep.subr.mxu1 %v137_v47  ;;  %v238_v46 = vld [vmem:[%s3128_s1 + $0x680] sm:$0xff]  ;;  %v171_v47 = vld [vmem:[%s3128_s1 + $0x468] sm:$0xff]  ;;  %v236_v51 = vld [vmem:[%s3128_s1 + $0x670] sm:$0xff] }
  0x38   :  { %447 = vmatprep.subr.mxu0 %v71_v49  ;;  %517 = vmatpush2.msra.mxu1 %v136_v50  ;;  %v237_v49 = vld [vmem:[%s3128_s1 + $0x678] sm:$0xff]  ;;  %v170_v50 = vld [vmem:[%s3128_s1 + $0x460] sm:$0xff]  ;;  %v232_v59 = vld [vmem:[%s3128_s1 + $0x650] sm:$0xff] }
  0x39   :  { %448 = vmatpush2.msra.mxu0 %v70_v52  ;;  %518 = vmatprep.subr.mxu1 %v135_v53  ;;  %v169_v52 = vld [vmem:[%s3128_s1 + $0x458] sm:$0xff]  ;;  %v235_v53 = vld [vmem:[%s3128_s1 + $0x668] sm:$0xff] }
  0x3a   :  { %449 = vmatprep.subr.mxu0 %v69_v54  ;;  %519 = vmatpush2.msra.mxu1 %v134_v55  ;;  %v168_v54 = vld [vmem:[%s3128_s1 + $0x450] sm:$0xff]  ;;  %v234_v55 = vld [vmem:[%s3128_s1 + $0x660] sm:$0xff] }
  0x3b   :  { %450 = vmatpush2.msra.mxu0 %v68_v56  ;;  %520 = vmatprep.subr.mxu1 %v133_v57  ;;  %v167_v56 = vld [vmem:[%s3128_s1 + $0x448] sm:$0xff]  ;;  %v233_v57 = vld [vmem:[%s3128_s1 + $0x658] sm:$0xff] }
  0x3c   :  { %451 = vmatprep.subr.mxu0 %v67_v60  ;;  %521 = vmatpush2.msra.mxu1 %v132_v61  ;;  %v165_v60 = vld [vmem:[%s3128_s1 + $0x438] sm:$0xff]  ;;  %v231_v61 = vld [vmem:[%s3128_s1 + $0x648] sm:$0xff] }
  0x3d   :  { %452 = vmatpush2.msra.mxu0 %v66_v62  ;;  %522 = vmatprep.subr.mxu1 %v131_v63  ;;  %v164_v62 = vld [vmem:[%s3128_s1 + $0x430] sm:$0xff]  ;;  %v230_v63 = vld [vmem:[%s3128_s1 + $0x640] sm:$0xff] }
  0x3e   :  { %453 = vmatprep.subr.mxu0 %v65_v0  ;;  %523 = vmatpush2.msra.mxu1 %v130_v1  ;;  %v163_v0 = vld [vmem:[%s3128_s1 + $0x428] sm:$0xff]  ;;  %v229_v1 = vld [vmem:[%s3128_s1 + $0x638] sm:$0xff] }
  0x3f   :  { %454 = vmatpush2.msra.mxu0 %v64_v2  ;;  %524 = vmatprep.subr.mxu1 %v129_v3  ;;  %v162_v2 = vld [vmem:[%s3128_s1 + $0x420] sm:$0xff]  ;;  %v228_v3 = vld [vmem:[%s3128_s1 + $0x630] sm:$0xff] }
  0x40   :  { %455 = vmatprep.subr.mxu0 %v63_v6  ;;  %457 = vmatprep.mubr.f32.mxu0 %v354_v4  ;;  %v161_v4 = vld [vmem:[%s3128_s1 + $0x418] sm:$0xff]  ;;  %v160_v6 = vld [vmem:[%s3128_s1 + $0x410] sm:$0xff] }
  0x41   :  { %456 = vmatpush2.msra.mxu0 %v62_v7  ;;  %525 = vmatpush2.msra.mxu1 %v128_v8  ;;  %v226_v7 = vld [vmem:[%s3128_s1 + $0x620] sm:$0xff]  ;;  %v159_v8 = vld [vmem:[%s3128_s1 + $0x408] sm:$0xff] }
  0x42   :  { %458 = vmatmul.mubr.f32.vlgmr.msra.gmra.mxu0 %v346_v58  ;;  %526 = vmatprep.subr.mxu1 %v127_v9  ;;  %v166_v58 = vld [vmem:[%s3128_s1 + $0x440] sm:$0xff]  ;;  %v225_v9 = vld [vmem:[%s3128_s1 + $0x618] sm:$0xff] }
  0x43   :  { %535 = vmatprep.subr.mxu0 %v189_v10  ;;  %527 = vmatpush2.msra.mxu1 %v126_v11  ;;  %v158_v10 = vld [vmem:[%s3128_s1 + $0x400] sm:$0xff]  ;;  %v224_v11 = vld [vmem:[%s3128_s1 + $0x610] sm:$0xff] }
  0x44   :  { %528 = vmatprep.mubr.f32.mxu1 %v355_v12  ;;  %536 = vmatpush1.msra.mxu0 %v188_v13  ;;  %v221_v12 = vld [vmem:[%s3128_s1 + $0x5f8] sm:$0xff]  ;;  %v223_v13 = vld [vmem:[%s3128_s1 + $0x608] sm:$0xff] }
  0x45   :  { %529 = vmatmul.mubr.f32.vlgmr.msra.gmra.mxu1 %v353_v5  ;;  %537 = vmatprep.subr.mxu0 %v187_v14  ;;  %v227_v5 = vld [vmem:[%s3128_s1 + $0x628] sm:$0xff]  ;;  %v220_v14 = vld [vmem:[%s3128_s1 + $0x5f0] sm:$0xff] }
  0x46   :  { %606 = vmatprep.subr.mxu1 %v253_v15  ;;  %538 = vmatpush1.msra.mxu0 %v186_v16  ;;  %v222_v15 = vld [vmem:[%s3128_s1 + $0x600] sm:$0xff]  ;;  %v219_v16 = vld [vmem:[%s3128_s1 + $0x5e8] sm:$0xff] }
  0x47   :  { %607 = vmatpush1.msra.mxu1 %v252_v17  ;;  %539 = vmatprep.subr.mxu0 %v185_v18  ;;  %v285_v17 = vld [vmem:[%s3128_s1 + $0x7f8] sm:$0xff]  ;;  %v218_v18 = vld [vmem:[%s3128_s1 + $0x5e0] sm:$0xff] }
  0x48   :  { %608 = vmatprep.subr.mxu1 %v251_v19  ;;  %540 = vmatpush1.msra.mxu0 %v184_v20  ;;  %v284_v19 = vld [vmem:[%s3128_s1 + $0x7f0] sm:$0xff]  ;;  %v217_v20 = vld [vmem:[%s3128_s1 + $0x5d8] sm:$0xff] }
  0x49   :  { %609 = vmatpush1.msra.mxu1 %v250_v21  ;;  %541 = vmatprep.subr.mxu0 %v183_v22 }
  0x4a   :  { %610 = vmatprep.subr.mxu1 %v249_v23  ;;  %542 = vmatpush1.msra.mxu0 %v182_v24 }
  0x4b   :  { %611 = vmatpush1.msra.mxu1 %v248_v25  ;;  %543 = vmatprep.subr.mxu0 %v181_v26 }
  0x4c   :  { %612 = vmatprep.subr.mxu1 %v247_v27  ;;  %544 = vmatpush1.msra.mxu0 %v180_v28 }
  0x4d   :  { %613 = vmatpush1.msra.mxu1 %v246_v29  ;;  %545 = vmatprep.subr.mxu0 %v179_v30 }
  0x4e   :  { %614 = vmatprep.subr.mxu1 %v245_v31  ;;  %546 = vmatpush1.msra.mxu0 %v178_v32 }
  0x4f   :  { %615 = vmatpush1.msra.mxu1 %v244_v33  ;;  %547 = vmatprep.subr.mxu0 %v177_v34 }
  0x50   :  { %616 = vmatprep.subr.mxu1 %v243_v35  ;;  %548 = vmatpush1.msra.mxu0 %v176_v36 }
  0x51   :  { %617 = vmatpush1.msra.mxu1 %v242_v37  ;;  %549 = vmatprep.subr.mxu0 %v175_v39 }
  0x52   :  { %618 = vmatprep.subr.mxu1 %v241_v40  ;;  %550 = vmatpush1.msra.mxu0 %v174_v41 }
  0x53   :  { %619 = vmatpush1.msra.mxu1 %v240_v42  ;;  %551 = vmatprep.subr.mxu0 %v173_v43 }
  0x54   :  { %620 = vmatprep.subr.mxu1 %v239_v44  ;;  %552 = vmatpush1.msra.mxu0 %v172_v45 }
  0x55   :  { %621 = vmatpush1.msra.mxu1 %v238_v46  ;;  %553 = vmatprep.subr.mxu0 %v171_v47 }
  0x56   :  { %622 = vmatprep.subr.mxu1 %v237_v49  ;;  %554 = vmatpush1.msra.mxu0 %v170_v50 }
  0x57   :  { %623 = vmatpush1.msra.mxu1 %v236_v51  ;;  %555 = vmatprep.subr.mxu0 %v169_v52 }
  0x58   :  { %624 = vmatprep.subr.mxu1 %v235_v53  ;;  %556 = vmatpush1.msra.mxu0 %v168_v54 }
  0x59   :  { %625 = vmatpush1.msra.mxu1 %v234_v55  ;;  %557 = vmatprep.subr.mxu0 %v167_v56 }
  0x5a   :  { %626 = vmatprep.subr.mxu1 %v233_v57  ;;  %558 = vmatpush1.msra.mxu0 %v166_v58 }
  0x5b   :  { %627 = vmatpush1.msra.mxu1 %v232_v59  ;;  %559 = vmatprep.subr.mxu0 %v165_v60 }
  0x5c   :  { %628 = vmatprep.subr.mxu1 %v231_v61  ;;  %560 = vmatpush1.msra.mxu0 %v164_v62 }
  0x5d   :  { %629 = vmatpush1.msra.mxu1 %v230_v63  ;;  %561 = vmatprep.subr.mxu0 %v163_v0 }
  0x5e   :  { %630 = vmatprep.subr.mxu1 %v229_v1  ;;  %562 = vmatpush1.msra.mxu0 %v162_v2 }
  0x5f   :  { %631 = vmatpush1.msra.mxu1 %v228_v3  ;;  %563 = vmatprep.subr.mxu0 %v161_v4 }
  0x60   :  { %632 = vmatprep.subr.mxu1 %v227_v5  ;;  %564 = vmatpush1.msra.mxu0 %v160_v6 }
  0x61   :  { %633 = vmatpush1.msra.mxu1 %v226_v7  ;;  %565 = vmatprep.subr.mxu0 %v159_v8 }
  0x62   :  { %634 = vmatprep.subr.mxu1 %v225_v9  ;;  %566 = vmatpush1.msra.mxu0 %v158_v10 }
  0x63   :  { %635 = vmatpush1.msra.mxu1 %v224_v11  ;;  %567 = vmatprep.subr.mxu0 %v221_v12 }
  0x64   :  { %636 = vmatprep.subr.mxu1 %v223_v13  ;;  %568 = vmatpush2.msra.mxu0 %v220_v14 }
  0x65   :  { %12 = vsyncpa [#allocation3], 0  ;;  %637 = vmatpush1.msra.mxu1 %v222_v15  ;;  %569 = vmatprep.subr.mxu0 %v219_v16  ;;  %v283_v21 = vld [vmem:[%s3128_s1 + $0x7e8] sm:$0xff]  ;;  %v216_v22 = vld [vmem:[%s3128_s1 + $0x5d0] sm:$0xff]  ;;  %vm390_vm0 = vcmask 195584   ;;  %vm1339_vm1 = vcmask 1041408  }
  0x66   :  { %638 = vmatprep.subr.mxu1 %v285_v17  ;;  %570 = vmatpush2.msra.mxu0 %v218_v18  ;;  %v282_v23 = vld [vmem:[%s3128_s1 + $0x7e0] sm:$0xff]  ;;  %v215_v24 = vld [vmem:[%s3128_s1 + $0x5c8] sm:$0xff]  ;;  %v281_v25 = vld [vmem:[%s3128_s1 + $0x7d8] sm:$0xff]  ;;  %vm1340_vm2 = vcmask 35842   ;;  %s1386_s14 = smov [#allocation2]  }
  0x67   :  { %639 = vmatpush2.msra.mxu1 %v284_v19  ;;  %571 = vmatprep.subr.mxu0 %v217_v20  ;;  %v214_v26 = vld [vmem:[%s3128_s1 + $0x5c0] sm:$0xff]  ;;  %v280_v27 = vld [vmem:[%s3128_s1 + $0x7d0] sm:$0xff]  ;;  %v213_v28 = vld [vmem:[%s3128_s1 + $0x5b8] sm:$0xff]  ;;  %s1349_s15 = sshll.u32 %s1386_s14, 4  ;;  %s1350_s15 = int_to_ptr.vmem [resolvable:$true] %s1349_s15 }
  0x68   :  { %640 = vmatprep.subr.mxu1 %v283_v21  ;;  %572 = vmatpush2.msra.mxu0 %v216_v22  ;;  %v279_v29 = vld [vmem:[%s3128_s1 + $0x7c8] sm:$0xff]  ;;  %v212_v30 = vld [vmem:[%s3128_s1 + $0x5b0] sm:$0xff]  ;;  %v278_v31 = vld [vmem:[%s3128_s1 + $0x7c0] sm:$0xff]  ;;  %p1368_p1 = scmp.lt.s32.totalorder %s1350_s15, %s1350_s15 }
  0x69   :  { %641 = vmatpush2.msra.mxu1 %v282_v23  ;;  %573 = vmatprep.subr.mxu0 %v215_v24  ;;  %v211_v32 = vld [vmem:[%s3128_s1 + $0x5a8] sm:$0xff]  ;;  %v277_v33 = vld [vmem:[%s3128_s1 + $0x7b8] sm:$0xff]  ;;  %v210_v34 = vld [vmem:[%s3128_s1 + $0x5a0] sm:$0xff] }
  0x6a   :  { %642 = vmatprep.subr.mxu1 %v281_v25  ;;  %574 = vmatpush2.msra.mxu0 %v214_v26  ;;  %v276_v35 = vld [vmem:[%s3128_s1 + $0x7b0] sm:$0xff]  ;;  %v209_v36 = vld [vmem:[%s3128_s1 + $0x598] sm:$0xff]  ;;  %v275_v37 = vld [vmem:[%s3128_s1 + $0x7a8] sm:$0xff] }
  0x6b   :  { %643 = vmatpush2.msra.mxu1 %v280_v27  ;;  %575 = vmatprep.subr.mxu0 %v213_v28  ;;  %v208_v39 = vld [vmem:[%s3128_s1 + $0x590] sm:$0xff]  ;;  %v274_v40 = vld [vmem:[%s3128_s1 + $0x7a0] sm:$0xff]  ;;  %v207_v41 = vld [vmem:[%s3128_s1 + $0x588] sm:$0xff] }
  0x6c   :  { %644 = vmatprep.subr.mxu1 %v279_v29  ;;  %576 = vmatpush2.msra.mxu0 %v212_v30  ;;  %v273_v42 = vld [vmem:[%s3128_s1 + $0x798] sm:$0xff]  ;;  %v206_v43 = vld [vmem:[%s3128_s1 + $0x580] sm:$0xff]  ;;  %v272_v44 = vld [vmem:[%s3128_s1 + $0x790] sm:$0xff] }
  0x6d   :  { %645 = vmatpush2.msra.mxu1 %v278_v31  ;;  %577 = vmatprep.subr.mxu0 %v211_v32  ;;  %v205_v45 = vld [vmem:[%s3128_s1 + $0x578] sm:$0xff]  ;;  %v271_v46 = vld [vmem:[%s3128_s1 + $0x788] sm:$0xff]  ;;  %v204_v47 = vld [vmem:[%s3128_s1 + $0x570] sm:$0xff] }
  0x6e   :  { %646 = vmatprep.subr.mxu1 %v277_v33  ;;  %578 = vmatpush2.msra.mxu0 %v210_v34  ;;  %v270_v49 = vld [vmem:[%s3128_s1 + $0x780] sm:$0xff]  ;;  %v203_v50 = vld [vmem:[%s3128_s1 + $0x568] sm:$0xff]  ;;  %v269_v51 = vld [vmem:[%s3128_s1 + $0x778] sm:$0xff] }
  0x6f   :  { %647 = vmatpush2.msra.mxu1 %v276_v35  ;;  %579 = vmatprep.subr.mxu0 %v209_v36  ;;  %v202_v52 = vld [vmem:[%s3128_s1 + $0x560] sm:$0xff]  ;;  %v268_v53 = vld [vmem:[%s3128_s1 + $0x770] sm:$0xff]  ;;  %v201_v54 = vld [vmem:[%s3128_s1 + $0x558] sm:$0xff] }
  0x70   :  { %648 = vmatprep.subr.mxu1 %v275_v37  ;;  %580 = vmatpush2.msra.mxu0 %v208_v39  ;;  %v267_v55 = vld [vmem:[%s3128_s1 + $0x768] sm:$0xff]  ;;  %v200_v56 = vld [vmem:[%s3128_s1 + $0x550] sm:$0xff]  ;;  %v266_v57 = vld [vmem:[%s3128_s1 + $0x760] sm:$0xff] }
  0x71   :  { %649 = vmatpush2.msra.mxu1 %v274_v40  ;;  %581 = vmatprep.subr.mxu0 %v207_v41  ;;  %v199_v58 = vld [vmem:[%s3128_s1 + $0x548] sm:$0xff]  ;;  %v265_v59 = vld [vmem:[%s3128_s1 + $0x758] sm:$0xff]  ;;  %v198_v60 = vld [vmem:[%s3128_s1 + $0x540] sm:$0xff] }
  0x72   :  { %650 = vmatprep.subr.mxu1 %v273_v42  ;;  %582 = vmatpush2.msra.mxu0 %v206_v43  ;;  %v28_v61 = vld [vmem:[%s3127_s0 + $0x8] sm:$0xff]  ;;  %v264_v62 = vld [vmem:[%s3128_s1 + $0x750] sm:$0xff]  ;;  %v197_v63 = vld [vmem:[%s3128_s1 + $0x538] sm:$0xff] }
  0x73   :  { %651 = vmatpush2.msra.mxu1 %v272_v44  ;;  %583 = vmatprep.subr.mxu0 %v205_v45  ;;  %v263_v0 = vld [vmem:[%s3128_s1 + $0x748] sm:$0xff]  ;;  %v196_v1 = vld [vmem:[%s3128_s1 + $0x530] sm:$0xff]  ;;  %v262_v2 = vld [vmem:[%s3128_s1 + $0x740] sm:$0xff]  ;;  %v356_v4 = vcombine.high %v28_v61, %v28_v61  ;;  %v363_v7 = vrot.slane %v28_v61, %v1751_v48 }
  0x74   :  { %652 = vmatprep.subr.mxu1 %v271_v46  ;;  %584 = vmatpush2.msra.mxu0 %v204_v47  ;;  %v195_v3 = vld [vmem:[%s3128_s1 + $0x528] sm:$0xff]  ;;  %v261_v5 = vld [vmem:[%s3128_s1 + $0x738] sm:$0xff]  ;;  %v194_v6 = vld [vmem:[%s3128_s1 + $0x520] sm:$0xff] }
  0x75   :  { %653 = vmatpush2.msra.mxu1 %v270_v49  ;;  %585 = vmatprep.subr.mxu0 %v203_v50  ;;  %v260_v8 = vld [vmem:[%s3128_s1 + $0x730] sm:$0xff]  ;;  %v193_v9 = vld [vmem:[%s3128_s1 + $0x518] sm:$0xff]  ;;  %v259_v10 = vld [vmem:[%s3128_s1 + $0x728] sm:$0xff]  ;;  %v370_v14 = vrot.slane %v356_v4, %v1751_v48  ;;  %v371_v17 = vcombine.high %v363_v7, %v363_v7 }
  0x76   :  { %654 = vmatprep.subr.mxu1 %v269_v51  ;;  %586 = vmatpush2.msra.mxu0 %v202_v52  ;;  %v192_v11 = vld [vmem:[%s3128_s1 + $0x510] sm:$0xff]  ;;  %v258_v12 = vld [vmem:[%s3128_s1 + $0x720] sm:$0xff]  ;;  %v191_v13 = vld [vmem:[%s3128_s1 + $0x508] sm:$0xff] }
  0x77   :  { %655 = vmatpush2.msra.mxu1 %v268_v53  ;;  %587 = vmatprep.subr.mxu0 %v201_v54  ;;  %v257_v15 = vld [vmem:[%s3128_s1 + $0x718] sm:$0xff]  ;;  %v190_v16 = vld [vmem:[%s3128_s1 + $0x500] sm:$0xff]  ;;  %v256_v18 = vld [vmem:[%s3128_s1 + $0x710] sm:$0xff]  ;;  %v372_v23 = vcombine.high %v370_v14, %v370_v14 }
  0x78   :  { %656 = vmatprep.subr.mxu1 %v267_v55  ;;  %588 = vmatpush2.msra.mxu0 %v200_v56  ;;  %v255_v19 = vld [vmem:[%s3128_s1 + $0x708] sm:$0xff]  ;;  %v2210_v20 = vld.sshfl [vmem:[%s3127_s0 + $0x10] sm:$0x33 pattern:$0x76325410]  ;;  %v317_v21 = vld [vmem:[%s3128_s1 + $0x8f8] sm:$0xff] }
  0x79   :  { %657 = vmatpush2.msra.mxu1 %v266_v57  ;;  %589 = vmatprep.subr.mxu0 %v199_v58  ;;  %v254_v22 = vld [vmem:[%s3128_s1 + $0x700] sm:$0xff]  ;;  %v316_v24 = vld [vmem:[%s3128_s1 + $0x8f0] sm:$0xff]  ;;  %v315_v25 = vld [vmem:[%s3128_s1 + $0x8e8] sm:$0xff]  ;;  %v380_v26 = vcombine.high %v2210_v20, %v2210_v20 }
  0x7a   :  { %658 = vmatprep.subr.mxu1 %v265_v59  ;;  %590 = vmatpush2.msra.mxu0 %v198_v60  ;;  %v314_v27 = vld [vmem:[%s3128_s1 + $0x8e0] sm:$0xff]  ;;  %v313_v28 = vld [vmem:[%s3128_s1 + $0x8d8] sm:$0xff]  ;;  %v312_v29 = vld [vmem:[%s3128_s1 + $0x8d0] sm:$0xff] }
  0x7b   :  { %659 = vmatpush2.msra.mxu1 %v264_v62  ;;  %591 = vmatprep.subr.mxu0 %v197_v63  ;;  %v311_v30 = vld [vmem:[%s3128_s1 + $0x8c8] sm:$0xff]  ;;  %v810_v32 = vld [vmem:[%s3130_s3 + $0x1e0] sm:$0xff]  ;;  %v309_v35 = vld [vmem:[%s3128_s1 + $0x8b8] sm:$0xff] }
  0x7c   :  { %660 = vmatprep.subr.mxu1 %v263_v0  ;;  %592 = vmatpush2.msra.mxu0 %v196_v1  ;;  %v811_v31 = vld [vmem:[%s3130_s3 + $0x1e8] sm:$0xff]  ;;  %v310_v33 = vld [vmem:[%s3128_s1 + $0x8c0] sm:$0xff]  ;;  %v308_v39 = vld [vmem:[%s3128_s1 + $0x8b0] sm:$0xff] }
  0x7d   :  { %661 = vmatpush2.msra.mxu1 %v262_v2  ;;  %593 = vmatprep.subr.mxu0 %v195_v3  ;;  %v807_v34 = vld [vmem:[%s3130_s3 + $0x1c8] sm:$0xff]  ;;  %v806_v36 = vld [vmem:[%s3130_s3 + $0x1c0] sm:$0xff]  ;;  %v305_v45 = vld [vmem:[%s3128_s1 + $0x898] sm:$0xff] }
  0x7e   :  { %662 = vmatprep.subr.mxu1 %v261_v5  ;;  %594 = vmatpush2.msra.mxu0 %v194_v6  ;;  %v803_v37 = vld [vmem:[%s3130_s3 + $0x1a8] sm:$0xff]  ;;  %v802_v40 = vld [vmem:[%s3130_s3 + $0x1a0] sm:$0xff]  ;;  %v304_v47 = vld [vmem:[%s3128_s1 + $0x890] sm:$0xff] }
  0x7f   :  { %663 = vmatpush2.msra.mxu1 %v260_v8  ;;  %595 = vmatprep.subr.mxu0 %v193_v9  ;;  %v307_v41 = vld [vmem:[%s3128_s1 + $0x8a8] sm:$0xff]  ;;  %v306_v43 = vld [vmem:[%s3128_s1 + $0x8a0] sm:$0xff]  ;;  %v301_v54 = vld [vmem:[%s3128_s1 + $0x878] sm:$0xff] }
  0x80   :  { %664 = vmatprep.subr.mxu1 %v259_v10  ;;  %596 = vmatpush2.msra.mxu0 %v192_v11  ;;  %v799_v42 = vld [vmem:[%s3130_s3 + $0x188] sm:$0xff]  ;;  %v798_v44 = vld [vmem:[%s3130_s3 + $0x180] sm:$0xff]  ;;  %v300_v56 = vld [vmem:[%s3128_s1 + $0x870] sm:$0xff] }
  0x81   :  { %665 = vmatpush2.msra.mxu1 %v258_v12  ;;  %597 = vmatprep.subr.mxu0 %v191_v13  ;;  %v795_v46 = vld [vmem:[%s3130_s3 + $0x168] sm:$0xff]  ;;  %v794_v49 = vld [vmem:[%s3130_s3 + $0x160] sm:$0xff]  ;;  %v297_v62 = vld [vmem:[%s3128_s1 + $0x858] sm:$0xff] }
  0x82   :  { %666 = vmatprep.subr.mxu1 %v257_v15  ;;  %598 = vmatpush2.msra.mxu0 %v190_v16  ;;  %v303_v50 = vld [vmem:[%s3128_s1 + $0x888] sm:$0xff]  ;;  %v302_v52 = vld [vmem:[%s3128_s1 + $0x880] sm:$0xff]  ;;  %v296_v0 = vld [vmem:[%s3128_s1 + $0x850] sm:$0xff] }
  0x83   :  { %599 = vmatprep.mubr.f32.mxu0 %v371_v17  ;;  %667 = vmatpush2.msra.mxu1 %v256_v18  ;;  %v791_v51 = vld [vmem:[%s3130_s3 + $0x148] sm:$0xff]  ;;  %v790_v53 = vld [vmem:[%s3130_s3 + $0x140] sm:$0xff]  ;;  %v293_v4 = vld [vmem:[%s3128_s1 + $0x838] sm:$0xff] }
  0x84   :  { %600 = vmatmul.mubr.f32.vlgmr.msra.gmra.mxu0 %v363_v7  ;;  %668 = vmatprep.subr.mxu1 %v255_v19  ;;  %v787_v55 = vld [vmem:[%s3130_s3 + $0x128] sm:$0xff]  ;;  %v786_v57 = vld [vmem:[%s3130_s3 + $0x120] sm:$0xff]  ;;  %v292_v5 = vld [vmem:[%s3128_s1 + $0x830] sm:$0xff] }
  0x85   :  { %677 = vmatprep.subr.mxu0 %v317_v21  ;;  %669 = vmatpush2.msra.mxu1 %v254_v22  ;;  %v299_v58 = vld [vmem:[%s3128_s1 + $0x868] sm:$0xff]  ;;  %v298_v60 = vld [vmem:[%s3128_s1 + $0x860] sm:$0xff]  ;;  %v289_v8 = vld [vmem:[%s3128_s1 + $0x818] sm:$0xff] }
  0x86   :  { %670 = vmatprep.mubr.f32.mxu1 %v372_v23  ;;  %678 = vmatpush1.msra.mxu0 %v316_v24  ;;  %v783_v59 = vld [vmem:[%s3130_s3 + $0x108] sm:$0xff]  ;;  %v782_v61 = vld [vmem:[%s3130_s3 + $0x100] sm:$0xff]  ;;  %v288_v9 = vld [vmem:[%s3128_s1 + $0x810] sm:$0xff] }
  0x87   :  { %671 = vmatmul.mubr.f32.vlgmr.msra.gmra.mxu1 %v370_v14  ;;  %679 = vmatprep.subr.mxu0 %v315_v25  ;;  %v779_v63 = vld [vmem:[%s3130_s3 + $0xe8] sm:$0xff]  ;;  %v778_v1 = vld [vmem:[%s3130_s3 + $0xe0] sm:$0xff]  ;;  %v321_v14 = vld [vmem:[%s3128_s1 + $0x918] sm:$0xff] }
  0x88   :  { %680 = vmatpush1.msra.mxu0 %v314_v27  ;;  %1358 = vmatprep.mubr.msk.f32.mxu0 %vm390_vm0, %v380_v26  ;;  %v295_v2 = vld [vmem:[%s3128_s1 + $0x848] sm:$0xff]  ;;  %v294_v3 = vld [vmem:[%s3128_s1 + $0x840] sm:$0xff]  ;;  %v320_v15 = vld [vmem:[%s3128_s1 + $0x910] sm:$0xff] }
  0x89   :  { %681 = vmatprep.subr.mxu0 %v313_v28  ;;  %900 = vmatprep.subr.mxu1 %v811_v31  ;;  %v291_v6 = vld [vmem:[%s3128_s1 + $0x828] sm:$0xff]  ;;  %v290_v7 = vld [vmem:[%s3128_s1 + $0x820] sm:$0xff]  ;;  %v813_v18 = vld [vmem:[%s3130_s3 + $0x1f8] sm:$0xff] }
  0x8a   :  { %682 = vmatpush1.msra.mxu0 %v312_v29  ;;  %901 = vmatpush1.msra.mxu1 %v810_v32  ;;  %v287_v10 = vld [vmem:[%s3128_s1 + $0x808] sm:$0xff]  ;;  %v286_v11 = vld [vmem:[%s3128_s1 + $0x800] sm:$0xff]  ;;  %v812_v19 = vld [vmem:[%s3130_s3 + $0x1f0] sm:$0xff] }
  0x8b   :  { %683 = vmatprep.subr.mxu0 %v311_v30  ;;  %902 = vmatprep.subr.mxu1 %v807_v34  ;;  %v323_v12 = vld [vmem:[%s3128_s1 + $0x928] sm:$0xff]  ;;  %v322_v13 = vld [vmem:[%s3128_s1 + $0x920] sm:$0xff]  ;;  %v809_v21 = vld [vmem:[%s3130_s3 + $0x1d8] sm:$0xff] }
  0x8c   :  { %684 = vmatpush1.msra.mxu0 %v310_v33  ;;  %903 = vmatpush1.msra.mxu1 %v806_v36  ;;  %v319_v16 = vld [vmem:[%s3128_s1 + $0x908] sm:$0xff]  ;;  %v318_v17 = vld [vmem:[%s3128_s1 + $0x900] sm:$0xff]  ;;  %v808_v22 = vld [vmem:[%s3130_s3 + $0x1d0] sm:$0xff] }
  0x8d   :  { %685 = vmatprep.subr.mxu0 %v309_v35  ;;  %904 = vmatprep.subr.mxu1 %v803_v37  ;;  %v805_v23 = vld [vmem:[%s3130_s3 + $0x1b8] sm:$0xff]  ;;  %v804_v24 = vld [vmem:[%s3130_s3 + $0x1b0] sm:$0xff]  ;;  %v775_v36 = vld [vmem:[%s3130_s3 + $0xc8] sm:$0xff] }
  0x8e   :  { %686 = vmatpush1.msra.mxu0 %v308_v39  ;;  %905 = vmatpush1.msra.mxu1 %v802_v40  ;;  %v800_v25 = vld [vmem:[%s3130_s3 + $0x190] sm:$0xff]  ;;  %v797_v26 = vld [vmem:[%s3130_s3 + $0x178] sm:$0xff]  ;;  %v774_v39 = vld [vmem:[%s3130_s3 + $0xc0] sm:$0xff] }
  0x8f   :  { %687 = vmatprep.subr.mxu0 %v307_v41  ;;  %906 = vmatprep.subr.mxu1 %v799_v42  ;;  %v796_v27 = vld [vmem:[%s3130_s3 + $0x170] sm:$0xff]  ;;  %v793_v28 = vld [vmem:[%s3130_s3 + $0x158] sm:$0xff]  ;;  %v771_v41 = vld [vmem:[%s3130_s3 + $0xa8] sm:$0xff] }
  0x90   :  { %688 = vmatpush1.msra.mxu0 %v306_v43  ;;  %907 = vmatpush1.msra.mxu1 %v798_v44  ;;  %v792_v29 = vld [vmem:[%s3130_s3 + $0x150] sm:$0xff]  ;;  %v789_v30 = vld [vmem:[%s3130_s3 + $0x138] sm:$0xff]  ;;  %v770_v43 = vld [vmem:[%s3130_s3 + $0xa0] sm:$0xff] }
  0x91   :  { %689 = vmatprep.subr.mxu0 %v305_v45  ;;  %908 = vmatprep.subr.mxu1 %v795_v46  ;;  %v788_v31 = vld [vmem:[%s3130_s3 + $0x130] sm:$0xff]  ;;  %v785_v32 = vld [vmem:[%s3130_s3 + $0x118] sm:$0xff]  ;;  %v767_v45 = vld [vmem:[%s3130_s3 + $0x88] sm:$0xff] }
  0x92   :  { %690 = vmatpush1.msra.mxu0 %v304_v47  ;;  %909 = vmatpush1.msra.mxu1 %v794_v49  ;;  %v784_v33 = vld [vmem:[%s3130_s3 + $0x110] sm:$0xff]  ;;  %v781_v34 = vld [vmem:[%s3130_s3 + $0xf8] sm:$0xff]  ;;  %v766_v47 = vld [vmem:[%s3130_s3 + $0x80] sm:$0xff] }
  0x93   :  { %691 = vmatprep.subr.mxu0 %v303_v50  ;;  %910 = vmatprep.subr.mxu1 %v791_v51  ;;  %v780_v35 = vld [vmem:[%s3130_s3 + $0xf0] sm:$0xff]  ;;  %v777_v37 = vld [vmem:[%s3130_s3 + $0xd8] sm:$0xff]  ;;  %v763_v50 = vld [vmem:[%s3130_s3 + $0x68] sm:$0xff] }
  0x94   :  { %692 = vmatpush1.msra.mxu0 %v302_v52  ;;  %911 = vmatpush1.msra.mxu1 %v790_v53  ;;  %v776_v40 = vld [vmem:[%s3130_s3 + $0xd0] sm:$0xff]  ;;  %v773_v42 = vld [vmem:[%s3130_s3 + $0xb8] sm:$0xff]  ;;  %v762_v52 = vld [vmem:[%s3130_s3 + $0x60] sm:$0xff] }
  0x95   :  { %693 = vmatprep.subr.mxu0 %v301_v54  ;;  %912 = vmatprep.subr.mxu1 %v787_v55  ;;  %v772_v44 = vld [vmem:[%s3130_s3 + $0xb0] sm:$0xff]  ;;  %v769_v46 = vld [vmem:[%s3130_s3 + $0x98] sm:$0xff]  ;;  %v759_v54 = vld [vmem:[%s3130_s3 + $0x48] sm:$0xff] }
  0x96   :  { %694 = vmatpush1.msra.mxu0 %v300_v56  ;;  %913 = vmatpush1.msra.mxu1 %v786_v57  ;;  %v768_v49 = vld [vmem:[%s3130_s3 + $0x90] sm:$0xff]  ;;  %v765_v51 = vld [vmem:[%s3130_s3 + $0x78] sm:$0xff]  ;;  %v758_v56 = vld [vmem:[%s3130_s3 + $0x40] sm:$0xff] }
  0x97   :  { %695 = vmatprep.subr.mxu0 %v299_v58  ;;  %914 = vmatprep.subr.mxu1 %v783_v59  ;;  %v764_v53 = vld [vmem:[%s3130_s3 + $0x70] sm:$0xff]  ;;  %v761_v55 = vld [vmem:[%s3130_s3 + $0x58] sm:$0xff]  ;;  %v755_v58 = vld [vmem:[%s3130_s3 + $0x28] sm:$0xff] }
  0x98   :  { %696 = vmatpush1.msra.mxu0 %v298_v60  ;;  %915 = vmatpush1.msra.mxu1 %v782_v61  ;;  %v760_v57 = vld [vmem:[%s3130_s3 + $0x50] sm:$0xff]  ;;  %v757_v59 = vld [vmem:[%s3130_s3 + $0x38] sm:$0xff]  ;;  %v754_v60 = vld [vmem:[%s3130_s3 + $0x20] sm:$0xff] }
  0x99   :  { %697 = vmatprep.subr.mxu0 %v297_v62  ;;  %916 = vmatprep.subr.mxu1 %v779_v63  ;;  %v756_v61 = vld [vmem:[%s3130_s3 + $0x30] sm:$0xff]  ;;  %v751_v62 = vld [vmem:[%s3130_s3 + $0x8] sm:$0xff]  ;;  %v753_v63 = vld [vmem:[%s3130_s3 + $0x18] sm:$0xff] }
  0x9a   :  { %698 = vmatpush1.msra.mxu0 %v296_v0  ;;  %917 = vmatpush1.msra.mxu1 %v778_v1  ;;  %v750_v0 = vld [vmem:[%s3130_s3] sm:$0xff]  ;;  %v752_v1 = vld [vmem:[%s3130_s3 + $0x10] sm:$0xff]  ;;  %vm1341_vm3 = vmor %vm1340_vm2, %vm1339_vm1 }
  0x9b   :  { %699 = vmatprep.subr.mxu0 %v295_v2  ;;  %918 = vmatprep.subr.mxu1 %v775_v36  ;;  %v875_v2 = vld [vmem:[%s3130_s3 + $0x3e8] sm:$0xff]  ;;  %v842_v36 = vld [vmem:[%s3130_s3 + $0x2e0] sm:$0xff] }
  0x9c   :  { %700 = vmatpush1.msra.mxu0 %v294_v3  ;;  %919 = vmatpush1.msra.mxu1 %v774_v39  ;;  %v877_v3 = vld [vmem:[%s3130_s3 + $0x3f8] sm:$0xff]  ;;  %v839_v39 = vld [vmem:[%s3130_s3 + $0x2c8] sm:$0xff] }
  0x9d   :  { %701 = vmatprep.subr.mxu0 %v293_v4  ;;  %920 = vmatprep.subr.mxu1 %v771_v41  ;;  %v874_v4 = vld [vmem:[%s3130_s3 + $0x3e0] sm:$0xff] }
  0x9e   :  { %702 = vmatpush1.msra.mxu0 %v292_v5  ;;  %921 = vmatpush1.msra.mxu1 %v770_v43  ;;  %v876_v5 = vld [vmem:[%s3130_s3 + $0x3f0] sm:$0xff]  ;;  %v838_v41 = vld [vmem:[%s3130_s3 + $0x2c0] sm:$0xff]  ;;  %v835_v43 = vld [vmem:[%s3130_s3 + $0x2a8] sm:$0xff] }
  0x9f   :  { %703 = vmatprep.subr.mxu0 %v291_v6  ;;  %922 = vmatprep.subr.mxu1 %v767_v45  ;;  %v871_v6 = vld [vmem:[%s3130_s3 + $0x3c8] sm:$0xff]  ;;  %v834_v45 = vld [vmem:[%s3130_s3 + $0x2a0] sm:$0xff] }
  0xa0   :  { %704 = vmatpush1.msra.mxu0 %v290_v7  ;;  %923 = vmatpush1.msra.mxu1 %v766_v47  ;;  %v873_v7 = vld [vmem:[%s3130_s3 + $0x3d8] sm:$0xff]  ;;  %v831_v47 = vld [vmem:[%s3130_s3 + $0x288] sm:$0xff] }
  0xa1   :  { %705 = vmatprep.subr.mxu0 %v289_v8  ;;  %924 = vmatprep.subr.mxu1 %v763_v50  ;;  %v870_v8 = vld [vmem:[%s3130_s3 + $0x3c0] sm:$0xff] }
  0xa2   :  { %706 = vmatpush1.msra.mxu0 %v288_v9  ;;  %925 = vmatpush1.msra.mxu1 %v762_v52  ;;  %v872_v9 = vld [vmem:[%s3130_s3 + $0x3d0] sm:$0xff]  ;;  %v830_v50 = vld [vmem:[%s3130_s3 + $0x280] sm:$0xff]  ;;  %v827_v52 = vld [vmem:[%s3130_s3 + $0x268] sm:$0xff] }
  0xa3   :  { %707 = vmatprep.subr.mxu0 %v287_v10  ;;  %926 = vmatprep.subr.mxu1 %v759_v54  ;;  %v867_v10 = vld [vmem:[%s3130_s3 + $0x3a8] sm:$0xff]  ;;  %v826_v54 = vld [vmem:[%s3130_s3 + $0x260] sm:$0xff] }
  0xa4   :  { %708 = vmatpush1.msra.mxu0 %v286_v11  ;;  %927 = vmatpush1.msra.mxu1 %v758_v56  ;;  %v869_v11 = vld [vmem:[%s3130_s3 + $0x3b8] sm:$0xff]  ;;  %v823_v56 = vld [vmem:[%s3130_s3 + $0x248] sm:$0xff] }
  0xa5   :  { %735 = vmatprep.subr.mxu0 %v323_v12  ;;  %928 = vmatprep.subr.mxu1 %v755_v58  ;;  %v866_v12 = vld [vmem:[%s3130_s3 + $0x3a0] sm:$0xff] }
  0xa6   :  { %736 = vmatpush2.msra.mxu0 %v322_v13  ;;  %929 = vmatpush1.msra.mxu1 %v754_v60  ;;  %v868_v13 = vld [vmem:[%s3130_s3 + $0x3b0] sm:$0xff]  ;;  %v822_v58 = vld [vmem:[%s3130_s3 + $0x240] sm:$0xff]  ;;  %v819_v60 = vld [vmem:[%s3130_s3 + $0x228] sm:$0xff] }
  0xa7   :  { %737 = vmatprep.subr.mxu0 %v321_v14  ;;  %930 = vmatprep.subr.mxu1 %v751_v62  ;;  %v863_v14 = vld [vmem:[%s3130_s3 + $0x388] sm:$0xff]  ;;  %v818_v62 = vld [vmem:[%s3130_s3 + $0x220] sm:$0xff] }
  0xa8   :  { %738 = vmatpush2.msra.mxu0 %v320_v15  ;;  %931 = vmatpush1.msra.mxu1 %v750_v0  ;;  %v865_v15 = vld [vmem:[%s3130_s3 + $0x398] sm:$0xff]  ;;  %v815_v0 = vld [vmem:[%s3130_s3 + $0x208] sm:$0xff] }
  0xa9   :  { %739 = vmatprep.subr.mxu0 %v319_v16  ;;  %932 = vmatprep.subr.mxu1 %v875_v2  ;;  %v862_v16 = vld [vmem:[%s3130_s3 + $0x380] sm:$0xff] }
  0xaa   :  { %740 = vmatpush2.msra.mxu0 %v318_v17  ;;  %933 = vmatpush2.msra.mxu1 %v874_v4  ;;  %v864_v17 = vld [vmem:[%s3130_s3 + $0x390] sm:$0xff]  ;;  %v814_v2 = vld [vmem:[%s3130_s3 + $0x200] sm:$0xff]  ;;  %v1077_v4 = vld [vmem:[%s3132_s5 + $0xf8] sm:$0xff] }
  0xab   :  { %742 = vmatmul.mubr.f32.vlgmr.msra.gmra.mxu0 %v2210_v20  ;;  %971 = vmatprep.subr.mxu0 %v813_v18  ;;  %v801_v20 = vld [vmem:[%s3130_s3 + $0x198] sm:$0xff]  ;;  %v859_v18 = vld [vmem:[%s3130_s3 + $0x368] sm:$0xff] }
  0xac   :  { %972 = vmatpush1.msra.mxu0 %v812_v19  ;;  %934 = vmatprep.subr.mxu1 %v871_v6  ;;  %v861_v19 = vld [vmem:[%s3130_s3 + $0x378] sm:$0xff]  ;;  %v2723_v6 = vsub.s32 0, %v1724_v38 }
  0xad   :  { %973 = vmatprep.subr.mxu0 %v809_v21  ;;  %935 = vmatpush2.msra.mxu1 %v870_v8  ;;  %v858_v21 = vld [vmem:[%s3130_s3 + $0x360] sm:$0xff]  ;;  %v2729_v8 = vsub.s32 1, %v1724_v38 }
  0xae   :  { %974 = vmatpush1.msra.mxu0 %v808_v22  ;;  %936 = vmatprep.subr.mxu1 %v867_v10  ;;  %v860_v22 = vld [vmem:[%s3130_s3 + $0x370] sm:$0xff] }
  0xaf   :  { %975 = vmatprep.subr.mxu0 %v805_v23  ;;  %937 = vmatpush2.msra.mxu1 %v866_v12  ;;  %v855_v23 = vld [vmem:[%s3130_s3 + $0x348] sm:$0xff] }
  0xb0   :  { %976 = vmatpush1.msra.mxu0 %v804_v24  ;;  %938 = vmatprep.subr.mxu1 %v863_v14  ;;  %v857_v24 = vld [vmem:[%s3130_s3 + $0x358] sm:$0xff] }
  0xb1   :  { %977 = vmatprep.subr.mxu0 %v801_v20  ;;  %939 = vmatpush2.msra.mxu1 %v862_v16  ;;  %v854_v20 = vld [vmem:[%s3130_s3 + $0x340] sm:$0xff] }
  0xb2   :  { %978 = vmatpush1.msra.mxu0 %v800_v25  ;;  %940 = vmatprep.subr.mxu1 %v859_v18  ;;  %v856_v25 = vld [vmem:[%s3130_s3 + $0x350] sm:$0xff] }
  0xb3   :  { %979 = vmatprep.subr.mxu0 %v797_v26  ;;  %941 = vmatpush2.msra.mxu1 %v858_v21  ;;  %v851_v26 = vld [vmem:[%s3130_s3 + $0x328] sm:$0xff] }
  0xb4   :  { %980 = vmatpush1.msra.mxu0 %v796_v27  ;;  %v853_v27 = vld [vmem:[%s3130_s3 + $0x338] sm:$0xff]  ;;  %942 = vmatprep.subr.mxu1 %v855_v23 }
  0xb5   :  { %981 = vmatprep.subr.mxu0 %v793_v28  ;;  %v850_v28 = vld [vmem:[%s3130_s3 + $0x320] sm:$0xff]  ;;  %943 = vmatpush2.msra.mxu1 %v854_v20 }
  0xb6   :  { %982 = vmatpush1.msra.mxu0 %v792_v29  ;;  %v852_v29 = vld [vmem:[%s3130_s3 + $0x330] sm:$0xff]  ;;  %944 = vmatprep.subr.mxu1 %v851_v26 }
  0xb7   :  { %983 = vmatprep.subr.mxu0 %v789_v30  ;;  %v847_v30 = vld [vmem:[%s3130_s3 + $0x308] sm:$0xff]  ;;  %945 = vmatpush2.msra.mxu1 %v850_v28 }
  0xb8   :  { %984 = vmatpush1.msra.mxu0 %v788_v31  ;;  %v849_v31 = vld [vmem:[%s3130_s3 + $0x318] sm:$0xff]  ;;  %946 = vmatprep.subr.mxu1 %v847_v30 }
  0xb9   :  { %985 = vmatprep.subr.mxu0 %v785_v32  ;;  %v846_v32 = vld [vmem:[%s3130_s3 + $0x300] sm:$0xff] }
  0xba   :  { %986 = vmatpush1.msra.mxu0 %v784_v33  ;;  %v848_v33 = vld [vmem:[%s3130_s3 + $0x310] sm:$0xff]  ;;  %947 = vmatpush2.msra.mxu1 %v846_v32 }
  0xbb   :  { %987 = vmatprep.subr.mxu0 %v781_v34  ;;  %v843_v34 = vld [vmem:[%s3130_s3 + $0x2e8] sm:$0xff] }
  0xbc   :  { %988 = vmatpush1.msra.mxu0 %v780_v35  ;;  %v845_v35 = vld [vmem:[%s3130_s3 + $0x2f8] sm:$0xff]  ;;  %948 = vmatprep.subr.mxu1 %v843_v34  ;;  %v1140_v34 = vld [vmem:[%s3132_s5 + $0x2f0] sm:$0xff] }
  0xbd   :  { %989 = vmatprep.subr.mxu0 %v777_v37  ;;  %v844_v37 = vld [vmem:[%s3130_s3 + $0x2f0] sm:$0xff]  ;;  %949 = vmatpush2.msra.mxu1 %v842_v36  ;;  %v1139_v36 = vld [vmem:[%s3132_s5 + $0x2e8] sm:$0xff] }
  0xbe   :  { %990 = vmatpush1.msra.mxu0 %v776_v40  ;;  %v841_v40 = vld [vmem:[%s3130_s3 + $0x2d8] sm:$0xff]  ;;  %950 = vmatprep.subr.mxu1 %v839_v39  ;;  %v1138_v39 = vld [vmem:[%s3132_s5 + $0x2e0] sm:$0xff] }
  0xbf   :  { %991 = vmatprep.subr.mxu0 %v773_v42  ;;  %v840_v42 = vld [vmem:[%s3130_s3 + $0x2d0] sm:$0xff]  ;;  %951 = vmatpush2.msra.mxu1 %v838_v41  ;;  %v1137_v41 = vld [vmem:[%s3132_s5 + $0x2d8] sm:$0xff] }
  0xc0   :  { %992 = vmatpush1.msra.mxu0 %v772_v44  ;;  %v837_v44 = vld [vmem:[%s3130_s3 + $0x2b8] sm:$0xff]  ;;  %952 = vmatprep.subr.mxu1 %v835_v43  ;;  %v1136_v43 = vld [vmem:[%s3132_s5 + $0x2d0] sm:$0xff] }
  0xc1   :  { %993 = vmatprep.subr.mxu0 %v769_v46  ;;  %v836_v46 = vld [vmem:[%s3130_s3 + $0x2b0] sm:$0xff]  ;;  %953 = vmatpush2.msra.mxu1 %v834_v45  ;;  %v1135_v45 = vld [vmem:[%s3132_s5 + $0x2c8] sm:$0xff] }
  0xc2   :  { %994 = vmatpush1.msra.mxu0 %v768_v49  ;;  %v833_v49 = vld [vmem:[%s3130_s3 + $0x298] sm:$0xff]  ;;  %954 = vmatprep.subr.mxu1 %v831_v47  ;;  %v1134_v47 = vld [vmem:[%s3132_s5 + $0x2c0] sm:$0xff] }
  0xc3   :  { %995 = vmatprep.subr.mxu0 %v765_v51  ;;  %v832_v51 = vld [vmem:[%s3130_s3 + $0x290] sm:$0xff]  ;;  %955 = vmatpush2.msra.mxu1 %v830_v50  ;;  %v1133_v50 = vld [vmem:[%s3132_s5 + $0x2b8] sm:$0xff] }
  0xc4   :  { %996 = vmatpush1.msra.mxu0 %v764_v53  ;;  %v829_v53 = vld [vmem:[%s3130_s3 + $0x278] sm:$0xff]  ;;  %956 = vmatprep.subr.mxu1 %v827_v52  ;;  %v1132_v52 = vld [vmem:[%s3132_s5 + $0x2b0] sm:$0xff] }
  0xc5   :  { %997 = vmatprep.subr.mxu0 %v761_v55  ;;  %v828_v55 = vld [vmem:[%s3130_s3 + $0x270] sm:$0xff]  ;;  %957 = vmatpush2.msra.mxu1 %v826_v54  ;;  %v1131_v54 = vld [vmem:[%s3132_s5 + $0x2a8] sm:$0xff] }
  0xc6   :  { %998 = vmatpush1.msra.mxu0 %v760_v57  ;;  %v825_v57 = vld [vmem:[%s3130_s3 + $0x258] sm:$0xff]  ;;  %958 = vmatprep.subr.mxu1 %v823_v56  ;;  %v1130_v56 = vld [vmem:[%s3132_s5 + $0x2a0] sm:$0xff] }
  0xc7   :  { %999 = vmatprep.subr.mxu0 %v757_v59  ;;  %v824_v59 = vld [vmem:[%s3130_s3 + $0x250] sm:$0xff]  ;;  %959 = vmatpush2.msra.mxu1 %v822_v58  ;;  %v1129_v58 = vld [vmem:[%s3132_s5 + $0x298] sm:$0xff] }
  0xc8   :  { %1000 = vmatpush1.msra.mxu0 %v756_v61  ;;  %v821_v61 = vld [vmem:[%s3130_s3 + $0x238] sm:$0xff]  ;;  %960 = vmatprep.subr.mxu1 %v819_v60  ;;  %v1128_v60 = vld [vmem:[%s3132_s5 + $0x290] sm:$0xff] }
  0xc9   :  { %1001 = vmatprep.subr.mxu0 %v753_v63  ;;  %v820_v63 = vld [vmem:[%s3130_s3 + $0x230] sm:$0xff]  ;;  %961 = vmatpush2.msra.mxu1 %v818_v62  ;;  %v1127_v62 = vld [vmem:[%s3132_s5 + $0x288] sm:$0xff] }
  0xca   :  { %1002 = vmatpush1.msra.mxu0 %v752_v1  ;;  %v817_v1 = vld [vmem:[%s3130_s3 + $0x218] sm:$0xff]  ;;  %962 = vmatprep.subr.mxu1 %v815_v0  ;;  %v1126_v0 = vld [vmem:[%s3132_s5 + $0x280] sm:$0xff] }
  0xcb   :  { %1003 = vmatprep.subr.mxu0 %v877_v3  ;;  %v816_v3 = vld [vmem:[%s3130_s3 + $0x210] sm:$0xff]  ;;  %963 = vmatpush2.msra.mxu1 %v814_v2  ;;  %v1125_v2 = vld [vmem:[%s3132_s5 + $0x278] sm:$0xff] }
  0xcc   :  { %1004 = vmatpush2.msra.mxu0 %v876_v5  ;;  %v1141_v5 = vld [vmem:[%s3132_s5 + $0x2f8] sm:$0xff]  ;;  %1186 = vmatprep.subr.mxu1 %v1077_v4  ;;  %v1124_v4 = vld [vmem:[%s3132_s5 + $0x270] sm:$0xff] }
  0xcd   :  { %1005 = vmatprep.subr.mxu0 %v873_v7  ;;  %v324_v7 = vld [vmem:[%s3129_s2] sm:$0x3] }
  0xce   :  { %1006 = vmatpush2.msra.mxu0 %v872_v9  ;;  %v329_v10 = vrot.slane %v324_v7, %v2723_v6 }
  0xcf   :  { %1007 = vmatprep.subr.mxu0 %v869_v11  ;;  %v333_v11 = vrot.slane %v324_v7, %v2729_v8  ;;  %v1123_v7 = vld [vmem:[%s3132_s5 + $0x268] sm:$0xff] }
  0xd0   :  { %1008 = vmatpush2.msra.mxu0 %v868_v13 }
  0xd1   :  { %1009 = vmatprep.subr.mxu0 %v865_v15 }
  0xd2   :  { %1010 = vmatpush2.msra.mxu0 %v864_v17 }
  0xd3   :  { %1011 = vmatprep.subr.mxu0 %v861_v19 }
  0xd4   :  { %1012 = vmatpush2.msra.mxu0 %v860_v22 }
  0xd5   :  { %1013 = vmatprep.subr.mxu0 %v857_v24 }
  0xd6   :  { %1014 = vmatpush2.msra.mxu0 %v856_v25 }
  0xd7   :  { %1015 = vmatprep.subr.mxu0 %v853_v27 }
  0xd8   :  { %1016 = vmatpush2.msra.mxu0 %v852_v29 }
  0xd9   :  { %1017 = vmatprep.subr.mxu0 %v849_v31 }
  0xda   :  { %1018 = vmatpush2.msra.mxu0 %v848_v33  ;;  %v1076_v33 = vld [vmem:[%s3132_s5 + $0xf0] sm:$0xff] }
  0xdb   :  { %1019 = vmatprep.subr.mxu0 %v845_v35  ;;  %v1075_v35 = vld [vmem:[%s3132_s5 + $0xe8] sm:$0xff] }
  0xdc   :  { %1020 = vmatpush2.msra.mxu0 %v844_v37  ;;  %v1074_v37 = vld [vmem:[%s3132_s5 + $0xe0] sm:$0xff] }
  0xdd   :  { %1021 = vmatprep.subr.mxu0 %v841_v40  ;;  %v1073_v40 = vld [vmem:[%s3132_s5 + $0xd8] sm:$0xff] }
  0xde   :  { %1022 = vmatpush2.msra.mxu0 %v840_v42  ;;  %v1072_v42 = vld [vmem:[%s3132_s5 + $0xd0] sm:$0xff] }
  0xdf   :  { %1023 = vmatprep.subr.mxu0 %v837_v44  ;;  %v1071_v44 = vld [vmem:[%s3132_s5 + $0xc8] sm:$0xff] }
  0xe0   :  { %1024 = vmatpush2.msra.mxu0 %v836_v46  ;;  %v1070_v46 = vld [vmem:[%s3132_s5 + $0xc0] sm:$0xff] }
  0xe1   :  { %1025 = vmatprep.subr.mxu0 %v833_v49  ;;  %v1069_v49 = vld [vmem:[%s3132_s5 + $0xb8] sm:$0xff] }
  0xe2   :  { %1026 = vmatpush2.msra.mxu0 %v832_v51  ;;  %v1068_v51 = vld [vmem:[%s3132_s5 + $0xb0] sm:$0xff] }
  0xe3   :  { %1027 = vmatprep.subr.mxu0 %v829_v53  ;;  %v1067_v53 = vld [vmem:[%s3132_s5 + $0xa8] sm:$0xff] }
  0xe4   :  { %1028 = vmatpush2.msra.mxu0 %v828_v55  ;;  %v1066_v55 = vld [vmem:[%s3132_s5 + $0xa0] sm:$0xff] }
  0xe5   :  { %1029 = vmatprep.subr.mxu0 %v825_v57  ;;  %v1065_v57 = vld [vmem:[%s3132_s5 + $0x98] sm:$0xff] }
  0xe6   :  { %1030 = vmatpush2.msra.mxu0 %v824_v59  ;;  %v1064_v59 = vld [vmem:[%s3132_s5 + $0x90] sm:$0xff] }
  0xe7   :  { %1031 = vmatprep.subr.mxu0 %v821_v61  ;;  %v1063_v61 = vld [vmem:[%s3132_s5 + $0x88] sm:$0xff] }
  0xe8   :  { %1032 = vmatpush2.msra.mxu0 %v820_v63  ;;  %v1062_v63 = vld [vmem:[%s3132_s5 + $0x80] sm:$0xff] }
  0xe9   :  { %1033 = vmatprep.subr.mxu0 %v817_v1  ;;  %v1061_v1 = vld [vmem:[%s3132_s5 + $0x78] sm:$0xff] }
  0xea   :  { %1034 = vmatpush2.msra.mxu0 %v816_v3  ;;  %v1060_v3 = vld [vmem:[%s3132_s5 + $0x70] sm:$0xff] }
  0xeb   :  { %1257 = vmatprep.subr.mxu0 %v1141_v5  ;;  %v1059_v5 = vld [vmem:[%s3132_s5 + $0x68] sm:$0xff] }
 0x102   :  { %v459_v9 = vpop.f32.mrf.mxu0 }
 0x103   :  { %v460_v14 = vadd.f32 %v459_v9, %v329_v10  ;;  %v1058_v9 = vld [vmem:[%s3132_s5 + $0x60] sm:$0xff] }
 0x104   :  { %v461_v12 = vpop.f32.mrf.mxu0  ;;  %v1122_v10 = vld [vmem:[%s3132_s5 + $0x260] sm:$0xff] }
 0x105   :  { %v530_v13 = vpop.f32.mrf.mxu1  ;;  %v462_v16 = vadd.f32 %v461_v12, %v333_v11  ;;  %v1057_v11 = vld [vmem:[%s3132_s5 + $0x58] sm:$0xff] }
 0x106   :  { %v531_v18 = vadd.f32 %v530_v13, %v460_v14  ;;  %v1121_v12 = vld [vmem:[%s3132_s5 + $0x258] sm:$0xff]  ;;  %v1056_v13 = vld [vmem:[%s3132_s5 + $0x50] sm:$0xff] }
 0x107   :  { %v532_v17 = vpop.f32.mrf.mxu1  ;;  %v1120_v14 = vld [vmem:[%s3132_s5 + $0x250] sm:$0xff] }
 0x108   :  { %v533_v22 = vadd.f32 %v532_v17, %v462_v16  ;;  %v1119_v16 = vld [vmem:[%s3132_s5 + $0x248] sm:$0xff]  ;;  %v1054_v17 = vld [vmem:[%s3132_s5 + $0x40] sm:$0xff] }
 0x144   :  { %v601_v15 = vpop.f32.mrf.mxu0 }
 0x145   :  { %v602_v23 = vadd.f32 %v601_v15, %v531_v18  ;;  %v1055_v15 = vld [vmem:[%s3132_s5 + $0x48] sm:$0xff]  ;;  %v1118_v18 = vld [vmem:[%s3132_s5 + $0x240] sm:$0xff] }
 0x146   :  { %v603_v19 = vpop.f32.mrf.mxu0 }
 0x147   :  { %v672_v21 = vpop.f32.mrf.mxu1  ;;  %v604_v24 = vadd.f32 %v603_v19, %v533_v22  ;;  %v1053_v19 = vld [vmem:[%s3132_s5 + $0x38] sm:$0xff]  ;;  %v1052_v22 = vld [vmem:[%s3132_s5 + $0x30] sm:$0xff] }
 0x148   :  { %v673_v25 = vadd.f32 %v672_v21, %v602_v23  ;;  %v1117_v21 = vld [vmem:[%s3132_s5 + $0x238] sm:$0xff]  ;;  %v1116_v23 = vld [vmem:[%s3132_s5 + $0x230] sm:$0xff] }
 0x149   :  { %v674_v20 = vpop.f32.mrf.mxu1 }
 0x14a   :  { %v675_v27 = vadd.f32 %v674_v20, %v604_v24  ;;  %v1051_v24 = vld [vmem:[%s3132_s5 + $0x28] sm:$0xff] }
 0x14b   :  { %v1115_v20 = vld [vmem:[%s3132_s5 + $0x228] sm:$0xff] }
 0x16b   :  { %v743_v26 = vpop.f32.mrf.mxu0 }
 0x16c   :  { %v744_v28 = vadd.f32 %v743_v26, %v673_v25  ;;  %v1050_v25 = vld [vmem:[%s3132_s5 + $0x20] sm:$0xff] }
 0x16d   :  { %v745_v29 = vpop.f32.mrf.mxu0  ;;  %v1114_v26 = vld [vmem:[%s3132_s5 + $0x220] sm:$0xff] }
 0x16e   :  { %v746_v30 = vadd.f32 %v745_v29, %v675_v27  ;;  %v748_v32 = vmax.f32 %v744_v28, 0.0  ;;  %v1049_v27 = vld [vmem:[%s3132_s5 + $0x18] sm:$0xff]  ;;  %v1048_v29 = vld [vmem:[%s3132_s5 + $0x10] sm:$0xff] }
 0x16f   :  { %v1113_v28 = vld [vmem:[%s3132_s5 + $0x218] sm:$0xff] }
 0x170   :  { %v749_v31 = vmax.f32 %v746_v30, 0.0  ;;  %v1112_v30 = vld [vmem:[%s3132_s5 + $0x210] sm:$0xff] }
 0x172   :  { %964 = vmatprep.mubr.f32.mxu1 %v749_v31  ;;  %1035 = vmatprep.mubr.f32.mxu0 %v749_v31  ;;  %v1047_v31 = vld [vmem:[%s3132_s5 + $0x8] sm:$0xff] }
 0x173   :  { %965 = vmatmul.mubr.f32.vlgmr.msra.gmra.mxu1 %v748_v32  ;;  %1036 = vmatmul.mubr.f32.vlgmr.msra.gmra.mxu0 %v748_v32  ;;  %v1111_v32 = vld [vmem:[%s3132_s5 + $0x208] sm:$0xff] }
 0x174   :  { %1187 = vmatpush1.msra.mxu1 %v1076_v33  ;;  %1258 = vmatpush1.msra.mxu0 %v1140_v34  ;;  %v1046_v33 = vld [vmem:[%s3132_s5] sm:$0xff] }
 0x175   :  { %1188 = vmatprep.subr.mxu1 %v1075_v35  ;;  %1259 = vmatprep.subr.mxu0 %v1139_v36  ;;  %v1110_v34 = vld [vmem:[%s3132_s5 + $0x200] sm:$0xff]  ;;  %v1109_v35 = vld [vmem:[%s3132_s5 + $0x1f8] sm:$0xff] }
 0x176   :  { %1189 = vmatpush1.msra.mxu1 %v1074_v37  ;;  %1260 = vmatpush1.msra.mxu0 %v1138_v39  ;;  %v1173_v36 = vld [vmem:[%s3132_s5 + $0x3f8] sm:$0xff]  ;;  %v1108_v37 = vld [vmem:[%s3132_s5 + $0x1f0] sm:$0xff] }
 0x177   :  { %1190 = vmatprep.subr.mxu1 %v1073_v40  ;;  %1261 = vmatprep.subr.mxu0 %v1137_v41  ;;  %v1172_v39 = vld [vmem:[%s3132_s5 + $0x3f0] sm:$0xff]  ;;  %v1107_v40 = vld [vmem:[%s3132_s5 + $0x1e8] sm:$0xff] }
 0x178   :  { %1191 = vmatpush1.msra.mxu1 %v1072_v42  ;;  %1262 = vmatpush1.msra.mxu0 %v1136_v43  ;;  %v1171_v41 = vld [vmem:[%s3132_s5 + $0x3e8] sm:$0xff]  ;;  %v1106_v42 = vld [vmem:[%s3132_s5 + $0x1e0] sm:$0xff] }
 0x179   :  { %1192 = vmatprep.subr.mxu1 %v1071_v44  ;;  %1263 = vmatprep.subr.mxu0 %v1135_v45  ;;  %v1170_v43 = vld [vmem:[%s3132_s5 + $0x3e0] sm:$0xff]  ;;  %v1105_v44 = vld [vmem:[%s3132_s5 + $0x1d8] sm:$0xff] }
 0x17a   :  { %1193 = vmatpush1.msra.mxu1 %v1070_v46  ;;  %1264 = vmatpush1.msra.mxu0 %v1134_v47  ;;  %v1169_v45 = vld [vmem:[%s3132_s5 + $0x3d8] sm:$0xff]  ;;  %v1104_v46 = vld [vmem:[%s3132_s5 + $0x1d0] sm:$0xff] }
 0x17b   :  { %1194 = vmatprep.subr.mxu1 %v1069_v49  ;;  %1265 = vmatprep.subr.mxu0 %v1133_v50  ;;  %v1168_v47 = vld [vmem:[%s3132_s5 + $0x3d0] sm:$0xff]  ;;  %v1103_v49 = vld [vmem:[%s3132_s5 + $0x1c8] sm:$0xff] }
 0x17c   :  { %1195 = vmatpush1.msra.mxu1 %v1068_v51  ;;  %1266 = vmatpush1.msra.mxu0 %v1132_v52  ;;  %v1167_v50 = vld [vmem:[%s3132_s5 + $0x3c8] sm:$0xff]  ;;  %v1102_v51 = vld [vmem:[%s3132_s5 + $0x1c0] sm:$0xff] }
 0x17d   :  { %1196 = vmatprep.subr.mxu1 %v1067_v53  ;;  %1267 = vmatprep.subr.mxu0 %v1131_v54  ;;  %v1166_v52 = vld [vmem:[%s3132_s5 + $0x3c0] sm:$0xff]  ;;  %v1101_v53 = vld [vmem:[%s3132_s5 + $0x1b8] sm:$0xff] }
 0x17e   :  { %1197 = vmatpush1.msra.mxu1 %v1066_v55  ;;  %1268 = vmatpush1.msra.mxu0 %v1130_v56  ;;  %v1165_v54 = vld [vmem:[%s3132_s5 + $0x3b8] sm:$0xff]  ;;  %v1100_v55 = vld [vmem:[%s3132_s5 + $0x1b0] sm:$0xff] }
 0x17f   :  { %1198 = vmatprep.subr.mxu1 %v1065_v57  ;;  %1269 = vmatprep.subr.mxu0 %v1129_v58  ;;  %v1164_v56 = vld [vmem:[%s3132_s5 + $0x3b0] sm:$0xff]  ;;  %v1099_v57 = vld [vmem:[%s3132_s5 + $0x1a8] sm:$0xff] }
 0x180   :  { %1199 = vmatpush1.msra.mxu1 %v1064_v59  ;;  %1270 = vmatpush1.msra.mxu0 %v1128_v60  ;;  %v1163_v58 = vld [vmem:[%s3132_s5 + $0x3a8] sm:$0xff]  ;;  %v1098_v59 = vld [vmem:[%s3132_s5 + $0x1a0] sm:$0xff] }
 0x181   :  { %1200 = vmatprep.subr.mxu1 %v1063_v61  ;;  %1271 = vmatprep.subr.mxu0 %v1127_v62  ;;  %v1162_v60 = vld [vmem:[%s3132_s5 + $0x3a0] sm:$0xff]  ;;  %v1097_v61 = vld [vmem:[%s3132_s5 + $0x198] sm:$0xff] }
 0x182   :  { %1201 = vmatpush1.msra.mxu1 %v1062_v63  ;;  %1272 = vmatpush1.msra.mxu0 %v1126_v0  ;;  %v1161_v62 = vld [vmem:[%s3132_s5 + $0x398] sm:$0xff]  ;;  %v1096_v63 = vld [vmem:[%s3132_s5 + $0x190] sm:$0xff] }
 0x183   :  { %1202 = vmatprep.subr.mxu1 %v1061_v1  ;;  %1273 = vmatprep.subr.mxu0 %v1125_v2  ;;  %v1160_v0 = vld [vmem:[%s3132_s5 + $0x390] sm:$0xff]  ;;  %v1095_v1 = vld [vmem:[%s3132_s5 + $0x188] sm:$0xff] }
 0x184   :  { %1203 = vmatpush1.msra.mxu1 %v1060_v3  ;;  %1274 = vmatpush1.msra.mxu0 %v1124_v4  ;;  %v1159_v2 = vld [vmem:[%s3132_s5 + $0x388] sm:$0xff]  ;;  %v1094_v3 = vld [vmem:[%s3132_s5 + $0x180] sm:$0xff] }
 0x185   :  { %1204 = vmatprep.subr.mxu1 %v1059_v5  ;;  %1275 = vmatprep.subr.mxu0 %v1123_v7  ;;  %v1158_v4 = vld [vmem:[%s3132_s5 + $0x380] sm:$0xff]  ;;  %v1093_v5 = vld [vmem:[%s3132_s5 + $0x178] sm:$0xff] }
 0x186   :  { %1205 = vmatpush1.msra.mxu1 %v1058_v9  ;;  %1276 = vmatpush1.msra.mxu0 %v1122_v10  ;;  %v1157_v7 = vld [vmem:[%s3132_s5 + $0x378] sm:$0xff]  ;;  %v1092_v9 = vld [vmem:[%s3132_s5 + $0x170] sm:$0xff] }
 0x187   :  { %1206 = vmatprep.subr.mxu1 %v1057_v11  ;;  %1277 = vmatprep.subr.mxu0 %v1121_v12  ;;  %v1156_v10 = vld [vmem:[%s3132_s5 + $0x370] sm:$0xff]  ;;  %v1091_v11 = vld [vmem:[%s3132_s5 + $0x168] sm:$0xff] }
 0x188   :  { %1207 = vmatpush1.msra.mxu1 %v1056_v13  ;;  %1278 = vmatpush1.msra.mxu0 %v1120_v14  ;;  %v1155_v12 = vld [vmem:[%s3132_s5 + $0x368] sm:$0xff]  ;;  %v1090_v13 = vld [vmem:[%s3132_s5 + $0x160] sm:$0xff] }
 0x189   :  { %1208 = vmatprep.subr.mxu1 %v1055_v15  ;;  %1279 = vmatprep.subr.mxu0 %v1119_v16  ;;  %v1154_v14 = vld [vmem:[%s3132_s5 + $0x360] sm:$0xff]  ;;  %v1089_v15 = vld [vmem:[%s3132_s5 + $0x158] sm:$0xff] }
 0x18a   :  { %1209 = vmatpush1.msra.mxu1 %v1054_v17  ;;  %1280 = vmatpush1.msra.mxu0 %v1118_v18  ;;  %v1153_v16 = vld [vmem:[%s3132_s5 + $0x358] sm:$0xff]  ;;  %v1088_v17 = vld [vmem:[%s3132_s5 + $0x150] sm:$0xff] }
 0x18b   :  { %1210 = vmatprep.subr.mxu1 %v1053_v19  ;;  %1281 = vmatprep.subr.mxu0 %v1117_v21  ;;  %v1152_v18 = vld [vmem:[%s3132_s5 + $0x350] sm:$0xff]  ;;  %v1087_v19 = vld [vmem:[%s3132_s5 + $0x148] sm:$0xff] }
 0x18c   :  { %1211 = vmatpush1.msra.mxu1 %v1052_v22  ;;  %1282 = vmatpush1.msra.mxu0 %v1116_v23  ;;  %v1151_v21 = vld [vmem:[%s3132_s5 + $0x348] sm:$0xff]  ;;  %v1086_v22 = vld [vmem:[%s3132_s5 + $0x140] sm:$0xff] }
 0x18d   :  { %1212 = vmatprep.subr.mxu1 %v1051_v24  ;;  %1283 = vmatprep.subr.mxu0 %v1115_v20  ;;  %v1150_v23 = vld [vmem:[%s3132_s5 + $0x340] sm:$0xff]  ;;  %v1085_v24 = vld [vmem:[%s3132_s5 + $0x138] sm:$0xff] }
 0x18e   :  { %1213 = vmatpush1.msra.mxu1 %v1050_v25  ;;  %1284 = vmatpush1.msra.mxu0 %v1114_v26  ;;  %v1149_v20 = vld [vmem:[%s3132_s5 + $0x338] sm:$0xff]  ;;  %v1084_v25 = vld [vmem:[%s3132_s5 + $0x130] sm:$0xff] }
 0x18f   :  { %1214 = vmatprep.subr.mxu1 %v1049_v27  ;;  %1285 = vmatprep.subr.mxu0 %v1113_v28  ;;  %v1148_v26 = vld [vmem:[%s3132_s5 + $0x330] sm:$0xff]  ;;  %v1083_v27 = vld [vmem:[%s3132_s5 + $0x128] sm:$0xff] }
 0x190   :  { %1215 = vmatpush1.msra.mxu1 %v1048_v29  ;;  %1286 = vmatpush1.msra.mxu0 %v1112_v30  ;;  %v1147_v28 = vld [vmem:[%s3132_s5 + $0x328] sm:$0xff]  ;;  %v1082_v29 = vld [vmem:[%s3132_s5 + $0x120] sm:$0xff] }
 0x191   :  { %1216 = vmatprep.subr.mxu1 %v1047_v31  ;;  %1287 = vmatprep.subr.mxu0 %v1111_v32  ;;  %v1146_v30 = vld [vmem:[%s3132_s5 + $0x320] sm:$0xff]  ;;  %v1081_v31 = vld [vmem:[%s3132_s5 + $0x118] sm:$0xff] }
 0x192   :  { %1217 = vmatpush1.msra.mxu1 %v1046_v33  ;;  %1288 = vmatpush1.msra.mxu0 %v1110_v34  ;;  %v1145_v32 = vld [vmem:[%s3132_s5 + $0x318] sm:$0xff]  ;;  %v1080_v33 = vld [vmem:[%s3132_s5 + $0x110] sm:$0xff] }
 0x193   :  { %1218 = vmatprep.subr.mxu1 %v1109_v35  ;;  %1289 = vmatprep.subr.mxu0 %v1173_v36  ;;  %v1144_v34 = vld [vmem:[%s3132_s5 + $0x310] sm:$0xff]  ;;  %v1079_v35 = vld [vmem:[%s3132_s5 + $0x108] sm:$0xff] }
 0x194   :  { %1219 = vmatpush2.msra.mxu1 %v1108_v37  ;;  %1290 = vmatpush2.msra.mxu0 %v1172_v39  ;;  %v1143_v36 = vld [vmem:[%s3132_s5 + $0x308] sm:$0xff]  ;;  %v1078_v37 = vld [vmem:[%s3132_s5 + $0x100] sm:$0xff] }
 0x195   :  { %1220 = vmatprep.subr.mxu1 %v1107_v40  ;;  %1291 = vmatprep.subr.mxu0 %v1171_v41  ;;  %v1142_v39 = vld [vmem:[%s3132_s5 + $0x300] sm:$0xff]  ;;  %v890_v40 = vsub.s32 2, %v1724_v38 }
 0x196   :  { %1221 = vmatpush2.msra.mxu1 %v1106_v42  ;;  %1292 = vmatpush2.msra.mxu0 %v1170_v43  ;;  %v878_v41 = vld [vmem:[%s3131_s4] sm:$0xf]  ;;  %v894_v42 = vsub.s32 3, %v1724_v38 }
 0x197   :  { %1222 = vmatprep.subr.mxu1 %v1105_v44  ;;  %1293 = vmatprep.subr.mxu0 %v1169_v45  ;;  %v883_v43 = vrot.slane %v878_v41, %v2723_v6  ;;  %v891_v44 = vrot.slane %v878_v41, %v890_v40  ;;  %v887_v45 = vrot.slane %v878_v41, %v2729_v8  ;;  %v1174_v38 = vld [vmem:[%s3133_s6] sm:$0x3]  ;;  %s1363_s6 = scalar_lea.vmem %s1350_s15, 64 }
 0x198   :  { %1223 = vmatpush2.msra.mxu1 %v1104_v46  ;;  %1294 = vmatpush2.msra.mxu0 %v1168_v47  ;;  %v895_v46 = vrot.slane %v878_v41, %v894_v42  ;;  %p1364_p0 = scmp.ne.s32.totalorder %s1350_s15, %s1363_s6  ;;  %p1369_p2 = scmp.lt.s32.totalorder %s1363_s6, %s1363_s6 }
 0x199   :  { %1224 = vmatprep.subr.mxu1 %v1103_v49  ;;  %1295 = vmatprep.subr.mxu0 %v1167_v50 }
 0x19a   :  { %1225 = vmatpush2.msra.mxu1 %v1102_v51  ;;  %1296 = vmatpush2.msra.mxu0 %v1166_v52  ;;  %p1370_p3 = por %p1369_p2, %p1368_p1 }
 0x19b   :  { %1226 = vmatprep.subr.mxu1 %v1101_v53  ;;  %1297 = vmatprep.subr.mxu0 %v1165_v54 }
 0x19c   :  { %1227 = vmatpush2.msra.mxu1 %v1100_v55  ;;  %1298 = vmatpush2.msra.mxu0 %v1164_v56  ;;  %p1371_p4 = pnand %p1370_p3, %p1364_p0 }
 0x19d   :  { %1228 = vmatprep.subr.mxu1 %v1099_v57  ;;  %1299 = vmatprep.subr.mxu0 %v1163_v58 }
 0x19e   :  { %1229 = vmatpush2.msra.mxu1 %v1098_v59  ;;  %1300 = vmatpush2.msra.mxu0 %v1162_v60  ;;  %v1179_v60 = vrot.slane %v1174_v38, %v2723_v6 }
 0x19f   :  { %1230 = vmatprep.subr.mxu1 %v1097_v61  ;;  %1301 = vmatprep.subr.mxu0 %v1161_v62  ;;  %v1183_v61 = vrot.slane %v1174_v38, %v2729_v8 }
 0x1a0   :  { %1231 = vmatpush2.msra.mxu1 %v1096_v63  ;;  %1302 = vmatpush2.msra.mxu0 %v1160_v0 }
 0x1a1   :  { %1232 = vmatprep.subr.mxu1 %v1095_v1  ;;  %1303 = vmatprep.subr.mxu0 %v1159_v2 }
 0x1a2   :  { %1233 = vmatpush2.msra.mxu1 %v1094_v3  ;;  %1304 = vmatpush2.msra.mxu0 %v1158_v4 }
 0x1a3   :  { %1234 = vmatprep.subr.mxu1 %v1093_v5  ;;  %1305 = vmatprep.subr.mxu0 %v1157_v7 }
 0x1a4   :  { %1235 = vmatpush2.msra.mxu1 %v1092_v9  ;;  %1306 = vmatpush2.msra.mxu0 %v1156_v10 }
 0x1a5   :  { %1236 = vmatprep.subr.mxu1 %v1091_v11  ;;  %1307 = vmatprep.subr.mxu0 %v1155_v12 }
 0x1a6   :  { %1237 = vmatpush2.msra.mxu1 %v1090_v13  ;;  %1308 = vmatpush2.msra.mxu0 %v1154_v14 }
 0x1a7   :  { %1238 = vmatprep.subr.mxu1 %v1089_v15  ;;  %1309 = vmatprep.subr.mxu0 %v1153_v16 }
 0x1a8   :  { %1239 = vmatpush2.msra.mxu1 %v1088_v17  ;;  %1310 = vmatpush2.msra.mxu0 %v1152_v18 }
 0x1a9   :  { %1240 = vmatprep.subr.mxu1 %v1087_v19  ;;  %1311 = vmatprep.subr.mxu0 %v1151_v21 }
 0x1aa   :  { %1241 = vmatpush2.msra.mxu1 %v1086_v22  ;;  %1312 = vmatpush2.msra.mxu0 %v1150_v23 }
 0x1ab   :  { %1242 = vmatprep.subr.mxu1 %v1085_v24  ;;  %1313 = vmatprep.subr.mxu0 %v1149_v20 }
 0x1ac   :  { %1243 = vmatpush2.msra.mxu1 %v1084_v25  ;;  %1314 = vmatpush2.msra.mxu0 %v1148_v26 }
 0x1ad   :  { %1244 = vmatprep.subr.mxu1 %v1083_v27  ;;  %1315 = vmatprep.subr.mxu0 %v1147_v28 }
 0x1ae   :  { %1245 = vmatpush2.msra.mxu1 %v1082_v29  ;;  %1316 = vmatpush2.msra.mxu0 %v1146_v30 }
 0x1af   :  { %1246 = vmatprep.subr.mxu1 %v1081_v31  ;;  %1317 = vmatprep.subr.mxu0 %v1145_v32 }
 0x1b0   :  { %1247 = vmatpush2.msra.mxu1 %v1080_v33  ;;  %1318 = vmatpush2.msra.mxu0 %v1144_v34 }
 0x1b1   :  { %1248 = vmatprep.subr.mxu1 %v1079_v35  ;;  %1319 = vmatprep.subr.mxu0 %v1143_v36 }
 0x1b2   :  { %1249 = vmatpush2.msra.mxu1 %v1078_v37  ;;  %1320 = vmatpush2.msra.mxu0 %v1142_v39 }
 0x233   :  { %v966_v47 = vpop.f32.mrf.mxu1  ;;  %v1037_v49 = vpop.f32.mrf.mxu0 }
 0x234   :  { %v967_v50 = vadd.f32 %v966_v47, %v883_v43  ;;  %v1038_v51 = vadd.f32 %v1037_v49, %v891_v44 }
 0x235   :  { %v968_v52 = vpop.f32.mrf.mxu1  ;;  %v1039_v53 = vpop.f32.mrf.mxu0 }
 0x236   :  { %v969_v54 = vadd.f32 %v968_v52, %v887_v45  ;;  %v1040_v55 = vadd.f32 %v1039_v53, %v895_v46  ;;  %v1042_v58 = vmax.f32 %v967_v50, 0.0  ;;  %v1044_v59 = vmax.f32 %v1038_v51, 0.0 }
 0x238   :  { %v1043_v56 = vmax.f32 %v969_v54, 0.0  ;;  %v1045_v57 = vmax.f32 %v1040_v55, 0.0 }
 0x23a   :  { %1250 = vmatprep.mubr.f32.mxu1 %v1043_v56  ;;  %1321 = vmatprep.mubr.f32.mxu0 %v1045_v57 }
 0x23b   :  { %1251 = vmatmul.mubr.f32.vlgmr.msra.gmra.mxu1 %v1042_v58  ;;  %1322 = vmatmul.mubr.f32.vlgmr.msra.gmra.mxu0 %v1044_v59 }
 0x2fb   :  { %v1252_v62 = vpop.f32.mrf.mxu1  ;;  %v1323_v63 = vpop.f32.mrf.mxu0 }
 0x2fc   :  { %v1253_v0 = vadd.f32 %v1252_v62, %v1179_v60 }
 0x2fd   :  { %v1254_v1 = vpop.f32.mrf.mxu1  ;;  %v1325_v3 = vpop.f32.mrf.mxu0 }
 0x2fe   :  { %v1255_v2 = vadd.f32 %v1254_v1, %v1183_v61  ;;  %v1324_v4 = vadd.f32 %v1323_v63, %v1253_v0 }
 0x300   :  { %v1326_v5 = vadd.f32 %v1325_v3, %v1255_v2 }
 0x302   :  { %v1330_v7 = vcombine.low %v1324_v4, %v1326_v5 }
 0x304   :  { %v1337_v9 = vrot.slane %v1330_v7, %v1751_v48 }
 0x306   :  { %1342 = vst.msk [vmem:[#allocation2] sm:$0xf] %vm1341_vm3, %v1337_v9 }
 0x307   :  { %1374 = shalt.err (!%p1371_p4)
}
 0x308   :  { %1352 = dma.vmem_to_hbm [thread:$0]  %s1350_s15, 64, %s3134_s7, [#allocation3]  }
 0x309   :  { %1383 = dma.done.wait [#allocation3], 64  }
 0x30a   :  { %1384 = vsyncadd [#allocation3], 4294967232 }
 0x30b   :  { %1356 = vsyncpa [#allocation3], 1 }

// kernel: net_forward.2
= control target key start
LH: loop header
LB: loop body
LE: loop exit
PB: predicated region body
PF: predicated region fallthrough
CT: control target
= control target key end

     0   :  { %s18072_s0 = inlined_call_operand.hbm [shape: f32[2,192,64], index: 0, kind: input, shape index: {}]   ;;  %s18073_s1 = inlined_call_operand.hbm [shape: f32[3,192,192], index: 1, kind: input, shape index: {}]   ;;  %s18074_s2 = inlined_call_operand.hbm [shape: f32[3,64,64], index: 2, kind: input, shape index: {}]   ;;  %s18075_s3 = inlined_call_operand.vmem [shape: f32[192,1], index: 3, kind: input, shape index: {}]   ;;  %s18076_s4 = inlined_call_operand.hbm [shape: f32[2,96,192], index: 4, kind: input, shape index: {}]   ;;  %s18077_s5 = inlined_call_operand.vmem [shape: f32[2,64,32], index: 5, kind: input, shape index: {}]   ;;  %s18078_s6 = inlined_call_operand.hbm [shape: f32[5,180,96], index: 6, kind: input, shape index: {}]   ;;  %s18079_s7 = inlined_call_operand.hbm [shape: f32[5,32,30], index: 7, kind: input, shape index: {}]   ;;  %s18080_s8 = inlined_call_operand.vmem [shape: f32[180,1], index: 8, kind: input, shape index: {}]   ;;  %s18081_s9 = inlined_call_operand.hbm [shape: f32[5,168,180], index: 9, kind: input, shape index: {}]   ;;  %s18082_s10 = inlined_call_operand.vmem [shape: f32[5,30,14], index: 10, kind: input, shape index: {}]   ;;  %s18083_s11 = inlined_call_operand.vmem [shape: f32[168,1], index: 11, kind: input, shape index: {}]   ;;  %s18084_s12 = inlined_call_operand.hbm [shape: f32[3,168,168], index: 12, kind: input, shape index: {}]   ;;  %s18085_s13 = inlined_call_operand.vmem [shape: f32[3,14,7], index: 13, kind: input, shape index: {}]   ;;  %s18086_s14 = inlined_call_operand.vmem [shape: f32[168,1], index: 14, kind: input, shape index: {}]   ;;  %s18087_s15 = inlined_call_operand.vmem [shape: f32[2,168,7], index: 15, kind: output, shape index: {}]  }
   0x1   :  { %18103 = sst [smem:[#allocation21_spill]] %s18073_s1 }
   0x2   :  { %18104 = sst [smem:[#allocation22_spill]] %s18074_s2 }
   0x3   :  { %18105 = sst [smem:[#allocation23_spill]] %s18082_s10 }
   0x4   :  { %18106 = sst [smem:[#allocation24_spill]] %s18085_s13 }
   0x5   :  { %18107 = sst [smem:[#allocation25_spill]] %s18087_s15 }
   0x6   :  { %20 = vsyncpa [#allocation3], 0 }
   0x7   :  { %22 = vsyncpa [#allocation3 + $0x1], 0 }
   0x8   :  { %23 = vsyncpa [#allocation5], 0 }
   0x9   :  { %24 = vsyncpa [#allocation8], 0 }
   0xa   :  { %25 = vsyncpa [#allocation11], 0 }
   0xb   :  { %26 = vsyncpa [#allocation14], 0  ;;  %s13662_s18 = smov 0   ;;  %s13664_s19 = smov 0  }
   0xc   :  { %s13666_s20 = smov 0   ;;  %s13668_s21 = smov 0  }
   0xd LB: > { %s13567_s22 = smov [#allocation4]   ;;  %s13683_s24 = sadd.s32 4294967295, %s13565_s21   ;;  %s13565_s21 = sphi %s13668_s21, %s18138_s21   ;;  %s13561_s20 = sphi %s13666_s20, %s18137_s20   ;;  %s13557_s19 = sphi %s13664_s19, %s18136_s19   ;;  %s13553_s18 = sphi %s13662_s18, %s18135_s18  }
   0xe   : > { %s395_s23 = sshll.u32 %s13567_s22, 4  ;;  %p10250_p0 = scmp.ge.s32.totalorder %s13565_s21, 1  ;;  %s396_s23 = int_to_ptr.vmem [resolvable:$true] %s395_s23 }
   0xf   : > { %p18096_p1 = scmp.eq.s32.totalorder %s13683_s24, 0  ;;  %p383_p2 = scmp.lt.s32.totalorder %s13565_s21, 3 }
  0x10   : > { %s13568_s26 = smov [#allocation7]   ;;  %s13569_s29 = smov [#allocation10]  }
  0x11   : > { %p13688_p3 = pnand %p10250_p0, %p383_p2  ;;  %s424_s27 = sshll.u32 %s13568_s26, 4  ;;  %s425_s27 = int_to_ptr.vmem [resolvable:$true] %s424_s27 }
  0x12   : > { %s453_s30 = sshll.u32 %s13569_s29, 4  ;;  %s13316_s17 = scalar_lea.vmem %s396_s23, 18432  ;;  %s454_s30 = int_to_ptr.vmem [resolvable:$true] %s453_s30 }
  0x13   : > { %s18108_s25 = scalar_select %p13688_p3, 1, 0 }
  0x14   : > { %p13215_p4 = pneg %p13688_p3  ;;  %p13317_p7 = scmp.ne.s32.totalorder %s396_s23, %s13316_s17 }
  0x15   : > { %p13324_p10 = scmp.lt.s32.totalorder %s396_s23, %s396_s23  ;;  %p13325_p11 = scmp.lt.s32.totalorder %s13316_s17, %s13316_s17 }
  0x16   : > { %p13696_p5 = pnand %p13215_p4, %p18096_p1 }
  0x17   : > { %p13326_p12 = por %p13325_p11, %p13324_p10 }
  0x18   : > { %p13702_p6 = pneg %p13696_p5 }
  0x1a   : > { %p13319_p8 = pnand %p13317_p7, %p13702_p6 }
  0x1c   : > { %p13320_p9 = pneg %p13319_p8 }
  0x1e   : > { %p13327_p13 = pnand %p13326_p12, %p13320_p9 }
  0x20   : > { %13330 = shalt.err (!%p13327_p13)
}
  0x21   : > { %s18090_s22 = smov 256   ;;  %s18092_s26 = smov 16  }
  0x22   : > { %s18111_s1 = sld [smem:[#allocation21_spill]]  ;;  %s13342_s13 = scalar_lea.vmem %s425_s27, 6144 }
  0x23   : > { %p13343_p0 = scmp.ne.s32.totalorder %s425_s27, %s13342_s13  ;;  %p13350_p7 = scmp.lt.s32.totalorder %s425_s27, %s425_s27 }
  0x24   : > { %p13351_p8 = scmp.lt.s32.totalorder %s13342_s13, %s13342_s13 }
  0x25   : > { %p13345_p2 = pnand %p13343_p0, %p13702_p6 }
  0x26   : > { %p13352_p9 = por %p13351_p8, %p13350_p7 }
  0x27   : > { %p13346_p4 = pneg %p13345_p2 }
  0x28   : > { %13218 = dma.hbm_to_vmem [thread:$0]  (!%p13696_p5), %s18111_s1, 18432, %s396_s23, [#allocation5], %s18090_s22, %s18090_s22, %s18092_s26  }
  0x29   : > { %p13353_p10 = pnand %p13352_p9, %p13346_p4 }
  0x2b   : > { %13356 = shalt.err (!%p13353_p10)
}
  0x2c   : > { %13224 = dma.hbm_to_vmem [thread:$0]  (!%p13696_p5), %s18076_s4, 6144, %s425_s27, [#allocation8], %s18090_s22, %s18090_s22, %s18092_s26  }
  0x2d   : > { %s13368_s15 = scalar_lea.vmem %s454_s30, 2560  ;;  %p13376_p0 = scmp.lt.s32.totalorder %s454_s30, %s454_s30 }
  0x2e   : > { %p13369_p11 = scmp.ne.s32.totalorder %s454_s30, %s13368_s15  ;;  %p13377_p2 = scmp.lt.s32.totalorder %s13368_s15, %s13368_s15 }
  0x30   : > { %p13371_p12 = pnand %p13369_p11, %p13702_p6  ;;  %p13378_p4 = por %p13377_p2, %p13376_p0 }
  0x32   : > { %p13372_p13 = pneg %p13371_p12 }
  0x34   : > { %p13379_p7 = pnand %p13378_p4, %p13372_p13 }
  0x36   : > { %13382 = shalt.err (!%p13379_p7)
}
  0x37   : > { %s18094_s13 = smov 128   ;;  %s18095_s23 = smov 8  }
  0x38   : > { %13230 = dma.hbm_to_vmem [thread:$0]  (!%p13696_p5), %s18079_s7, 2560, %s454_s30, [#allocation11], %s18094_s13, %s18094_s13, %s18095_s23  }
  0x39   : > { %s13574_s29 = smov [#allocation6]   ;;  %s13575_s22 = smov [#allocation9]  }
  0x3a   : > { %s408_s17 = sshll.u32 %s13574_s29, 4  ;;  %s440_s15 = sshll.u32 %s13575_s22, 4  ;;  %s409_s17 = int_to_ptr.vmem [resolvable:$true] %s408_s17  ;;  %s441_s15 = int_to_ptr.vmem [resolvable:$true] %s440_s15 }
  0x3b   : > { %s13394_s26 = scalar_lea.vmem %s409_s17, 3072  ;;  %p13402_p11 = scmp.lt.s32.totalorder %s409_s17, %s409_s17 }
  0x3c   : > { %p13395_p8 = scmp.ne.s32.totalorder %s409_s17, %s13394_s26  ;;  %p13403_p12 = scmp.lt.s32.totalorder %s13394_s26, %s13394_s26 }
  0x3e   : > { %p13397_p9 = pnand %p13395_p8, %p13702_p6  ;;  %p13404_p13 = por %p13403_p12, %p13402_p11 }
  0x40   : > { %p13398_p10 = pneg %p13397_p9 }
  0x42   : > { %p13405_p0 = pnand %p13404_p13, %p13398_p10 }
  0x44   : > { %13408 = shalt.err (!%p13405_p0)
}
  0x45   : > { %s18112_s2 = sld [smem:[#allocation22_spill]]  ;;  %s13420_s22 = scalar_lea.vmem %s441_s15, 14720 }
  0x46   : > { %p13421_p2 = scmp.ne.s32.totalorder %s441_s15, %s13420_s22  ;;  %p13428_p8 = scmp.lt.s32.totalorder %s441_s15, %s441_s15 }
  0x47   : > { %p13429_p9 = scmp.lt.s32.totalorder %s13420_s22, %s13420_s22 }
  0x48   : > { %p13423_p4 = pnand %p13421_p2, %p13702_p6 }
  0x49   : > { %p13430_p10 = por %p13429_p9, %p13428_p8 }
  0x4a   : > { %p13424_p7 = pneg %p13423_p4 }
  0x4b   : > { %13221 = dma.hbm_to_vmem [thread:$0]  (!%p13696_p5), %s18112_s2, 3072, %s409_s17, [#allocation5], %s18094_s13, %s18094_s13, %s18095_s23  }
  0x4c   : > { %p13431_p11 = pnand %p13430_p10, %p13424_p7 }
  0x4e   : > { %13434 = shalt.err (!%p13431_p11)
}
  0x4f   : > { %13227 = dma.hbm_to_vmem [thread:$0]  (!%p13696_p5), %s18078_s6, 14720, %s441_s15, [#allocation8], %s18094_s13, %s18094_s13, %s18095_s23  }
  0x50   : > { %s13576_s29 = smov [#allocation12]   ;;  %s13577_s30 = smov [#allocation13]  }
  0x51   : > { %s469_s17 = sshll.u32 %s13576_s29, 4  ;;  %s488_s10 = sshll.u32 %s13577_s30, 4  ;;  %s470_s17 = int_to_ptr.vmem [resolvable:$true] %s469_s17  ;;  %s489_s10 = int_to_ptr.vmem [resolvable:$true] %s488_s10 }
  0x52   : > { %s13446_s1 = scalar_lea.vmem %s470_s17, 26880  ;;  %p13454_p2 = scmp.lt.s32.totalorder %s470_s17, %s470_s17 }
  0x53   : > { %p13447_p12 = scmp.ne.s32.totalorder %s470_s17, %s13446_s1  ;;  %p13455_p4 = scmp.lt.s32.totalorder %s13446_s1, %s13446_s1 }
  0x55   : > { %p13449_p13 = pnand %p13447_p12, %p13702_p6  ;;  %p13456_p7 = por %p13455_p4, %p13454_p2 }
  0x57   : > { %p13450_p0 = pneg %p13449_p13 }
  0x59   : > { %p13457_p8 = pnand %p13456_p7, %p13450_p0 }
  0x5b   : > { %13460 = shalt.err (!%p13457_p8)
}
  0x5c   : > { %s18113_s22 = smov 16   ;;  %s18114_s26 = smov 256  }
  0x5d   : > { %13233 = dma.hbm_to_vmem [thread:$0]  (!%p13696_p5), %s18081_s9, 26880, %s470_s17, [#allocation11], %s18114_s26, %s18114_s26, %s18113_s22  }
  0x5e   : > { %s13472_s29 = scalar_lea.vmem %s489_s10, 16128  ;;  %p13480_p12 = scmp.lt.s32.totalorder %s489_s10, %s489_s10 }
  0x5f   : > { %p13473_p9 = scmp.ne.s32.totalorder %s489_s10, %s13472_s29  ;;  %p13481_p13 = scmp.lt.s32.totalorder %s13472_s29, %s13472_s29 }
  0x61   : > { %p13475_p10 = pnand %p13473_p9, %p13702_p6  ;;  %p13482_p0 = por %p13481_p13, %p13480_p12 }
  0x63   : > { %p13476_p11 = pneg %p13475_p10 }
  0x65   : > { %p13483_p2 = pnand %p13482_p0, %p13476_p11 }
  0x67   : > { %13486 = shalt.err (!%p13483_p2)
}
  0x68   : > { %13236 = dma.hbm_to_vmem [thread:$0]  (!%p13696_p5), %s18084_s12, 16128, %s489_s10, [#allocation14], %s18114_s26, %s18114_s26, %s18113_s22  }
  0x69   : > { %s13777_s28 = sadd.s32 1, %s13565_s21   ;;  %s39_s17 = sadd.s32 1, %s13561_s20 }
  0x6a   : > { %s36_s16 = ssub.s32 %s13565_s21, %s13777_s28  ;;  %p46_p4 = scmp.ne.s32.totalorder %s13561_s20, %s13557_s19 }
  0x6b   : > { %p37_p6 = scmp.eq.s32.totalorder %s36_s16, 0  ;;  %p47_p7 = scmp.eq.s32.totalorder %s13565_s21, 0 }
  0x6c   : > { %p52_p8 = scmp.ne.s32.totalorder %s13557_s19, %s13553_s18  ;;  %p13248_p11 = scmp.lt.s32.totalorder %s13565_s21, 2 }
  0x6d   : > { %s13788_s15 = scalar_select %p37_p6, %s13561_s20, %s39_s17  }
  0x6e   : > { %p48_p9 = por %p47_p7, %p46_p4  ;;  %p13792_p10 = por %p18096_p1, %p52_p8 }
  0x6f   : > { %s508_s29 = sand.u32 1, %s13561_s20   ;;  %s13182_s22 = smul.u32 3072, %s13565_s21 }
  0x70   : > { %s18115_s27 = scalar_select %p13792_p10, 1, 0 }
  0x71   : > { %s13181_s10 = smul.u32 192, %s508_s29  ;;  %p13799_p5 = pnand %p13248_p11, %p48_p9 }
  0x72   : > { %s13806_s18 = scalar_lea.hbm %s18072_s0, %s13182_s22  ;;  %s13810_s13 = scalar_lea.sflag [#allocation3], %s508_s29 }
  0x73   : > { %s512_s16 = scalar_lea.vmem [#allocation2], %s13181_s10  ;;  %s13487_s21 = scalar_lea.hbm %s13806_s18, 3072 }
  0x74   : > { %s519_s17 = sshll.u32 %s512_s16, 4  ;;  %p13488_p12 = scmp.ne.s32.totalorder %s13806_s18, %s13487_s21  ;;  %s13808_s17 = int_to_ptr.vmem [resolvable:$true] %s519_s17 }
  0x75   : > { %p13489_p13 = pneg %p13799_p5  ;;  %s13492_s22 = scalar_lea.hbm %s18072_s0, 6144 }
  0x76   : > { %p13493_p6 = scmp.lt.s32.totalorder %s13806_s18, %s18072_s0  ;;  %p13494_p4 = scmp.lt.s32.totalorder %s13492_s22, %s13487_s21 }
  0x77   : > { %p13490_p0 = pnand %p13489_p13, %p13488_p12 }
  0x78   : > { %p13495_p7 = por %p13494_p4, %p13493_p6 }
  0x79   : > { %p13491_p2 = pneg %p13490_p0 }
  0x7b   : > { %p13496_p8 = pnand %p13495_p7, %p13491_p2 }
  0x7d   : > { %13499 = shalt.err (!%p13496_p8)
}
  0x7e   : > { %s13500_s29 = scalar_lea.vmem %s13808_s17, 3072  ;;  %s13578_s10 = smov [#allocation2]  }
  0x7f   : > { %p13501_p9 = scmp.ne.s32.totalorder %s13808_s17, %s13500_s29  ;;  %s13505_s16 = sshll.u32 %s13578_s10, 4  ;;  %s13506_s16 = int_to_ptr.vmem [resolvable:$false] %s13505_s16 }
  0x80   : > { %s13507_s23 = scalar_lea.vmem %s13506_s16, 6144  ;;  %p13508_p0 = scmp.lt.s32.totalorder %s13808_s17, %s13506_s16 }
  0x81   : > { %p13503_p11 = pnand %p13501_p9, %p13489_p13  ;;  %p13509_p1 = scmp.lt.s32.totalorder %s13507_s23, %s13500_s29 }
  0x83   : > { %p13504_p12 = pneg %p13503_p11  ;;  %p13510_p10 = por %p13509_p1, %p13508_p0 }
  0x85   : > { %p13511_p3 = pnand %p13510_p10, %p13504_p12 }
  0x87   : > { %13514 = shalt.err (!%p13511_p3)
}
  0x88   : > { %s18117_s2 = smov 8   ;;  %s18118_s21 = smov 128  }
  0x89   : > { %13240 = dma.hbm_to_vmem [thread:$0]  (!%p13799_p5), %s13806_s18, 3072, %s13808_s17, %s13810_s13, %s18118_s21, %s18118_s21, %s18117_s2  }
  0x8a   : > { %p18119_p13 = scmp.ne.s32.totalorder %s18108_s25, 0 }
  0x8c   : > { %531 = sbr.rel (%p18119_p13) target bundleno = 4794 (0x12ba), region = 80 }
  0x91   : > { %s533_s1 = sand.u32 1, %s13557_s19   ;;  %p18120_p1 = scmp.ne.s32.totalorder %s18115_s27, 0 }
  0x92   : > { %s13183_s22 = smul.u32 192, %s533_s1  ;;  %s534_s30 = scalar_lea.sflag [#allocation3], %s533_s1 }
  0x94   : > { %s13837_s29 = scalar_lea.vmem [#allocation2], %s13183_s22 }
  0x95   : > { %13532 = dma.done.wait (%p18120_p1), %s534_s30, 3072  }
  0x96   : > { %13534 = vsyncadd (%p18120_p1), %s534_s30, 4294964224  ;;  %p18121_p3 = scmp.eq.s32.totalorder %s13683_s24, 0 }
  0x98   : > { %13536 = dma.done.wait (%p18121_p3), [#allocation5], 21504   ;;  %p18122_p10 = pmov %p18121_p3 }
  0x99   : > { %p18123_p5 = pmov %p18121_p3 }
  0x9a   : > { %13538 = vsyncadd (%p18122_p10), [#allocation5], 4294945792 }
  0x9b   : > { %13540 = dma.done.wait (%p18123_p5), [#allocation8], 20864   ;;  %p18124_p2 = pmov %p18121_p3 }
  0x9d   : > { %13542 = vsyncadd (%p18124_p2), [#allocation8], 4294946432  ;;  %p18125_p6 = pmov %p18124_p2 }
  0x9e   : > { %p18126_p4 = pmov %p18124_p2 }
  0x9f   : > { %13544 = dma.done.wait (%p18125_p6), [#allocation11], 29440  }
  0xa0   : > { %13546 = vsyncadd (%p18126_p4), [#allocation11], 4294937856  ;;  %p18127_p7 = pmov %p18124_p2 }
  0xa1   : > { %p18128_p8 = pmov %p18124_p2 }
  0xa2   : > { %13548 = dma.done.wait (%p18127_p7), [#allocation14], 16128  }
  0xa3   : > { %13550 = vsyncadd (%p18128_p8), [#allocation14], 4294951168  ;;  %v963_v0 = vld [vmem:[#allocation6 + $0x78] sm:$0xff]  ;;  %v962_v1 = vld [vmem:[#allocation6 + $0x70] sm:$0xff]  ;;  %vm649_vm0 = vcmask 523264   ;;  %v18099_v40 = vmov 0.0  }
  0xa4   : > { %11744 = vmatprep.subr.mxu1 %v963_v0  ;;  %v961_v2 = vld [vmem:[#allocation6 + $0x68] sm:$0xff]  ;;  %v617_v3 = vld [vmem:[%s13837_s29] sm:$0xff]  ;;  %v648_v4 = vld [vmem:[#allocation6 + $0x38] sm:$0xff]  ;;  %vm3548_vm1 = vcmask 261120   ;;  %vm13581_vm2 = vmmov 0   ;;  %vm3887_vm3 = vcmask 785408  }
  0xa5   : > { %11745 = vmatpush3.msra.mxu1 %v963_v0  ;;  %11760 = vmatprep.mubr.msk.f32.mxu1 %vm649_vm0, %v617_v3  ;;  %v960_v5 = vld [vmem:[#allocation6 + $0x60] sm:$0xff]  ;;  %v647_v6 = vld [vmem:[#allocation6 + $0x30] sm:$0xff]  ;;  %v646_v7 = vld [vmem:[#allocation6 + $0x28] sm:$0xff]  ;;  %vm5922_vm4 = vcmask 1045504   ;;  %s18129_s27 = sld [smem:[#allocation23_spill]]  ;;  %vm5852_vm5 = vcmask 244736  }
  0xa6   : > { %11746 = vmatprep.subr.mxu1 %v962_v1  ;;  %11692 = vmatprep.subr.mxu0 %v648_v4  ;;  %v959_v8 = vld [vmem:[#allocation6 + $0x58] sm:$0xff]  ;;  %v645_v9 = vld [vmem:[#allocation6 + $0x20] sm:$0xff]  ;;  %v958_v10 = vld [vmem:[#allocation6 + $0x50] sm:$0xff]  ;;  %vm6379_vm6 = vcmask 424960   ;;  %vm6443_vm7 = vcmask 1043456   ;;  %s18133_s25 = sld [smem:[#allocation24_spill]] }
  0xa7   : > { %11747 = vmatpush3.msra.mxu1 %v962_v1  ;;  %11693 = vmatpush3.msra.mxu0 %v648_v4  ;;  %v644_v11 = vld [vmem:[#allocation6 + $0x18] sm:$0xff]  ;;  %v957_v12 = vld [vmem:[#allocation6 + $0x48] sm:$0xff]  ;;  %v643_v13 = vld [vmem:[#allocation6 + $0x10] sm:$0xff]  ;;  %vm8487_vm8 = vcmask 113664   ;;  %vm8985_vm9 = vcmask 326656   ;;  %p612_p9 = scmp.lt.s32.totalorder %s13683_s24, 1 }
  0xa8   : > { %11748 = vmatprep.subr.mxu1 %v961_v2  ;;  %11694 = vmatprep.subr.mxu0 %v647_v6  ;;  %v956_v14 = vld [vmem:[#allocation6 + $0x40] sm:$0xff]  ;;  %v642_v15 = vld [vmem:[#allocation6 + $0x8] sm:$0xff]  ;;  %v13865_v17 = vld [vmem:[%s13837_s29 + $0x10] sm:$0xff]  ;;  %s18134_s13 = sld [smem:[#allocation25_spill]]  ;;  %vm10093_vm10 = vcmask 56320  }
  0xa9   : > { %11749 = vmatpush3.msra.mxu1 %v961_v2  ;;  %11695 = vmatpush3.msra.mxu0 %v647_v6  ;;  %v13862_v16 = vld [vmem:[%s13837_s29 + $0x8] sm:$0xff]  ;;  %v641_v18 = vld [vmem:[#allocation6] sm:$0xff]  ;;  %v13872_v19 = vld [vmem:[%s13837_s29 + $0x18] sm:$0xff]  ;;  %s18140_s24 = smov (!%p612_p9, %s13683_s24), 1 }
  0xaa   : > { %11750 = vmatprep.subr.mxu1 %v960_v5  ;;  %11696 = vmatprep.subr.mxu0 %v646_v7  ;;  %v13875_v20 = vld [vmem:[%s13837_s29 + $0x20] sm:$0xff]  ;;  %v13887_v21 = vld [vmem:[%s13837_s29 + $0x28] sm:$0xff]  ;;  %v13890_v22 = vld [vmem:[%s13837_s29 + $0x30] sm:$0xff]  ;;  %s13184_s22 = smul.u32 168, %s18140_s24 }
  0xab   : > { %11751 = vmatpush3.msra.mxu1 %v960_v5  ;;  %11697 = vmatpush3.msra.mxu0 %v646_v7  ;;  %v13901_v23 = vld [vmem:[%s13837_s29 + $0x38] sm:$0xff]  ;;  %v13904_v24 = vld [vmem:[%s13837_s29 + $0x40] sm:$0xff]  ;;  %v13915_v25 = vld [vmem:[%s13837_s29 + $0x48] sm:$0xff] }
  0xac   : > { %11752 = vmatprep.subr.mxu1 %v959_v8  ;;  %11698 = vmatprep.subr.mxu0 %v645_v9  ;;  %v13918_v26 = vld [vmem:[%s13837_s29 + $0x50] sm:$0xff]  ;;  %v13929_v27 = vld [vmem:[%s13837_s29 + $0x58] sm:$0xff]  ;;  %v13932_v28 = vld [vmem:[%s13837_s29 + $0x60] sm:$0xff] }
  0xad   : > { %11753 = vmatpush3.msra.mxu1 %v959_v8  ;;  %11699 = vmatpush3.msra.mxu0 %v645_v9  ;;  %v13943_v29 = vld [vmem:[%s13837_s29 + $0x68] sm:$0xff]  ;;  %v13946_v30 = vld [vmem:[%s13837_s29 + $0x70] sm:$0xff]  ;;  %v13957_v31 = vld [vmem:[%s13837_s29 + $0x78] sm:$0xff] }
  0xae   : > { %11754 = vmatprep.subr.mxu1 %v958_v10  ;;  %11700 = vmatprep.subr.mxu0 %v644_v11  ;;  %v13960_v32 = vld [vmem:[%s13837_s29 + $0x80] sm:$0xff]  ;;  %v13971_v33 = vld [vmem:[%s13837_s29 + $0x88] sm:$0xff]  ;;  %v13974_v34 = vld [vmem:[%s13837_s29 + $0x90] sm:$0xff]  ;;  %s17995_s26 = scalar_lea.vmem %s18134_s13, %s13184_s22 }
  0xaf   : > { %11755 = vmatpush3.msra.mxu1 %v958_v10  ;;  %11701 = vmatpush3.msra.mxu0 %v644_v11  ;;  %v13985_v35 = vld [vmem:[%s13837_s29 + $0x98] sm:$0xff]  ;;  %v13988_v36 = vld [vmem:[%s13837_s29 + $0xa0] sm:$0xff]  ;;  %v13999_v37 = vld [vmem:[%s13837_s29 + $0xa8] sm:$0xff] }
  0xb0   : > { %11756 = vmatprep.subr.mxu1 %v957_v12  ;;  %11702 = vmatprep.subr.mxu0 %v643_v13  ;;  %v14002_v38 = vld [vmem:[%s13837_s29 + $0xb0] sm:$0xff]  ;;  %v14013_v39 = vld [vmem:[%s13837_s29 + $0xb8] sm:$0xff]  ;;  %v1151_v41 = vld [vmem:[#allocation4 + $0x188] sm:$0xff] }
  0xb1   : > { %11757 = vmatpush3.msra.mxu1 %v957_v12  ;;  %11703 = vmatpush3.msra.mxu0 %v643_v13  ;;  %v918_v42 = vld [vmem:[#allocation4 + $0x58] sm:$0xff] }
  0xb2   : > { %11758 = vmatprep.subr.mxu1 %v956_v14  ;;  %11704 = vmatprep.subr.mxu0 %v642_v15 }
  0xb3   : > { %11759 = vmatpush3.msra.mxu1 %v956_v14  ;;  %11705 = vmatpush3.msra.mxu0 %v642_v15 }
  0xb4   : > { %11761 = vmatmul.mubr.msk.f32.vlgmr.msra.gmra.mxu1 %vm649_vm0, %v13862_v16  ;;  %11706 = vmatprep.subr.mxu0 %v641_v18 }
  0xb5   : > { %11763 = vmatprep.mubr.msk.f32.mxu1 %vm649_vm0, %v13865_v17  ;;  %11707 = vmatpush3.msra.mxu0 %v641_v18 }
  0xb6   : > { %11708 = vmatprep.mubr.msk.f32.mxu0 %vm649_vm0, %v617_v3  ;;  %1270 = vmatprep.subr.mxu0 %v18099_v40 }
  0xb7   : > { %11709 = vmatmul.mubr.msk.f32.vlgmr.msra.gmra.mxu0 %vm649_vm0, %v13862_v16  ;;  %13133 = vmatprep.subr.mxu1 %v18099_v40 }
  0xb8   : > { %11764 = vmatmul.mubr.msk.f32.gmra.mxu1 %vm649_vm0, %v13872_v19  ;;  %11711 = vmatprep.mubr.msk.f32.mxu0 %vm649_vm0, %v13865_v17 }
  0xb9   : > { %11766 = vmatprep.mubr.msk.f32.mxu1 %vm649_vm0, %v13875_v20 }
  0xbb   : > { %11712 = vmatmul.mubr.msk.f32.gmra.mxu0 %vm649_vm0, %v13872_v19 }
  0xbc   : > { %11767 = vmatmul.mubr.msk.f32.gmra.mxu1 %vm649_vm0, %v13887_v21  ;;  %11714 = vmatprep.mubr.msk.f32.mxu0 %vm649_vm0, %v13875_v20 }
  0xbd   : > { %11769 = vmatprep.mubr.msk.f32.mxu1 %vm649_vm0, %v13890_v22 }
  0xbf   : > { %11715 = vmatmul.mubr.msk.f32.gmra.mxu0 %vm649_vm0, %v13887_v21 }
  0xc0   : > { %11770 = vmatmul.mubr.msk.f32.gmra.mxu1 %vm649_vm0, %v13901_v23  ;;  %11717 = vmatprep.mubr.msk.f32.mxu0 %vm649_vm0, %v13890_v22 }
  0xc1   : > { %11772 = vmatprep.mubr.msk.f32.mxu1 %vm649_vm0, %v13904_v24 }
  0xc3   : > { %11718 = vmatmul.mubr.msk.f32.gmra.mxu0 %vm649_vm0, %v13901_v23 }
  0xc4   : > { %11773 = vmatmul.mubr.msk.f32.gmra.mxu1 %vm649_vm0, %v13915_v25  ;;  %11720 = vmatprep.mubr.msk.f32.mxu0 %vm649_vm0, %v13904_v24 }
  0xc5   : > { %11775 = vmatprep.mubr.msk.f32.mxu1 %vm649_vm0, %v13918_v26 }
  0xc7   : > { %11721 = vmatmul.mubr.msk.f32.gmra.mxu0 %vm649_vm0, %v13915_v25 }
  0xc8   : > { %11776 = vmatmul.mubr.msk.f32.gmra.mxu1 %vm649_vm0, %v13929_v27  ;;  %11723 = vmatprep.mubr.msk.f32.mxu0 %vm649_vm0, %v13918_v26 }
  0xc9   : > { %11778 = vmatprep.mubr.msk.f32.mxu1 %vm649_vm0, %v13932_v28 }
  0xcb   : > { %11724 = vmatmul.mubr.msk.f32.gmra.mxu0 %vm649_vm0, %v13929_v27 }
  0xcc   : > { %11779 = vmatmul.mubr.msk.f32.gmra.mxu1 %vm649_vm0, %v13943_v29  ;;  %11726 = vmatprep.mubr.msk.f32.mxu0 %vm649_vm0, %v13932_v28 }
  0xcd   : > { %11781 = vmatprep.mubr.msk.f32.mxu1 %vm649_vm0, %v13946_v30 }
  0xcf   : > { %11727 = vmatmul.mubr.msk.f32.gmra.mxu0 %vm649_vm0, %v13943_v29 }
  0xd0   : > { %11782 = vmatmul.mubr.msk.f32.gmra.mxu1 %vm649_vm0, %v13957_v31  ;;  %11729 = vmatprep.mubr.msk.f32.mxu0 %vm649_vm0, %v13946_v30 }
  0xd1   : > { %11784 = vmatprep.mubr.msk.f32.mxu1 %vm649_vm0, %v13960_v32 }
  0xd3   : > { %11730 = vmatmul.mubr.msk.f32.gmra.mxu0 %vm649_vm0, %v13957_v31 }
  0xd4   : > { %11785 = vmatmul.mubr.msk.f32.gmra.mxu1 %vm649_vm0, %v13971_v33  ;;  %11732 = vmatprep.mubr.msk.f32.mxu0 %vm649_vm0, %v13960_v32 }
  0xd5   : > { %11787 = vmatprep.mubr.msk.f32.mxu1 %vm649_vm0, %v13974_v34 }
  0xd7   : > { %11733 = vmatmul.mubr.msk.f32.gmra.mxu0 %vm649_vm0, %v13971_v33 }
  0xd8   : > { %11788 = vmatmul.mubr.msk.f32.gmra.mxu1 %vm649_vm0, %v13985_v35  ;;  %11735 = vmatprep.mubr.msk.f32.mxu0 %vm649_vm0, %v13974_v34 }
  0xd9   : > { %11790 = vmatprep.mubr.msk.f32.mxu1 %vm649_vm0, %v13988_v36 }
  0xdb   : > { %11736 = vmatmul.mubr.msk.f32.gmra.mxu0 %vm649_vm0, %v13985_v35 }
  0xdc   : > { %11791 = vmatmul.mubr.msk.f32.gmra.mxu1 %vm649_vm0, %v13999_v37  ;;  %11738 = vmatprep.mubr.msk.f32.mxu0 %vm649_vm0, %v13988_v36 }
  0xdd   : > { %11793 = vmatprep.mubr.msk.f32.mxu1 %vm649_vm0, %v14002_v38 }
  0xdf   : > { %11739 = vmatmul.mubr.msk.f32.gmra.mxu0 %vm649_vm0, %v13999_v37 }
  0xe0   : > { %11794 = vmatmul.mubr.msk.f32.gmra.mxu1 %vm649_vm0, %v14013_v39  ;;  %11741 = vmatprep.mubr.msk.f32.mxu0 %vm649_vm0, %v14002_v38 }
  0xe1   : > { %10346 = vmatprep.mubr.msk.f32.mxu1 %vm649_vm0, %v918_v42 }
  0xe3   : > { %11742 = vmatmul.mubr.msk.f32.gmra.mxu0 %vm649_vm0, %v14013_v39 }
  0xe4   : > { %10317 = vmatprep.mubr.msk.f32.mxu0 %vm649_vm0, %v1151_v41 }
 0x174   : > { %v14027_v43 = vpop.f32.mrf.mxu1 }
 0x176   : > { %v14029_v44 = vpop.f32.mrf.mxu1 }
 0x177   : > { %v14031_v45 = vpop.f32.mrf.mxu0 }
 0x178   : > { %v14033_v46 = vpop.f32.mrf.mxu1 }
 0x179   : > { %v14035_v47 = vpop.f32.mrf.mxu0 }
 0x17a   : > { %v14037_v48 = vpop.f32.mrf.mxu1 }
 0x17b   : > { %v14039_v49 = vpop.f32.mrf.mxu0 }
 0x17c   : > { %v14041_v50 = vpop.f32.mrf.mxu1 }
 0x17d   : > { %v14043_v51 = vpop.f32.mrf.mxu0 }
 0x17e   : > { %v14045_v52 = vpop.f32.mrf.mxu1 }
 0x17f   : > { %v14047_v53 = vpop.f32.mrf.mxu0 }
 0x180   : > { %v11771_v54 = vpop.f32.mrf.mxu1 }
 0x181   : > { %v14049_v55 = vpop.f32.mrf.mxu0 }
 0x182   : > { %v1060_v56 = vpop.f32.mrf.mxu1 }
 0x183   : > { %v14051_v57 = vpop.f32.mrf.mxu0 }
 0x184   : > { %v11774_v58 = vpop.f32.mrf.mxu1 }
 0x185   : > { %v14053_v59 = vpop.f32.mrf.mxu0 }
 0x186   : > { %v1070_v60 = vpop.f32.mrf.mxu1 }
 0x187   : > { %v14055_v61 = vpop.f32.mrf.mxu0 }
 0x188   : > { %v11777_v62 = vpop.f32.mrf.mxu1 }
 0x189   : > { %v14057_v63 = vpop.f32.mrf.mxu0 }
 0x18a   : > { %v1080_v0 = vpop.f32.mrf.mxu1 }
 0x18b   : > { %v14059_v1 = vpop.f32.mrf.mxu0 }
 0x18c   : > { %v11780_v2 = vpop.f32.mrf.mxu1 }
 0x18d   : > { %v14061_v3 = vpop.f32.mrf.mxu0 }
 0x18e   : > { %v1090_v4 = vpop.f32.mrf.mxu1 }
 0x18f   : > { %v14063_v5 = vpop.f32.mrf.mxu0 }
 0x190   : > { %v11783_v6 = vpop.f32.mrf.mxu1 }
 0x191   : > { %1271 = vmatpush1.msra.mxu0 %v11783_v6  ;;  %v14065_v7 = vpop.f32.mrf.mxu0  ;;  %v1157_v6 = vld [vmem:[#allocation4 + $0x1b8] sm:$0xff] }
 0x192   : > { %v1100_v8 = vpop.f32.mrf.mxu1  ;;  %1272 = vmatprep.subr.mxu0 %v18099_v40 }
 0x193   : > { %1273 = vmatpush1.msra.mxu0 %v1100_v8  ;;  %v14068_v9 = vpop.f32.mrf.mxu0  ;;  %v920_v8 = vld [vmem:[#allocation4 + $0x68] sm:$0xff] }
 0x194   : > { %1274 = vmatprep.subr.mxu0 %v18099_v40  ;;  %13157 = vmatpush1.msra.mxu1 %v14068_v9  ;;  %v14076_v11 = vpop.f32.mrf.mxu1 }
 0x195   : > { %1275 = vmatpush1.msra.mxu0 %v11780_v2  ;;  %v14072_v10 = vpop.f32.mrf.mxu0  ;;  %13134 = vmatprep.subr.mxu1 %v18099_v40  ;;  %v917_v2 = vld [vmem:[#allocation4 + $0x50] sm:$0xff] }
 0x196   : > { %1276 = vmatprep.subr.mxu0 %v18099_v40  ;;  %13158 = vmatpush1.msra.mxu1 %v14072_v10  ;;  %v14086_v13 = vpop.f32.mrf.mxu1 }
 0x197   : > { %1277 = vmatpush1.msra.mxu0 %v1090_v4  ;;  %13135 = vmatprep.subr.mxu1 %v18099_v40  ;;  %v14080_v12 = vpop.f32.mrf.mxu0  ;;  %v1154_v4 = vld [vmem:[#allocation4 + $0x1a0] sm:$0xff] }
 0x198   : > { %1278 = vmatprep.subr.mxu0 %v18099_v40  ;;  %13159 = vmatpush1.msra.mxu1 %v14063_v5  ;;  %v14096_v15 = vpop.f32.mrf.mxu1 }
 0x199   : > { %1279 = vmatpush1.msra.mxu0 %v11777_v62  ;;  %13136 = vmatprep.subr.mxu1 %v18099_v40  ;;  %v14090_v14 = vpop.f32.mrf.mxu0  ;;  %v1152_v62 = vld [vmem:[#allocation4 + $0x190] sm:$0xff] }
 0x19a   : > { %1280 = vmatprep.subr.mxu0 %v18099_v40  ;;  %13160 = vmatpush1.msra.mxu1 %v14065_v7  ;;  %v1120_v41 = vpop.f32.mrf.mxu1 }
 0x19b   : > { %1281 = vmatpush1.msra.mxu0 %v1080_v0  ;;  %13137 = vmatprep.subr.mxu1 %v18099_v40  ;;  %v14100_v18 = vpop.f32.mrf.mxu0  ;;  %v1155_v0 = vld [vmem:[#allocation4 + $0x1a8] sm:$0xff] }
 0x19c   : > { %1282 = vmatprep.subr.mxu0 %v18099_v40  ;;  %13161 = vmatpush1.msra.mxu1 %v14059_v1 }
 0x19d   : > { %1283 = vmatpush1.msra.mxu0 %v11774_v58  ;;  %13138 = vmatprep.subr.mxu1 %v18099_v40  ;;  %v14108_v42 = vpop.f32.mrf.mxu0  ;;  %v1150_v58 = vld [vmem:[#allocation4 + $0x180] sm:$0xff] }
 0x19e   : > { %1284 = vmatprep.subr.mxu0 %v18099_v40  ;;  %13162 = vmatpush1.msra.mxu1 %v14061_v3 }
 0x19f   : > { %1285 = vmatpush1.msra.mxu0 %v1070_v60  ;;  %13139 = vmatprep.subr.mxu1 %v18099_v40  ;;  %v1153_v60 = vld [vmem:[#allocation4 + $0x198] sm:$0xff] }
 0x1a0   : > { %1286 = vmatprep.subr.mxu0 %v18099_v40  ;;  %13163 = vmatpush1.msra.mxu1 %v14055_v61 }
 0x1a1   : > { %1287 = vmatpush1.msra.mxu0 %v11771_v54  ;;  %13140 = vmatprep.subr.mxu1 %v18099_v40  ;;  %v11792_v54 = vpop.f32.mrf.mxu1 }
 0x1a2   : > { %1288 = vmatprep.subr.mxu0 %v18099_v40  ;;  %13164 = vmatpush1.msra.mxu1 %v14057_v63 }
 0x1a3   : > { %1289 = vmatpush1.msra.mxu0 %v1060_v56  ;;  %13141 = vmatprep.subr.mxu1 %v18099_v40  ;;  %v14118_v56 = vpop.f32.mrf.mxu0 }
 0x1a4   : > { %1290 = vmatprep.subr.mxu0 %v18099_v40  ;;  %13165 = vmatpush1.msra.mxu1 %v14051_v57 }
 0x1a5   : > { %1291 = vmatpush1.msra.mxu0 %v14041_v50  ;;  %13142 = vmatprep.subr.mxu1 %v18099_v40  ;;  %v1130_v50 = vpop.f32.mrf.mxu1 }
 0x1a6   : > { %1292 = vmatprep.subr.mxu0 %v18099_v40  ;;  %13166 = vmatpush1.msra.mxu1 %v14053_v59 }
 0x1a7   : > { %1293 = vmatpush1.msra.mxu0 %v14045_v52  ;;  %13143 = vmatprep.subr.mxu1 %v18099_v40  ;;  %v14128_v52 = vpop.f32.mrf.mxu0 }
 0x1a8   : > { %1294 = vmatprep.subr.mxu0 %v18099_v40  ;;  %13167 = vmatpush1.msra.mxu1 %v14047_v53 }
 0x1a9   : > { %1295 = vmatpush1.msra.mxu0 %v14033_v46  ;;  %13144 = vmatprep.subr.mxu1 %v18099_v40  ;;  %v11795_v46 = vpop.f32.mrf.mxu1 }
 0x1aa   : > { %1296 = vmatprep.subr.mxu0 %v18099_v40  ;;  %13168 = vmatpush1.msra.mxu1 %v14049_v55 }
 0x1ab   : > { %1297 = vmatpush1.msra.mxu0 %v14037_v48  ;;  %13145 = vmatprep.subr.mxu1 %v18099_v40  ;;  %v14138_v48 = vpop.f32.mrf.mxu0 }
 0x1ac   : > { %1298 = vmatprep.subr.mxu0 %v18099_v40  ;;  %13169 = vmatpush1.msra.mxu1 %v14039_v49 }
 0x1ad   : > { %1299 = vmatpush1.msra.mxu0 %v14027_v43  ;;  %13146 = vmatprep.subr.mxu1 %v18099_v40  ;;  %v1140_v43 = vpop.f32.mrf.mxu1 }
 0x1ae   : > { %1300 = vmatprep.subr.mxu0 %v18099_v40  ;;  %13170 = vmatpush1.msra.mxu1 %v14043_v51 }
 0x1af   : > { %1301 = vmatpush1.msra.mxu0 %v14029_v44  ;;  %13147 = vmatprep.subr.mxu1 %v18099_v40  ;;  %v14146_v44 = vpop.f32.mrf.mxu0 }
 0x1b0   : > { %1318 = vmatprep.subr.mxu0 %v18099_v40  ;;  %13171 = vmatpush1.msra.mxu1 %v14031_v45 }
 0x1b1   : > { %1319 = vmatpush2.msra.mxu0 %v11795_v46  ;;  %13148 = vmatprep.subr.mxu1 %v18099_v40  ;;  %v927_v46 = vld [vmem:[#allocation4 + $0xa0] sm:$0xff] }
 0x1b2   : > { %1320 = vmatprep.subr.mxu0 %v18099_v40  ;;  %13172 = vmatpush1.msra.mxu1 %v14035_v47 }
 0x1b3   : > { %1321 = vmatpush2.msra.mxu0 %v1140_v43  ;;  %13149 = vmatprep.subr.mxu1 %v18099_v40  ;;  %v1167_v43 = vld [vmem:[#allocation4 + $0x208] sm:$0xff] }
 0x1b4   : > { %1322 = vmatprep.subr.mxu0 %v18099_v40  ;;  %13173 = vmatpush2.msra.mxu1 %v14138_v48 }
 0x1b5   : > { %1323 = vmatpush2.msra.mxu0 %v11792_v54  ;;  %13150 = vmatprep.subr.mxu1 %v18099_v40  ;;  %v925_v54 = vld [vmem:[#allocation4 + $0x90] sm:$0xff] }
 0x1b6   : > { %1324 = vmatprep.subr.mxu0 %v18099_v40  ;;  %13174 = vmatpush2.msra.mxu1 %v14146_v44 }
 0x1b7   : > { %1325 = vmatpush2.msra.mxu0 %v1130_v50  ;;  %13151 = vmatprep.subr.mxu1 %v18099_v40  ;;  %v1165_v50 = vld [vmem:[#allocation4 + $0x1f8] sm:$0xff] }
 0x1b8   : > { %1326 = vmatprep.subr.mxu0 %v18099_v40  ;;  %13175 = vmatpush2.msra.mxu1 %v14118_v56 }
 0x1b9   : > { %1327 = vmatpush2.msra.mxu0 %v14096_v15  ;;  %13152 = vmatprep.subr.mxu1 %v18099_v40  ;;  %v923_v15 = vld [vmem:[#allocation4 + $0x80] sm:$0xff] }
 0x1ba   : > { %1328 = vmatprep.subr.mxu0 %v18099_v40  ;;  %13176 = vmatpush2.msra.mxu1 %v14128_v52 }
 0x1bb   : > { %1329 = vmatpush2.msra.mxu0 %v1120_v41  ;;  %13153 = vmatprep.subr.mxu1 %v18099_v40  ;;  %v1163_v41 = vld [vmem:[#allocation4 + $0x1e8] sm:$0xff] }
 0x1bc   : > { %1330 = vmatprep.subr.mxu0 %v18099_v40  ;;  %13177 = vmatpush2.msra.mxu1 %v14100_v18 }
 0x1bd   : > { %1331 = vmatpush2.msra.mxu0 %v14076_v11  ;;  %13154 = vmatprep.subr.mxu1 %v18099_v40  ;;  %v921_v11 = vld [vmem:[#allocation4 + $0x70] sm:$0xff] }
 0x1be   : > { %1332 = vmatprep.subr.mxu0 %v18099_v40  ;;  %13178 = vmatpush2.msra.mxu1 %v14108_v42 }
 0x1bf   : > { %1333 = vmatpush2.msra.mxu0 %v14086_v13  ;;  %13155 = vmatprep.subr.mxu1 %v18099_v40  ;;  %v1161_v13 = vld [vmem:[#allocation4 + $0x1d8] sm:$0xff] }
 0x1c0   : > { %1335 = vmatmul.mubr.f32.vlgmr.msra.gmra.mxu0 %v1150_v58  ;;  %1527 = vmatprep.subr.mxu0 %v18099_v40  ;;  %v929_v58 = vld [vmem:[#allocation4 + $0xb0] sm:$0xff] }
 0x1c1   : > { %1528 = vmatpush1.msra.mxu0 %v14068_v9  ;;  %10318 = vmatprep.mubr.msk.f32.mxu0 %vm649_vm0, %v1153_v60  ;;  %v919_v9 = vld [vmem:[#allocation4 + $0x60] sm:$0xff]  ;;  %v932_v60 = vld [vmem:[#allocation4 + $0xc8] sm:$0xff] }
 0x1c2   : > { %1529 = vmatprep.subr.mxu0 %v18099_v40  ;;  %13179 = vmatpush2.msra.mxu1 %v14080_v12 }
 0x1c3   : > { %1530 = vmatpush1.msra.mxu0 %v14072_v10  ;;  %13156 = vmatprep.subr.mxu1 %v18099_v40  ;;  %v1159_v10 = vld [vmem:[#allocation4 + $0x1c8] sm:$0xff] }
 0x1c4   : > { %1340 = vmatmul.mubr.f32.gmra.mxu0 %v1152_v62  ;;  %1531 = vmatprep.subr.mxu0 %v18099_v40  ;;  %v1169_v62 = vld [vmem:[#allocation4 + $0x218] sm:$0xff] }
 0x1c5   : > { %1532 = vmatpush1.msra.mxu0 %v14063_v5  ;;  %10319 = vmatprep.mubr.msk.f32.mxu0 %vm649_vm0, %v1155_v0  ;;  %v1156_v5 = vld [vmem:[#allocation4 + $0x1b0] sm:$0xff] }
 0x1c6   : > { %1533 = vmatprep.subr.mxu0 %v18099_v40  ;;  %13180 = vmatpush2.msra.mxu1 %v14090_v14  ;;  %v1168_v0 = vld [vmem:[#allocation4 + $0x210] sm:$0xff] }
 0x1c7   : > { %1534 = vmatpush1.msra.mxu0 %v14065_v7  ;;  %1617 = vmatmul.mubr.f32.vlgmr.msra.gmra.mxu1 %v917_v2  ;;  %v922_v7 = vld [vmem:[#allocation4 + $0x78] sm:$0xff]  ;;  %v1171_v2 = vld [vmem:[#allocation4 + $0x228] sm:$0xff] }
 0x1c8   : > { %1345 = vmatmul.mubr.f32.gmra.mxu0 %v1154_v4  ;;  %1535 = vmatprep.subr.mxu0 %v18099_v40  ;;  %v1170_v4 = vld [vmem:[#allocation4 + $0x220] sm:$0xff] }
 0x1c9   : > { %1536 = vmatpush1.msra.mxu0 %v14059_v1  ;;  %10320 = vmatprep.mubr.msk.f32.mxu0 %vm649_vm0, %v1157_v6  ;;  %v1158_v1 = vld [vmem:[#allocation4 + $0x1c0] sm:$0xff]  ;;  %v936_v6 = vld [vmem:[#allocation4 + $0xe8] sm:$0xff] }
 0x1ca   : > { %1537 = vmatprep.subr.mxu0 %v18099_v40  ;;  %10347 = vmatprep.mubr.msk.f32.mxu1 %vm649_vm0, %v920_v8  ;;  %v1173_v8 = vld [vmem:[#allocation4 + $0x238] sm:$0xff] }
 0x1cb   : > { %1538 = vmatpush1.msra.mxu0 %v14061_v3  ;;  %1622 = vmatmul.mubr.f32.gmra.mxu1 %v919_v9  ;;  %v924_v3 = vld [vmem:[#allocation4 + $0x88] sm:$0xff]  ;;  %v1172_v9 = vld [vmem:[#allocation4 + $0x230] sm:$0xff] }
 0x1cc   : > { %1350 = vmatmul.mubr.f32.gmra.mxu0 %v1156_v5  ;;  %1539 = vmatprep.subr.mxu0 %v18099_v40  ;;  %v938_v5 = vld [vmem:[#allocation4 + $0xf8] sm:$0xff] }
 0x1cd   : > { %1540 = vmatpush1.msra.mxu0 %v14055_v61  ;;  %10321 = vmatprep.mubr.msk.f32.mxu0 %vm649_vm0, %v1159_v10  ;;  %v1160_v61 = vld [vmem:[#allocation4 + $0x1d0] sm:$0xff]  ;;  %v1175_v10 = vld [vmem:[#allocation4 + $0x248] sm:$0xff] }
 0x1ce   : > { %1541 = vmatprep.subr.mxu0 %v18099_v40  ;;  %10348 = vmatprep.mubr.msk.f32.mxu1 %vm649_vm0, %v922_v7  ;;  %v940_v7 = vld [vmem:[#allocation4 + $0x108] sm:$0xff] }
 0x1cf   : > { %1542 = vmatpush1.msra.mxu0 %v14057_v63  ;;  %1627 = vmatmul.mubr.f32.gmra.mxu1 %v921_v11  ;;  %v926_v63 = vld [vmem:[#allocation4 + $0x98] sm:$0xff] }
 0x1d0   : > { %1355 = vmatmul.mubr.f32.gmra.mxu0 %v1158_v1  ;;  %1543 = vmatprep.subr.mxu0 %v18099_v40  ;;  %v1177_v11 = vld [vmem:[#allocation4 + $0x258] sm:$0xff]  ;;  %v1176_v1 = vld [vmem:[#allocation4 + $0x250] sm:$0xff] }
 0x1d1   : > { %1544 = vmatpush1.msra.mxu0 %v14051_v57  ;;  %10322 = vmatprep.mubr.msk.f32.mxu0 %vm649_vm0, %v1161_v13  ;;  %v1162_v57 = vld [vmem:[#allocation4 + $0x1e0] sm:$0xff]  ;;  %v942_v13 = vld [vmem:[#allocation4 + $0x118] sm:$0xff] }
 0x1d2   : > { %1545 = vmatprep.subr.mxu0 %v18099_v40  ;;  %10349 = vmatprep.mubr.msk.f32.mxu1 %vm649_vm0, %v924_v3  ;;  %v1179_v3 = vld [vmem:[#allocation4 + $0x268] sm:$0xff] }
 0x1d3   : > { %1546 = vmatpush1.msra.mxu0 %v14053_v59  ;;  %1632 = vmatmul.mubr.f32.gmra.mxu1 %v923_v15  ;;  %v928_v59 = vld [vmem:[#allocation4 + $0xa8] sm:$0xff]  ;;  %v1178_v15 = vld [vmem:[#allocation4 + $0x260] sm:$0xff] }
 0x1d4   : > { %1360 = vmatmul.mubr.f32.gmra.mxu0 %v1160_v61  ;;  %1547 = vmatprep.subr.mxu0 %v18099_v40  ;;  %v944_v61 = vld [vmem:[#allocation4 + $0x128] sm:$0xff] }
 0x1d5   : > { %1548 = vmatpush1.msra.mxu0 %v14047_v53  ;;  %10323 = vmatprep.mubr.msk.f32.mxu0 %vm649_vm0, %v1163_v41  ;;  %v1164_v53 = vld [vmem:[#allocation4 + $0x1f0] sm:$0xff]  ;;  %v1181_v41 = vld [vmem:[#allocation4 + $0x278] sm:$0xff] }
 0x1d6   : > { %1549 = vmatprep.subr.mxu0 %v18099_v40  ;;  %10350 = vmatprep.mubr.msk.f32.mxu1 %vm649_vm0, %v926_v63  ;;  %v1180_v63 = vld [vmem:[#allocation4 + $0x270] sm:$0xff] }
 0x1d7   : > { %1550 = vmatpush1.msra.mxu0 %v14049_v55  ;;  %1637 = vmatmul.mubr.f32.gmra.mxu1 %v925_v54  ;;  %v930_v55 = vld [vmem:[#allocation4 + $0xb8] sm:$0xff] }
 0x1d8   : > { %1365 = vmatmul.mubr.f32.gmra.mxu0 %v1162_v57  ;;  %1551 = vmatprep.subr.mxu0 %v18099_v40  ;;  %v946_v54 = vld [vmem:[#allocation4 + $0x138] sm:$0xff]  ;;  %v1183_v57 = vld [vmem:[#allocation4 + $0x288] sm:$0xff] }
 0x1d9   : > { %1552 = vmatpush1.msra.mxu0 %v14039_v49  ;;  %10324 = vmatprep.mubr.msk.f32.mxu0 %vm649_vm0, %v1165_v50  ;;  %v1166_v49 = vld [vmem:[#allocation4 + $0x200] sm:$0xff]  ;;  %v945_v50 = vld [vmem:[#allocation4 + $0x130] sm:$0xff] }
 0x1da   : > { %1553 = vmatprep.subr.mxu0 %v18099_v40  ;;  %10351 = vmatprep.mubr.msk.f32.mxu1 %vm649_vm0, %v928_v59  ;;  %v948_v59 = vld [vmem:[#allocation4 + $0x148] sm:$0xff] }
 0x1db   : > { %1554 = vmatpush1.msra.mxu0 %v14043_v51  ;;  %1642 = vmatmul.mubr.f32.gmra.mxu1 %v927_v46  ;;  %v931_v51 = vld [vmem:[#allocation4 + $0xc0] sm:$0xff]  ;;  %v1185_v46 = vld [vmem:[#allocation4 + $0x298] sm:$0xff] }
 0x1dc   : > { %1370 = vmatmul.mubr.f32.gmra.mxu0 %v1164_v53  ;;  %1555 = vmatprep.subr.mxu0 %v18099_v40  ;;  %v947_v53 = vld [vmem:[#allocation4 + $0x140] sm:$0xff] }
 0x1dd   : > { %1556 = vmatpush1.msra.mxu0 %v14031_v45  ;;  %10325 = vmatprep.mubr.msk.f32.mxu0 %vm649_vm0, %v1167_v43  ;;  %v934_v45 = vld [vmem:[#allocation4 + $0xd8] sm:$0xff]  ;;  %v1184_v43 = vld [vmem:[#allocation4 + $0x290] sm:$0xff] }
 0x1de   : > { %1557 = vmatprep.subr.mxu0 %v18099_v40  ;;  %10352 = vmatprep.mubr.msk.f32.mxu1 %vm649_vm0, %v930_v55  ;;  %v950_v55 = vld [vmem:[#allocation4 + $0x158] sm:$0xff] }
 0x1df   : > { %1558 = vmatpush1.msra.mxu0 %v14035_v47  ;;  %1647 = vmatmul.mubr.f32.gmra.mxu1 %v929_v58  ;;  %v933_v47 = vld [vmem:[#allocation4 + $0xd0] sm:$0xff]  ;;  %v1187_v58 = vld [vmem:[#allocation4 + $0x2a8] sm:$0xff] }
 0x1e0   : > { %1375 = vmatmul.mubr.f32.gmra.mxu0 %v1166_v49  ;;  %10353 = vmatprep.mubr.msk.f32.mxu1 %vm649_vm0, %v932_v60  ;;  %v949_v49 = vld [vmem:[#allocation4 + $0x150] sm:$0xff]  ;;  %v1186_v60 = vld [vmem:[#allocation4 + $0x2a0] sm:$0xff] }
 0x1e1   : > { %10326 = vmatprep.mubr.msk.f32.mxu0 %vm649_vm0, %v1169_v62  ;;  %1575 = vmatprep.subr.mxu0 %v18099_v40  ;;  %v952_v62 = vld [vmem:[#allocation4 + $0x168] sm:$0xff] }
 0x1e2   : > { %1576 = vmatpush2.msra.mxu0 %v14138_v48  ;;  %2027 = vmatprep.subr.mxu1 %v18099_v40  ;;  %v935_v48 = vld [vmem:[#allocation4 + $0xe0] sm:$0xff] }
 0x1e3   : > { %1652 = vmatmul.mubr.f32.gmra.mxu1 %v931_v51  ;;  %1577 = vmatprep.subr.mxu0 %v18099_v40  ;;  %v1189_v51 = vld [vmem:[#allocation4 + $0x2b8] sm:$0xff] }
 0x1e4   : > { %1380 = vmatmul.mubr.f32.gmra.mxu0 %v1168_v0  ;;  %10354 = vmatprep.mubr.msk.f32.mxu1 %vm649_vm0, %v934_v45  ;;  %v951_v0 = vld [vmem:[#allocation4 + $0x160] sm:$0xff]  ;;  %v1188_v45 = vld [vmem:[#allocation4 + $0x2b0] sm:$0xff] }
 0x1e5   : > { %10327 = vmatprep.mubr.msk.f32.mxu0 %vm649_vm0, %v1171_v2  ;;  %1578 = vmatpush2.msra.mxu0 %v14146_v44  ;;  %v1174_v44 = vld [vmem:[#allocation4 + $0x240] sm:$0xff]  ;;  %v954_v2 = vld [vmem:[#allocation4 + $0x178] sm:$0xff] }
 0x1e6   : > { %1579 = vmatprep.subr.mxu0 %v18099_v40 }
 0x1e7   : > { %1657 = vmatmul.mubr.f32.gmra.mxu1 %v933_v47  ;;  %1580 = vmatpush2.msra.mxu0 %v14118_v56  ;;  %v937_v56 = vld [vmem:[#allocation4 + $0xf0] sm:$0xff]  ;;  %v1191_v47 = vld [vmem:[#allocation4 + $0x2c8] sm:$0xff] }
 0x1e8   : > { %1385 = vmatmul.mubr.f32.gmra.mxu0 %v1170_v4  ;;  %10355 = vmatprep.mubr.msk.f32.mxu1 %vm649_vm0, %v936_v6  ;;  %v953_v4 = vld [vmem:[#allocation4 + $0x170] sm:$0xff]  ;;  %v1190_v6 = vld [vmem:[#allocation4 + $0x2c0] sm:$0xff] }
 0x1e9   : > { %10328 = vmatprep.mubr.msk.f32.mxu0 %vm649_vm0, %v1173_v8  ;;  %1581 = vmatprep.subr.mxu0 %v18099_v40  ;;  %v1193_v8 = vld [vmem:[#allocation4 + $0x2d8] sm:$0xff] }
 0x1ea   : > { %1582 = vmatpush2.msra.mxu0 %v14128_v52  ;;  %v939_v52 = vld [vmem:[#allocation4 + $0x100] sm:$0xff] }
 0x1eb   : > { %1662 = vmatmul.mubr.f32.gmra.mxu1 %v935_v48  ;;  %1583 = vmatprep.subr.mxu0 %v18099_v40  ;;  %v1192_v48 = vld [vmem:[#allocation4 + $0x2d0] sm:$0xff] }
 0x1ec   : > { %1390 = vmatmul.mubr.f32.gmra.mxu0 %v1172_v9  ;;  %10356 = vmatprep.mubr.msk.f32.mxu1 %vm649_vm0, %v938_v5  ;;  %v1195_v9 = vld [vmem:[#allocation4 + $0x2e8] sm:$0xff]  ;;  %v1194_v5 = vld [vmem:[#allocation4 + $0x2e0] sm:$0xff] }
 0x1ed   : > { %10329 = vmatprep.mubr.msk.f32.mxu0 %vm649_vm0, %v1175_v10  ;;  %1584 = vmatpush2.msra.mxu0 %v14100_v18  ;;  %v14244_v18 = vld [vmem:[#allocation6 + $0xb8] sm:$0xff] }
 0x1ee   : > { %1585 = vmatprep.subr.mxu0 %v18099_v40  ;;  %v1197_v10 = vld [vmem:[#allocation4 + $0x2f8] sm:$0xff] }
 0x1ef   : > { %1667 = vmatmul.mubr.f32.gmra.mxu1 %v937_v56  ;;  %1586 = vmatpush2.msra.mxu0 %v14108_v42  ;;  %v941_v42 = vld [vmem:[#allocation4 + $0x110] sm:$0xff] }
 0x1f0   : > { %1395 = vmatmul.mubr.f32.gmra.mxu0 %v1174_v44  ;;  %10357 = vmatprep.mubr.msk.f32.mxu1 %vm649_vm0, %v940_v7  ;;  %v1196_v56 = vld [vmem:[#allocation4 + $0x2f0] sm:$0xff]  ;;  %v908_v44 = vld [vmem:[#allocation4 + $0x8] sm:$0xff]  ;;  %v907_v7 = vld [vmem:[#allocation4] sm:$0xff] }
 0x1f1   : > { %10330 = vmatprep.mubr.msk.f32.mxu0 %vm649_vm0, %v1177_v11  ;;  %1587 = vmatprep.subr.mxu0 %v18099_v40  ;;  %v910_v11 = vld [vmem:[#allocation4 + $0x18] sm:$0xff] }
 0x1f2   : > { %1588 = vmatpush2.msra.mxu0 %v14080_v12  ;;  %v943_v12 = vld [vmem:[#allocation4 + $0x120] sm:$0xff] }
 0x1f3   : > { %1672 = vmatmul.mubr.f32.gmra.mxu1 %v939_v52  ;;  %1589 = vmatprep.subr.mxu0 %v18099_v40  ;;  %v1719_v52 = vld [vmem:[#allocation6 + $0xb0] sm:$0xff] }
 0x1f4   : > { %1400 = vmatmul.mubr.f32.gmra.mxu0 %v1176_v1  ;;  %10358 = vmatprep.mubr.msk.f32.mxu1 %vm649_vm0, %v942_v13  ;;  %v909_v1 = vld [vmem:[#allocation4 + $0x10] sm:$0xff]  ;;  %v1718_v13 = vld [vmem:[#allocation6 + $0xa8] sm:$0xff] }
 0x1f5   : > { %10331 = vmatprep.mubr.msk.f32.mxu0 %vm649_vm0, %v1179_v3  ;;  %1590 = vmatpush2.msra.mxu0 %v14090_v14  ;;  %v1182_v14 = vld [vmem:[#allocation4 + $0x280] sm:$0xff]  ;;  %v912_v3 = vld [vmem:[#allocation4 + $0x28] sm:$0xff] }
 0x1f6   : > { %11796 = vmatprep.subr.mxu0 %v14244_v18 }
 0x1f7   : > { %1677 = vmatmul.mubr.f32.gmra.mxu1 %v941_v42  ;;  %v1717_v42 = vld [vmem:[#allocation6 + $0xa0] sm:$0xff] }
 0x1f8   : > { %1405 = vmatmul.mubr.f32.gmra.mxu0 %v1178_v15  ;;  %10359 = vmatprep.mubr.msk.f32.mxu1 %vm649_vm0, %v944_v61  ;;  %v911_v15 = vld [vmem:[#allocation4 + $0x20] sm:$0xff]  ;;  %v1716_v61 = vld [vmem:[#allocation6 + $0x98] sm:$0xff] }
 0x1f9   : > { %10332 = vmatprep.mubr.msk.f32.mxu0 %vm649_vm0, %v1181_v41  ;;  %v914_v41 = vld [vmem:[#allocation4 + $0x38] sm:$0xff] }
 0x1fb   : > { %1682 = vmatmul.mubr.f32.gmra.mxu1 %v943_v12  ;;  %v1715_v12 = vld [vmem:[#allocation6 + $0x90] sm:$0xff] }
 0x1fc   : > { %1410 = vmatmul.mubr.f32.gmra.mxu0 %v1180_v63  ;;  %10360 = vmatprep.mubr.msk.f32.mxu1 %vm649_vm0, %v946_v54  ;;  %v1714_v63 = vld [vmem:[#allocation6 + $0x88] sm:$0xff] }
 0x1fd   : > { %10333 = vmatprep.mubr.msk.f32.mxu0 %vm649_vm0, %v1183_v57  ;;  %v916_v54 = vld [vmem:[#allocation4 + $0x48] sm:$0xff]  ;;  %v1713_v57 = vld [vmem:[#allocation6 + $0x80] sm:$0xff] }
 0x1ff   : > { %1687 = vmatmul.mubr.f32.gmra.mxu1 %v945_v50  ;;  %v915_v50 = vld [vmem:[#allocation4 + $0x40] sm:$0xff] }
 0x200   : > { %1415 = vmatmul.mubr.f32.gmra.mxu0 %v1182_v14  ;;  %10361 = vmatprep.mubr.msk.f32.mxu1 %vm649_vm0, %v948_v59  ;;  %v13304_v14 = vld [vmem:[%s13837_s29] sm:$0xff]  ;;  %v2241_v59 = vld [vmem:[%s18075_s3 + $0x28] sm:$0xff] }
 0x201   : > { %10334 = vmatprep.mubr.msk.f32.mxu0 %vm649_vm0, %v1185_v46  ;;  %v2244_v46 = vld [vmem:[%s18075_s3 + $0x40] sm:$0xff] }
 0x203   : > { %1692 = vmatmul.mubr.f32.gmra.mxu1 %v947_v53 }
 0x204   : > { %1420 = vmatmul.mubr.f32.gmra.mxu0 %v1184_v43  ;;  %10362 = vmatprep.mubr.msk.f32.mxu1 %vm649_vm0, %v950_v55 }
 0x205   : > { %10335 = vmatprep.mubr.msk.f32.mxu0 %vm649_vm0, %v1187_v58 }
 0x207   : > { %1697 = vmatmul.mubr.f32.gmra.mxu1 %v949_v49 }
 0x208   : > { %1425 = vmatmul.mubr.f32.gmra.mxu0 %v1186_v60  ;;  %10363 = vmatprep.mubr.msk.f32.mxu1 %vm649_vm0, %v952_v62  ;;  %v2243_v60 = vld [vmem:[%s18075_s3 + $0x38] sm:$0xff]  ;;  %v2246_v62 = vld [vmem:[%s18075_s3 + $0x50] sm:$0xff] }
 0x209   : > { %10336 = vmatprep.mubr.msk.f32.mxu0 %vm649_vm0, %v1189_v51 }
 0x20b   : > { %1702 = vmatmul.mubr.f32.gmra.mxu1 %v951_v0 }
 0x20c   : > { %1430 = vmatmul.mubr.f32.gmra.mxu0 %v1188_v45  ;;  %10364 = vmatprep.mubr.msk.f32.mxu1 %vm649_vm0, %v954_v2 }
 0x20d   : > { %10337 = vmatprep.mubr.msk.f32.mxu0 %vm649_vm0, %v1191_v47 }
 0x20f   : > { %1707 = vmatmul.mubr.f32.gmra.mxu1 %v953_v4  ;;  %v2245_v4 = vld [vmem:[%s18075_s3 + $0x48] sm:$0xff] }
 0x210   : > { %1435 = vmatmul.mubr.f32.gmra.mxu0 %v1190_v6  ;;  %v2248_v6 = vld [vmem:[%s18075_s3 + $0x60] sm:$0xff] }
 0x211   : > { %10338 = vmatprep.mubr.msk.f32.mxu0 %vm649_vm0, %v1193_v8 }
 0x214   : > { %1440 = vmatmul.mubr.f32.gmra.mxu0 %v1192_v48 }
 0x215   : > { %10339 = vmatprep.mubr.msk.f32.mxu0 %vm649_vm0, %v1195_v9 }
 0x218   : > { %1445 = vmatmul.mubr.f32.gmra.mxu0 %v1194_v5 }
 0x219   : > { %10340 = vmatprep.mubr.msk.f32.mxu0 %vm649_vm0, %v1197_v10 }
 0x21c   : > { %1450 = vmatmul.mubr.f32.gmra.mxu0 %v1196_v56  ;;  %v2247_v56 = vld [vmem:[%s18075_s3 + $0x58] sm:$0xff] }
 0x21d   : > { %10341 = vmatprep.mubr.msk.f32.mxu0 %vm649_vm0, %v908_v44  ;;  %v2250_v44 = vld [vmem:[%s18075_s3 + $0x70] sm:$0xff] }
 0x220   : > { %1592 = vmatmul.mubr.f32.vlgmr.msra.gmra.mxu0 %v907_v7 }
 0x221   : > { %10342 = vmatprep.mubr.msk.f32.mxu0 %vm649_vm0, %v910_v11  ;;  %11797 = vmatpush3.msra.mxu0 %v14244_v18  ;;  %v913_v18 = vld [vmem:[#allocation4 + $0x30] sm:$0xff] }
 0x222   : > { %11798 = vmatprep.subr.mxu0 %v1719_v52 }
 0x223   : > { %11799 = vmatpush3.msra.mxu0 %v1719_v52 }
 0x224   : > { %1597 = vmatmul.mubr.f32.gmra.mxu0 %v909_v1  ;;  %11800 = vmatprep.subr.mxu0 %v1718_v13 }
 0x225   : > { %10343 = vmatprep.mubr.msk.f32.mxu0 %vm649_vm0, %v912_v3  ;;  %11801 = vmatpush3.msra.mxu0 %v1718_v13  ;;  %v2249_v3 = vld [vmem:[%s18075_s3 + $0x68] sm:$0xff] }
 0x226   : > { %11802 = vmatprep.subr.mxu0 %v1717_v42 }
 0x227   : > { %11803 = vmatpush3.msra.mxu0 %v1717_v42  ;;  %v2252_v42 = vld [vmem:[%s18075_s3 + $0x80] sm:$0xff] }
 0x228   : > { %1602 = vmatmul.mubr.f32.gmra.mxu0 %v911_v15  ;;  %11804 = vmatprep.subr.mxu0 %v1716_v61 }
 0x229   : > { %10344 = vmatprep.mubr.msk.f32.mxu0 %vm649_vm0, %v914_v41  ;;  %11805 = vmatpush3.msra.mxu0 %v1716_v61 }
 0x22a   : > { %11806 = vmatprep.subr.mxu0 %v1715_v12 }
 0x22b   : > { %11807 = vmatpush3.msra.mxu0 %v1715_v12 }
 0x22c   : > { %1607 = vmatmul.mubr.f32.gmra.mxu0 %v913_v18  ;;  %11808 = vmatprep.subr.mxu0 %v1714_v63 }
 0x22d   : > { %10345 = vmatprep.mubr.msk.f32.mxu0 %vm649_vm0, %v916_v54  ;;  %11809 = vmatpush3.msra.mxu0 %v1714_v63  ;;  %v2251_v63 = vld [vmem:[%s18075_s3 + $0x78] sm:$0xff]  ;;  %v2254_v54 = vld [vmem:[%s18075_s3 + $0x90] sm:$0xff] }
 0x22e   : > { %11810 = vmatprep.subr.mxu0 %v1713_v57 }
 0x22f   : > { %11811 = vmatpush3.msra.mxu0 %v1713_v57 }
 0x230   : > { %1612 = vmatmul.mubr.f32.gmra.mxu0 %v915_v50 }
 0x231   : > { %11812 = vmatprep.mubr.msk.f32.mxu0 %vm649_vm0, %v13304_v14 }
 0x234   : > { %11813 = vmatmul.mubr.msk.f32.vlgmr.msra.gmra.mxu0 %vm649_vm0, %v13862_v16 }
 0x235   : > { %11815 = vmatprep.mubr.msk.f32.mxu0 %vm649_vm0, %v13865_v17  ;;  %v13580_v17 = vmov 0  }
 0x236   : > { %13302 = vset.pattern.permute.xlu0 %v13580_v17  ;;  %13303 = vset.pattern.permute.xlu1 %v13580_v17 }
 0x238   : > { %11816 = vmatmul.mubr.msk.f32.gmra.mxu0 %vm649_vm0, %v13872_v19 }
 0x239   : > { %11818 = vmatprep.mubr.msk.f32.mxu0 %vm649_vm0, %v13875_v20  ;;  %v2236_v20 = vld [vmem:[%s18075_s3] sm:$0xff] }
 0x23a   : > { %2262 = vperm.xlu0 %13302, %v2236_v20   ;;  %v2253_v20 = vld [vmem:[%s18075_s3 + $0x88] sm:$0xff] }
 0x23c   : > { %11819 = vmatmul.mubr.msk.f32.gmra.mxu0 %vm649_vm0, %v13887_v21 }
 0x23d   : > { %11821 = vmatprep.mubr.msk.f32.mxu0 %vm649_vm0, %v13890_v22 }
 0x240   : > { %11822 = vmatmul.mubr.msk.f32.gmra.mxu0 %vm649_vm0, %v13901_v23  ;;  %v2237_v23 = vld [vmem:[%s18075_s3 + $0x8] sm:$0xff] }
 0x241   : > { %11824 = vmatprep.mubr.msk.f32.mxu0 %vm649_vm0, %v13904_v24  ;;  %2267 = vperm.xlu0 %13302, %v2237_v23  }
 0x244   : > { %11825 = vmatmul.mubr.msk.f32.gmra.mxu0 %vm649_vm0, %v13915_v25 }
 0x245   : > { %11827 = vmatprep.mubr.msk.f32.mxu0 %vm649_vm0, %v13918_v26 }
 0x248   : > { %11828 = vmatmul.mubr.msk.f32.gmra.mxu0 %vm649_vm0, %v13929_v27 }
 0x249   : > { %11830 = vmatprep.mubr.msk.f32.mxu0 %vm649_vm0, %v13932_v28  ;;  %v2238_v28 = vld [vmem:[%s18075_s3 + $0x10] sm:$0xff] }
 0x24a   : > { %2272 = vperm.xlu1 %13303, %v2238_v28  }
 0x24c   : > { %11831 = vmatmul.mubr.msk.f32.gmra.mxu0 %vm649_vm0, %v13943_v29  ;;  %v2240_v29 = vld [vmem:[%s18075_s3 + $0x20] sm:$0xff] }
 0x24d   : > { %11833 = vmatprep.mubr.msk.f32.mxu0 %vm649_vm0, %v13946_v30  ;;  %2282 = vperm.xlu0 %13302, %v2240_v29   ;;  %v2255_v29 = vld [vmem:[%s18075_s3 + $0x98] sm:$0xff] }
 0x250   : > { %11834 = vmatmul.mubr.msk.f32.gmra.mxu0 %vm649_vm0, %v13957_v31 }
 0x251   : > { %11836 = vmatprep.mubr.msk.f32.mxu0 %vm649_vm0, %v13960_v32 }
 0x254   : > { %11837 = vmatmul.mubr.msk.f32.gmra.mxu0 %vm649_vm0, %v13971_v33 }
 0x255   : > { %11839 = vmatprep.mubr.msk.f32.mxu0 %vm649_vm0, %v13974_v34  ;;  %v2239_v34 = vld [vmem:[%s18075_s3 + $0x18] sm:$0xff] }
 0x256   : > { %2277 = vperm.xlu1 %13303, %v2239_v34  }
 0x258   : > { %11840 = vmatmul.mubr.msk.f32.gmra.mxu0 %vm649_vm0, %v13985_v35  ;;  %v2242_v35 = vld [vmem:[%s18075_s3 + $0x30] sm:$0xff] }
 0x259   : > { %11842 = vmatprep.mubr.msk.f32.mxu0 %vm649_vm0, %v13988_v36  ;;  %2292 = vperm.xlu0 %13302, %v2242_v35  }
 0x25a   : > { %2287 = vperm.xlu1 %13303, %v2241_v59  }
 0x25c   : > { %11843 = vmatmul.mubr.msk.f32.gmra.mxu0 %vm649_vm0, %v13999_v37 }
 0x25d   : > { %11845 = vmatprep.mubr.msk.f32.mxu0 %vm649_vm0, %v14002_v38  ;;  %2302 = vperm.xlu0 %13302, %v2244_v46  }
 0x25e   : > { %2297 = vperm.xlu1 %13303, %v2243_v60   ;;  %v5666_v60 = vld [vmem:[%s18080_s8 + $0x10] sm:$0xff] }
 0x260   : > { %11846 = vmatmul.mubr.msk.f32.gmra.mxu0 %vm649_vm0, %v14013_v39 }
 0x261   : > { %2312 = vperm.xlu0 %13302, %v2246_v62  }
 0x262   : > { %2307 = vperm.xlu1 %13303, %v2245_v4   ;;  %v5665_v4 = vld [vmem:[%s18080_s8 + $0x8] sm:$0xff] }
 0x265   : > { %2322 = vperm.xlu0 %13302, %v2248_v6   ;;  %v5668_v6 = vld [vmem:[%s18080_s8 + $0x20] sm:$0xff] }
 0x266   : > { %2317 = vperm.xlu1 %13303, %v2247_v56  }
 0x269   : > { %2332 = vperm.xlu0 %13302, %v2250_v44   ;;  %v5667_v44 = vld [vmem:[%s18080_s8 + $0x18] sm:$0xff] }
 0x26a   : > { %2327 = vperm.xlu1 %13303, %v2249_v3   ;;  %v5669_v3 = vld [vmem:[%s18080_s8 + $0x28] sm:$0xff] }
 0x26d   : > { %2342 = vperm.xlu0 %13302, %v2252_v42   ;;  %v5672_v42 = vld [vmem:[%s18080_s8 + $0x40] sm:$0xff] }
 0x26e   : > { %2337 = vperm.xlu1 %13303, %v2251_v63  }
 0x271   : > { %2352 = vperm.xlu0 %13302, %v2254_v54   ;;  %v5671_v54 = vld [vmem:[%s18080_s8 + $0x38] sm:$0xff] }
 0x272   : > { %2347 = vperm.xlu1 %13303, %v2253_v20  }
 0x276   : > { %2357 = vperm.xlu1 %13303, %v2255_v29  }
 0x280   : > { %v14319_v16 = vpop.f32.mrf.mxu0 }
 0x282   : > { %v1338_v19 = vpop.f32.mrf.mxu0 }
 0x284   : > { %v14324_v21 = vpop.f32.mrf.mxu0 }
 0x286   : > { %v1343_v22 = vpop.f32.mrf.mxu0 }
 0x287   : > { %v1618_v24 = vpop.f32.mrf.mxu1  ;;  %v2256_v22 = vld [vmem:[%s18075_s3 + $0xa0] sm:$0xff] }
 0x288   : > { %v14329_v25 = vpop.f32.mrf.mxu0  ;;  %2362 = vperm.xlu0 %13302, %v2256_v22  }
 0x289   : > { %v1620_v26 = vpop.f32.mrf.mxu1 }
 0x28a   : > { %v1348_v27 = vpop.f32.mrf.mxu0 }
 0x28b   : > { %v1623_v30 = vpop.f32.mrf.mxu1 }
 0x28c   : > { %v14337_v31 = vpop.f32.mrf.mxu0 }
 0x28d   : > { %v1625_v32 = vpop.f32.mrf.mxu1 }
 0x28e   : > { %v1353_v33 = vpop.f32.mrf.mxu0 }
 0x28f   : > { %v1628_v36 = vpop.f32.mrf.mxu1 }
 0x290   : > { %v14345_v37 = vpop.f32.mrf.mxu0 }
 0x291   : > { %v1630_v38 = vpop.f32.mrf.mxu1 }
 0x292   : > { %v1358_v39 = vpop.f32.mrf.mxu0  ;;  %v2257_v38 = vld [vmem:[%s18075_s3 + $0xa8] sm:$0xff] }
 0x293   : > { %v1633_v53 = vpop.f32.mrf.mxu1  ;;  %v5664_v39 = vld [vmem:[%s18080_s8] sm:$0xff]  ;;  %2367 = vperm.xlu1 %13303, %v2257_v38  }
 0x294   : > { %v1361_v43 = vpop.f32.mrf.mxu0 }
 0x295   : > { %v14353_v55 = vadd.f32 %v1618_v24, %v1361_v43  ;;  %v1635_v58 = vpop.f32.mrf.mxu1 }
 0x296   : > { %v1363_v49 = vpop.f32.mrf.mxu0 }
 0x297   : > { %v1638_v51 = vpop.f32.mrf.mxu1  ;;  %v2259_v49 = vld [vmem:[%s18075_s3 + $0xb8] sm:$0xff] }
 0x298   : > { %v1366_v0 = vpop.f32.mrf.mxu0  ;;  %2377 = vperm.xlu1 %13303, %v2259_v49  }
 0x299   : > { %v14361_v45 = vadd.f32 %v1623_v30, %v1366_v0  ;;  %v1640_v2 = vpop.f32.mrf.mxu1  ;;  %v2258_v30 = vld [vmem:[%s18075_s3 + $0xb0] sm:$0xff] }
 0x29a   : > { %v1368_v47 = vpop.f32.mrf.mxu0  ;;  %2372 = vperm.xlu0 %13302, %v2258_v30  }
 0x29b   : > { %v1643_v8 = vpop.f32.mrf.mxu1 }
 0x29c   : > { %v1371_v48 = vpop.f32.mrf.mxu0  ;;  %5694 = vperm.xlu1 %13303, %v5665_v4  }
 0x29d   : > { %v14369_v9 = vadd.f32 %v1628_v36, %v1371_v48  ;;  %v1645_v5 = vpop.f32.mrf.mxu1 }
 0x29e   : > { %v1373_v10 = vpop.f32.mrf.mxu0  ;;  %5689 = vperm.xlu0 %13302, %v5664_v39  }
 0x29f   : > { %v1648_v7 = vpop.f32.mrf.mxu1 }
 0x2a0   : > { %v1376_v11 = vpop.f32.mrf.mxu0  ;;  %5704 = vperm.xlu1 %13303, %v5667_v44  }
 0x2a1   : > { %v14377_v52 = vadd.f32 %v1633_v53, %v1376_v11  ;;  %v1650_v1 = vpop.f32.mrf.mxu1  ;;  %v1908_v11 = vld [vmem:[#allocation4 + $0x308] sm:$0xff] }
 0x2a2   : > { %v1378_v13 = vpop.f32.mrf.mxu0  ;;  %5699 = vperm.xlu0 %13302, %v5666_v60   ;;  %10389 = vmatprep.mubr.msk.f32.mxu1 %vm649_vm0, %v1908_v11  ;;  %v5683_v11 = vld [vmem:[%s18080_s8 + $0x98] sm:$0xff] }
 0x2a3   : > { %v1653_v15 = vpop.f32.mrf.mxu1 }
 0x2a4   : > { %v1381_v61 = vpop.f32.mrf.mxu0  ;;  %5714 = vperm.xlu1 %13303, %v5669_v3  }
 0x2a5   : > { %v14385_v41 = vadd.f32 %v1638_v51, %v1381_v61  ;;  %v1655_v12 = vpop.f32.mrf.mxu1 }
 0x2a6   : > { %v1383_v18 = vpop.f32.mrf.mxu0  ;;  %5709 = vperm.xlu0 %13302, %v5668_v6  }
 0x2a7   : > { %v1658_v57 = vpop.f32.mrf.mxu1 }
 0x2a8   : > { %v1386_v50 = vpop.f32.mrf.mxu0  ;;  %5724 = vperm.xlu1 %13303, %v5671_v54   ;;  %v8317_v54 = vld [vmem:[%s18083_s11] sm:$0xff] }
 0x2a9   : > { %v14393_v14 = vadd.f32 %v1643_v8, %v1386_v50  ;;  %v1660_v17 = vpop.f32.mrf.mxu1 }
 0x2aa   : > { %v1388_v19 = vpop.f32.mrf.mxu0 }
 0x2ab   : > { %v1663_v23 = vpop.f32.mrf.mxu1 }
 0x2ac   : > { %v1391_v24 = vpop.f32.mrf.mxu0 }
 0x2ad   : > { %v14401_v26 = vadd.f32 %v1648_v7, %v1391_v24  ;;  %v1665_v27 = vpop.f32.mrf.mxu1  ;;  %v5670_v7 = vld [vmem:[%s18080_s8 + $0x30] sm:$0xff]  ;;  %v5676_v24 = vld [vmem:[%s18080_s8 + $0x60] sm:$0xff] }
 0x2ae   : > { %v1393_v28 = vpop.f32.mrf.mxu0  ;;  %5719 = vperm.xlu0 %13302, %v5670_v7  }
 0x2af   : > { %v1668_v32 = vpop.f32.mrf.mxu1 }
 0x2b0   : > { %v1396_v33 = vpop.f32.mrf.mxu0 }
 0x2b1   : > { %v14409_v34 = vadd.f32 %v1653_v15, %v1396_v33  ;;  %v1670_v35 = vpop.f32.mrf.mxu1  ;;  %v5675_v33 = vld [vmem:[%s18080_s8 + $0x58] sm:$0xff] }
 0x2b2   : > { %v1398_v36 = vpop.f32.mrf.mxu0  ;;  %5729 = vperm.xlu0 %13302, %v5672_v42   ;;  %v5678_v35 = vld [vmem:[%s18080_s8 + $0x70] sm:$0xff] }
 0x2b3   : > { %v1673_v59 = vpop.f32.mrf.mxu1 }
 0x2b4   : > { %v1401_v46 = vpop.f32.mrf.mxu0 }
 0x2b5   : > { %v14417_v53 = vadd.f32 %v1658_v57, %v1401_v46  ;;  %v1675_v43 = vpop.f32.mrf.mxu1  ;;  %v5674_v57 = vld [vmem:[%s18080_s8 + $0x50] sm:$0xff] }
 0x2b6   : > { %v1403_v58 = vpop.f32.mrf.mxu0  ;;  %5739 = vperm.xlu0 %13302, %v5674_v57   ;;  %v5677_v43 = vld [vmem:[%s18080_s8 + $0x68] sm:$0xff]  ;;  %v8320_v57 = vld [vmem:[%s18083_s11 + $0x18] sm:$0xff] }
 0x2b7   : > { %v1678_v62 = vpop.f32.mrf.mxu1  ;;  %v5680_v58 = vld [vmem:[%s18080_s8 + $0x80] sm:$0xff] }
 0x2b8   : > { %v1406_v51 = vpop.f32.mrf.mxu0 }
 0x2b9   : > { %v14425_v0 = vadd.f32 %v1663_v23, %v1406_v51  ;;  %v1680_v2 = vpop.f32.mrf.mxu1  ;;  %v5673_v23 = vld [vmem:[%s18080_s8 + $0x48] sm:$0xff] }
 0x2ba   : > { %v1408_v47 = vpop.f32.mrf.mxu0  ;;  %5734 = vperm.xlu1 %13303, %v5673_v23   ;;  %5749 = vperm.xlu0 %13302, %v5676_v24   ;;  %v5679_v2 = vld [vmem:[%s18080_s8 + $0x78] sm:$0xff] }
 0x2bb   : > { %v1683_v8 = vpop.f32.mrf.mxu1  ;;  %v5682_v47 = vld [vmem:[%s18080_s8 + $0x90] sm:$0xff] }
 0x2bc   : > { %v1411_v48 = vpop.f32.mrf.mxu0 }
 0x2bd   : > { %v14433_v5 = vadd.f32 %v1668_v32, %v1411_v48  ;;  %v1685_v10 = vpop.f32.mrf.mxu1  ;;  %v5681_v48 = vld [vmem:[%s18080_s8 + $0x88] sm:$0xff] }
 0x2be   : > { %v1413_v56 = vpop.f32.mrf.mxu0  ;;  %5744 = vperm.xlu1 %13303, %v5675_v33   ;;  %5759 = vperm.xlu0 %13302, %v5678_v35   ;;  %v5684_v10 = vld [vmem:[%s18080_s8 + $0xa0] sm:$0xff]  ;;  %v8323_v33 = vld [vmem:[%s18083_s11 + $0x30] sm:$0xff]  ;;  %v8326_v35 = vld [vmem:[%s18083_s11 + $0x48] sm:$0xff] }
 0x2bf   : > { %v1688_v1 = vpop.f32.mrf.mxu1 }
 0x2c0   : > { %v1416_v13 = vpop.f32.mrf.mxu0 }
 0x2c1   : > { %v14448_v15 = vadd.f32 %v1673_v59, %v1416_v13  ;;  %v1690_v61 = vpop.f32.mrf.mxu1 }
 0x2c2   : > { %v1418_v12 = vpop.f32.mrf.mxu0  ;;  %5754 = vperm.xlu1 %13303, %v5677_v43   ;;  %5769 = vperm.xlu0 %13302, %v5680_v58   ;;  %v5685_v61 = vld [vmem:[%s18080_s8 + $0xa8] sm:$0xff] }
 0x2c3   : > { %v1693_v18 = vpop.f32.mrf.mxu1  ;;  %v8318_v12 = vld [vmem:[%s18083_s11 + $0x8] sm:$0xff] }
 0x2c4   : > { %v1421_v63 = vpop.f32.mrf.mxu0 }
 0x2c5   : > { %v14456_v50 = vadd.f32 %v1678_v62, %v1421_v63  ;;  %v1695_v17 = vpop.f32.mrf.mxu1 }
 0x2c6   : > { %v1423_v19 = vpop.f32.mrf.mxu0  ;;  %5764 = vperm.xlu1 %13303, %v5679_v2   ;;  %5779 = vperm.xlu0 %13302, %v5682_v47   ;;  %v8329_v47 = vld [vmem:[%s18083_s11 + $0x60] sm:$0xff] }
 0x2c7   : > { %v1698_v20 = vpop.f32.mrf.mxu1 }
 0x2c8   : > { %v1426_v22 = vpop.f32.mrf.mxu0 }
 0x2c9   : > { %v14464_v27 = vadd.f32 %v1683_v8, %v1426_v22  ;;  %v1700_v28 = vpop.f32.mrf.mxu1  ;;  %v8322_v22 = vld [vmem:[%s18083_s11 + $0x28] sm:$0xff] }
 0x2ca   : > { %v1428_v29 = vpop.f32.mrf.mxu0  ;;  %5774 = vperm.xlu1 %13303, %v5681_v48   ;;  %5789 = vperm.xlu0 %13302, %v5684_v10   ;;  %v8321_v28 = vld [vmem:[%s18083_s11 + $0x20] sm:$0xff]  ;;  %v8331_v10 = vld [vmem:[%s18083_s11 + $0x70] sm:$0xff] }
 0x2cb   : > { %v1703_v30 = vpop.f32.mrf.mxu1  ;;  %v8324_v29 = vld [vmem:[%s18083_s11 + $0x38] sm:$0xff] }
 0x2cc   : > { %v1431_v32 = vpop.f32.mrf.mxu0 }
 0x2cd   : > { %v14472_v36 = vadd.f32 %v1688_v1, %v1431_v32  ;;  %v1705_v38 = vpop.f32.mrf.mxu1  ;;  %v5686_v1 = vld [vmem:[%s18080_s8 + $0xb0] sm:$0xf] }
 0x2ce   : > { %v1433_v39 = vpop.f32.mrf.mxu0  ;;  %5784 = vperm.xlu1 %13303, %v5683_v11   ;;  %5799 = vperm.xlu0 %13302, %v5686_v1   ;;  %v8333_v1 = vld [vmem:[%s18083_s11 + $0x80] sm:$0xff] }
 0x2cf   : > { %v1708_v59 = vpop.f32.mrf.mxu1 }
 0x2d0   : > { %v1436_v46 = vpop.f32.mrf.mxu0 }
 0x2d1   : > { %v14480_v49 = vadd.f32 %v1693_v18, %v1436_v46  ;;  %v1710_v60 = vpop.f32.mrf.mxu1  ;;  %v8328_v46 = vld [vmem:[%s18083_s11 + $0x58] sm:$0xff] }
 0x2d2   : > { %v1438_v62 = vpop.f32.mrf.mxu0  ;;  %5794 = vperm.xlu1 %13303, %v5685_v61   ;;  %8345 = vperm.xlu0 %13302, %v8318_v12   ;;  %v8327_v60 = vld [vmem:[%s18083_s11 + $0x50] sm:$0xff] }
 0x2d3   : > { %v8330_v62 = vld [vmem:[%s18083_s11 + $0x68] sm:$0xff] }
 0x2d4   : > { %v1441_v51 = vpop.f32.mrf.mxu0 }
 0x2d5   : > { %v14488_v4 = vadd.f32 %v1698_v20, %v1441_v51  ;;  %v8319_v20 = vld [vmem:[%s18083_s11 + $0x10] sm:$0xff] }
 0x2d6   : > { %v1443_v6 = vpop.f32.mrf.mxu0  ;;  %8340 = vperm.xlu1 %13303, %v8317_v54   ;;  %8355 = vperm.xlu0 %13302, %v8320_v57   ;;  %v9925_v54 = vld [vmem:[%s18086_s14] sm:$0xff] }
 0x2d7   : > { %v8332_v6 = vld [vmem:[%s18083_s11 + $0x78] sm:$0xff] }
 0x2d8   : > { %v1446_v8 = vpop.f32.mrf.mxu0 }
 0x2d9   : > { %v14496_v56 = vadd.f32 %v1703_v30, %v1446_v8 }
 0x2da   : > { %v1448_v44 = vpop.f32.mrf.mxu0  ;;  %8350 = vperm.xlu1 %13303, %v8319_v20   ;;  %8365 = vperm.xlu0 %13302, %v8322_v22   ;;  %v8337_v20 = vld [vmem:[%s18083_s11 + $0xa0] sm:$0xff]  ;;  %v9927_v22 = vld [vmem:[%s18086_s14 + $0x10] sm:$0xff] }
 0x2db   : > { %v8334_v44 = vld [vmem:[%s18083_s11 + $0x88] sm:$0xff] }
 0x2dc   : > { %v1451_v7 = vpop.f32.mrf.mxu0 }
 0x2dd   : > { %v14504_v13 = vadd.f32 %v1708_v59, %v1451_v7  ;;  %v8325_v59 = vld [vmem:[%s18083_s11 + $0x40] sm:$0xff] }
 0x2de   : > { %v1453_v3 = vpop.f32.mrf.mxu0  ;;  %8360 = vperm.xlu1 %13303, %v8321_v28   ;;  %8375 = vperm.xlu0 %13302, %v8324_v29   ;;  %v9926_v29 = vld [vmem:[%s18086_s14 + $0x8] sm:$0xff] }
 0x2df   : > { %v8336_v3 = vld [vmem:[%s18083_s11 + $0x98] sm:$0xff] }
 0x2e0   : > { %v14506_v42 = vpop.f32.mrf.mxu0 }
 0x2e2   : > { %v1595_v18 = vpop.f32.mrf.mxu0  ;;  %8370 = vperm.xlu1 %13303, %v8323_v33   ;;  %8385 = vperm.xlu0 %13302, %v8326_v35   ;;  %v9928_v35 = vld [vmem:[%s18086_s14 + $0x18] sm:$0xff] }
 0x2e3   : > { %v8335_v18 = vld [vmem:[%s18083_s11 + $0x90] sm:$0xff] }
 0x2e4   : > { %v14514_v63 = vpop.f32.mrf.mxu0 }
 0x2e6   : > { %v1600_v17 = vpop.f32.mrf.mxu0  ;;  %8380 = vperm.xlu1 %13303, %v8325_v59   ;;  %8395 = vperm.xlu0 %13302, %v8328_v46   ;;  %v9930_v46 = vld [vmem:[%s18086_s14 + $0x28] sm:$0xff] }
 0x2e8   : > { %v14522_v19 = vpop.f32.mrf.mxu0 }
 0x2ea   : > { %v1605_v23 = vpop.f32.mrf.mxu0  ;;  %8390 = vperm.xlu1 %13303, %v8327_v60   ;;  %8405 = vperm.xlu0 %13302, %v8330_v62   ;;  %v9933_v60 = vld [vmem:[%s18086_s14 + $0x40] sm:$0xff] }
 0x2ec   : > { %v14530_v24 = vpop.f32.mrf.mxu0 }
 0x2ee   : > { %v1610_v30 = vpop.f32.mrf.mxu0  ;;  %8400 = vperm.xlu1 %13303, %v8329_v47   ;;  %8415 = vperm.xlu0 %13302, %v8332_v6   ;;  %v9932_v47 = vld [vmem:[%s18086_s14 + $0x38] sm:$0xff]  ;;  %v9935_v6 = vld [vmem:[%s18086_s14 + $0x50] sm:$0xff] }
 0x2ef   : > { %v9929_v30 = vld [vmem:[%s18086_s14 + $0x20] sm:$0xff] }
 0x2f0   : > { %v14538_v32 = vpop.f32.mrf.mxu0 }
 0x2f2   : > { %v1615_v38 = vpop.f32.mrf.mxu0  ;;  %8410 = vperm.xlu1 %13303, %v8331_v10   ;;  %8425 = vperm.xlu0 %13302, %v8334_v44   ;;  %v9934_v44 = vld [vmem:[%s18086_s14 + $0x48] sm:$0xff] }
 0x2f3   : > { %v9931_v38 = vld [vmem:[%s18086_s14 + $0x30] sm:$0xff] }
 0x2f4   : > { %v14546_v39 = vpop.f32.mrf.mxu0 }
 0x2f6   : > { %v14554_v43 = vpop.f32.mrf.mxu0  ;;  %8420 = vperm.xlu1 %13303, %v8333_v1   ;;  %8435 = vperm.xlu0 %13302, %v8336_v3   ;;  %v9937_v1 = vld [vmem:[%s18086_s14 + $0x60] sm:$0xff] }
 0x2f8   : > { %v14556_v58 = vpop.f32.mrf.mxu0 }
 0x2fa   : > { %v14564_v51 = vpop.f32.mrf.mxu0  ;;  %8430 = vperm.xlu1 %13303, %v8335_v18   ;;  %9948 = vperm.xlu0 %13302, %v9925_v54   ;;  %v9941_v54 = vld [vmem:[%s18086_s14 + $0x80] sm:$0xff] }
 0x2fc   : > { %v14566_v2 = vpop.f32.mrf.mxu0 }
 0x2fe   : > { %v14574_v8 = vpop.f32.mrf.mxu0  ;;  %8440 = vperm.xlu1 %13303, %v8337_v20   ;;  %9958 = vperm.xlu0 %13302, %v9927_v22   ;;  %v1907_v22 = vld [vmem:[#allocation4 + $0x300] sm:$0xff] }
 0x300   : > { %v11823_v48 = vpop.f32.mrf.mxu0 }
 0x302   : > { %v14582_v7 = vpop.f32.mrf.mxu0  ;;  %9953 = vperm.xlu1 %13303, %v9926_v29   ;;  %9968 = vperm.xlu0 %13302, %v9929_v30   ;;  %v1912_v29 = vld [vmem:[#allocation4 + $0x328] sm:$0xff]  ;;  %v1911_v30 = vld [vmem:[#allocation4 + $0x320] sm:$0xff] }
 0x304   : > { %v11826_v11 = vpop.f32.mrf.mxu0 }
 0x306   : > { %v1827_v61 = vpop.f32.mrf.mxu0  ;;  %9963 = vperm.xlu1 %13303, %v9928_v35   ;;  %9978 = vperm.xlu0 %13302, %v9931_v38   ;;  %v1913_v35 = vld [vmem:[#allocation4 + $0x330] sm:$0xff]  ;;  %v1916_v38 = vld [vmem:[#allocation4 + $0x348] sm:$0xff] }
 0x308   : > { %v11829_v12 = vpop.f32.mrf.mxu0 }
 0x30a   : > { %v1837_v57 = vpop.f32.mrf.mxu0  ;;  %9973 = vperm.xlu1 %13303, %v9930_v46   ;;  %9988 = vperm.xlu0 %13302, %v9933_v60   ;;  %v1918_v46 = vld [vmem:[#allocation4 + $0x358] sm:$0xff]  ;;  %v1917_v60 = vld [vmem:[#allocation4 + $0x350] sm:$0xff] }
 0x30c   : > { %v11832_v17 = vpop.f32.mrf.mxu0 }
 0x30e   : > { %v1847_v23 = vpop.f32.mrf.mxu0  ;;  %9983 = vperm.xlu1 %13303, %v9932_v47   ;;  %9998 = vperm.xlu0 %13302, %v9935_v6   ;;  %v1919_v47 = vld [vmem:[#allocation4 + $0x360] sm:$0xff]  ;;  %v1922_v6 = vld [vmem:[#allocation4 + $0x378] sm:$0xff] }
 0x310   : > { %v11835_v28 = vpop.f32.mrf.mxu0 }
 0x311   : > { %2028 = vmatpush1.msra.mxu1 %v11835_v28  ;;  %v1909_v28 = vld [vmem:[#allocation4 + $0x310] sm:$0xff] }
 0x312   : > { %v1857_v33 = vpop.f32.mrf.mxu0  ;;  %2029 = vmatprep.subr.mxu1 %v18099_v40  ;;  %9993 = vperm.xlu1 %13303, %v9934_v44   ;;  %v1924_v44 = vld [vmem:[#allocation4 + $0x388] sm:$0xff] }
 0x313   : > { %2030 = vmatpush1.msra.mxu1 %v1857_v33  ;;  %10008 = vperm.xlu0 %13302, %v9937_v1   ;;  %v1914_v33 = vld [vmem:[#allocation4 + $0x338] sm:$0xff] }
 0x314   : > { %2031 = vmatprep.subr.mxu1 %v18099_v40  ;;  %v14617_v59 = vpop.f32.mrf.mxu0  ;;  %v1926_v1 = vld [vmem:[#allocation4 + $0x398] sm:$0xff] }
 0x315   : > { %2032 = vmatpush1.msra.mxu1 %v11832_v17 }
 0x316   : > { %2033 = vmatprep.subr.mxu1 %v18099_v40  ;;  %v14627_v62 = vpop.f32.mrf.mxu0 }
 0x317   : > { %2034 = vmatpush1.msra.mxu1 %v1847_v23  ;;  %v1910_v23 = vld [vmem:[#allocation4 + $0x318] sm:$0xff] }
 0x318   : > { %2035 = vmatprep.subr.mxu1 %v18099_v40  ;;  %v14637_v10 = vpop.f32.mrf.mxu0 }
 0x319   : > { %2036 = vmatpush1.msra.mxu1 %v11829_v12  ;;  %v9939_v12 = vld [vmem:[%s18086_s14 + $0x70] sm:$0xff] }
 0x31a   : > { %2037 = vmatprep.subr.mxu1 %v18099_v40  ;;  %v1877_v3 = vpop.f32.mrf.mxu0  ;;  %10018 = vperm.xlu0 %13302, %v9939_v12   ;;  %v1930_v12 = vld [vmem:[#allocation4 + $0x3b8] sm:$0xff] }
 0x31b   : > { %2038 = vmatpush1.msra.mxu1 %v1837_v57 }
 0x31c   : > { %2039 = vmatprep.subr.mxu1 %v18099_v40  ;;  %v11844_v18 = vpop.f32.mrf.mxu0 }
 0x31d   : > { %2040 = vmatpush1.msra.mxu1 %v11826_v11  ;;  %v2435_v11 = vld [vmem:[%s18077_s5 + $0x38] sm:$0xff] }
 0x31e   : > { %2041 = vmatprep.subr.mxu1 %v18099_v40  ;;  %11848 = vmatprep.subr.mxu0 %v2435_v11  ;;  %v1887_v57 = vpop.f32.mrf.mxu0 }
 0x31f   : > { %2042 = vmatpush1.msra.mxu1 %v1827_v61  ;;  %11849 = vmatpush3.msra.mxu0 %v2435_v11  ;;  %v2434_v61 = vld [vmem:[%s18077_s5 + $0x30] sm:$0xff]  ;;  %v1923_v11 = vld [vmem:[#allocation4 + $0x380] sm:$0xff] }
 0x320   : > { %2043 = vmatprep.subr.mxu1 %v18099_v40  ;;  %11850 = vmatprep.subr.mxu0 %v2434_v61  ;;  %v11847_v17 = vpop.f32.mrf.mxu0 }
 0x321   : > { %2044 = vmatpush1.msra.mxu1 %v11823_v48  ;;  %v9936_v48 = vld [vmem:[%s18086_s14 + $0x58] sm:$0xff]  ;;  %11851 = vmatpush3.msra.mxu0 %v2434_v61  ;;  %v1928_v61 = vld [vmem:[#allocation4 + $0x3a8] sm:$0xff] }
 0x322   : > { %2045 = vmatprep.subr.mxu1 %v18099_v40  ;;  %10003 = vperm.xlu1 %13303, %v9936_v48   ;;  %v1897_v20 = vpop.f32.mrf.mxu0  ;;  %v1927_v48 = vld [vmem:[#allocation4 + $0x3a0] sm:$0xff] }
 0x323   : > { %2046 = vmatpush1.msra.mxu1 %v14582_v7  ;;  %v2433_v7 = vld [vmem:[%s18077_s5 + $0x28] sm:$0xff]  ;;  %10028 = vperm.xlu0 %13302, %v9941_v54   ;;  %v1934_v54 = vld [vmem:[#allocation4 + $0x3d8] sm:$0xff] }
 0x324   : > { %2047 = vmatprep.subr.mxu1 %v18099_v40  ;;  %11852 = vmatprep.subr.mxu0 %v2433_v7 }
 0x325   : > { %2048 = vmatpush1.msra.mxu1 %v14566_v2  ;;  %v9938_v2 = vld [vmem:[%s18086_s14 + $0x68] sm:$0xff]  ;;  %11853 = vmatpush3.msra.mxu0 %v2433_v7 }
 0x326   : > { %2049 = vmatprep.subr.mxu1 %v18099_v40  ;;  %10013 = vperm.xlu1 %13303, %v9938_v2   ;;  %v1932_v7 = vld [vmem:[#allocation4 + $0x3c8] sm:$0xff]  ;;  %v1931_v2 = vld [vmem:[#allocation4 + $0x3c0] sm:$0xff] }
 0x327   : > { %2050 = vmatpush1.msra.mxu1 %v14574_v8  ;;  %v9940_v8 = vld [vmem:[%s18086_s14 + $0x78] sm:$0xff] }
 0x328   : > { %2051 = vmatprep.subr.mxu1 %v18099_v40 }
 0x329   : > { %2052 = vmatpush1.msra.mxu1 %v14556_v58  ;;  %v9943_v58 = vld [vmem:[%s18086_s14 + $0x90] sm:$0xff] }
 0x32a   : > { %2053 = vmatprep.subr.mxu1 %v18099_v40  ;;  %10023 = vperm.xlu1 %13303, %v9940_v8   ;;  %v1936_v8 = vld [vmem:[#allocation4 + $0x3e8] sm:$0xff] }
 0x32b   : > { %2054 = vmatpush1.msra.mxu1 %v14564_v51  ;;  %10038 = vperm.xlu0 %13302, %v9943_v58   ;;  %v9942_v51 = vld [vmem:[%s18086_s14 + $0x88] sm:$0xff]  ;;  %v1935_v58 = vld [vmem:[#allocation4 + $0x3e0] sm:$0xff] }
 0x32c   : > { %2055 = vmatprep.subr.mxu1 %v18099_v40 }
 0x32d   : > { %2056 = vmatpush1.msra.mxu1 %v14546_v39  ;;  %v9945_v39 = vld [vmem:[%s18086_s14 + $0xa0] sm:$0xff] }
 0x32e   : > { %2057 = vmatprep.subr.mxu1 %v18099_v40  ;;  %10033 = vperm.xlu1 %13303, %v9942_v51   ;;  %v1937_v51 = vld [vmem:[#allocation4 + $0x3f0] sm:$0xff] }
 0x32f   : > { %2058 = vmatpush1.msra.mxu1 %v14554_v43  ;;  %10048 = vperm.xlu0 %13302, %v9945_v39   ;;  %v9944_v43 = vld [vmem:[%s18086_s14 + $0x98] sm:$0xff]  ;;  %v1940_v39 = vld [vmem:[#allocation4 + $0x408] sm:$0xff] }
 0x330   : > { %2075 = vmatprep.subr.mxu1 %v18099_v40 }
 0x331   : > { %2076 = vmatpush2.msra.mxu1 %v11847_v17  ;;  %v1938_v17 = vld [vmem:[#allocation4 + $0x3f8] sm:$0xff] }
 0x332   : > { %2077 = vmatprep.subr.mxu1 %v18099_v40  ;;  %10043 = vperm.xlu1 %13303, %v9944_v43   ;;  %v1942_v43 = vld [vmem:[#allocation4 + $0x418] sm:$0xff] }
 0x333   : > { %2078 = vmatpush2.msra.mxu1 %v1897_v20  ;;  %v1939_v20 = vld [vmem:[#allocation4 + $0x400] sm:$0xff] }
 0x334   : > { %2079 = vmatprep.subr.mxu1 %v18099_v40 }
 0x335   : > { %2080 = vmatpush2.msra.mxu1 %v11844_v18  ;;  %v1929_v18 = vld [vmem:[#allocation4 + $0x3b0] sm:$0xff] }
 0x336   : > { %2081 = vmatprep.subr.mxu1 %v18099_v40 }
 0x337   : > { %2082 = vmatpush2.msra.mxu1 %v1887_v57  ;;  %v1933_v57 = vld [vmem:[#allocation4 + $0x3d0] sm:$0xff] }
 0x338   : > { %2083 = vmatprep.subr.mxu1 %v18099_v40 }
 0x339   : > { %2084 = vmatpush2.msra.mxu1 %v14637_v10  ;;  %v1921_v10 = vld [vmem:[#allocation4 + $0x370] sm:$0xff] }
 0x33a   : > { %2085 = vmatprep.subr.mxu1 %v18099_v40 }
 0x33b   : > { %2086 = vmatpush2.msra.mxu1 %v1877_v3  ;;  %v1925_v3 = vld [vmem:[#allocation4 + $0x390] sm:$0xff] }
 0x33c   : > { %2087 = vmatprep.subr.mxu1 %v18099_v40 }
 0x33d   : > { %2088 = vmatpush2.msra.mxu1 %v14617_v59  ;;  %v1915_v59 = vld [vmem:[#allocation4 + $0x340] sm:$0xff] }
 0x33e   : > { %2089 = vmatprep.subr.mxu1 %v18099_v40 }
 0x33f   : > { %2090 = vmatpush2.msra.mxu1 %v14627_v62  ;;  %v1920_v62 = vld [vmem:[#allocation4 + $0x368] sm:$0xff] }
 0x340   : > { %2092 = vmatmul.mubr.f32.vlgmr.msra.gmra.mxu1 %v1907_v22  ;;  %2947 = vmatprep.subr.mxu1 %v18099_v40  ;;  %v2432_v22 = vld [vmem:[%s18077_s5 + $0x20] sm:$0xff] }
 0x341   : > { %10390 = vmatprep.mubr.msk.f32.mxu1 %vm649_vm0, %v1910_v23  ;;  %v1941_v23 = vld [vmem:[#allocation4 + $0x410] sm:$0xff]  ;;  %11854 = vmatprep.subr.mxu0 %v2432_v22 }
 0x342   : > { %11855 = vmatpush3.msra.mxu0 %v2432_v22  ;;  %v10443_v22 = vld [vmem:[%s18077_s5 + $0x70] sm:$0xff] }
 0x344   : > { %2097 = vmatmul.mubr.f32.gmra.mxu1 %v1909_v28  ;;  %v1944_v28 = vld [vmem:[#allocation4 + $0x428] sm:$0xff] }
 0x345   : > { %10391 = vmatprep.mubr.msk.f32.mxu1 %vm649_vm0, %v1912_v29  ;;  %v2431_v29 = vld [vmem:[%s18077_s5 + $0x18] sm:$0xff] }
 0x346   : > { %11856 = vmatprep.subr.mxu0 %v2431_v29 }
 0x347   : > { %11857 = vmatpush3.msra.mxu0 %v2431_v29 }
 0x348   : > { %2102 = vmatmul.mubr.f32.gmra.mxu1 %v1911_v30  ;;  %v2430_v30 = vld [vmem:[%s18077_s5 + $0x10] sm:$0xff] }
 0x349   : > { %10392 = vmatprep.mubr.msk.f32.mxu1 %vm649_vm0, %v1914_v33  ;;  %v1943_v33 = vld [vmem:[#allocation4 + $0x420] sm:$0xff]  ;;  %11858 = vmatprep.subr.mxu0 %v2430_v30 }
 0x34a   : > { %11859 = vmatpush3.msra.mxu0 %v2430_v30 }
 0x34c   : > { %2107 = vmatmul.mubr.f32.gmra.mxu1 %v1913_v35  ;;  %v1946_v35 = vld [vmem:[#allocation4 + $0x438] sm:$0xff] }
 0x34d   : > { %10393 = vmatprep.mubr.msk.f32.mxu1 %vm649_vm0, %v1916_v38  ;;  %v2429_v38 = vld [vmem:[%s18077_s5 + $0x8] sm:$0xff] }
 0x34e   : > { %11860 = vmatprep.subr.mxu0 %v2429_v38 }
 0x34f   : > { %11861 = vmatpush3.msra.mxu0 %v2429_v38 }
 0x350   : > { %2112 = vmatmul.mubr.f32.gmra.mxu1 %v1915_v59  ;;  %v2428_v59 = vld [vmem:[%s18077_s5] sm:$0xff] }
 0x351   : > { %10394 = vmatprep.mubr.msk.f32.mxu1 %vm649_vm0, %v1918_v46  ;;  %v1945_v46 = vld [vmem:[#allocation4 + $0x430] sm:$0xff]  ;;  %11862 = vmatprep.subr.mxu0 %v2428_v59 }
 0x352   : > { %11863 = vmatpush3.msra.mxu0 %v2428_v59 }
 0x354   : > { %2117 = vmatmul.mubr.f32.gmra.mxu1 %v1917_v60  ;;  %v1948_v60 = vld [vmem:[#allocation4 + $0x448] sm:$0xff] }
 0x355   : > { %10395 = vmatprep.mubr.msk.f32.mxu1 %vm649_vm0, %v1920_v62  ;;  %v1947_v62 = vld [vmem:[#allocation4 + $0x440] sm:$0xff] }
 0x358   : > { %2122 = vmatmul.mubr.f32.gmra.mxu1 %v1919_v47  ;;  %v1950_v47 = vld [vmem:[#allocation4 + $0x458] sm:$0xff] }
 0x359   : > { %10396 = vmatprep.mubr.msk.f32.mxu1 %vm649_vm0, %v1922_v6  ;;  %v1949_v6 = vld [vmem:[#allocation4 + $0x450] sm:$0xff] }
 0x35c   : > { %2127 = vmatmul.mubr.f32.gmra.mxu1 %v1921_v10  ;;  %v1952_v10 = vld [vmem:[#allocation4 + $0x468] sm:$0xff] }
 0x35d   : > { %10397 = vmatprep.mubr.msk.f32.mxu1 %vm649_vm0, %v1924_v44  ;;  %v1951_v44 = vld [vmem:[#allocation4 + $0x460] sm:$0xff] }
 0x360   : > { %2132 = vmatmul.mubr.f32.gmra.mxu1 %v1923_v11  ;;  %v1954_v11 = vld [vmem:[#allocation4 + $0x478] sm:$0xff] }
 0x361   : > { %10398 = vmatprep.mubr.msk.f32.mxu1 %vm649_vm0, %v1926_v1  ;;  %v1953_v1 = vld [vmem:[#allocation4 + $0x470] sm:$0xff] }
 0x364   : > { %2137 = vmatmul.mubr.f32.gmra.mxu1 %v1925_v3  ;;  %v10444_v3 = vld [vmem:[%s18077_s5 + $0x78] sm:$0xff] }
 0x365   : > { %10399 = vmatprep.mubr.msk.f32.mxu1 %vm649_vm0, %v1928_v61  ;;  %11900 = vmatprep.subr.mxu0 %v10444_v3  ;;  %v1594_v61 = vadd.f32 %v14506_v42, %v14319_v16  ;;  %v2273_v16 = vpop.permute.xlu1 %2272 }
 0x368   : > { %2142 = vmatmul.mubr.f32.gmra.mxu1 %v1927_v48  ;;  %v2263_v48 = vpop.permute.xlu0 %2262 }
 0x369   : > { %10400 = vmatprep.mubr.msk.f32.mxu1 %vm649_vm0, %v1930_v12 }
 0x36c   : > { %2147 = vmatmul.mubr.f32.gmra.mxu1 %v1929_v18 }
 0x36d   : > { %10401 = vmatprep.mubr.msk.f32.mxu1 %vm649_vm0, %v1932_v7 }
 0x370   : > { %2152 = vmatmul.mubr.f32.gmra.mxu1 %v1931_v2  ;;  %v1599_v2 = vadd.f32 %v14514_v63, %v14324_v21 }
 0x371   : > { %10402 = vmatprep.mubr.msk.f32.mxu1 %vm649_vm0, %v1934_v54 }
 0x374   : > { %2157 = vmatmul.mubr.f32.gmra.mxu1 %v1933_v57 }
 0x375   : > { %10403 = vmatprep.mubr.msk.f32.mxu1 %vm649_vm0, %v1936_v8 }
 0x378   : > { %2162 = vmatmul.mubr.f32.gmra.mxu1 %v1935_v58 }
 0x379   : > { %10404 = vmatprep.mubr.msk.f32.mxu1 %vm649_vm0, %v1938_v17  ;;  %v2268_v17 = vpop.permute.xlu0 %2267 }
 0x37c   : > { %2167 = vmatmul.mubr.f32.gmra.mxu1 %v1937_v51 }
 0x37d   : > { %10405 = vmatprep.mubr.msk.f32.mxu1 %vm649_vm0, %v1940_v39  ;;  %v1604_v39 = vadd.f32 %v14522_v19, %v14329_v25 }
 0x380   : > { %2172 = vmatmul.mubr.f32.gmra.mxu1 %v1939_v20 }
 0x381   : > { %10406 = vmatprep.mubr.msk.f32.mxu1 %vm649_vm0, %v1942_v43 }
 0x384   : > { %2177 = vmatmul.mubr.f32.gmra.mxu1 %v1941_v23  ;;  %v1609_v23 = vadd.f32 %v14530_v24, %v14337_v31  ;;  %v10441_v31 = vld [vmem:[%s18077_s5 + $0x60] sm:$0xff]  ;;  %v1614_v24 = vadd.f32 %v14538_v32, %v14345_v37  ;;  %v10439_v37 = vld [vmem:[%s18077_s5 + $0x50] sm:$0xff] }
 0x385   : > { %10407 = vmatprep.mubr.msk.f32.mxu1 %vm649_vm0, %v1944_v28  ;;  %v10442_v28 = vld [vmem:[%s18077_s5 + $0x68] sm:$0xff] }
 0x388   : > { %2182 = vmatmul.mubr.f32.gmra.mxu1 %v1943_v33  ;;  %v2278_v33 = vpop.permute.xlu1 %2277 }
 0x389   : > { %10408 = vmatprep.mubr.msk.f32.mxu1 %vm649_vm0, %v1946_v35 }
 0x38c   : > { %2187 = vmatmul.mubr.f32.gmra.mxu1 %v1945_v46  ;;  %v10440_v46 = vld [vmem:[%s18077_s5 + $0x58] sm:$0xff] }
 0x38d   : > { %10409 = vmatprep.mubr.msk.f32.mxu1 %vm649_vm0, %v1948_v60 }
 0x390   : > { %2192 = vmatmul.mubr.f32.gmra.mxu1 %v1947_v62 }
 0x391   : > { %10410 = vmatprep.mubr.msk.f32.mxu1 %vm649_vm0, %v1950_v47  ;;  %v2283_v47 = vpop.permute.xlu0 %2282 }
 0x394   : > { %2197 = vmatmul.mubr.f32.gmra.mxu1 %v1949_v6 }
 0x395   : > { %10411 = vmatprep.mubr.msk.f32.mxu1 %vm649_vm0, %v1952_v10 }
 0x398   : > { %2202 = vmatmul.mubr.f32.gmra.mxu1 %v1951_v44  ;;  %v10438_v44 = vld [vmem:[%s18077_s5 + $0x48] sm:$0xff] }
 0x399   : > { %10412 = vmatprep.mubr.msk.f32.mxu1 %vm649_vm0, %v1954_v11 }
 0x39c   : > { %2207 = vmatmul.mubr.f32.gmra.mxu1 %v1953_v1 }
 0x400   : > { %v2093_v12 = vpop.f32.mrf.mxu1 }
 0x401   : > { %v2212_v18 = vadd.f32 %v2093_v12, %v1594_v61 }
 0x402   : > { %v2095_v7 = vpop.f32.mrf.mxu1 }
 0x403   : > { %v14753_v54 = vadd.f32 %v2263_v48, %v2212_v18  ;;  %v10437_v48 = vld [vmem:[%s18077_s5 + $0x40] sm:$0xff] }
 0x404   : > { %v2098_v57 = vpop.f32.mrf.mxu1 }
 0x405   : > { %v2404_v8 = vmax.f32 %v14753_v54, 0.0  ;;  %v2213_v58 = vadd.f32 %v2098_v57, %v1599_v2  ;;  %v2293_v2 = vpop.permute.xlu0 %2292 }
 0x406   : > { %v2100_v51 = vpop.f32.mrf.mxu1 }
 0x407   : > { %v14758_v20 = vadd.f32 %v2268_v17, %v2213_v58  ;;  %11864 = vmatprep.mubr.msk.f32.mxu0 %vm649_vm0, %v2404_v8 }
 0x408   : > { %v2103_v42 = vpop.f32.mrf.mxu1 }
 0x409   : > { %v2405_v21 = vmax.f32 %v14758_v20, 0.0  ;;  %v2214_v63 = vadd.f32 %v2103_v42, %v1604_v39 }
 0x40a   : > { %v2105_v43 = vpop.f32.mrf.mxu1 }
 0x40b   : > { %v14769_v25 = vadd.f32 %v2273_v16, %v2214_v63  ;;  %11865 = vmatmul.mubr.msk.f32.vlgmr.msra.gmra.mxu0 %vm649_vm0, %v2405_v21 }
 0x40c   : > { %v2108_v19 = vpop.f32.mrf.mxu1  ;;  %11901 = vmatpush3.msra.mxu0 %v10444_v3  ;;  %v2288_v3 = vpop.permute.xlu1 %2287 }
 0x40d   : > { %v2406_v29 = vmax.f32 %v14769_v25, 0.0  ;;  %v2215_v30 = vadd.f32 %v2108_v19, %v1609_v23  ;;  %11902 = vmatprep.subr.mxu0 %v10443_v22  ;;  %v2303_v23 = vpop.permute.xlu0 %2302 }
 0x40e   : > { %v2110_v35 = vpop.f32.mrf.mxu1  ;;  %11903 = vmatpush3.msra.mxu0 %v10443_v22 }
 0x40f   : > { %v14783_v38 = vadd.f32 %v2278_v33, %v2215_v30  ;;  %11867 = vmatprep.mubr.msk.f32.mxu0 %vm649_vm0, %v2406_v29  ;;  %11904 = vmatprep.subr.mxu0 %v10442_v28 }
 0x410   : > { %v2113_v59 = vpop.f32.mrf.mxu1  ;;  %11905 = vmatpush3.msra.mxu0 %v10442_v28  ;;  %v2298_v16 = vpop.permute.xlu1 %2297 }
 0x411   : > { %v2407_v60 = vmax.f32 %v14783_v38, 0.0  ;;  %v2216_v62 = vadd.f32 %v2113_v59, %v1614_v24  ;;  %11906 = vmatprep.subr.mxu0 %v10441_v31 }
 0x412   : > { %v2115_v6 = vpop.f32.mrf.mxu1  ;;  %11907 = vmatpush3.msra.mxu0 %v10441_v31 }
 0x413   : > { %v14795_v32 = vadd.f32 %v2283_v47, %v2216_v62  ;;  %11868 = vmatmul.mubr.msk.f32.gmra.mxu0 %vm649_vm0, %v2407_v60  ;;  %11908 = vmatprep.subr.mxu0 %v10440_v46  ;;  %v2313_v62 = vpop.permute.xlu0 %2312 }
 0x414   : > { %v2118_v10 = vpop.f32.mrf.mxu1  ;;  %11909 = vmatpush3.msra.mxu0 %v10440_v46  ;;  %v2308_v35 = vpop.permute.xlu1 %2307 }
 0x415   : > { %v2408_v11 = vmax.f32 %v14795_v32, 0.0  ;;  %v2217_v1 = vadd.f32 %v2118_v10, %v14353_v55  ;;  %11910 = vmatprep.subr.mxu0 %v10439_v37 }
 0x416   : > { %v2120_v61 = vpop.f32.mrf.mxu1  ;;  %11911 = vmatpush3.msra.mxu0 %v10439_v37 }
 0x417   : > { %v14808_v12 = vadd.f32 %v2288_v3, %v2217_v1  ;;  %11870 = vmatprep.mubr.msk.f32.mxu0 %vm649_vm0, %v2408_v11  ;;  %11912 = vmatprep.subr.mxu0 %v10438_v44 }
 0x418   : > { %v2123_v18 = vpop.f32.mrf.mxu1  ;;  %11913 = vmatpush3.msra.mxu0 %v10438_v44  ;;  %v2318_v44 = vpop.permute.xlu1 %2317 }
 0x419   : > { %v2409_v7 = vmax.f32 %v14808_v12, 0.0  ;;  %v2218_v55 = vadd.f32 %v2123_v18, %v14361_v45  ;;  %11914 = vmatprep.subr.mxu0 %v10437_v48  ;;  %v2323_v18 = vpop.permute.xlu0 %2322 }
 0x41a   : > { %v2125_v57 = vpop.f32.mrf.mxu1  ;;  %11915 = vmatpush3.msra.mxu0 %v10437_v48 }
 0x41b   : > { %v14815_v58 = vadd.f32 %v2293_v2, %v2218_v55  ;;  %11871 = vmatmul.mubr.msk.f32.gmra.mxu0 %vm649_vm0, %v2409_v7  ;;  %3072 = vmatprep.subr.mxu0 %v18099_v40 }
 0x41c   : > { %v2128_v17 = vpop.f32.mrf.mxu1 }
 0x41d   : > { %v2410_v51 = vmax.f32 %v14815_v58, 0.0  ;;  %v2219_v39 = vadd.f32 %v2128_v17, %v14369_v9 }
 0x41e   : > { %v2130_v42 = vpop.f32.mrf.mxu1 }
 0x41f   : > { %v14823_v45 = vadd.f32 %v2298_v16, %v2219_v39  ;;  %11873 = vmatprep.mubr.msk.f32.mxu0 %vm649_vm0, %v2410_v51  ;;  %v2328_v39 = vpop.permute.xlu1 %2327 }
 0x420   : > { %v2133_v63 = vpop.f32.mrf.mxu1 }
 0x421   : > { %v2411_v43 = vmax.f32 %v14823_v45, 0.0  ;;  %v2220_v22 = vadd.f32 %v2133_v63, %v14377_v52 }
 0x422   : > { %v2135_v19 = vpop.f32.mrf.mxu1 }
 0x423   : > { %v14830_v28 = vadd.f32 %v2303_v23, %v2220_v22  ;;  %11874 = vmatmul.mubr.msk.f32.gmra.mxu0 %vm649_vm0, %v2411_v43  ;;  %v2333_v23 = vpop.permute.xlu0 %2332 }
 0x424   : > { %v2138_v9 = vpop.f32.mrf.mxu1 }
 0x425   : > { %v2412_v30 = vmax.f32 %v14830_v28, 0.0  ;;  %v2221_v33 = vadd.f32 %v2138_v9, %v14385_v41 }
 0x426   : > { %v2140_v31 = vpop.f32.mrf.mxu1 }
 0x427   : > { %v14837_v24 = vadd.f32 %v2308_v35, %v2221_v33  ;;  %11876 = vmatprep.mubr.msk.f32.mxu0 %vm649_vm0, %v2412_v30  ;;  %v2338_v31 = vpop.permute.xlu1 %2337 }
 0x428   : > { %v2143_v52 = vpop.f32.mrf.mxu1 }
 0x429   : > { %v2413_v59 = vmax.f32 %v14837_v24, 0.0  ;;  %v2222_v46 = vadd.f32 %v2143_v52, %v14393_v14 }
 0x42a   : > { %v2145_v47 = vpop.f32.mrf.mxu1 }
 0x42b   : > { %v14844_v6 = vadd.f32 %v2313_v62, %v2222_v46  ;;  %11877 = vmatmul.mubr.msk.f32.gmra.mxu0 %vm649_vm0, %v2413_v59 }
 0x42c   : > { %v2148_v41 = vpop.f32.mrf.mxu1 }
 0x42d   : > { %v2414_v37 = vmax.f32 %v14844_v6, 0.0  ;;  %v2223_v10 = vadd.f32 %v2148_v41, %v14401_v26  ;;  %v2343_v41 = vpop.permute.xlu0 %2342 }
 0x42e   : > { %v2150_v1 = vpop.f32.mrf.mxu1 }
 0x42f   : > { %v14851_v3 = vadd.f32 %v2318_v44, %v2223_v10  ;;  %11879 = vmatprep.mubr.msk.f32.mxu0 %vm649_vm0, %v2414_v37 }
 0x430   : > { %v2153_v14 = vpop.f32.mrf.mxu1 }
 0x431   : > { %v2415_v61 = vmax.f32 %v14851_v3, 0.0  ;;  %v2224_v48 = vadd.f32 %v2153_v14, %v14409_v34 }
 0x432   : > { %v2155_v55 = vpop.f32.mrf.mxu1 }
 0x433   : > { %v14858_v2 = vadd.f32 %v2323_v18, %v2224_v48  ;;  %11880 = vmatmul.mubr.msk.f32.gmra.mxu0 %vm649_vm0, %v2415_v61  ;;  %v2348_v48 = vpop.permute.xlu1 %2347 }
 0x434   : > { %v2158_v26 = vpop.f32.mrf.mxu1 }
 0x435   : > { %v2416_v57 = vmax.f32 %v14858_v2, 0.0  ;;  %v2225_v17 = vadd.f32 %v2158_v26, %v14417_v53 }
 0x436   : > { %v2160_v16 = vpop.f32.mrf.mxu1 }
 0x437   : > { %v14865_v42 = vadd.f32 %v2328_v39, %v2225_v17  ;;  %11882 = vmatprep.mubr.msk.f32.mxu0 %vm649_vm0, %v2416_v57  ;;  %v2353_v39 = vpop.permute.xlu0 %2352 }
 0x438   : > { %v2163_v34 = vpop.f32.mrf.mxu1 }
 0x439   : > { %v2417_v63 = vmax.f32 %v14865_v42, 0.0  ;;  %v2226_v22 = vadd.f32 %v2163_v34, %v14425_v0 }
 0x43a   : > { %v2165_v19 = vpop.f32.mrf.mxu1 }
 0x43b   : > { %v14872_v9 = vadd.f32 %v2333_v23, %v2226_v22  ;;  %11883 = vmatmul.mubr.msk.f32.gmra.mxu0 %vm649_vm0, %v2417_v63  ;;  %v2358_v19 = vpop.permute.xlu1 %2357 }
 0x43c   : > { %v2168_v53 = vpop.f32.mrf.mxu1 }
 0x43d   : > { %v2418_v33 = vmax.f32 %v14872_v9, 0.0  ;;  %v2227_v35 = vadd.f32 %v2168_v53, %v14433_v5  ;;  %v15075_v9 = vld [vmem:[#allocation7] sm:$0xff] }
 0x43e   : > { %v2170_v52 = vpop.f32.mrf.mxu1 }
 0x43f   : > { %v14879_v46 = vadd.f32 %v2338_v31, %v2227_v35  ;;  %11885 = vmatprep.mubr.msk.f32.mxu0 %vm649_vm0, %v2418_v33 }
 0x440   : > { %v2173_v0 = vpop.f32.mrf.mxu1 }
 0x441   : > { %v2419_v62 = vmax.f32 %v14879_v46, 0.0  ;;  %v2228_v47 = vadd.f32 %v2173_v0, %v14448_v15  ;;  %v15080_v46 = vld [vmem:[#allocation7 + $0x18] sm:$0xff] }
 0x442   : > { %v2175_v10 = vpop.f32.mrf.mxu1 }
 0x443   : > { %v14886_v44 = vadd.f32 %v2343_v41, %v2228_v47  ;;  %11886 = vmatmul.mubr.msk.f32.gmra.mxu0 %vm649_vm0, %v2419_v62  ;;  %v2363_v47 = vpop.permute.xlu0 %2362 }
 0x444   : > { %v2178_v5 = vpop.f32.mrf.mxu1 }
 0x445   : > { %v2420_v1 = vmax.f32 %v14886_v44, 0.0  ;;  %v2229_v14 = vadd.f32 %v2178_v5, %v14456_v50  ;;  %v15090_v44 = vld [vmem:[#allocation7 + $0x10] sm:$0xff] }
 0x446   : > { %v2180_v18 = vpop.f32.mrf.mxu1 }
 0x447   : > { %v14893_v55 = vadd.f32 %v2348_v48, %v2229_v14  ;;  %11888 = vmatprep.mubr.msk.f32.mxu0 %vm649_vm0, %v2420_v1  ;;  %v2368_v48 = vpop.permute.xlu1 %2367 }
 0x448   : > { %v2183_v15 = vpop.f32.mrf.mxu1 }
 0x449   : > { %v2421_v26 = vmax.f32 %v14893_v55, 0.0  ;;  %v2230_v17 = vadd.f32 %v2183_v15, %v14464_v27 }
 0x44a   : > { %v2185_v16 = vpop.f32.mrf.mxu1 }
 0x44b   : > { %v2398_v34 = vadd.f32 %v2353_v39, %v2230_v17  ;;  %11889 = vmatmul.mubr.msk.f32.gmra.mxu0 %vm649_vm0, %v2421_v26  ;;  %v2373_v39 = vpop.permute.xlu0 %2372 }
 0x44c   : > { %v2188_v22 = vpop.f32.mrf.mxu1 }
 0x44d   : > { %v2422_v50 = vmax.f32 %v2398_v34, 0.0  ;;  %v2231_v23 = vadd.f32 %v2188_v22, %v14472_v36 }
 0x44e   : > { %v2190_v53 = vpop.f32.mrf.mxu1 }
 0x44f   : > { %v2399_v35 = vadd.f32 %v2358_v19, %v2231_v23  ;;  %11891 = vmatprep.mubr.msk.f32.mxu0 %vm649_vm0, %v2422_v50  ;;  %v2378_v19 = vpop.permute.xlu1 %2377 }
 0x450   : > { %v2193_v31 = vpop.f32.mrf.mxu1 }
 0x451   : > { %v2423_v52 = vmax.f32 %v2399_v35, 0.0  ;;  %v2232_v0 = vadd.f32 %v2193_v31, %v14480_v49  ;;  %v15105_v31 = vld [vmem:[#allocation7 + $0x20] sm:$0xff] }
 0x452   : > { %v2195_v27 = vpop.f32.mrf.mxu1 }
 0x453   : > { %v2400_v41 = vadd.f32 %v2363_v47, %v2232_v0  ;;  %11892 = vmatmul.mubr.msk.f32.gmra.mxu0 %vm649_vm0, %v2423_v52  ;;  %v15110_v0 = vld [vmem:[#allocation7 + $0x38] sm:$0xff]  ;;  %v15120_v27 = vld [vmem:[#allocation7 + $0x30] sm:$0xff] }
 0x454   : > { %v2198_v10 = vpop.f32.mrf.mxu1 }
 0x455   : > { %v2424_v5 = vmax.f32 %v2400_v41, 0.0  ;;  %v2233_v14 = vadd.f32 %v2198_v10, %v14488_v4  ;;  %v15125_v10 = vld [vmem:[#allocation7 + $0x48] sm:$0xff] }
 0x456   : > { %v2200_v36 = vpop.f32.mrf.mxu1 }
 0x457   : > { %v2401_v18 = vadd.f32 %v2368_v48, %v2233_v14  ;;  %11894 = vmatprep.mubr.msk.f32.mxu0 %vm649_vm0, %v2424_v5  ;;  %v15135_v14 = vld [vmem:[#allocation7 + $0x40] sm:$0xff] }
 0x458   : > { %v2203_v55 = vpop.f32.mrf.mxu1 }
 0x459   : > { %v2425_v15 = vmax.f32 %v2401_v18, 0.0  ;;  %v2234_v17 = vadd.f32 %v2203_v55, %v14496_v56  ;;  %v2888_v56 = vld [vmem:[#allocation7 + $0x8] sm:$0xff] }
 0x45a   : > { %v2205_v49 = vpop.f32.mrf.mxu1  ;;  %10469 = vmatprep.mubr.msk.f32.mxu1 %vm649_vm0, %v2888_v56 }
 0x45b   : > { %v2402_v16 = vadd.f32 %v2373_v39, %v2234_v17  ;;  %11895 = vmatmul.mubr.msk.f32.gmra.mxu0 %vm649_vm0, %v2425_v15 }
 0x45c   : > { %v2208_v34 = vpop.f32.mrf.mxu1 }
 0x45d   : > { %v2426_v22 = vmax.f32 %v2402_v16, 0.0  ;;  %v2235_v23 = vadd.f32 %v2208_v34, %v14504_v13  ;;  %v15217_v34 = vld [vmem:[#allocation7 + $0x58] sm:$0xff] }
 0x45e   : > { %v2210_v4 = vpop.f32.mrf.mxu1 }
 0x45f   : > { %v2403_v53 = vadd.f32 %v2378_v19, %v2235_v23  ;;  %11897 = vmatprep.mubr.msk.f32.mxu0 %vm649_vm0, %v2426_v22  ;;  %v15223_v23 = vld [vmem:[#allocation7 + $0x50] sm:$0xff]  ;;  %v15227_v19 = vld [vmem:[#allocation7 + $0x68] sm:$0xff] }
 0x461   : > { %v2427_v35 = vmax.f32 %v2403_v53, 0.0  ;;  %v15239_v53 = vld [vmem:[#allocation7 + $0x60] sm:$0xff] }
 0x463   : > { %11898 = vmatmul.mubr.msk.f32.gmra.mxu0 %vm649_vm0, %v2427_v35 }
 0x464   : > { %11916 = vmatprep.mubr.msk.f32.mxu0 %vm649_vm0, %v2404_v8 }
 0x467   : > { %11917 = vmatmul.mubr.msk.f32.vlgmr.msra.gmra.mxu0 %vm649_vm0, %v2405_v21 }
 0x468   : > { %11919 = vmatprep.mubr.msk.f32.mxu0 %vm649_vm0, %v2406_v29 }
 0x46b   : > { %11920 = vmatmul.mubr.msk.f32.gmra.mxu0 %vm649_vm0, %v2407_v60 }
 0x46c   : > { %11922 = vmatprep.mubr.msk.f32.mxu0 %vm649_vm0, %v2408_v11 }
 0x46f   : > { %11923 = vmatmul.mubr.msk.f32.gmra.mxu0 %vm649_vm0, %v2409_v7 }
 0x470   : > { %11925 = vmatprep.mubr.msk.f32.mxu0 %vm649_vm0, %v2410_v51 }
 0x473   : > { %11926 = vmatmul.mubr.msk.f32.gmra.mxu0 %vm649_vm0, %v2411_v43 }
 0x474   : > { %11928 = vmatprep.mubr.msk.f32.mxu0 %vm649_vm0, %v2412_v30 }
 0x477   : > { %11929 = vmatmul.mubr.msk.f32.gmra.mxu0 %vm649_vm0, %v2413_v59 }
 0x478   : > { %11931 = vmatprep.mubr.msk.f32.mxu0 %vm649_vm0, %v2414_v37 }
 0x47b   : > { %11932 = vmatmul.mubr.msk.f32.gmra.mxu0 %vm649_vm0, %v2415_v61 }
 0x47c   : > { %11934 = vmatprep.mubr.msk.f32.mxu0 %vm649_vm0, %v2416_v57 }
 0x47f   : > { %11935 = vmatmul.mubr.msk.f32.gmra.mxu0 %vm649_vm0, %v2417_v63 }
 0x480   : > { %11937 = vmatprep.mubr.msk.f32.mxu0 %vm649_vm0, %v2418_v33 }
 0x483   : > { %11938 = vmatmul.mubr.msk.f32.gmra.mxu0 %vm649_vm0, %v2419_v62 }
 0x484   : > { %11940 = vmatprep.mubr.msk.f32.mxu0 %vm649_vm0, %v2420_v1 }
 0x487   : > { %11941 = vmatmul.mubr.msk.f32.gmra.mxu0 %vm649_vm0, %v2421_v26  ;;  %v15095_v26 = vld [vmem:[#allocation7 + $0x28] sm:$0xff] }
 0x488   : > { %11943 = vmatprep.mubr.msk.f32.mxu0 %vm649_vm0, %v2422_v50 }
 0x48b   : > { %11944 = vmatmul.mubr.msk.f32.gmra.mxu0 %vm649_vm0, %v2423_v52 }
 0x48c   : > { %11946 = vmatprep.mubr.msk.f32.mxu0 %vm649_vm0, %v2424_v5 }
 0x48f   : > { %11947 = vmatmul.mubr.msk.f32.gmra.mxu0 %vm649_vm0, %v2425_v15 }
 0x490   : > { %11949 = vmatprep.mubr.msk.f32.mxu0 %vm649_vm0, %v2426_v22 }
 0x493   : > { %11950 = vmatmul.mubr.msk.f32.gmra.mxu0 %vm649_vm0, %v2427_v35  ;;  %v15242_v35 = vld [vmem:[#allocation7 + $0x78] sm:$0xff] }
 0x494   : > { %10481 = vmatprep.mubr.msk.f32.mxu0 %vm649_vm0, %v2888_v56  ;;  %v15250_v56 = vld [vmem:[#allocation7 + $0x70] sm:$0xff] }
 0x4cb   : > { %v14972_v13 = vpop.f32.mrf.mxu0 }
 0x4cd   : > { %v14974_v54 = vpop.f32.mrf.mxu0 }
 0x4d3   : > { %v14976_v8 = vpop.f32.mrf.mxu0 }
 0x4d5   : > { %v14978_v20 = vpop.f32.mrf.mxu0 }
 0x4db   : > { %v14980_v21 = vpop.f32.mrf.mxu0 }
 0x4dd   : > { %v14982_v25 = vpop.f32.mrf.mxu0 }
 0x4e3   : > { %v14984_v29 = vpop.f32.mrf.mxu0 }
 0x4e5   : > { %v14986_v38 = vpop.f32.mrf.mxu0 }
 0x4eb   : > { %v14988_v60 = vpop.f32.mrf.mxu0 }
 0x4ed   : > { %v14990_v32 = vpop.f32.mrf.mxu0 }
 0x4f3   : > { %v14992_v11 = vpop.f32.mrf.mxu0 }
 0x4f5   : > { %v14994_v12 = vpop.f32.mrf.mxu0 }
 0x4fb   : > { %v14996_v7 = vpop.f32.mrf.mxu0 }
 0x4fd   : > { %v14998_v58 = vpop.f32.mrf.mxu0 }
 0x503   : > { %v15000_v51 = vpop.f32.mrf.mxu0 }
 0x504   : > { %2948 = vmatpush1.msra.mxu1 %v15000_v51 }
 0x505   : > { %v15003_v45 = vpop.f32.mrf.mxu0  ;;  %2949 = vmatprep.subr.mxu1 %v18099_v40 }
 0x506   : > { %2950 = vmatpush1.msra.mxu1 %v15003_v45 }
 0x507   : > { %2951 = vmatprep.subr.mxu1 %v18099_v40 }
 0x508   : > { %2952 = vmatpush1.msra.mxu1 %v14996_v7 }
 0x509   : > { %2953 = vmatprep.subr.mxu1 %v18099_v40 }
 0x50a   : > { %2954 = vmatpush1.msra.mxu1 %v14998_v58 }
 0x50b   : > { %2955 = vmatprep.subr.mxu1 %v18099_v40  ;;  %v15017_v43 = vpop.f32.mrf.mxu0 }
 0x50c   : > { %2956 = vmatpush1.msra.mxu1 %v14992_v11 }
 0x50d   : > { %2957 = vmatprep.subr.mxu1 %v18099_v40  ;;  %v15023_v28 = vpop.f32.mrf.mxu0 }
 0x50e   : > { %2958 = vmatpush1.msra.mxu1 %v14994_v12 }
 0x50f   : > { %2959 = vmatprep.subr.mxu1 %v18099_v40 }
 0x510   : > { %2960 = vmatpush1.msra.mxu1 %v14988_v60 }
 0x511   : > { %2961 = vmatprep.subr.mxu1 %v18099_v40 }
 0x512   : > { %2962 = vmatpush1.msra.mxu1 %v14990_v32 }
 0x513   : > { %2963 = vmatprep.subr.mxu1 %v18099_v40  ;;  %v15027_v30 = vpop.f32.mrf.mxu0 }
 0x514   : > { %2964 = vmatpush1.msra.mxu1 %v14984_v29 }
 0x515   : > { %2965 = vmatprep.subr.mxu1 %v18099_v40  ;;  %v15033_v24 = vpop.f32.mrf.mxu0 }
 0x516   : > { %2966 = vmatpush1.msra.mxu1 %v14986_v38 }
 0x517   : > { %2967 = vmatprep.subr.mxu1 %v18099_v40 }
 0x518   : > { %2968 = vmatpush1.msra.mxu1 %v14980_v21 }
 0x519   : > { %2969 = vmatprep.subr.mxu1 %v18099_v40 }
 0x51a   : > { %2970 = vmatpush1.msra.mxu1 %v14982_v25 }
 0x51b   : > { %2971 = vmatprep.subr.mxu1 %v18099_v40  ;;  %v15037_v59 = vpop.f32.mrf.mxu0 }
 0x51c   : > { %2972 = vmatpush1.msra.mxu1 %v14976_v8 }
 0x51d   : > { %2973 = vmatprep.subr.mxu1 %v18099_v40  ;;  %v15043_v6 = vpop.f32.mrf.mxu0 }
 0x51e   : > { %2974 = vmatpush1.msra.mxu1 %v14978_v20 }
 0x51f   : > { %2975 = vmatprep.subr.mxu1 %v18099_v40 }
 0x520   : > { %2976 = vmatpush1.msra.mxu1 %v14972_v13 }
 0x521   : > { %2977 = vmatprep.subr.mxu1 %v18099_v40 }
 0x522   : > { %2978 = vmatpush1.msra.mxu1 %v14974_v54 }
 0x523   : > { %v15047_v37 = vpop.f32.mrf.mxu0  ;;  %2995 = vmatprep.subr.mxu1 %v18099_v40 }
 0x524   : > { %2996 = vmatpush2.msra.mxu1 %v15047_v37 }
 0x525   : > { %v15051_v3 = vpop.f32.mrf.mxu0  ;;  %2997 = vmatprep.subr.mxu1 %v18099_v40 }
 0x526   : > { %2998 = vmatpush2.msra.mxu1 %v15051_v3 }
 0x527   : > { %v15055_v61 = vpop.f32.mrf.mxu0  ;;  %2999 = vmatprep.subr.mxu1 %v18099_v40 }
 0x528   : > { %3000 = vmatpush2.msra.mxu1 %v15037_v59 }
 0x529   : > { %v15059_v2 = vpop.f32.mrf.mxu0  ;;  %3001 = vmatprep.subr.mxu1 %v18099_v40 }
 0x52a   : > { %3002 = vmatpush2.msra.mxu1 %v15043_v6 }
 0x52b   : > { %v15063_v57 = vpop.f32.mrf.mxu0  ;;  %3003 = vmatprep.subr.mxu1 %v18099_v40 }
 0x52c   : > { %3004 = vmatpush2.msra.mxu1 %v15027_v30 }
 0x52d   : > { %v15067_v42 = vpop.f32.mrf.mxu0  ;;  %3005 = vmatprep.subr.mxu1 %v18099_v40 }
 0x52e   : > { %3006 = vmatpush2.msra.mxu1 %v15033_v24 }
 0x52f   : > { %v15071_v63 = vpop.f32.mrf.mxu0  ;;  %3007 = vmatprep.subr.mxu1 %v18099_v40 }
 0x530   : > { %3008 = vmatpush2.msra.mxu1 %v15017_v43 }
 0x531   : > { %v15077_v33 = vpop.f32.mrf.mxu0  ;;  %3009 = vmatprep.subr.mxu1 %v18099_v40 }
 0x532   : > { %3010 = vmatpush2.msra.mxu1 %v15023_v28 }
 0x533   : > { %v15083_v62 = vpop.f32.mrf.mxu0  ;;  %3258 = vmatprep.subr.mxu1 %v18099_v40  ;;  %3012 = vmatmul.mubr.f32.vlgmr.msra.gmra.mxu1 %v15075_v9 }
 0x534   : > { %3259 = vmatpush1.msra.mxu1 %v15000_v51  ;;  %10470 = vmatprep.mubr.msk.f32.mxu1 %vm649_vm0, %v15080_v46  ;;  %v15347_v51 = vld [vmem:[#allocation7 + $0xf8] sm:$0xff] }
 0x535   : > { %v15092_v1 = vpop.f32.mrf.mxu0  ;;  %3260 = vmatprep.subr.mxu1 %v18099_v40 }
 0x536   : > { %3261 = vmatpush1.msra.mxu1 %v15003_v45  ;;  %v15357_v45 = vld [vmem:[#allocation7 + $0xf0] sm:$0xff] }
 0x537   : > { %v15098_v50 = vpop.f32.mrf.mxu0  ;;  %3262 = vmatprep.subr.mxu1 %v18099_v40  ;;  %3017 = vmatmul.mubr.f32.gmra.mxu1 %v15090_v44 }
 0x538   : > { %3263 = vmatpush1.msra.mxu1 %v14996_v7  ;;  %10471 = vmatprep.mubr.msk.f32.mxu1 %vm649_vm0, %v15095_v26  ;;  %v15333_v7 = vld [vmem:[#allocation7 + $0xe8] sm:$0xff] }
 0x539   : > { %v15107_v52 = vpop.f32.mrf.mxu0  ;;  %3264 = vmatprep.subr.mxu1 %v18099_v40 }
 0x53a   : > { %3265 = vmatpush1.msra.mxu1 %v14998_v58  ;;  %v15343_v58 = vld [vmem:[#allocation7 + $0xe0] sm:$0xff] }
 0x53b   : > { %v15113_v47 = vpop.f32.mrf.mxu0  ;;  %3266 = vmatprep.subr.mxu1 %v18099_v40  ;;  %3022 = vmatmul.mubr.f32.gmra.mxu1 %v15105_v31 }
 0x53c   : > { %3267 = vmatpush1.msra.mxu1 %v14992_v11  ;;  %10472 = vmatprep.mubr.msk.f32.mxu1 %vm649_vm0, %v15110_v0  ;;  %v15319_v11 = vld [vmem:[#allocation7 + $0xd8] sm:$0xff] }
 0x53d   : > { %v15122_v41 = vpop.f32.mrf.mxu0  ;;  %3268 = vmatprep.subr.mxu1 %v18099_v40 }
 0x53e   : > { %3269 = vmatpush1.msra.mxu1 %v14994_v12  ;;  %v15329_v12 = vld [vmem:[#allocation7 + $0xd0] sm:$0xff] }
 0x53f   : > { %v15128_v5 = vpop.f32.mrf.mxu0  ;;  %3270 = vmatprep.subr.mxu1 %v18099_v40  ;;  %3027 = vmatmul.mubr.f32.gmra.mxu1 %v15120_v27 }
 0x540   : > { %3271 = vmatpush1.msra.mxu1 %v14988_v60  ;;  %10473 = vmatprep.mubr.msk.f32.mxu1 %vm649_vm0, %v15125_v10  ;;  %v15305_v60 = vld [vmem:[#allocation7 + $0xc8] sm:$0xff] }
 0x541   : > { %v15137_v48 = vpop.f32.mrf.mxu0  ;;  %3272 = vmatprep.subr.mxu1 %v18099_v40 }
 0x542   : > { %3273 = vmatpush1.msra.mxu1 %v14990_v32  ;;  %v15315_v32 = vld [vmem:[#allocation7 + $0xc0] sm:$0xff] }
 0x543   : > { %v15141_v36 = vpop.f32.mrf.mxu0  ;;  %3274 = vmatprep.subr.mxu1 %v18099_v40  ;;  %3032 = vmatmul.mubr.f32.gmra.mxu1 %v15135_v14 }
 0x544   : > { %3073 = vmatpush1.msra.mxu0 %v15141_v36  ;;  %3275 = vmatpush1.msra.mxu1 %v14984_v29  ;;  %v15291_v29 = vld [vmem:[#allocation7 + $0xb8] sm:$0xff] }
 0x545   : > { %v15147_v18 = vpop.f32.mrf.mxu0  ;;  %3074 = vmatprep.subr.mxu0 %v18099_v40  ;;  %3276 = vmatprep.subr.mxu1 %v18099_v40 }
 0x546   : > { %3075 = vmatpush1.msra.mxu0 %v15147_v18  ;;  %3277 = vmatpush1.msra.mxu1 %v14986_v38  ;;  %v15301_v38 = vld [vmem:[#allocation7 + $0xb0] sm:$0xff] }
 0x547   : > { %3076 = vmatprep.subr.mxu0 %v18099_v40  ;;  %3278 = vmatprep.subr.mxu1 %v18099_v40  ;;  %v15157_v55 = vpop.f32.mrf.mxu0 }
 0x548   : > { %3077 = vmatpush1.msra.mxu0 %v15128_v5  ;;  %3279 = vmatpush1.msra.mxu1 %v14980_v21  ;;  %v15277_v21 = vld [vmem:[#allocation7 + $0xa8] sm:$0xff] }
 0x549   : > { %3078 = vmatprep.subr.mxu0 %v18099_v40  ;;  %3280 = vmatprep.subr.mxu1 %v18099_v40  ;;  %v15167_v15 = vpop.f32.mrf.mxu0 }
 0x54a   : > { %3079 = vmatpush1.msra.mxu0 %v15137_v48  ;;  %3281 = vmatpush1.msra.mxu1 %v14982_v25  ;;  %v15287_v25 = vld [vmem:[#allocation7 + $0xa0] sm:$0xff] }
 0x54b   : > { %3080 = vmatprep.subr.mxu0 %v18099_v40  ;;  %3282 = vmatprep.subr.mxu1 %v18099_v40  ;;  %v15177_v17 = vpop.f32.mrf.mxu0 }
 0x54c   : > { %3081 = vmatpush1.msra.mxu0 %v15113_v47  ;;  %3283 = vmatpush1.msra.mxu1 %v14976_v8  ;;  %v15264_v8 = vld [vmem:[#allocation7 + $0x98] sm:$0xff] }
 0x54d   : > { %3082 = vmatprep.subr.mxu0 %v18099_v40  ;;  %3284 = vmatprep.subr.mxu1 %v18099_v40  ;;  %v15187_v39 = vpop.f32.mrf.mxu0 }
 0x54e   : > { %3083 = vmatpush1.msra.mxu0 %v15122_v41  ;;  %3285 = vmatpush1.msra.mxu1 %v14978_v20  ;;  %v15273_v20 = vld [vmem:[#allocation7 + $0x90] sm:$0xff] }
 0x54f   : > { %3084 = vmatprep.subr.mxu0 %v18099_v40  ;;  %3286 = vmatprep.subr.mxu1 %v18099_v40  ;;  %v15197_v49 = vpop.f32.mrf.mxu0 }
 0x550   : > { %3085 = vmatpush1.msra.mxu0 %v15098_v50  ;;  %3287 = vmatpush1.msra.mxu1 %v14972_v13  ;;  %v15253_v13 = vld [vmem:[#allocation7 + $0x88] sm:$0xff] }
 0x551   : > { %3086 = vmatprep.subr.mxu0 %v18099_v40  ;;  %3288 = vmatprep.subr.mxu1 %v18099_v40  ;;  %v15207_v16 = vpop.f32.mrf.mxu0 }
 0x552   : > { %3087 = vmatpush1.msra.mxu0 %v15107_v52  ;;  %3289 = vmatpush1.msra.mxu1 %v14974_v54  ;;  %v15261_v54 = vld [vmem:[#allocation7 + $0x80] sm:$0xff] }
 0x553   : > { %3088 = vmatprep.subr.mxu0 %v18099_v40  ;;  %3306 = vmatprep.subr.mxu1 %v18099_v40  ;;  %v15219_v22 = vpop.f32.mrf.mxu0 }
 0x554   : > { %3089 = vmatpush1.msra.mxu0 %v15083_v62  ;;  %3307 = vmatpush2.msra.mxu1 %v15047_v37  ;;  %v3213_v37 = vld [vmem:[#allocation7 + $0x138] sm:$0xff] }
 0x555   : > { %3090 = vmatprep.subr.mxu0 %v18099_v40  ;;  %3308 = vmatprep.subr.mxu1 %v18099_v40  ;;  %v15234_v4 = vpop.f32.mrf.mxu0 }
 0x556   : > { %3091 = vmatpush1.msra.mxu0 %v15092_v1  ;;  %3309 = vmatpush2.msra.mxu1 %v15051_v3  ;;  %v3212_v3 = vld [vmem:[#allocation7 + $0x130] sm:$0xff] }
 0x557   : > { %3092 = vmatprep.subr.mxu0 %v18099_v40  ;;  %3310 = vmatprep.subr.mxu1 %v18099_v40 }
 0x558   : > { %3093 = vmatpush1.msra.mxu0 %v15071_v63  ;;  %3311 = vmatpush2.msra.mxu1 %v15037_v59  ;;  %v3211_v59 = vld [vmem:[#allocation7 + $0x128] sm:$0xff] }
 0x559   : > { %3094 = vmatprep.subr.mxu0 %v18099_v40  ;;  %3312 = vmatprep.subr.mxu1 %v18099_v40 }
 0x55a   : > { %3095 = vmatpush1.msra.mxu0 %v15077_v33  ;;  %3313 = vmatpush2.msra.mxu1 %v15043_v6  ;;  %v3210_v6 = vld [vmem:[#allocation7 + $0x120] sm:$0xff] }
 0x55b   : > { %3096 = vmatprep.subr.mxu0 %v18099_v40  ;;  %3314 = vmatprep.subr.mxu1 %v18099_v40 }
 0x55c   : > { %3097 = vmatpush1.msra.mxu0 %v15063_v57  ;;  %3315 = vmatpush2.msra.mxu1 %v15027_v30  ;;  %v15375_v30 = vld [vmem:[#allocation7 + $0x118] sm:$0xff] }
 0x55d   : > { %3098 = vmatprep.subr.mxu0 %v18099_v40  ;;  %3316 = vmatprep.subr.mxu1 %v18099_v40 }
 0x55e   : > { %3099 = vmatpush1.msra.mxu0 %v15067_v42  ;;  %3317 = vmatpush2.msra.mxu1 %v15033_v24  ;;  %v3208_v24 = vld [vmem:[#allocation7 + $0x110] sm:$0xff] }
 0x55f   : > { %3100 = vmatprep.subr.mxu0 %v18099_v40  ;;  %3318 = vmatprep.subr.mxu1 %v18099_v40 }
 0x560   : > { %3101 = vmatpush1.msra.mxu0 %v15055_v61  ;;  %3319 = vmatpush2.msra.mxu1 %v15017_v43  ;;  %v15361_v43 = vld [vmem:[#allocation7 + $0x108] sm:$0xff] }
 0x561   : > { %3102 = vmatprep.subr.mxu0 %v18099_v40  ;;  %3320 = vmatprep.subr.mxu1 %v18099_v40 }
 0x562   : > { %3103 = vmatpush1.msra.mxu0 %v15059_v2  ;;  %3321 = vmatpush2.msra.mxu1 %v15023_v28  ;;  %v15371_v28 = vld [vmem:[#allocation7 + $0x100] sm:$0xff] }
 0x563   : > { %3120 = vmatprep.subr.mxu0 %v18099_v40  ;;  %10474 = vmatprep.mubr.msk.f32.mxu1 %vm649_vm0, %v15217_v34 }
 0x564   : > { %3121 = vmatpush2.msra.mxu0 %v15219_v22  ;;  %3037 = vmatmul.mubr.f32.gmra.mxu1 %v15223_v23 }
 0x565   : > { %3122 = vmatprep.subr.mxu0 %v18099_v40  ;;  %10475 = vmatprep.mubr.msk.f32.mxu1 %vm649_vm0, %v15227_v19 }
 0x566   : > { %3123 = vmatpush2.msra.mxu0 %v15234_v4 }
 0x567   : > { %3124 = vmatprep.subr.mxu0 %v18099_v40 }
 0x568   : > { %3125 = vmatpush2.msra.mxu0 %v15197_v49  ;;  %3042 = vmatmul.mubr.f32.gmra.mxu1 %v15239_v53 }
 0x569   : > { %3126 = vmatprep.subr.mxu0 %v18099_v40  ;;  %10476 = vmatprep.mubr.msk.f32.mxu1 %vm649_vm0, %v15242_v35 }
 0x56a   : > { %3127 = vmatpush2.msra.mxu0 %v15207_v16 }
 0x56b   : > { %3128 = vmatprep.subr.mxu0 %v18099_v40 }
 0x56c   : > { %3129 = vmatpush2.msra.mxu0 %v15177_v17  ;;  %3047 = vmatmul.mubr.f32.gmra.mxu1 %v15250_v56 }
 0x56d   : > { %3130 = vmatprep.subr.mxu0 %v18099_v40  ;;  %10477 = vmatprep.mubr.msk.f32.mxu1 %vm649_vm0, %v15253_v13 }
 0x56e   : > { %3131 = vmatpush2.msra.mxu0 %v15187_v39 }
 0x56f   : > { %3132 = vmatprep.subr.mxu0 %v18099_v40 }
 0x570   : > { %3133 = vmatpush2.msra.mxu0 %v15157_v55  ;;  %3052 = vmatmul.mubr.f32.gmra.mxu1 %v15261_v54 }
 0x571   : > { %3134 = vmatprep.subr.mxu0 %v18099_v40  ;;  %10478 = vmatprep.mubr.msk.f32.mxu1 %vm649_vm0, %v15264_v8 }
 0x572   : > { %3135 = vmatpush2.msra.mxu0 %v15167_v15 }
 0x573   : > { %3137 = vmatmul.mubr.f32.vlgmr.msra.gmra.mxu0 %v15075_v9  ;;  %3383 = vmatprep.subr.mxu0 %v18099_v40  ;;  %v3218_v9 = vld [vmem:[#allocation7 + $0x160] sm:$0xff] }
 0x574   : > { %3384 = vmatpush1.msra.mxu0 %v15141_v36  ;;  %10482 = vmatprep.mubr.msk.f32.mxu0 %vm649_vm0, %v15080_v46  ;;  %v3220_v46 = vld [vmem:[#allocation7 + $0x170] sm:$0xff] }
 0x575   : > { %3385 = vmatprep.subr.mxu0 %v18099_v40  ;;  %3057 = vmatmul.mubr.f32.gmra.mxu1 %v15273_v20 }
 0x576   : > { %3386 = vmatpush1.msra.mxu0 %v15147_v18  ;;  %10479 = vmatprep.mubr.msk.f32.mxu1 %vm649_vm0, %v15277_v21 }
 0x577   : > { %3142 = vmatmul.mubr.f32.gmra.mxu0 %v15090_v44  ;;  %3387 = vmatprep.subr.mxu0 %v18099_v40  ;;  %v3546_v44 = vld [vmem:[#allocation10 + $0x10] sm:$0xff] }
 0x578   : > { %3388 = vmatpush1.msra.mxu0 %v15128_v5  ;;  %10483 = vmatprep.mubr.msk.f32.mxu0 %vm649_vm0, %v15095_v26  ;;  %v3544_v26 = vld [vmem:[#allocation10] sm:$0xff] }
 0x579   : > { %3389 = vmatprep.subr.mxu0 %v18099_v40  ;;  %3062 = vmatmul.mubr.f32.gmra.mxu1 %v15287_v25 }
 0x57a   : > { %3390 = vmatpush1.msra.mxu0 %v15137_v48  ;;  %10480 = vmatprep.mubr.msk.f32.mxu1 %vm649_vm0, %v15291_v29  ;;  %v15451_v48 = vld [vmem:[#allocation10 + $0x38] sm:$0xff] }
 0x57b   : > { %3147 = vmatmul.mubr.f32.gmra.mxu0 %v15105_v31  ;;  %3391 = vmatprep.subr.mxu0 %v18099_v40 }
 0x57c   : > { %3392 = vmatpush1.msra.mxu0 %v15113_v47  ;;  %10484 = vmatprep.mubr.msk.f32.mxu0 %vm649_vm0, %v15110_v0 }
 0x57d   : > { %3393 = vmatprep.subr.mxu0 %v18099_v40  ;;  %3067 = vmatmul.mubr.f32.gmra.mxu1 %v15301_v38 }
 0x57e   : > { %3394 = vmatpush1.msra.mxu0 %v15122_v41  ;;  %10493 = vmatprep.mubr.msk.f32.mxu1 %vm649_vm0, %v15305_v60 }
 0x57f   : > { %3152 = vmatmul.mubr.f32.gmra.mxu0 %v15120_v27  ;;  %3395 = vmatprep.subr.mxu0 %v18099_v40 }
 0x580   : > { %3396 = vmatpush1.msra.mxu0 %v15098_v50  ;;  %10485 = vmatprep.mubr.msk.f32.mxu0 %vm649_vm0, %v15125_v10 }
 0x581   : > { %3397 = vmatprep.subr.mxu0 %v18099_v40  ;;  %3323 = vmatmul.mubr.f32.vlgmr.msra.gmra.mxu1 %v15315_v32 }
 0x582   : > { %3398 = vmatpush1.msra.mxu0 %v15107_v52  ;;  %10494 = vmatprep.mubr.msk.f32.mxu1 %vm649_vm0, %v15319_v11 }
 0x583   : > { %3157 = vmatmul.mubr.f32.gmra.mxu0 %v15135_v14  ;;  %3399 = vmatprep.subr.mxu0 %v18099_v40 }
 0x584   : > { %3400 = vmatpush1.msra.mxu0 %v15083_v62  ;;  %10486 = vmatprep.mubr.msk.f32.mxu0 %vm649_vm0, %v15217_v34  ;;  %v3547_v62 = vld [vmem:[#allocation10 + $0x18] sm:$0xff] }
 0x585   : > { %3401 = vmatprep.subr.mxu0 %v18099_v40  ;;  %3328 = vmatmul.mubr.f32.gmra.mxu1 %v15329_v12 }
 0x586   : > { %3402 = vmatpush1.msra.mxu0 %v15092_v1  ;;  %10495 = vmatprep.mubr.msk.f32.mxu1 %vm649_vm0, %v15333_v7  ;;  %v3545_v1 = vld [vmem:[#allocation10 + $0x8] sm:$0xff] }
 0x587   : > { %3162 = vmatmul.mubr.f32.gmra.mxu0 %v15223_v23  ;;  %3403 = vmatprep.subr.mxu0 %v18099_v40 }
 0x588   : > { %3404 = vmatpush1.msra.mxu0 %v15071_v63  ;;  %10487 = vmatprep.mubr.msk.f32.mxu0 %vm649_vm0, %v15227_v19  ;;  %v3219_v63 = vld [vmem:[#allocation7 + $0x168] sm:$0xff] }
 0x589   : > { %3405 = vmatprep.subr.mxu0 %v18099_v40  ;;  %3333 = vmatmul.mubr.f32.gmra.mxu1 %v15343_v58 }
 0x58a   : > { %3406 = vmatpush1.msra.mxu0 %v15077_v33  ;;  %10496 = vmatprep.mubr.msk.f32.mxu1 %vm649_vm0, %v15347_v51  ;;  %v3221_v33 = vld [vmem:[#allocation7 + $0x178] sm:$0xff] }
 0x58b   : > { %3167 = vmatmul.mubr.f32.gmra.mxu0 %v15239_v53  ;;  %3407 = vmatprep.subr.mxu0 %v18099_v40 }
 0x58c   : > { %3408 = vmatpush1.msra.mxu0 %v15063_v57  ;;  %10488 = vmatprep.mubr.msk.f32.mxu0 %vm649_vm0, %v15242_v35  ;;  %v3217_v57 = vld [vmem:[#allocation7 + $0x158] sm:$0xff] }
 0x58d   : > { %3409 = vmatprep.subr.mxu0 %v18099_v40  ;;  %3338 = vmatmul.mubr.f32.gmra.mxu1 %v15357_v45 }
 0x58e   : > { %3410 = vmatpush1.msra.mxu0 %v15067_v42  ;;  %10497 = vmatprep.mubr.msk.f32.mxu1 %vm649_vm0, %v15361_v43  ;;  %v3216_v42 = vld [vmem:[#allocation7 + $0x150] sm:$0xff] }
 0x58f   : > { %3172 = vmatmul.mubr.f32.gmra.mxu0 %v15250_v56  ;;  %3411 = vmatprep.subr.mxu0 %v18099_v40 }
 0x590   : > { %3412 = vmatpush1.msra.mxu0 %v15055_v61  ;;  %10489 = vmatprep.mubr.msk.f32.mxu0 %vm649_vm0, %v15253_v13  ;;  %v3215_v61 = vld [vmem:[#allocation7 + $0x148] sm:$0xff] }
 0x591   : > { %3413 = vmatprep.subr.mxu0 %v18099_v40  ;;  %3343 = vmatmul.mubr.f32.gmra.mxu1 %v15371_v28 }
 0x592   : > { %3414 = vmatpush1.msra.mxu0 %v15059_v2  ;;  %10498 = vmatprep.mubr.msk.f32.mxu1 %vm649_vm0, %v15375_v30  ;;  %v3214_v2 = vld [vmem:[#allocation7 + $0x140] sm:$0xff] }
 0x593   : > { %3177 = vmatmul.mubr.f32.gmra.mxu0 %v15261_v54  ;;  %3431 = vmatprep.subr.mxu0 %v18099_v40 }
 0x594   : > { %3432 = vmatpush2.msra.mxu0 %v15219_v22  ;;  %10490 = vmatprep.mubr.msk.f32.mxu0 %vm649_vm0, %v15264_v8 }
 0x595   : > { %3433 = vmatprep.subr.mxu0 %v18099_v40  ;;  %3348 = vmatmul.mubr.f32.gmra.mxu1 %v3208_v24 }
 0x596   : > { %3434 = vmatpush2.msra.mxu0 %v15234_v4  ;;  %10499 = vmatprep.mubr.msk.f32.mxu1 %vm649_vm0, %v3211_v59 }
 0x597   : > { %3182 = vmatmul.mubr.f32.gmra.mxu0 %v15273_v20  ;;  %3435 = vmatprep.subr.mxu0 %v18099_v40 }
 0x598   : > { %3436 = vmatpush2.msra.mxu0 %v15197_v49  ;;  %10491 = vmatprep.mubr.msk.f32.mxu0 %vm649_vm0, %v15277_v21 }
 0x599   : > { %3437 = vmatprep.subr.mxu0 %v18099_v40  ;;  %3353 = vmatmul.mubr.f32.gmra.mxu1 %v3210_v6 }
 0x59a   : > { %3438 = vmatpush2.msra.mxu0 %v15207_v16  ;;  %10500 = vmatprep.mubr.msk.f32.mxu1 %vm649_vm0, %v3213_v37 }
 0x59b   : > { %3187 = vmatmul.mubr.f32.gmra.mxu0 %v15287_v25  ;;  %3439 = vmatprep.subr.mxu0 %v18099_v40 }
 0x59c   : > { %3440 = vmatpush2.msra.mxu0 %v15177_v17  ;;  %10492 = vmatprep.mubr.msk.f32.mxu0 %vm649_vm0, %v15291_v29 }
 0x59d   : > { %3441 = vmatprep.subr.mxu0 %v18099_v40  ;;  %3358 = vmatmul.mubr.f32.gmra.mxu1 %v3212_v3 }
 0x59e   : > { %3442 = vmatpush2.msra.mxu0 %v15187_v39  ;;  %10501 = vmatprep.mubr.msk.f32.mxu1 %vm649_vm0, %v3215_v61 }
 0x59f   : > { %3192 = vmatmul.mubr.f32.gmra.mxu0 %v15301_v38  ;;  %3443 = vmatprep.subr.mxu0 %v18099_v40 }
 0x5a0   : > { %3444 = vmatpush2.msra.mxu0 %v15157_v55  ;;  %10505 = vmatprep.mubr.msk.f32.mxu0 %vm649_vm0, %v15305_v60 }
 0x5a1   : > { %3445 = vmatprep.subr.mxu0 %v18099_v40  ;;  %3363 = vmatmul.mubr.f32.gmra.mxu1 %v3214_v2 }
 0x5a2   : > { %3446 = vmatpush2.msra.mxu0 %v15167_v15  ;;  %10502 = vmatprep.mubr.msk.f32.mxu1 %vm649_vm0, %v3217_v57 }
 0x5a3   : > { %3448 = vmatmul.mubr.f32.vlgmr.msra.gmra.mxu0 %v15315_v32  ;;  %12004 = vmatprep.subr.mxu0 %v18099_v40 }
 0x5a4   : > { %10506 = vmatprep.mubr.msk.f32.mxu0 %vm649_vm0, %v15319_v11  ;;  %11952 = vmatprep.subr.mxu1 %v3547_v62 }
 0x5a5   : > { %3368 = vmatmul.mubr.f32.gmra.mxu1 %v3216_v42 }
 0x5a6   : > { %10503 = vmatprep.mubr.msk.f32.mxu1 %vm649_vm0, %v3219_v63  ;;  %11953 = vmatpush3.msra.mxu1 %v3547_v62 }
 0x5a7   : > { %3453 = vmatmul.mubr.f32.gmra.mxu0 %v15329_v12  ;;  %11954 = vmatprep.subr.mxu1 %v3546_v44 }
 0x5a8   : > { %10507 = vmatprep.mubr.msk.f32.mxu0 %vm649_vm0, %v15333_v7  ;;  %11955 = vmatpush3.msra.mxu1 %v3546_v44 }
 0x5a9   : > { %3373 = vmatmul.mubr.f32.gmra.mxu1 %v3218_v9  ;;  %11956 = vmatprep.subr.mxu1 %v3545_v1 }
 0x5aa   : > { %10504 = vmatprep.mubr.msk.f32.mxu1 %vm649_vm0, %v3221_v33  ;;  %11957 = vmatpush3.msra.mxu1 %v3545_v1 }
 0x5ab   : > { %3458 = vmatmul.mubr.f32.gmra.mxu0 %v15343_v58  ;;  %11958 = vmatprep.subr.mxu1 %v3544_v26 }
 0x5ac   : > { %10508 = vmatprep.mubr.msk.f32.mxu0 %vm649_vm0, %v15347_v51  ;;  %11959 = vmatpush3.msra.mxu1 %v3544_v26 }
 0x5ad   : > { %3378 = vmatmul.mubr.f32.gmra.mxu1 %v3220_v46  ;;  %11978 = vmatprep.subr.mxu1 %v15451_v48 }
 0x5af   : > { %3463 = vmatmul.mubr.f32.gmra.mxu0 %v15357_v45 }
 0x5b0   : > { %10509 = vmatprep.mubr.msk.f32.mxu0 %vm649_vm0, %v15361_v43 }
 0x5b3   : > { %3468 = vmatmul.mubr.f32.gmra.mxu0 %v15371_v28 }
 0x5b4   : > { %10510 = vmatprep.mubr.msk.f32.mxu0 %vm649_vm0, %v15375_v30 }
 0x5b7   : > { %3473 = vmatmul.mubr.f32.gmra.mxu0 %v3208_v24 }
 0x5b8   : > { %10511 = vmatprep.mubr.msk.f32.mxu0 %vm649_vm0, %v3211_v59 }
 0x5bb   : > { %3478 = vmatmul.mubr.f32.gmra.mxu0 %v3210_v6 }
 0x5bc   : > { %10512 = vmatprep.mubr.msk.f32.mxu0 %vm649_vm0, %v3213_v37 }
 0x5bf   : > { %3483 = vmatmul.mubr.f32.gmra.mxu0 %v3212_v3 }
 0x5c0   : > { %10513 = vmatprep.mubr.msk.f32.mxu0 %vm649_vm0, %v3215_v61 }
 0x5c3   : > { %3488 = vmatmul.mubr.f32.gmra.mxu0 %v3214_v2 }
 0x5c4   : > { %10514 = vmatprep.mubr.msk.f32.mxu0 %vm649_vm0, %v3217_v57 }
 0x5c7   : > { %3493 = vmatmul.mubr.f32.gmra.mxu0 %v3216_v42 }
 0x5c8   : > { %10515 = vmatprep.mubr.msk.f32.mxu0 %vm649_vm0, %v3219_v63 }
 0x5cb   : > { %3498 = vmatmul.mubr.f32.gmra.mxu0 %v3218_v9 }
 0x5cc   : > { %10516 = vmatprep.mubr.msk.f32.mxu0 %vm649_vm0, %v3221_v33 }
 0x5cf   : > { %3503 = vmatmul.mubr.f32.gmra.mxu0 %v3220_v46 }
 0x5d0   : > { %12028 = vmatprep.mubr.msk.f32.mxu0 %vm13581_vm2, %v18099_v40 }
 0x5f3   : > { %v15441_v50 = vpop.f32.mrf.mxu1 }
 0x5f5   : > { %v3015_v31 = vpop.f32.mrf.mxu1 }
 0x5f7   : > { %v15443_v52 = vpop.f32.mrf.mxu1 }
 0x5f9   : > { %v3020_v0 = vpop.f32.mrf.mxu1 }
 0x5fb   : > { %v15445_v47 = vpop.f32.mrf.mxu1 }
 0x5fd   : > { %v3025_v27 = vpop.f32.mrf.mxu1 }
 0x5ff   : > { %v15447_v41 = vpop.f32.mrf.mxu1 }
 0x601   : > { %v3030_v10 = vpop.f32.mrf.mxu1 }
 0x603   : > { %v15449_v5 = vpop.f32.mrf.mxu1 }
 0x605   : > { %v3035_v14 = vpop.f32.mrf.mxu1 }
 0x624   : > { %v15454_v36 = vpop.f32.mrf.mxu1 }
 0x626   : > { %v3040_v18 = vpop.f32.mrf.mxu1 }
 0x628   : > { %v15456_v55 = vpop.f32.mrf.mxu1 }
 0x62a   : > { %v3045_v15 = vpop.f32.mrf.mxu1 }
 0x62c   : > { %v15458_v17 = vpop.f32.mrf.mxu1 }
 0x62e   : > { %v3050_v39 = vpop.f32.mrf.mxu1 }
 0x630   : > { %v15460_v49 = vpop.f32.mrf.mxu1 }
 0x632   : > { %v3055_v16 = vpop.f32.mrf.mxu1 }
 0x633   : > { %v3138_v34 = vpop.f32.mrf.mxu0 }
 0x634   : > { %v3508_v18 = vmax.f32 %v15441_v50, %v3138_v34 }
 0x635   : > { %v3140_v22 = vpop.f32.mrf.mxu0  ;;  %v15462_v23 = vpop.f32.mrf.mxu1 }
 0x637   : > { %v3143_v19 = vpop.f32.mrf.mxu0  ;;  %v3060_v4 = vpop.f32.mrf.mxu1 }
 0x639   : > { %v3145_v53 = vpop.f32.mrf.mxu0  ;;  %v15464_v35 = vpop.f32.mrf.mxu1 }
 0x63b   : > { %v15466_v56 = vpop.f32.mrf.mxu0  ;;  %v3065_v13 = vpop.f32.mrf.mxu1 }
 0x63c   : > { %v3509_v13 = vmax.f32 %v15443_v52, %v3143_v19 }
 0x63d   : > { %v3150_v54 = vpop.f32.mrf.mxu0  ;;  %v15468_v8 = vpop.f32.mrf.mxu1 }
 0x63f   : > { %v15470_v20 = vpop.f32.mrf.mxu0  ;;  %v3070_v21 = vpop.f32.mrf.mxu1 }
 0x641   : > { %v3155_v25 = vpop.f32.mrf.mxu0  ;;  %v3324_v29 = vpop.f32.mrf.mxu1 }
 0x643   : > { %v15472_v38 = vpop.f32.mrf.mxu0  ;;  %v3326_v60 = vpop.f32.mrf.mxu1 }
 0x645   : > { %v3160_v32 = vpop.f32.mrf.mxu0  ;;  %v3329_v11 = vpop.f32.mrf.mxu1 }
 0x646   : > { %v3510_v32 = vmax.f32 %v15445_v47, %v15466_v56  ;;  %v3511_v47 = vmax.f32 %v15447_v41, %v15470_v20 }
 0x647   : > { %v15474_v12 = vpop.f32.mrf.mxu0  ;;  %v3331_v7 = vpop.f32.mrf.mxu1 }
 0x649   : > { %v3165_v58 = vpop.f32.mrf.mxu0  ;;  %v3334_v51 = vpop.f32.mrf.mxu1 }
 0x64b   : > { %v15476_v45 = vpop.f32.mrf.mxu0  ;;  %v3336_v43 = vpop.f32.mrf.mxu1 }
 0x64d   : > { %v3170_v28 = vpop.f32.mrf.mxu0  ;;  %v3339_v30 = vpop.f32.mrf.mxu1 }
 0x64f   : > { %v15478_v24 = vpop.f32.mrf.mxu0  ;;  %v3341_v59 = vpop.f32.mrf.mxu1 }
 0x650   : > { %v3734_v59 = vld [vmem:[#allocation10 + $0x20] sm:$0xff] }
 0x651   : > { %v3175_v6 = vpop.f32.mrf.mxu0  ;;  %v15480_v37 = vpop.f32.mrf.mxu1 }
 0x653   : > { %v15482_v3 = vpop.f32.mrf.mxu0  ;;  %v3346_v61 = vpop.f32.mrf.mxu1 }
 0x654   : > { %v3512_v61 = vmax.f32 %v15449_v5, %v15472_v38 }
 0x655   : > { %v3180_v2 = vpop.f32.mrf.mxu0  ;;  %v15484_v57 = vpop.f32.mrf.mxu1 }
 0x657   : > { %v15486_v42 = vpop.f32.mrf.mxu0  ;;  %v3351_v63 = vpop.f32.mrf.mxu1 }
 0x658   : > { %v3513_v63 = vmax.f32 %v15454_v36, %v15474_v12  ;;  %v3515_v12 = vmax.f32 %v15458_v17, %v15478_v24  ;;  %v3517_v24 = vmax.f32 %v15462_v23, %v15486_v42 }
 0x659   : > { %v3185_v9 = vpop.f32.mrf.mxu0  ;;  %v15488_v33 = vpop.f32.mrf.mxu1 }
 0x65b   : > { %v15490_v46 = vpop.f32.mrf.mxu0  ;;  %v3356_v62 = vpop.f32.mrf.mxu1 }
 0x65c   : > { %v3514_v62 = vmax.f32 %v15456_v55, %v15476_v45  ;;  %v3516_v45 = vmax.f32 %v15460_v49, %v15482_v3  ;;  %v3518_v3 = vmax.f32 %v15464_v35, %v15490_v46 }
 0x65d   : > { %v3190_v44 = vpop.f32.mrf.mxu0  ;;  %v15492_v1 = vpop.f32.mrf.mxu1 }
 0x65f   : > { %v15494_v26 = vpop.f32.mrf.mxu0  ;;  %v3361_v31 = vpop.f32.mrf.mxu1 }
 0x660   : > { %v3519_v42 = vmax.f32 %v15468_v8, %v15494_v26 }
 0x661   : > { %v3195_v0 = vpop.f32.mrf.mxu0  ;;  %v15496_v27 = vpop.f32.mrf.mxu1 }
 0x663   : > { %v3449_v10 = vpop.f32.mrf.mxu0  ;;  %v3366_v14 = vpop.f32.mrf.mxu1 }
 0x664   : > { %v3520_v15 = vmax.f32 %v3324_v29, %v3449_v10  ;;  %v3736_v29 = vld [vmem:[#allocation10 + $0x30] sm:$0xff] }
 0x665   : > { %v3451_v39 = vpop.f32.mrf.mxu0  ;;  %v15499_v16 = vpop.f32.mrf.mxu1 }
 0x666   : > { %v15501_v22 = vmax.f32 %v3508_v18, %v3520_v15 }
 0x667   : > { %v3454_v4 = vpop.f32.mrf.mxu0  ;;  %v3371_v53 = vpop.f32.mrf.mxu1 }
 0x668   : > { %v3521_v54 = vmax.f32 %v3329_v11, %v3454_v4  ;;  %11960 = vmatprep.mubr.msk.f32.mxu1 %vm3548_vm1, %v15501_v22  ;;  %v3735_v11 = vld [vmem:[#allocation10 + $0x28] sm:$0xff] }
 0x669   : > { %v3456_v21 = vpop.f32.mrf.mxu0  ;;  %v15506_v25 = vpop.f32.mrf.mxu1 }
 0x66a   : > { %v15508_v60 = vmax.f32 %v3509_v13, %v3521_v54 }
 0x66b   : > { %v3459_v50 = vpop.f32.mrf.mxu0  ;;  %v3376_v34 = vpop.f32.mrf.mxu1 }
 0x66c   : > { %v3522_v7 = vmax.f32 %v3334_v51, %v3459_v50  ;;  %11961 = vmatmul.mubr.msk.f32.vlgmr.msra.gmra.mxu1 %vm3548_vm1, %v15508_v60 }
 0x66d   : > { %v3461_v52 = vpop.f32.mrf.mxu0  ;;  %v15514_v19 = vpop.f32.mrf.mxu1  ;;  %11979 = vmatpush3.msra.mxu1 %v15451_v48 }
 0x66e   : > { %v15517_v58 = vmax.f32 %v3510_v32, %v3522_v7  ;;  %11980 = vmatprep.subr.mxu1 %v3736_v29 }
 0x66f   : > { %v3464_v43 = vpop.f32.mrf.mxu0  ;;  %v3381_v28 = vpop.f32.mrf.mxu1  ;;  %11981 = vmatpush3.msra.mxu1 %v3736_v29 }
 0x670   : > { %v3523_v56 = vmax.f32 %v3339_v30, %v3464_v43  ;;  %11963 = vmatprep.mubr.msk.f32.mxu1 %vm3548_vm1, %v15517_v58  ;;  %11982 = vmatprep.subr.mxu1 %v3735_v11 }
 0x671   : > { %v3466_v51 = vpop.f32.mrf.mxu0  ;;  %11983 = vmatpush3.msra.mxu1 %v3735_v11 }
 0x672   : > { %v15523_v6 = vmax.f32 %v3511_v47, %v3523_v56  ;;  %11984 = vmatprep.subr.mxu1 %v3734_v59 }
 0x673   : > { %v3469_v48 = vpop.f32.mrf.mxu0  ;;  %11985 = vmatpush3.msra.mxu1 %v3734_v59 }
 0x674   : > { %v3524_v2 = vmax.f32 %v15480_v37, %v3469_v48  ;;  %11964 = vmatmul.mubr.msk.f32.gmra.mxu1 %vm3548_vm1, %v15523_v6  ;;  %12097 = vmatprep.subr.mxu1 %v18099_v40 }
 0x675   : > { %v3471_v41 = vpop.f32.mrf.mxu0 }
 0x676   : > { %v15531_v20 = vmax.f32 %v3512_v61, %v3524_v2  ;;  %v3710_v2 = vld [vmem:[#allocation9] sm:$0xff] }
 0x677   : > { %v3474_v30 = vpop.f32.mrf.mxu0 }
 0x678   : > { %v3525_v9 = vmax.f32 %v15484_v57, %v3474_v30  ;;  %11966 = vmatprep.mubr.msk.f32.mxu1 %vm3548_vm1, %v15531_v20 }
 0x679   : > { %v3476_v5 = vpop.f32.mrf.mxu0 }
 0x67a   : > { %v15538_v38 = vmax.f32 %v3513_v63, %v3525_v9  ;;  %v3711_v63 = vld [vmem:[#allocation9 + $0x8] sm:$0xff]  ;;  %v3712_v5 = vld [vmem:[#allocation9 + $0x10] sm:$0xff] }
 0x67b   : > { %v3479_v37 = vpop.f32.mrf.mxu0 }
 0x67c   : > { %v3526_v44 = vmax.f32 %v15488_v33, %v3479_v37  ;;  %11967 = vmatmul.mubr.msk.f32.gmra.mxu1 %vm3548_vm1, %v15538_v38  ;;  %v3713_v37 = vld [vmem:[#allocation9 + $0x18] sm:$0xff] }
 0x67d   : > { %v3481_v31 = vpop.f32.mrf.mxu0 }
 0x67e   : > { %v15545_v0 = vmax.f32 %v3514_v62, %v3526_v44  ;;  %v3714_v62 = vld [vmem:[#allocation9 + $0x20] sm:$0xff]  ;;  %v3715_v44 = vld [vmem:[#allocation9 + $0x28] sm:$0xff]  ;;  %v3864_v31 = vld [vmem:[#allocation9 + $0xb8] sm:$0xff] }
 0x67f   : > { %v3484_v36 = vpop.f32.mrf.mxu0 }
 0x680   : > { %v3527_v57 = vmax.f32 %v15492_v1, %v3484_v36  ;;  %11969 = vmatprep.mubr.msk.f32.mxu1 %vm3548_vm1, %v15545_v0  ;;  %v3716_v36 = vld [vmem:[#allocation9 + $0x30] sm:$0xff] }
 0x681   : > { %v3486_v10 = vpop.f32.mrf.mxu0 }
 0x682   : > { %v15552_v14 = vmax.f32 %v3515_v12, %v3527_v57  ;;  %v4390_v12 = vld [vmem:[#allocation10 + $0x58] sm:$0xff]  ;;  %v3865_v57 = vld [vmem:[#allocation9 + $0xc0] sm:$0xff]  ;;  %v3717_v10 = vld [vmem:[#allocation9 + $0x38] sm:$0xff] }
 0x683   : > { %v3489_v55 = vpop.f32.mrf.mxu0 }
 0x684   : > { %v3528_v33 = vmax.f32 %v15496_v27, %v3489_v55  ;;  %11970 = vmatmul.mubr.msk.f32.gmra.mxu1 %vm3548_vm1, %v15552_v14  ;;  %v4389_v55 = vld [vmem:[#allocation10 + $0x50] sm:$0xff] }
 0x685   : > { %v3491_v18 = vpop.f32.mrf.mxu0 }
 0x686   : > { %v15559_v15 = vmax.f32 %v3516_v45, %v3528_v33  ;;  %v3866_v45 = vld [vmem:[#allocation9 + $0xc8] sm:$0xff]  ;;  %v3718_v33 = vld [vmem:[#allocation9 + $0x40] sm:$0xff] }
 0x687   : > { %v3494_v17 = vpop.f32.mrf.mxu0  ;;  %v4388_v18 = vld [vmem:[#allocation10 + $0x48] sm:$0xff] }
 0x688   : > { %v3529_v1 = vmax.f32 %v15499_v16, %v3494_v17  ;;  %11972 = vmatprep.mubr.msk.f32.mxu1 %vm3548_vm1, %v15559_v15  ;;  %v3867_v17 = vld [vmem:[#allocation9 + $0xd0] sm:$0xff] }
 0x689   : > { %v3496_v39 = vpop.f32.mrf.mxu0 }
 0x68a   : > { %v15566_v4 = vmax.f32 %v3517_v24, %v3529_v1  ;;  %v3719_v24 = vld [vmem:[#allocation9 + $0x48] sm:$0xff]  ;;  %v4387_v1 = vld [vmem:[#allocation10 + $0x40] sm:$0xff] }
 0x68b   : > { %v3499_v49 = vpop.f32.mrf.mxu0  ;;  %v3868_v39 = vld [vmem:[#allocation9 + $0xd8] sm:$0xff] }
 0x68c   : > { %v3530_v27 = vmax.f32 %v15506_v25, %v3499_v49  ;;  %11973 = vmatmul.mubr.msk.f32.gmra.mxu1 %vm3548_vm1, %v15566_v4  ;;  %v3720_v49 = vld [vmem:[#allocation9 + $0x50] sm:$0xff] }
 0x68d   : > { %v3501_v53 = vpop.f32.mrf.mxu0 }
 0x68e   : > { %v15573_v13 = vmax.f32 %v3518_v3, %v3530_v27  ;;  %v15683_v3 = vld [vmem:[#allocation10 + $0x78] sm:$0xff]  ;;  %v3869_v27 = vld [vmem:[#allocation9 + $0xe0] sm:$0xff]  ;;  %v3721_v53 = vld [vmem:[#allocation9 + $0x58] sm:$0xff] }
 0x68f   : > { %v3504_v23 = vpop.f32.mrf.mxu0 }
 0x690   : > { %v3531_v16 = vmax.f32 %v15514_v19, %v3504_v23  ;;  %11975 = vmatprep.mubr.msk.f32.mxu1 %vm3548_vm1, %v15573_v13  ;;  %v3870_v23 = vld [vmem:[#allocation9 + $0xe8] sm:$0xff] }
 0x691   : > { %v3506_v54 = vpop.f32.mrf.mxu0 }
 0x692   : > { %v15580_v21 = vmax.f32 %v3519_v42, %v3531_v16  ;;  %v3722_v42 = vld [vmem:[#allocation9 + $0x60] sm:$0xff]  ;;  %v3871_v16 = vld [vmem:[#allocation9 + $0xf0] sm:$0xff]  ;;  %v3723_v54 = vld [vmem:[#allocation9 + $0x68] sm:$0xff] }
 0x694   : > { %11976 = vmatmul.mubr.msk.f32.gmra.mxu1 %vm3548_vm1, %v15580_v21 }
 0x695   : > { %11986 = vmatprep.mubr.msk.f32.mxu1 %vm3548_vm1, %v15501_v22 }
 0x698   : > { %11987 = vmatmul.mubr.msk.f32.vlgmr.msra.gmra.mxu1 %vm3548_vm1, %v15508_v60 }
 0x699   : > { %11989 = vmatprep.mubr.msk.f32.mxu1 %vm3548_vm1, %v15517_v58 }
 0x69c   : > { %11990 = vmatmul.mubr.msk.f32.gmra.mxu1 %vm3548_vm1, %v15523_v6 }
 0x69d   : > { %11992 = vmatprep.mubr.msk.f32.mxu1 %vm3548_vm1, %v15531_v20 }
 0x6a0   : > { %11993 = vmatmul.mubr.msk.f32.gmra.mxu1 %vm3548_vm1, %v15538_v38 }
 0x6a1   : > { %11995 = vmatprep.mubr.msk.f32.mxu1 %vm3548_vm1, %v15545_v0 }
 0x6a4   : > { %11996 = vmatmul.mubr.msk.f32.gmra.mxu1 %vm3548_vm1, %v15552_v14 }
 0x6a5   : > { %11998 = vmatprep.mubr.msk.f32.mxu1 %vm3548_vm1, %v15559_v15 }
 0x6a8   : > { %11999 = vmatmul.mubr.msk.f32.gmra.mxu1 %vm3548_vm1, %v15566_v4 }
 0x6a9   : > { %12001 = vmatprep.mubr.msk.f32.mxu1 %vm3548_vm1, %v15573_v13 }
 0x6ac   : > { %12002 = vmatmul.mubr.msk.f32.gmra.mxu1 %vm3548_vm1, %v15580_v21 }
 0x6ad   : > { %12121 = vmatprep.mubr.msk.f32.mxu1 %vm13581_vm2, %v18099_v40 }
 0x72c   : > { %v11962_v35 = vpop.f32.mrf.mxu1 }
 0x72e   : > { %v3651_v8 = vpop.f32.mrf.mxu1 }
 0x734   : > { %v11965_v46 = vpop.f32.mrf.mxu1 }
 0x736   : > { %v3661_v26 = vpop.f32.mrf.mxu1 }
 0x73c   : > { %v11968_v25 = vpop.f32.mrf.mxu1 }
 0x73e   : > { %v3671_v50 = vpop.f32.mrf.mxu1 }
 0x744   : > { %v11971_v34 = vpop.f32.mrf.mxu1 }
 0x746   : > { %v3681_v29 = vpop.f32.mrf.mxu1 }
 0x74c   : > { %v11974_v32 = vpop.f32.mrf.mxu1 }
 0x74e   : > { %v3691_v7 = vpop.f32.mrf.mxu1 }
 0x754   : > { %v11977_v52 = vpop.f32.mrf.mxu1 }
 0x755   : > { %12098 = vmatpush3.msra.mxu1 %v11977_v52  ;;  %v3877_v52 = vld [vmem:[#allocation9 + $0x120] sm:$0xff] }
 0x756   : > { %v3701_v19 = vpop.f32.mrf.mxu1  ;;  %12099 = vmatprep.subr.mxu1 %v18099_v40 }
 0x757   : > { %12100 = vmatpush3.msra.mxu1 %v3701_v19  ;;  %v3729_v19 = vld [vmem:[#allocation9 + $0x98] sm:$0xff] }
 0x758   : > { %v15613_v11 = vpop.f32.mrf.mxu1  ;;  %12101 = vmatprep.subr.mxu1 %v18099_v40 }
 0x759   : > { %12102 = vmatpush3.msra.mxu1 %v11974_v32  ;;  %v3876_v32 = vld [vmem:[#allocation9 + $0x118] sm:$0xff] }
 0x75a   : > { %v15616_v43 = vpop.f32.mrf.mxu1  ;;  %12103 = vmatprep.subr.mxu1 %v18099_v40 }
 0x75b   : > { %12104 = vmatpush3.msra.mxu1 %v3691_v7  ;;  %v3728_v7 = vld [vmem:[#allocation9 + $0x90] sm:$0xff] }
 0x75c   : > { %v11991_v28 = vpop.f32.mrf.mxu1  ;;  %12105 = vmatprep.subr.mxu1 %v18099_v40 }
 0x75d   : > { %12106 = vmatpush3.msra.mxu1 %v11971_v34  ;;  %v3875_v34 = vld [vmem:[#allocation9 + $0x110] sm:$0xff] }
 0x75e   : > { %v3814_v59 = vpop.f32.mrf.mxu1  ;;  %12107 = vmatprep.subr.mxu1 %v18099_v40 }
 0x75f   : > { %12108 = vmatpush3.msra.mxu1 %v3681_v29  ;;  %v3727_v29 = vld [vmem:[#allocation9 + $0x88] sm:$0xff] }
 0x760   : > { %v11994_v47 = vpop.f32.mrf.mxu1  ;;  %12109 = vmatprep.subr.mxu1 %v18099_v40 }
 0x761   : > { %12110 = vmatpush3.msra.mxu1 %v11968_v25  ;;  %v3874_v25 = vld [vmem:[#allocation9 + $0x108] sm:$0xff] }
 0x762   : > { %v3824_v56 = vpop.f32.mrf.mxu1  ;;  %12111 = vmatprep.subr.mxu1 %v18099_v40 }
 0x763   : > { %12112 = vmatpush3.msra.mxu1 %v3671_v50  ;;  %v3726_v50 = vld [vmem:[#allocation9 + $0x80] sm:$0xff] }
 0x764   : > { %v11997_v51 = vpop.f32.mrf.mxu1  ;;  %12113 = vmatprep.subr.mxu1 %v18099_v40 }
 0x765   : > { %12114 = vmatpush3.msra.mxu1 %v11965_v46  ;;  %v3873_v46 = vld [vmem:[#allocation9 + $0x100] sm:$0xff] }
 0x766   : > { %v3834_v48 = vpop.f32.mrf.mxu1  ;;  %12115 = vmatprep.subr.mxu1 %v18099_v40 }
 0x767   : > { %12116 = vmatpush3.msra.mxu1 %v3661_v26  ;;  %v3725_v26 = vld [vmem:[#allocation9 + $0x78] sm:$0xff] }
 0x768   : > { %v12000_v61 = vpop.f32.mrf.mxu1  ;;  %12117 = vmatprep.subr.mxu1 %v18099_v40 }
 0x769   : > { %12118 = vmatpush3.msra.mxu1 %v11962_v35  ;;  %v3872_v35 = vld [vmem:[#allocation9 + $0xf8] sm:$0xff] }
 0x76a   : > { %v3844_v41 = vpop.f32.mrf.mxu1  ;;  %12119 = vmatprep.subr.mxu1 %v18099_v40 }
 0x76b   : > { %12120 = vmatpush3.msra.mxu1 %v3651_v8  ;;  %v3724_v8 = vld [vmem:[#allocation9 + $0x70] sm:$0xff] }
 0x76c   : > { %v12003_v30 = vpop.f32.mrf.mxu1  ;;  %12122 = vmatmul.mubr.msk.f32.vlgmr.msra.gmra.mxu1 %vm3887_vm3, %v3710_v2  ;;  %12216 = vmatprep.subr.mxu1 %v18099_v40  ;;  %v3884_v2 = vld [vmem:[#allocation9 + $0x158] sm:$0xff] }
 0x76d   : > { %12005 = vmatpush3.msra.mxu0 %v12003_v30  ;;  %12124 = vmatprep.mubr.msk.f32.mxu1 %vm13581_vm2, %v18099_v40  ;;  %v3886_v30 = vld [vmem:[#allocation9 + $0x168] sm:$0xf] }
 0x76e   : > { %v3854_v9 = vpop.f32.mrf.mxu1  ;;  %12006 = vmatprep.subr.mxu0 %v18099_v40 }
 0x76f   : > { %12007 = vmatpush3.msra.mxu0 %v3854_v9  ;;  %v4814_v9 = vld [vmem:[#allocation10 + $0x68] sm:$0xff] }
 0x770   : > { %12008 = vmatprep.subr.mxu0 %v18099_v40  ;;  %12125 = vmatmul.mubr.msk.f32.gmra.mxu1 %vm3887_vm3, %v3711_v63  ;;  %v4815_v63 = vld [vmem:[#allocation10 + $0x70] sm:$0xff] }
 0x771   : > { %12009 = vmatpush3.msra.mxu0 %v12000_v61  ;;  %12127 = vmatprep.mubr.msk.f32.mxu1 %vm13581_vm2, %v18099_v40  ;;  %v3883_v61 = vld [vmem:[#allocation9 + $0x150] sm:$0xff] }
 0x772   : > { %12010 = vmatprep.subr.mxu0 %v18099_v40 }
 0x773   : > { %12011 = vmatpush3.msra.mxu0 %v3844_v41  ;;  %v3885_v41 = vld [vmem:[#allocation9 + $0x160] sm:$0xff] }
 0x774   : > { %12012 = vmatprep.subr.mxu0 %v18099_v40  ;;  %12128 = vmatmul.mubr.msk.f32.gmra.mxu1 %vm3887_vm3, %v3712_v5  ;;  %v4813_v5 = vld [vmem:[#allocation10 + $0x60] sm:$0xff] }
 0x775   : > { %12013 = vmatpush3.msra.mxu0 %v11997_v51  ;;  %12130 = vmatprep.mubr.msk.f32.mxu1 %vm13581_vm2, %v18099_v40  ;;  %v3881_v51 = vld [vmem:[#allocation9 + $0x140] sm:$0xff] }
 0x776   : > { %12014 = vmatprep.subr.mxu0 %v18099_v40 }
 0x777   : > { %12015 = vmatpush3.msra.mxu0 %v3834_v48  ;;  %v3882_v48 = vld [vmem:[#allocation9 + $0x148] sm:$0xff] }
 0x778   : > { %12016 = vmatprep.subr.mxu0 %v18099_v40  ;;  %12131 = vmatmul.mubr.msk.f32.gmra.mxu1 %vm3887_vm3, %v3713_v37 }
 0x779   : > { %12017 = vmatpush3.msra.mxu0 %v11994_v47  ;;  %12133 = vmatprep.mubr.msk.f32.mxu1 %vm13581_vm2, %v18099_v40  ;;  %v3880_v47 = vld [vmem:[#allocation9 + $0x138] sm:$0xff] }
 0x77a   : > { %12018 = vmatprep.subr.mxu0 %v18099_v40 }
 0x77b   : > { %12019 = vmatpush3.msra.mxu0 %v3824_v56  ;;  %v3732_v56 = vld [vmem:[#allocation9 + $0xb0] sm:$0xf] }
 0x77c   : > { %12020 = vmatprep.subr.mxu0 %v18099_v40  ;;  %12134 = vmatmul.mubr.msk.f32.gmra.mxu1 %vm3887_vm3, %v3714_v62 }
 0x77d   : > { %12021 = vmatpush3.msra.mxu0 %v11991_v28  ;;  %12136 = vmatprep.mubr.msk.f32.mxu1 %vm13581_vm2, %v18099_v40  ;;  %v3879_v28 = vld [vmem:[#allocation9 + $0x130] sm:$0xff] }
 0x77e   : > { %12022 = vmatprep.subr.mxu0 %v18099_v40 }
 0x77f   : > { %12023 = vmatpush3.msra.mxu0 %v3814_v59  ;;  %v3731_v59 = vld [vmem:[#allocation9 + $0xa8] sm:$0xff] }
 0x780   : > { %12024 = vmatprep.subr.mxu0 %v18099_v40  ;;  %12137 = vmatmul.mubr.msk.f32.gmra.mxu1 %vm3887_vm3, %v3715_v44 }
 0x781   : > { %12025 = vmatpush3.msra.mxu0 %v15613_v11  ;;  %12139 = vmatprep.mubr.msk.f32.mxu1 %vm13581_vm2, %v18099_v40  ;;  %v3878_v11 = vld [vmem:[#allocation9 + $0x128] sm:$0xff] }
 0x782   : > { %12026 = vmatprep.subr.mxu0 %v18099_v40 }
 0x783   : > { %12027 = vmatpush3.msra.mxu0 %v15616_v43  ;;  %v3730_v43 = vld [vmem:[#allocation9 + $0xa0] sm:$0xff] }
 0x784   : > { %12029 = vmatmul.mubr.msk.f32.vlgmr.msra.gmra.mxu0 %vm3887_vm3, %v3864_v31  ;;  %12140 = vmatmul.mubr.msk.f32.gmra.mxu1 %vm3887_vm3, %v3716_v36 }
 0x785   : > { %12031 = vmatprep.mubr.msk.f32.mxu0 %vm13581_vm2, %v18099_v40  ;;  %12142 = vmatprep.mubr.msk.f32.mxu1 %vm13581_vm2, %v18099_v40 }
 0x786   : > { %12190 = vmatprep.subr.mxu0 %v4390_v12 }
 0x787   : > { %12191 = vmatpush3.msra.mxu0 %v4390_v12 }
 0x788   : > { %12032 = vmatmul.mubr.msk.f32.gmra.mxu0 %vm3887_vm3, %v3865_v57  ;;  %12143 = vmatmul.mubr.msk.f32.gmra.mxu1 %vm3887_vm3, %v3717_v10 }
 0x789   : > { %12034 = vmatprep.mubr.msk.f32.mxu0 %vm13581_vm2, %v18099_v40  ;;  %12145 = vmatprep.mubr.msk.f32.mxu1 %vm13581_vm2, %v18099_v40 }
 0x78a   : > { %12192 = vmatprep.subr.mxu0 %v4389_v55 }
 0x78b   : > { %12193 = vmatpush3.msra.mxu0 %v4389_v55 }
 0x78c   : > { %12035 = vmatmul.mubr.msk.f32.gmra.mxu0 %vm3887_vm3, %v3866_v45  ;;  %12146 = vmatmul.mubr.msk.f32.gmra.mxu1 %vm3887_vm3, %v3718_v33 }
 0x78d   : > { %12037 = vmatprep.mubr.msk.f32.mxu0 %vm13581_vm2, %v18099_v40  ;;  %12148 = vmatprep.mubr.msk.f32.mxu1 %vm13581_vm2, %v18099_v40 }
 0x78e   : > { %12194 = vmatprep.subr.mxu0 %v4388_v18 }
 0x78f   : > { %12195 = vmatpush3.msra.mxu0 %v4388_v18 }
 0x790   : > { %12038 = vmatmul.mubr.msk.f32.gmra.mxu0 %vm3887_vm3, %v3867_v17  ;;  %12149 = vmatmul.mubr.msk.f32.gmra.mxu1 %vm3887_vm3, %v3719_v24 }
 0x791   : > { %12040 = vmatprep.mubr.msk.f32.mxu0 %vm13581_vm2, %v18099_v40  ;;  %12151 = vmatprep.mubr.msk.f32.mxu1 %vm13581_vm2, %v18099_v40 }
 0x792   : > { %12196 = vmatprep.subr.mxu0 %v4387_v1 }
 0x793   : > { %12197 = vmatpush3.msra.mxu0 %v4387_v1 }
 0x794   : > { %12041 = vmatmul.mubr.msk.f32.gmra.mxu0 %vm3887_vm3, %v3868_v39  ;;  %12152 = vmatmul.mubr.msk.f32.gmra.mxu1 %vm3887_vm3, %v3720_v49 }
 0x795   : > { %12043 = vmatprep.mubr.msk.f32.mxu0 %vm13581_vm2, %v18099_v40  ;;  %12154 = vmatprep.mubr.msk.f32.mxu1 %vm13581_vm2, %v18099_v40 }
 0x796   : > { %12309 = vmatprep.subr.mxu0 %v15683_v3 }
 0x798   : > { %12044 = vmatmul.mubr.msk.f32.gmra.mxu0 %vm3887_vm3, %v3869_v27  ;;  %12155 = vmatmul.mubr.msk.f32.gmra.mxu1 %vm3887_vm3, %v3721_v53 }
 0x799   : > { %12046 = vmatprep.mubr.msk.f32.mxu0 %vm13581_vm2, %v18099_v40  ;;  %12157 = vmatprep.mubr.msk.f32.mxu1 %vm13581_vm2, %v18099_v40 }
 0x79c   : > { %12047 = vmatmul.mubr.msk.f32.gmra.mxu0 %vm3887_vm3, %v3870_v23  ;;  %12158 = vmatmul.mubr.msk.f32.gmra.mxu1 %vm3887_vm3, %v3722_v42 }
 0x79d   : > { %12049 = vmatprep.mubr.msk.f32.mxu0 %vm13581_vm2, %v18099_v40  ;;  %12160 = vmatprep.mubr.msk.f32.mxu1 %vm13581_vm2, %v18099_v40 }
 0x7a0   : > { %12050 = vmatmul.mubr.msk.f32.gmra.mxu0 %vm3887_vm3, %v3871_v16  ;;  %12161 = vmatmul.mubr.msk.f32.gmra.mxu1 %vm3887_vm3, %v3723_v54 }
 0x7a1   : > { %12052 = vmatprep.mubr.msk.f32.mxu0 %vm13581_vm2, %v18099_v40  ;;  %12163 = vmatprep.mubr.msk.f32.mxu1 %vm13581_vm2, %v18099_v40 }
 0x7a4   : > { %12053 = vmatmul.mubr.msk.f32.gmra.mxu0 %vm3887_vm3, %v3872_v35  ;;  %12164 = vmatmul.mubr.msk.f32.gmra.mxu1 %vm3887_vm3, %v3724_v8 }
 0x7a5   : > { %12055 = vmatprep.mubr.msk.f32.mxu0 %vm13581_vm2, %v18099_v40  ;;  %12166 = vmatprep.mubr.msk.f32.mxu1 %vm13581_vm2, %v18099_v40 }
 0x7a8   : > { %12056 = vmatmul.mubr.msk.f32.gmra.mxu0 %vm3887_vm3, %v3873_v46  ;;  %12167 = vmatmul.mubr.msk.f32.gmra.mxu1 %vm3887_vm3, %v3725_v26 }
 0x7a9   : > { %12058 = vmatprep.mubr.msk.f32.mxu0 %vm13581_vm2, %v18099_v40  ;;  %12169 = vmatprep.mubr.msk.f32.mxu1 %vm13581_vm2, %v18099_v40 }
 0x7ac   : > { %12059 = vmatmul.mubr.msk.f32.gmra.mxu0 %vm3887_vm3, %v3874_v25  ;;  %12170 = vmatmul.mubr.msk.f32.gmra.mxu1 %vm3887_vm3, %v3726_v50 }
 0x7ad   : > { %12061 = vmatprep.mubr.msk.f32.mxu0 %vm13581_vm2, %v18099_v40  ;;  %12172 = vmatprep.mubr.msk.f32.mxu1 %vm13581_vm2, %v18099_v40 }
 0x7b0   : > { %12062 = vmatmul.mubr.msk.f32.gmra.mxu0 %vm3887_vm3, %v3875_v34  ;;  %12173 = vmatmul.mubr.msk.f32.gmra.mxu1 %vm3887_vm3, %v3727_v29 }
 0x7b1   : > { %12064 = vmatprep.mubr.msk.f32.mxu0 %vm13581_vm2, %v18099_v40  ;;  %12175 = vmatprep.mubr.msk.f32.mxu1 %vm13581_vm2, %v18099_v40 }
 0x7b4   : > { %12065 = vmatmul.mubr.msk.f32.gmra.mxu0 %vm3887_vm3, %v3876_v32  ;;  %12176 = vmatmul.mubr.msk.f32.gmra.mxu1 %vm3887_vm3, %v3728_v7 }
 0x7b5   : > { %12067 = vmatprep.mubr.msk.f32.mxu0 %vm13581_vm2, %v18099_v40  ;;  %12178 = vmatprep.mubr.msk.f32.mxu1 %vm13581_vm2, %v18099_v40 }
 0x7b8   : > { %12068 = vmatmul.mubr.msk.f32.gmra.mxu0 %vm3887_vm3, %v3877_v52  ;;  %12179 = vmatmul.mubr.msk.f32.gmra.mxu1 %vm3887_vm3, %v3729_v19 }
 0x7b9   : > { %12070 = vmatprep.mubr.msk.f32.mxu0 %vm13581_vm2, %v18099_v40  ;;  %12181 = vmatprep.mubr.msk.f32.mxu1 %vm13581_vm2, %v18099_v40 }
 0x7bc   : > { %12071 = vmatmul.mubr.msk.f32.gmra.mxu0 %vm3887_vm3, %v3878_v11  ;;  %12182 = vmatmul.mubr.msk.f32.gmra.mxu1 %vm3887_vm3, %v3730_v43 }
 0x7bd   : > { %12073 = vmatprep.mubr.msk.f32.mxu0 %vm13581_vm2, %v18099_v40  ;;  %12184 = vmatprep.mubr.msk.f32.mxu1 %vm13581_vm2, %v18099_v40 }
 0x7c0   : > { %12074 = vmatmul.mubr.msk.f32.gmra.mxu0 %vm3887_vm3, %v3879_v28  ;;  %12185 = vmatmul.mubr.msk.f32.gmra.mxu1 %vm3887_vm3, %v3731_v59 }
 0x7c1   : > { %12076 = vmatprep.mubr.msk.f32.mxu0 %vm13581_vm2, %v18099_v40  ;;  %12187 = vmatprep.mubr.msk.f32.mxu1 %vm13581_vm2, %v18099_v40 }
 0x7c4   : > { %12077 = vmatmul.mubr.msk.f32.gmra.mxu0 %vm3887_vm3, %v3880_v47  ;;  %12188 = vmatmul.mubr.msk.f32.gmra.mxu1 %vm3887_vm3, %v3732_v56 }
 0x7c5   : > { %12079 = vmatprep.mubr.msk.f32.mxu0 %vm13581_vm2, %v18099_v40  ;;  %12240 = vmatprep.mubr.msk.f32.mxu1 %vm13581_vm2, %v18099_v40 }
 0x7c8   : > { %12080 = vmatmul.mubr.msk.f32.gmra.mxu0 %vm3887_vm3, %v3881_v51 }
 0x7c9   : > { %12082 = vmatprep.mubr.msk.f32.mxu0 %vm13581_vm2, %v18099_v40 }
 0x7cc   : > { %12083 = vmatmul.mubr.msk.f32.gmra.mxu0 %vm3887_vm3, %v3882_v48 }
 0x7cd   : > { %12085 = vmatprep.mubr.msk.f32.mxu0 %vm13581_vm2, %v18099_v40 }
 0x7d0   : > { %12086 = vmatmul.mubr.msk.f32.gmra.mxu0 %vm3887_vm3, %v3883_v61 }
 0x7d1   : > { %12088 = vmatprep.mubr.msk.f32.mxu0 %vm13581_vm2, %v18099_v40 }
 0x7d4   : > { %12089 = vmatmul.mubr.msk.f32.gmra.mxu0 %vm3887_vm3, %v3884_v2 }
 0x7d5   : > { %12091 = vmatprep.mubr.msk.f32.mxu0 %vm13581_vm2, %v18099_v40 }
 0x7d8   : > { %12092 = vmatmul.mubr.msk.f32.gmra.mxu0 %vm3887_vm3, %v3885_v41 }
 0x7d9   : > { %12094 = vmatprep.mubr.msk.f32.mxu0 %vm13581_vm2, %v18099_v40 }
 0x7dc   : > { %12095 = vmatmul.mubr.msk.f32.gmra.mxu0 %vm3887_vm3, %v3886_v30 }
 0x7dd   : > { %12198 = vmatprep.mubr.msk.f32.mxu0 %vm3548_vm1, %v15501_v22 }
 0x7e0   : > { %12199 = vmatmul.mubr.msk.f32.vlgmr.msra.gmra.mxu0 %vm3548_vm1, %v15508_v60 }
 0x7e1   : > { %12201 = vmatprep.mubr.msk.f32.mxu0 %vm3548_vm1, %v15517_v58  ;;  %12310 = vmatpush3.msra.mxu0 %v15683_v3 }
 0x7e2   : > { %12311 = vmatprep.subr.mxu0 %v4815_v63 }
 0x7e3   : > { %12312 = vmatpush3.msra.mxu0 %v4815_v63 }
 0x7e4   : > { %12202 = vmatmul.mubr.msk.f32.gmra.mxu0 %vm3548_vm1, %v15523_v6  ;;  %12313 = vmatprep.subr.mxu0 %v4814_v9 }
 0x7e5   : > { %12204 = vmatprep.mubr.msk.f32.mxu0 %vm3548_vm1, %v15531_v20  ;;  %12314 = vmatpush3.msra.mxu0 %v4814_v9 }
 0x7e6   : > { %12315 = vmatprep.subr.mxu0 %v4813_v5 }
 0x7e7   : > { %12316 = vmatpush3.msra.mxu0 %v4813_v5 }
 0x7e8   : > { %12205 = vmatmul.mubr.msk.f32.gmra.mxu0 %vm3548_vm1, %v15538_v38  ;;  %12335 = vmatprep.subr.mxu0 %v18099_v40 }
 0x7e9   : > { %12207 = vmatprep.mubr.msk.f32.mxu0 %vm3548_vm1, %v15545_v0 }
 0x7ec   : > { %12208 = vmatmul.mubr.msk.f32.gmra.mxu0 %vm3548_vm1, %v15552_v14 }
 0x7ed   : > { %12210 = vmatprep.mubr.msk.f32.mxu0 %vm3548_vm1, %v15559_v15 }
 0x7f0   : > { %12211 = vmatmul.mubr.msk.f32.gmra.mxu0 %vm3548_vm1, %v15566_v4 }
 0x7f1   : > { %12213 = vmatprep.mubr.msk.f32.mxu0 %vm3548_vm1, %v15573_v13 }
 0x7f4   : > { %12214 = vmatmul.mubr.msk.f32.gmra.mxu0 %vm3548_vm1, %v15580_v21 }
 0x7f5   : > { %12317 = vmatprep.mubr.msk.f32.mxu0 %vm3548_vm1, %v15501_v22 }
 0x7f8   : > { %12318 = vmatmul.mubr.msk.f32.vlgmr.msra.gmra.mxu0 %vm3548_vm1, %v15508_v60 }
 0x7f9   : > { %12320 = vmatprep.mubr.msk.f32.mxu0 %vm3548_vm1, %v15517_v58 }
 0x7fc   : > { %12321 = vmatmul.mubr.msk.f32.gmra.mxu0 %vm3548_vm1, %v15523_v6 }
 0x7fd   : > { %12323 = vmatprep.mubr.msk.f32.mxu0 %vm3548_vm1, %v15531_v20 }
 0x800   : > { %12324 = vmatmul.mubr.msk.f32.gmra.mxu0 %vm3548_vm1, %v15538_v38 }
 0x801   : > { %12326 = vmatprep.mubr.msk.f32.mxu0 %vm3548_vm1, %v15545_v0 }
 0x804   : > { %12327 = vmatmul.mubr.msk.f32.gmra.mxu0 %vm3548_vm1, %v15552_v14 }
 0x805   : > { %12329 = vmatprep.mubr.msk.f32.mxu0 %vm3548_vm1, %v15559_v15 }
 0x808   : > { %12330 = vmatmul.mubr.msk.f32.gmra.mxu0 %vm3548_vm1, %v15566_v4 }
 0x809   : > { %12332 = vmatprep.mubr.msk.f32.mxu0 %vm3548_vm1, %v15573_v13 }
 0x80c   : > { %12333 = vmatmul.mubr.msk.f32.gmra.mxu0 %vm3548_vm1, %v15580_v21 }
 0x80d   : > { %12359 = vmatprep.mubr.msk.f32.mxu0 %vm13581_vm2, %v18099_v40 }
 0x82c   : > { %v4272_v37 = vpop.f32.mrf.mxu1 }
 0x82e   : > { %v12123_v62 = vpop.f32.mrf.mxu1 }
 0x830   : > { %v4277_v44 = vpop.f32.mrf.mxu1 }
 0x832   : > { %v12126_v31 = vpop.f32.mrf.mxu1 }
 0x834   : > { %v4282_v36 = vpop.f32.mrf.mxu1 }
 0x836   : > { %v12129_v12 = vpop.f32.mrf.mxu1 }
 0x838   : > { %v4287_v57 = vpop.f32.mrf.mxu1 }
 0x83a   : > { %v12132_v10 = vpop.f32.mrf.mxu1 }
 0x83c   : > { %v4292_v55 = vpop.f32.mrf.mxu1 }
 0x83e   : > { %v12135_v45 = vpop.f32.mrf.mxu1 }
 0x840   : > { %v4297_v33 = vpop.f32.mrf.mxu1 }
 0x842   : > { %v12138_v18 = vpop.f32.mrf.mxu1 }
 0x844   : > { %v4023_v17 = vpop.f32.mrf.mxu0  ;;  %v4302_v24 = vpop.f32.mrf.mxu1 }
 0x845   : > { %v15832_v1 = vadd.f32 %v4272_v37, %v4023_v17 }
 0x846   : > { %v12030_v39 = vpop.f32.mrf.mxu0  ;;  %v12141_v49 = vpop.f32.mrf.mxu1 }
 0x848   : > { %v4028_v3 = vpop.f32.mrf.mxu0  ;;  %v4307_v27 = vpop.f32.mrf.mxu1 }
 0x849   : > { %v15834_v53 = vadd.f32 %v4277_v44, %v4028_v3 }
 0x84a   : > { %v12033_v23 = vpop.f32.mrf.mxu0  ;;  %v12144_v42 = vpop.f32.mrf.mxu1 }
 0x84c   : > { %v4033_v16 = vpop.f32.mrf.mxu0  ;;  %v4312_v54 = vpop.f32.mrf.mxu1 }
 0x84d   : > { %v15836_v35 = vadd.f32 %v4282_v36, %v4033_v16 }
 0x84e   : > { %v12036_v8 = vpop.f32.mrf.mxu0  ;;  %v12147_v46 = vpop.f32.mrf.mxu1 }
 0x850   : > { %v4038_v26 = vpop.f32.mrf.mxu0  ;;  %v4317_v25 = vpop.f32.mrf.mxu1 }
 0x851   : > { %v15838_v50 = vadd.f32 %v4287_v57, %v4038_v26 }
 0x852   : > { %v12039_v34 = vpop.f32.mrf.mxu0  ;;  %v12150_v29 = vpop.f32.mrf.mxu1 }
 0x854   : > { %v4043_v32 = vpop.f32.mrf.mxu0  ;;  %v4322_v7 = vpop.f32.mrf.mxu1 }
 0x855   : > { %v15840_v52 = vadd.f32 %v4292_v55, %v4043_v32 }
 0x856   : > { %v12042_v19 = vpop.f32.mrf.mxu0  ;;  %v12153_v11 = vpop.f32.mrf.mxu1 }
 0x858   : > { %v4048_v43 = vpop.f32.mrf.mxu0  ;;  %v4327_v28 = vpop.f32.mrf.mxu1 }
 0x859   : > { %v15842_v59 = vadd.f32 %v4297_v33, %v4048_v43 }
 0x85a   : > { %v12045_v47 = vpop.f32.mrf.mxu0  ;;  %v12156_v56 = vpop.f32.mrf.mxu1 }
 0x85c   : > { %v4053_v51 = vpop.f32.mrf.mxu0  ;;  %v4332_v48 = vpop.f32.mrf.mxu1 }
 0x85d   : > { %v15844_v61 = vadd.f32 %v4302_v24, %v4053_v51 }
 0x85e   : > { %v12048_v2 = vpop.f32.mrf.mxu0  ;;  %v12159_v41 = vpop.f32.mrf.mxu1 }
 0x860   : > { %v4058_v30 = vpop.f32.mrf.mxu0  ;;  %v4337_v63 = vpop.f32.mrf.mxu1 }
 0x861   : > { %v15846_v9 = vadd.f32 %v4307_v27, %v4058_v30 }
 0x862   : > { %v12051_v5 = vpop.f32.mrf.mxu0  ;;  %v12162_v37 = vpop.f32.mrf.mxu1 }
 0x864   : > { %v4063_v62 = vpop.f32.mrf.mxu0  ;;  %v4342_v44 = vpop.f32.mrf.mxu1 }
 0x865   : > { %v15848_v31 = vadd.f32 %v4312_v54, %v4063_v62 }
 0x866   : > { %v12054_v36 = vpop.f32.mrf.mxu0  ;;  %v12165_v12 = vpop.f32.mrf.mxu1 }
 0x868   : > { %v4068_v57 = vpop.f32.mrf.mxu0  ;;  %v4347_v10 = vpop.f32.mrf.mxu1 }
 0x869   : > { %v15850_v55 = vadd.f32 %v4317_v25, %v4068_v57 }
 0x86a   : > { %v12057_v45 = vpop.f32.mrf.mxu0  ;;  %v12168_v33 = vpop.f32.mrf.mxu1 }
 0x86c   : > { %v4073_v18 = vpop.f32.mrf.mxu0  ;;  %v4352_v17 = vpop.f32.mrf.mxu1 }
 0x86d   : > { %v15852_v24 = vadd.f32 %v4322_v7, %v4073_v18 }
 0x86e   : > { %v12060_v39 = vpop.f32.mrf.mxu0  ;;  %v12171_v49 = vpop.f32.mrf.mxu1 }
 0x870   : > { %v4078_v3 = vpop.f32.mrf.mxu0  ;;  %v4357_v27 = vpop.f32.mrf.mxu1 }
 0x871   : > { %v15854_v23 = vadd.f32 %v4327_v28, %v4078_v3 }
 0x872   : > { %v12063_v42 = vpop.f32.mrf.mxu0  ;;  %v12174_v16 = vpop.f32.mrf.mxu1 }
 0x874   : > { %v4083_v54 = vpop.f32.mrf.mxu0  ;;  %v4362_v8 = vpop.f32.mrf.mxu1 }
 0x875   : > { %v15856_v46 = vadd.f32 %v4332_v48, %v4083_v54 }
 0x876   : > { %v12066_v26 = vpop.f32.mrf.mxu0  ;;  %v12177_v25 = vpop.f32.mrf.mxu1 }
 0x878   : > { %v4088_v34 = vpop.f32.mrf.mxu0  ;;  %v4367_v29 = vpop.f32.mrf.mxu1 }
 0x879   : > { %v15858_v32 = vadd.f32 %v4337_v63, %v4088_v34 }
 0x87a   : > { %v12069_v7 = vpop.f32.mrf.mxu0  ;;  %v12180_v19 = vpop.f32.mrf.mxu1 }
 0x87c   : > { %v4093_v11 = vpop.f32.mrf.mxu0  ;;  %v4372_v43 = vpop.f32.mrf.mxu1 }
 0x87d   : > { %v15860_v47 = vadd.f32 %v4342_v44, %v4093_v11 }
 0x87e   : > { %v12072_v28 = vpop.f32.mrf.mxu0  ;;  %v12183_v56 = vpop.f32.mrf.mxu1 }
 0x880   : > { %v4098_v51 = vpop.f32.mrf.mxu0  ;;  %v4377_v2 = vpop.f32.mrf.mxu1 }
 0x881   : > { %v15862_v41 = vadd.f32 %v4347_v10, %v4098_v51 }
 0x882   : > { %v12075_v48 = vpop.f32.mrf.mxu0  ;;  %v12186_v30 = vpop.f32.mrf.mxu1 }
 0x884   : > { %v4103_v5 = vpop.f32.mrf.mxu0  ;;  %v4382_v37 = vpop.f32.mrf.mxu1 }
 0x885   : > { %v15864_v62 = vadd.f32 %v4352_v17, %v4103_v5 }
 0x886   : > { %v12078_v63 = vpop.f32.mrf.mxu0  ;;  %v12189_v36 = vpop.f32.mrf.mxu1 }
 0x888   : > { %v4108_v12 = vpop.f32.mrf.mxu0 }
 0x889   : > { %v15866_v57 = vadd.f32 %v4357_v27, %v4108_v12 }
 0x88a   : > { %v12081_v45 = vpop.f32.mrf.mxu0 }
 0x88c   : > { %v4113_v44 = vpop.f32.mrf.mxu0 }
 0x88d   : > { %v15868_v33 = vadd.f32 %v4362_v8, %v4113_v44 }
 0x88e   : > { %v12084_v18 = vpop.f32.mrf.mxu0 }
 0x890   : > { %v4118_v39 = vpop.f32.mrf.mxu0 }
 0x891   : > { %v15870_v49 = vadd.f32 %v4367_v29, %v4118_v39 }
 0x892   : > { %v12087_v10 = vpop.f32.mrf.mxu0 }
 0x893   : > { %v4517_v10 = vld [vmem:[#allocation9 + $0x170] sm:$0xff] }
 0x894   : > { %v4123_v3 = vpop.f32.mrf.mxu0 }
 0x895   : > { %v15872_v42 = vadd.f32 %v4372_v43, %v4123_v3  ;;  %v5242_v3 = vld [vmem:[#allocation10 + $0x98] sm:$0xff] }
 0x896   : > { %v12090_v16 = vpop.f32.mrf.mxu0 }
 0x898   : > { %v4128_v17 = vpop.f32.mrf.mxu0 }
 0x899   : > { %v15874_v54 = vadd.f32 %v4377_v2, %v4128_v17 }
 0x89a   : > { %v12093_v26 = vpop.f32.mrf.mxu0 }
 0x89b   : > { %v5241_v26 = vld [vmem:[#allocation10 + $0x90] sm:$0xff] }
 0x89c   : > { %v4133_v25 = vpop.f32.mrf.mxu0 }
 0x89d   : > { %v15876_v27 = vadd.f32 %v4382_v37, %v4133_v25  ;;  %v4518_v25 = vld [vmem:[#allocation9 + $0x178] sm:$0xff] }
 0x89e   : > { %v12096_v34 = vpop.f32.mrf.mxu0 }
 0x8a0   : > { %v12200_v7 = vpop.f32.mrf.mxu0 }
 0x8a2   : > { %v4457_v8 = vpop.f32.mrf.mxu0 }
 0x8a4   : > { %v12203_v19 = vpop.f32.mrf.mxu0 }
 0x8a6   : > { %v4467_v11 = vpop.f32.mrf.mxu0 }
 0x8a8   : > { %v12206_v28 = vpop.f32.mrf.mxu0 }
 0x8aa   : > { %v4477_v29 = vpop.f32.mrf.mxu0 }
 0x8ac   : > { %v12209_v56 = vpop.f32.mrf.mxu0 }
 0x8ae   : > { %v4487_v51 = vpop.f32.mrf.mxu0 }
 0x8b0   : > { %v12212_v48 = vpop.f32.mrf.mxu0 }
 0x8b2   : > { %v4497_v43 = vpop.f32.mrf.mxu0 }
 0x8b4   : > { %v12215_v30 = vpop.f32.mrf.mxu0 }
 0x8b5   : > { %12217 = vmatpush3.msra.mxu1 %v12215_v30  ;;  %v4525_v30 = vld [vmem:[#allocation9 + $0x1b0] sm:$0xff] }
 0x8b6   : > { %v4507_v5 = vpop.f32.mrf.mxu0  ;;  %12218 = vmatprep.subr.mxu1 %v18099_v40 }
 0x8b7   : > { %12219 = vmatpush3.msra.mxu1 %v4507_v5  ;;  %v4945_v5 = vld [vmem:[#allocation9 + $0x238] sm:$0xff] }
 0x8b8   : > { %12220 = vmatprep.subr.mxu1 %v18099_v40  ;;  %v15880_v2 = vpop.f32.mrf.mxu0 }
 0x8b9   : > { %12221 = vmatpush3.msra.mxu1 %v12212_v48  ;;  %v4524_v48 = vld [vmem:[#allocation9 + $0x1a8] sm:$0xff] }
 0x8ba   : > { %12222 = vmatprep.subr.mxu1 %v18099_v40  ;;  %v15883_v37 = vpop.f32.mrf.mxu0 }
 0x8bb   : > { %12223 = vmatpush3.msra.mxu1 %v4497_v43  ;;  %v4944_v43 = vld [vmem:[#allocation9 + $0x230] sm:$0xff] }
 0x8bc   : > { %12224 = vmatprep.subr.mxu1 %v18099_v40  ;;  %v15886_v63 = vpop.f32.mrf.mxu0 }
 0x8bd   : > { %12225 = vmatpush3.msra.mxu1 %v12209_v56  ;;  %v4523_v56 = vld [vmem:[#allocation9 + $0x1a0] sm:$0xff] }
 0x8be   : > { %12226 = vmatprep.subr.mxu1 %v18099_v40  ;;  %v15889_v36 = vpop.f32.mrf.mxu0 }
 0x8bf   : > { %12227 = vmatpush3.msra.mxu1 %v4487_v51  ;;  %v4943_v51 = vld [vmem:[#allocation9 + $0x228] sm:$0xff] }
 0x8c0   : > { %12228 = vmatprep.subr.mxu1 %v18099_v40  ;;  %v12325_v12 = vpop.f32.mrf.mxu0 }
 0x8c1   : > { %12229 = vmatpush3.msra.mxu1 %v12206_v28  ;;  %v4521_v28 = vld [vmem:[#allocation9 + $0x190] sm:$0xff] }
 0x8c2   : > { %12230 = vmatprep.subr.mxu1 %v18099_v40  ;;  %v4903_v45 = vpop.f32.mrf.mxu0 }
 0x8c3   : > { %12231 = vmatpush3.msra.mxu1 %v4477_v29  ;;  %v4522_v29 = vld [vmem:[#allocation9 + $0x198] sm:$0xff] }
 0x8c4   : > { %12232 = vmatprep.subr.mxu1 %v18099_v40  ;;  %v12328_v44 = vpop.f32.mrf.mxu0 }
 0x8c5   : > { %12233 = vmatpush3.msra.mxu1 %v12203_v19  ;;  %v5239_v19 = vld [vmem:[#allocation10 + $0x80] sm:$0xff] }
 0x8c6   : > { %12234 = vmatprep.subr.mxu1 %v18099_v40  ;;  %v4913_v18 = vpop.f32.mrf.mxu0 }
 0x8c7   : > { %12235 = vmatpush3.msra.mxu1 %v4467_v11  ;;  %v4520_v11 = vld [vmem:[#allocation9 + $0x188] sm:$0xff] }
 0x8c8   : > { %12236 = vmatprep.subr.mxu1 %v18099_v40  ;;  %v12331_v39 = vpop.f32.mrf.mxu0 }
 0x8c9   : > { %12237 = vmatpush3.msra.mxu1 %v12200_v7  ;;  %v5240_v7 = vld [vmem:[#allocation10 + $0x88] sm:$0xff] }
 0x8ca   : > { %12238 = vmatprep.subr.mxu1 %v18099_v40  ;;  %v4923_v16 = vpop.f32.mrf.mxu0 }
 0x8cb   : > { %12239 = vmatpush3.msra.mxu1 %v4457_v8  ;;  %v4519_v8 = vld [vmem:[#allocation9 + $0x180] sm:$0xff] }
 0x8cc   : > { %12241 = vmatmul.mubr.msk.f32.vlgmr.msra.gmra.mxu1 %vm3887_vm3, %v4517_v10  ;;  %v12334_v17 = vpop.f32.mrf.mxu0  ;;  %12428 = vmatprep.subr.mxu1 %v5242_v3  ;;  %v4950_v10 = vld [vmem:[#allocation9 + $0x260] sm:$0xff] }
 0x8cd   : > { %12336 = vmatpush3.msra.mxu0 %v12334_v17  ;;  %12243 = vmatprep.mubr.msk.f32.mxu1 %vm13581_vm2, %v18099_v40  ;;  %v4532_v17 = vld [vmem:[#allocation9 + $0x1e8] sm:$0xff] }
 0x8ce   : > { %v4933_v34 = vpop.f32.mrf.mxu0  ;;  %12337 = vmatprep.subr.mxu0 %v18099_v40  ;;  %12429 = vmatpush3.msra.mxu1 %v5242_v3  ;;  %v4531_v3 = vld [vmem:[#allocation9 + $0x1e0] sm:$0xff] }
 0x8cf   : > { %12338 = vmatpush3.msra.mxu0 %v4933_v34  ;;  %12430 = vmatprep.subr.mxu1 %v5241_v26  ;;  %v4953_v34 = vld [vmem:[#allocation9 + $0x278] sm:$0xff] }
 0x8d0   : > { %12244 = vmatmul.mubr.msk.f32.gmra.mxu1 %vm3887_vm3, %v4518_v25  ;;  %12339 = vmatprep.subr.mxu0 %v18099_v40  ;;  %v4533_v25 = vld [vmem:[#allocation9 + $0x1f0] sm:$0xff] }
 0x8d1   : > { %12340 = vmatpush3.msra.mxu0 %v12331_v39  ;;  %12246 = vmatprep.mubr.msk.f32.mxu1 %vm13581_vm2, %v18099_v40  ;;  %v4530_v39 = vld [vmem:[#allocation9 + $0x1d8] sm:$0xff] }
 0x8d2   : > { %12341 = vmatprep.subr.mxu0 %v18099_v40  ;;  %12431 = vmatpush3.msra.mxu1 %v5241_v26  ;;  %v4952_v26 = vld [vmem:[#allocation9 + $0x270] sm:$0xff] }
 0x8d3   : > { %12342 = vmatpush3.msra.mxu0 %v4923_v16  ;;  %12432 = vmatprep.subr.mxu1 %v5240_v7  ;;  %v4951_v16 = vld [vmem:[#allocation9 + $0x268] sm:$0xff] }
 0x8d4   : > { %12247 = vmatmul.mubr.msk.f32.gmra.mxu1 %vm3887_vm3, %v4519_v8  ;;  %12343 = vmatprep.subr.mxu0 %v18099_v40  ;;  %v4954_v8 = vld [vmem:[#allocation9 + $0x280] sm:$0xff] }
 0x8d5   : > { %12344 = vmatpush3.msra.mxu0 %v12328_v44  ;;  %12249 = vmatprep.mubr.msk.f32.mxu1 %vm13581_vm2, %v18099_v40  ;;  %v4529_v44 = vld [vmem:[#allocation9 + $0x1d0] sm:$0xff] }
 0x8d6   : > { %12345 = vmatprep.subr.mxu0 %v18099_v40  ;;  %12433 = vmatpush3.msra.mxu1 %v5240_v7  ;;  %v4534_v7 = vld [vmem:[#allocation9 + $0x1f8] sm:$0xff] }
 0x8d7   : > { %12346 = vmatpush3.msra.mxu0 %v4913_v18  ;;  %12434 = vmatprep.subr.mxu1 %v5239_v19  ;;  %v4949_v18 = vld [vmem:[#allocation9 + $0x258] sm:$0xff] }
 0x8d8   : > { %12250 = vmatmul.mubr.msk.f32.gmra.mxu1 %vm3887_vm3, %v4520_v11  ;;  %12347 = vmatprep.subr.mxu0 %v18099_v40  ;;  %v4955_v11 = vld [vmem:[#allocation9 + $0x288] sm:$0xff] }
 0x8d9   : > { %12348 = vmatpush3.msra.mxu0 %v12325_v12  ;;  %12252 = vmatprep.mubr.msk.f32.mxu1 %vm13581_vm2, %v18099_v40  ;;  %v4528_v12 = vld [vmem:[#allocation9 + $0x1c8] sm:$0xff] }
 0x8da   : > { %12349 = vmatprep.subr.mxu0 %v18099_v40  ;;  %12435 = vmatpush3.msra.mxu1 %v5239_v19  ;;  %v4535_v19 = vld [vmem:[#allocation9 + $0x200] sm:$0xff] }
 0x8db   : > { %12350 = vmatpush3.msra.mxu0 %v4903_v45  ;;  %12454 = vmatprep.subr.mxu1 %v18099_v40  ;;  %v4948_v45 = vld [vmem:[#allocation9 + $0x250] sm:$0xff] }
 0x8dc   : > { %12253 = vmatmul.mubr.msk.f32.gmra.mxu1 %vm3887_vm3, %v4521_v28  ;;  %12351 = vmatprep.subr.mxu0 %v18099_v40  ;;  %v4536_v28 = vld [vmem:[#allocation9 + $0x208] sm:$0xff] }
 0x8dd   : > { %12352 = vmatpush3.msra.mxu0 %v15886_v63  ;;  %12255 = vmatprep.mubr.msk.f32.mxu1 %vm13581_vm2, %v18099_v40  ;;  %v4527_v63 = vld [vmem:[#allocation9 + $0x1c0] sm:$0xff] }
 0x8de   : > { %12353 = vmatprep.subr.mxu0 %v18099_v40 }
 0x8df   : > { %12354 = vmatpush3.msra.mxu0 %v15889_v36  ;;  %v4947_v36 = vld [vmem:[#allocation9 + $0x248] sm:$0xff] }
 0x8e0   : > { %12256 = vmatmul.mubr.msk.f32.gmra.mxu1 %vm3887_vm3, %v4522_v29  ;;  %12355 = vmatprep.subr.mxu0 %v18099_v40  ;;  %v4956_v29 = vld [vmem:[#allocation9 + $0x290] sm:$0xff] }
 0x8e1   : > { %12356 = vmatpush3.msra.mxu0 %v15880_v2  ;;  %12258 = vmatprep.mubr.msk.f32.mxu1 %vm13581_vm2, %v18099_v40  ;;  %v4526_v2 = vld [vmem:[#allocation9 + $0x1b8] sm:$0xff] }
 0x8e2   : > { %12357 = vmatprep.subr.mxu0 %v18099_v40 }
 0x8e3   : > { %12358 = vmatpush3.msra.mxu0 %v15883_v37  ;;  %v4946_v37 = vld [vmem:[#allocation9 + $0x240] sm:$0xff] }
 0x8e4   : > { %12259 = vmatmul.mubr.msk.f32.gmra.mxu1 %vm3887_vm3, %v4523_v56  ;;  %12360 = vmatmul.mubr.msk.f32.vlgmr.msra.gmra.mxu0 %vm3887_vm3, %v4943_v51  ;;  %v4537_v56 = vld [vmem:[#allocation9 + $0x210] sm:$0xff]  ;;  %v4957_v51 = vld [vmem:[#allocation9 + $0x298] sm:$0xff] }
 0x8e5   : > { %12261 = vmatprep.mubr.msk.f32.mxu1 %vm13581_vm2, %v18099_v40  ;;  %12362 = vmatprep.mubr.msk.f32.mxu0 %vm13581_vm2, %v18099_v40 }
 0x8e6   : > { %12547 = vmatprep.subr.mxu0 %v18099_v40 }
 0x8e8   : > { %12262 = vmatmul.mubr.msk.f32.gmra.mxu1 %vm3887_vm3, %v4524_v48  ;;  %12363 = vmatmul.mubr.msk.f32.gmra.mxu0 %vm3887_vm3, %v4944_v43  ;;  %v4538_v48 = vld [vmem:[#allocation9 + $0x218] sm:$0xff]  ;;  %v4958_v43 = vld [vmem:[#allocation9 + $0x2a0] sm:$0xff] }
 0x8e9   : > { %12264 = vmatprep.mubr.msk.f32.mxu1 %vm13581_vm2, %v18099_v40  ;;  %12365 = vmatprep.mubr.msk.f32.mxu0 %vm13581_vm2, %v18099_v40 }
 0x8ec   : > { %12265 = vmatmul.mubr.msk.f32.gmra.mxu1 %vm3887_vm3, %v4525_v30  ;;  %12366 = vmatmul.mubr.msk.f32.gmra.mxu0 %vm3887_vm3, %v4945_v5  ;;  %v4539_v30 = vld [vmem:[#allocation9 + $0x220] sm:$0xf]  ;;  %v4959_v5 = vld [vmem:[#allocation9 + $0x2a8] sm:$0xff] }
 0x8ed   : > { %12267 = vmatprep.mubr.msk.f32.mxu1 %vm13581_vm2, %v18099_v40  ;;  %12368 = vmatprep.mubr.msk.f32.mxu0 %vm13581_vm2, %v18099_v40 }
 0x8f0   : > { %12268 = vmatmul.mubr.msk.f32.gmra.mxu1 %vm3887_vm3, %v4526_v2  ;;  %12369 = vmatmul.mubr.msk.f32.gmra.mxu0 %vm3887_vm3, %v4946_v37  ;;  %v4960_v2 = vld [vmem:[#allocation9 + $0x2b0] sm:$0xff]  ;;  %v4961_v37 = vld [vmem:[#allocation9 + $0x2b8] sm:$0xff] }
 0x8f1   : > { %12270 = vmatprep.mubr.msk.f32.mxu1 %vm13581_vm2, %v18099_v40  ;;  %12371 = vmatprep.mubr.msk.f32.mxu0 %vm13581_vm2, %v18099_v40 }
 0x8f4   : > { %12271 = vmatmul.mubr.msk.f32.gmra.mxu1 %vm3887_vm3, %v4527_v63  ;;  %12372 = vmatmul.mubr.msk.f32.gmra.mxu0 %vm3887_vm3, %v4947_v36 }
 0x8f5   : > { %12273 = vmatprep.mubr.msk.f32.mxu1 %vm13581_vm2, %v18099_v40  ;;  %12374 = vmatprep.mubr.msk.f32.mxu0 %vm13581_vm2, %v18099_v40 }
 0x8f8   : > { %12274 = vmatmul.mubr.msk.f32.gmra.mxu1 %vm3887_vm3, %v4528_v12  ;;  %12375 = vmatmul.mubr.msk.f32.gmra.mxu0 %vm3887_vm3, %v4948_v45 }
 0x8f9   : > { %12276 = vmatprep.mubr.msk.f32.mxu1 %vm13581_vm2, %v18099_v40  ;;  %12377 = vmatprep.mubr.msk.f32.mxu0 %vm13581_vm2, %v18099_v40 }
 0x8fc   : > { %12277 = vmatmul.mubr.msk.f32.gmra.mxu1 %vm3887_vm3, %v4529_v44  ;;  %12378 = vmatmul.mubr.msk.f32.gmra.mxu0 %vm3887_vm3, %v4949_v18 }
 0x8fd   : > { %12279 = vmatprep.mubr.msk.f32.mxu1 %vm13581_vm2, %v18099_v40  ;;  %12380 = vmatprep.mubr.msk.f32.mxu0 %vm13581_vm2, %v18099_v40 }
 0x900   : > { %12280 = vmatmul.mubr.msk.f32.gmra.mxu1 %vm3887_vm3, %v4530_v39  ;;  %12381 = vmatmul.mubr.msk.f32.gmra.mxu0 %vm3887_vm3, %v4950_v10 }
 0x901   : > { %12282 = vmatprep.mubr.msk.f32.mxu1 %vm13581_vm2, %v18099_v40  ;;  %12383 = vmatprep.mubr.msk.f32.mxu0 %vm13581_vm2, %v18099_v40 }
 0x904   : > { %12283 = vmatmul.mubr.msk.f32.gmra.mxu1 %vm3887_vm3, %v4531_v3  ;;  %12384 = vmatmul.mubr.msk.f32.gmra.mxu0 %vm3887_vm3, %v4951_v16 }
 0x905   : > { %12285 = vmatprep.mubr.msk.f32.mxu1 %vm13581_vm2, %v18099_v40  ;;  %12386 = vmatprep.mubr.msk.f32.mxu0 %vm13581_vm2, %v18099_v40 }
 0x908   : > { %12286 = vmatmul.mubr.msk.f32.gmra.mxu1 %vm3887_vm3, %v4532_v17  ;;  %12387 = vmatmul.mubr.msk.f32.gmra.mxu0 %vm3887_vm3, %v4952_v26 }
 0x909   : > { %12288 = vmatprep.mubr.msk.f32.mxu1 %vm13581_vm2, %v18099_v40  ;;  %12389 = vmatprep.mubr.msk.f32.mxu0 %vm13581_vm2, %v18099_v40 }
 0x90c   : > { %12289 = vmatmul.mubr.msk.f32.gmra.mxu1 %vm3887_vm3, %v4533_v25  ;;  %12390 = vmatmul.mubr.msk.f32.gmra.mxu0 %vm3887_vm3, %v4953_v34 }
 0x90d   : > { %12291 = vmatprep.mubr.msk.f32.mxu1 %vm13581_vm2, %v18099_v40  ;;  %12392 = vmatprep.mubr.msk.f32.mxu0 %vm13581_vm2, %v18099_v40 }
 0x910   : > { %12292 = vmatmul.mubr.msk.f32.gmra.mxu1 %vm3887_vm3, %v4534_v7  ;;  %12393 = vmatmul.mubr.msk.f32.gmra.mxu0 %vm3887_vm3, %v4954_v8 }
 0x911   : > { %12294 = vmatprep.mubr.msk.f32.mxu1 %vm13581_vm2, %v18099_v40  ;;  %12395 = vmatprep.mubr.msk.f32.mxu0 %vm13581_vm2, %v18099_v40 }
 0x914   : > { %12295 = vmatmul.mubr.msk.f32.gmra.mxu1 %vm3887_vm3, %v4535_v19  ;;  %12396 = vmatmul.mubr.msk.f32.gmra.mxu0 %vm3887_vm3, %v4955_v11 }
 0x915   : > { %12297 = vmatprep.mubr.msk.f32.mxu1 %vm13581_vm2, %v18099_v40  ;;  %12398 = vmatprep.mubr.msk.f32.mxu0 %vm13581_vm2, %v18099_v40 }
 0x918   : > { %12298 = vmatmul.mubr.msk.f32.gmra.mxu1 %vm3887_vm3, %v4536_v28  ;;  %12399 = vmatmul.mubr.msk.f32.gmra.mxu0 %vm3887_vm3, %v4956_v29 }
 0x919   : > { %12300 = vmatprep.mubr.msk.f32.mxu1 %vm13581_vm2, %v18099_v40  ;;  %12401 = vmatprep.mubr.msk.f32.mxu0 %vm13581_vm2, %v18099_v40 }
 0x91c   : > { %12301 = vmatmul.mubr.msk.f32.gmra.mxu1 %vm3887_vm3, %v4537_v56  ;;  %12402 = vmatmul.mubr.msk.f32.gmra.mxu0 %vm3887_vm3, %v4957_v51 }
 0x91d   : > { %12303 = vmatprep.mubr.msk.f32.mxu1 %vm13581_vm2, %v18099_v40  ;;  %12404 = vmatprep.mubr.msk.f32.mxu0 %vm13581_vm2, %v18099_v40 }
 0x920   : > { %12304 = vmatmul.mubr.msk.f32.gmra.mxu1 %vm3887_vm3, %v4538_v48  ;;  %12405 = vmatmul.mubr.msk.f32.gmra.mxu0 %vm3887_vm3, %v4958_v43 }
 0x921   : > { %12306 = vmatprep.mubr.msk.f32.mxu1 %vm13581_vm2, %v18099_v40  ;;  %12407 = vmatprep.mubr.msk.f32.mxu0 %vm13581_vm2, %v18099_v40 }
 0x924   : > { %12307 = vmatmul.mubr.msk.f32.gmra.mxu1 %vm3887_vm3, %v4539_v30  ;;  %12408 = vmatmul.mubr.msk.f32.gmra.mxu0 %vm3887_vm3, %v4959_v5 }
 0x925   : > { %12436 = vmatprep.mubr.msk.f32.mxu1 %vm3548_vm1, %v15501_v22  ;;  %12410 = vmatprep.mubr.msk.f32.mxu0 %vm13581_vm2, %v18099_v40  ;;  %v4962_v22 = vld [vmem:[#allocation9 + $0x2c0] sm:$0xff] }
 0x928   : > { %12411 = vmatmul.mubr.msk.f32.gmra.mxu0 %vm3887_vm3, %v4960_v2  ;;  %12437 = vmatmul.mubr.msk.f32.vlgmr.msra.gmra.mxu1 %vm3548_vm1, %v15508_v60  ;;  %v4963_v60 = vld [vmem:[#allocation9 + $0x2c8] sm:$0xff] }
 0x929   : > { %12439 = vmatprep.mubr.msk.f32.mxu1 %vm3548_vm1, %v15517_v58  ;;  %12413 = vmatprep.mubr.msk.f32.mxu0 %vm13581_vm2, %v18099_v40  ;;  %v4964_v58 = vld [vmem:[#allocation9 + $0x2d0] sm:$0xff] }
 0x92c   : > { %12414 = vmatmul.mubr.msk.f32.gmra.mxu0 %vm3887_vm3, %v4961_v37  ;;  %12440 = vmatmul.mubr.msk.f32.gmra.mxu1 %vm3548_vm1, %v15523_v6  ;;  %v4965_v6 = vld [vmem:[#allocation9 + $0x2d8] sm:$0xf] }
 0x92d   : > { %12442 = vmatprep.mubr.msk.f32.mxu1 %vm3548_vm1, %v15531_v20  ;;  %12416 = vmatprep.mubr.msk.f32.mxu0 %vm13581_vm2, %v18099_v40 }
 0x930   : > { %12417 = vmatmul.mubr.msk.f32.gmra.mxu0 %vm3887_vm3, %v4962_v22  ;;  %12443 = vmatmul.mubr.msk.f32.gmra.mxu1 %vm3548_vm1, %v15538_v38 }
 0x931   : > { %12445 = vmatprep.mubr.msk.f32.mxu1 %vm3548_vm1, %v15545_v0  ;;  %12419 = vmatprep.mubr.msk.f32.mxu0 %vm13581_vm2, %v18099_v40 }
 0x934   : > { %12420 = vmatmul.mubr.msk.f32.gmra.mxu0 %vm3887_vm3, %v4963_v60  ;;  %12446 = vmatmul.mubr.msk.f32.gmra.mxu1 %vm3548_vm1, %v15552_v14 }
 0x935   : > { %12448 = vmatprep.mubr.msk.f32.mxu1 %vm3548_vm1, %v15559_v15  ;;  %12422 = vmatprep.mubr.msk.f32.mxu0 %vm13581_vm2, %v18099_v40 }
 0x938   : > { %12423 = vmatmul.mubr.msk.f32.gmra.mxu0 %vm3887_vm3, %v4964_v58  ;;  %12449 = vmatmul.mubr.msk.f32.gmra.mxu1 %vm3548_vm1, %v15566_v4 }
 0x939   : > { %12451 = vmatprep.mubr.msk.f32.mxu1 %vm3548_vm1, %v15573_v13  ;;  %12425 = vmatprep.mubr.msk.f32.mxu0 %vm13581_vm2, %v18099_v40 }
 0x93c   : > { %12426 = vmatmul.mubr.msk.f32.gmra.mxu0 %vm3887_vm3, %v4965_v6  ;;  %12452 = vmatmul.mubr.msk.f32.gmra.mxu1 %vm3548_vm1, %v15580_v21 }
 0x93d   : > { %12478 = vmatprep.mubr.msk.f32.mxu1 %vm13581_vm2, %v18099_v40  ;;  %12555 = vmatprep.mubr.msk.f32.mxu0 %vm13581_vm2, %v18099_v40 }
 0x98c   : > { %v4675_v20 = vpop.f32.mrf.mxu1 }
 0x98d   : > { %v4789_v38 = vadd.f32 %v4675_v20, %v15832_v1 }
 0x98e   : > { %v12242_v0 = vpop.f32.mrf.mxu1 }
 0x990   : > { %v4680_v14 = vpop.f32.mrf.mxu1 }
 0x991   : > { %v4790_v15 = vadd.f32 %v4680_v14, %v15834_v53 }
 0x992   : > { %v12245_v4 = vpop.f32.mrf.mxu1 }
 0x994   : > { %v4685_v13 = vpop.f32.mrf.mxu1 }
 0x995   : > { %v4791_v63 = vadd.f32 %v4685_v13, %v15836_v35 }
 0x996   : > { %v12248_v36 = vpop.f32.mrf.mxu1 }
 0x998   : > { %v4690_v12 = vpop.f32.mrf.mxu1 }
 0x999   : > { %v4792_v21 = vadd.f32 %v4690_v12, %v15838_v50 }
 0x99a   : > { %v12251_v45 = vpop.f32.mrf.mxu1 }
 0x99c   : > { %v4695_v44 = vpop.f32.mrf.mxu1 }
 0x99d   : > { %v4793_v18 = vadd.f32 %v4695_v44, %v15840_v52 }
 0x99e   : > { %v12254_v39 = vpop.f32.mrf.mxu1 }
 0x9a0   : > { %v4700_v10 = vpop.f32.mrf.mxu1 }
 0x9a1   : > { %v4794_v1 = vadd.f32 %v4700_v10, %v15842_v59 }
 0x9a2   : > { %v12257_v3 = vpop.f32.mrf.mxu1 }
 0x9a4   : > { %v4705_v16 = vpop.f32.mrf.mxu1  ;;  %v5101_v17 = vpop.f32.mrf.mxu0 }
 0x9a5   : > { %v4795_v53 = vadd.f32 %v4705_v16, %v15844_v61  ;;  %v16083_v26 = vadd.f32 %v5101_v17, %v4789_v38 }
 0x9a6   : > { %v12260_v35 = vpop.f32.mrf.mxu1  ;;  %v12361_v25 = vpop.f32.mrf.mxu0 }
 0x9a8   : > { %v4710_v34 = vpop.f32.mrf.mxu1  ;;  %v5106_v7 = vpop.f32.mrf.mxu0 }
 0x9a9   : > { %v4796_v50 = vadd.f32 %v4710_v34, %v15846_v9  ;;  %v16086_v8 = vadd.f32 %v5106_v7, %v4790_v15 }
 0x9aa   : > { %v12263_v52 = vpop.f32.mrf.mxu1  ;;  %v12364_v19 = vpop.f32.mrf.mxu0 }
 0x9ac   : > { %v4715_v11 = vpop.f32.mrf.mxu1  ;;  %v5111_v28 = vpop.f32.mrf.mxu0 }
 0x9ad   : > { %v4797_v59 = vadd.f32 %v4715_v11, %v15848_v31  ;;  %v16089_v29 = vadd.f32 %v5111_v28, %v4791_v63 }
 0x9ae   : > { %v12266_v56 = vpop.f32.mrf.mxu1  ;;  %v12367_v61 = vpop.f32.mrf.mxu0 }
 0x9b0   : > { %v4720_v51 = vpop.f32.mrf.mxu1  ;;  %v5116_v48 = vpop.f32.mrf.mxu0 }
 0x9b1   : > { %v4798_v43 = vadd.f32 %v4720_v51, %v15850_v55  ;;  %v16092_v30 = vadd.f32 %v5116_v48, %v4792_v21 }
 0x9b2   : > { %v12269_v5 = vpop.f32.mrf.mxu1  ;;  %v12370_v9 = vpop.f32.mrf.mxu0 }
 0x9b4   : > { %v4725_v2 = vpop.f32.mrf.mxu1  ;;  %v5121_v37 = vpop.f32.mrf.mxu0 }
 0x9b5   : > { %v4799_v22 = vadd.f32 %v4725_v2, %v15852_v24  ;;  %v16095_v60 = vadd.f32 %v5121_v37, %v4793_v18 }
 0x9b6   : > { %v12272_v58 = vpop.f32.mrf.mxu1  ;;  %v12373_v31 = vpop.f32.mrf.mxu0 }
 0x9b8   : > { %v4730_v6 = vpop.f32.mrf.mxu1  ;;  %v5126_v20 = vpop.f32.mrf.mxu0 }
 0x9b9   : > { %v4800_v38 = vadd.f32 %v4730_v6, %v15854_v23  ;;  %v16098_v0 = vadd.f32 %v5126_v20, %v4794_v1 }
 0x9ba   : > { %v12275_v14 = vpop.f32.mrf.mxu1  ;;  %v12376_v55 = vpop.f32.mrf.mxu0 }
 0x9bc   : > { %v4735_v15 = vpop.f32.mrf.mxu1  ;;  %v5131_v4 = vpop.f32.mrf.mxu0 }
 0x9bd   : > { %v4801_v13 = vadd.f32 %v4735_v15, %v15856_v46  ;;  %v16101_v63 = vadd.f32 %v5131_v4, %v4795_v53 }
 0x9be   : > { %v12278_v36 = vpop.f32.mrf.mxu1  ;;  %v12379_v24 = vpop.f32.mrf.mxu0 }
 0x9c0   : > { %v4740_v12 = vpop.f32.mrf.mxu1  ;;  %v5136_v21 = vpop.f32.mrf.mxu0 }
 0x9c1   : > { %v4802_v45 = vadd.f32 %v4740_v12, %v15858_v32  ;;  %v16104_v44 = vadd.f32 %v5136_v21, %v4796_v50 }
 0x9c2   : > { %v12281_v18 = vpop.f32.mrf.mxu1  ;;  %v12382_v23 = vpop.f32.mrf.mxu0 }
 0x9c4   : > { %v4745_v39 = vpop.f32.mrf.mxu1  ;;  %v5141_v10 = vpop.f32.mrf.mxu0 }
 0x9c5   : > { %v4803_v1 = vadd.f32 %v4745_v39, %v15860_v47  ;;  %v16107_v3 = vadd.f32 %v5141_v10, %v4797_v59 }
 0x9c6   : > { %v12284_v16 = vpop.f32.mrf.mxu1  ;;  %v12385_v46 = vpop.f32.mrf.mxu0 }
 0x9c8   : > { %v4750_v17 = vpop.f32.mrf.mxu1  ;;  %v5146_v53 = vpop.f32.mrf.mxu0 }
 0x9c9   : > { %v4804_v35 = vadd.f32 %v4750_v17, %v15862_v41  ;;  %v16110_v25 = vadd.f32 %v5146_v53, %v4798_v43 }
 0x9ca   : > { %v12287_v34 = vpop.f32.mrf.mxu1  ;;  %v12388_v32 = vpop.f32.mrf.mxu0 }
 0x9cc   : > { %v4755_v7 = vpop.f32.mrf.mxu1  ;;  %v5151_v50 = vpop.f32.mrf.mxu0 }
 0x9cd   : > { %v4805_v52 = vadd.f32 %v4755_v7, %v15864_v62  ;;  %v16113_v19 = vadd.f32 %v5151_v50, %v4799_v22 }
 0x9ce   : > { %v12290_v11 = vpop.f32.mrf.mxu1  ;;  %v12391_v47 = vpop.f32.mrf.mxu0 }
 0x9d0   : > { %v4760_v28 = vpop.f32.mrf.mxu1  ;;  %v5156_v59 = vpop.f32.mrf.mxu0 }
 0x9d1   : > { %v4806_v56 = vadd.f32 %v4760_v28, %v15866_v57  ;;  %v16116_v61 = vadd.f32 %v5156_v59, %v4800_v38 }
 0x9d2   : > { %v12293_v51 = vpop.f32.mrf.mxu1  ;;  %v12394_v41 = vpop.f32.mrf.mxu0 }
 0x9d4   : > { %v4765_v48 = vpop.f32.mrf.mxu1  ;;  %v5161_v43 = vpop.f32.mrf.mxu0 }
 0x9d5   : > { %v4807_v5 = vadd.f32 %v4765_v48, %v15868_v33  ;;  %v16119_v9 = vadd.f32 %v5161_v43, %v4801_v13 }
 0x9d6   : > { %v12296_v2 = vpop.f32.mrf.mxu1  ;;  %v12397_v62 = vpop.f32.mrf.mxu0 }
 0x9d8   : > { %v4770_v37 = vpop.f32.mrf.mxu1  ;;  %v5166_v22 = vpop.f32.mrf.mxu0 }
 0x9d9   : > { %v4808_v58 = vadd.f32 %v4770_v37, %v15870_v49  ;;  %v16122_v31 = vadd.f32 %v5166_v22, %v4802_v45 }
 0x9da   : > { %v12299_v6 = vpop.f32.mrf.mxu1  ;;  %v12400_v57 = vpop.f32.mrf.mxu0 }
 0x9db   : > { %v5369_v57 = vld [vmem:[#allocation9 + $0x2e0] sm:$0xff] }
 0x9dc   : > { %v4775_v20 = vpop.f32.mrf.mxu1  ;;  %v5171_v38 = vpop.f32.mrf.mxu0 }
 0x9dd   : > { %v4809_v14 = vadd.f32 %v4775_v20, %v15872_v42  ;;  %v16125_v55 = vadd.f32 %v5171_v38, %v4803_v1  ;;  %v10719_v20 = vld [vmem:[%s18129_s27 + $0x38] sm:$0x3f]  ;;  %v5370_v38 = vld [vmem:[#allocation9 + $0x2e8] sm:$0xff] }
 0x9de   : > { %v12302_v15 = vpop.f32.mrf.mxu1  ;;  %v12403_v33 = vpop.f32.mrf.mxu0 }
 0x9df   : > { %v5372_v15 = vld [vmem:[#allocation9 + $0x2f8] sm:$0xff]  ;;  %v5373_v33 = vld [vmem:[#allocation9 + $0x300] sm:$0xff] }
 0x9e0   : > { %v4780_v4 = vpop.f32.mrf.mxu1  ;;  %v5176_v13 = vpop.f32.mrf.mxu0 }
 0x9e1   : > { %v4810_v36 = vadd.f32 %v4780_v4, %v15874_v54  ;;  %v16128_v24 = vadd.f32 %v5176_v13, %v4804_v35  ;;  %v5374_v4 = vld [vmem:[#allocation9 + $0x308] sm:$0xff]  ;;  %v5375_v13 = vld [vmem:[#allocation9 + $0x310] sm:$0xff] }
 0x9e2   : > { %v12305_v12 = vpop.f32.mrf.mxu1  ;;  %v12406_v49 = vpop.f32.mrf.mxu0 }
 0x9e3   : > { %v5377_v12 = vld [vmem:[#allocation9 + $0x320] sm:$0xff]  ;;  %v5378_v49 = vld [vmem:[#allocation9 + $0x328] sm:$0xff] }
 0x9e4   : > { %v4785_v21 = vpop.f32.mrf.mxu1  ;;  %v5181_v45 = vpop.f32.mrf.mxu0 }
 0x9e5   : > { %v4811_v18 = vadd.f32 %v4785_v21, %v15876_v27  ;;  %v16131_v23 = vadd.f32 %v5181_v45, %v4805_v52  ;;  %v5379_v21 = vld [vmem:[#allocation9 + $0x330] sm:$0xff]  ;;  %v5380_v45 = vld [vmem:[#allocation9 + $0x338] sm:$0xff] }
 0x9e6   : > { %v12308_v39 = vpop.f32.mrf.mxu1  ;;  %v12409_v42 = vpop.f32.mrf.mxu0 }
 0x9e7   : > { %v5382_v39 = vld [vmem:[#allocation9 + $0x348] sm:$0xff]  ;;  %v5383_v42 = vld [vmem:[#allocation9 + $0x350] sm:$0xff] }
 0x9e8   : > { %v5186_v10 = vpop.f32.mrf.mxu0  ;;  %v12438_v1 = vpop.f32.mrf.mxu1 }
 0x9e9   : > { %v16133_v16 = vadd.f32 %v5186_v10, %v4806_v56  ;;  %v5384_v10 = vld [vmem:[#allocation9 + $0x358] sm:$0xff] }
 0x9ea   : > { %v12412_v46 = vpop.f32.mrf.mxu0  ;;  %v5309_v17 = vpop.f32.mrf.mxu1 }
 0x9eb   : > { %v5851_v46 = vld [vmem:[%s18129_s27 + $0x18] sm:$0x3f] }
 0x9ec   : > { %v5191_v53 = vpop.f32.mrf.mxu0  ;;  %v12441_v54 = vpop.f32.mrf.mxu1  ;;  %12548 = vmatpush3.msk.msra.mxu0 %vm5922_vm4, %v5851_v46 }
 0x9ed   : > { %v16135_v35 = vadd.f32 %v5191_v53, %v4807_v5  ;;  %12549 = vmatprep.subr.mxu0 %v18099_v40  ;;  %v5850_v53 = vld [vmem:[%s18129_s27 + $0x10] sm:$0xff] }
 0x9ee   : > { %v12415_v34 = vpop.f32.mrf.mxu0  ;;  %v5319_v32 = vpop.f32.mrf.mxu1  ;;  %12550 = vmatpush3.msra.mxu0 %v5850_v53 }
 0x9ef   : > { %12551 = vmatprep.subr.mxu0 %v18099_v40  ;;  %v5849_v34 = vld [vmem:[%s18129_s27 + $0x8] sm:$0xff] }
 0x9f0   : > { %v5196_v7 = vpop.f32.mrf.mxu0  ;;  %v12444_v50 = vpop.f32.mrf.mxu1  ;;  %12552 = vmatpush3.msra.mxu0 %v5849_v34 }
 0x9f1   : > { %v16137_v11 = vadd.f32 %v5196_v7, %v4808_v58  ;;  %v5387_v7 = vld [vmem:[#allocation9 + $0x370] sm:$0xff]  ;;  %12553 = vmatprep.subr.mxu0 %v18099_v40 }
 0x9f2   : > { %v12418_v27 = vpop.f32.mrf.mxu0  ;;  %v5329_v52 = vpop.f32.mrf.mxu1 }
 0x9f3   : > { %v10716_v27 = vld [vmem:[%s18129_s27 + $0x20] sm:$0xff] }
 0x9f4   : > { %v5201_v47 = vpop.f32.mrf.mxu0  ;;  %v12447_v28 = vpop.f32.mrf.mxu1 }
 0x9f5   : > { %v16139_v59 = vadd.f32 %v5201_v47, %v4809_v14  ;;  %v5371_v14 = vld [vmem:[#allocation9 + $0x2f0] sm:$0xff]  ;;  %v5389_v47 = vld [vmem:[#allocation9 + $0x380] sm:$0xff] }
 0x9f6   : > { %v12421_v56 = vpop.f32.mrf.mxu0  ;;  %v5339_v51 = vpop.f32.mrf.mxu1 }
 0x9f7   : > { %v5391_v56 = vld [vmem:[#allocation9 + $0x390] sm:$0xf] }
 0x9f8   : > { %v5206_v41 = vpop.f32.mrf.mxu0  ;;  %v12450_v48 = vpop.f32.mrf.mxu1 }
 0x9f9   : > { %v16141_v43 = vadd.f32 %v5206_v41, %v4810_v36  ;;  %v5376_v36 = vld [vmem:[#allocation9 + $0x318] sm:$0xff] }
 0x9fa   : > { %v12424_v5 = vpop.f32.mrf.mxu0  ;;  %v5349_v2 = vpop.f32.mrf.mxu1 }
 0x9fc   : > { %v5211_v62 = vpop.f32.mrf.mxu0  ;;  %v12453_v37 = vpop.f32.mrf.mxu1 }
 0x9fd   : > { %v16143_v22 = vadd.f32 %v5211_v62, %v4811_v18  ;;  %12455 = vmatpush3.msra.mxu1 %v12453_v37  ;;  %v5381_v18 = vld [vmem:[#allocation9 + $0x340] sm:$0xff] }
 0x9fe   : > { %v5359_v58 = vpop.f32.mrf.mxu1  ;;  %12456 = vmatprep.subr.mxu1 %v18099_v40  ;;  %v12427_v6 = vpop.f32.mrf.mxu0 }
 0x9ff   : > { %12457 = vmatpush3.msra.mxu1 %v5359_v58  ;;  %v5695_v6 = vpop.permute.xlu1 %5694 }
 0xa00   : > { %12458 = vmatprep.subr.mxu1 %v18099_v40 }
 0xa01   : > { %12459 = vmatpush3.msra.mxu1 %v12450_v48  ;;  %v5690_v48 = vpop.permute.xlu0 %5689 }
 0xa02   : > { %12460 = vmatprep.subr.mxu1 %v18099_v40 }
 0xa03   : > { %12461 = vmatpush3.msra.mxu1 %v5349_v2 }
 0xa04   : > { %12462 = vmatprep.subr.mxu1 %v18099_v40 }
 0xa05   : > { %12463 = vmatpush3.msra.mxu1 %v12447_v28  ;;  %v5390_v28 = vld [vmem:[#allocation9 + $0x388] sm:$0xff] }
 0xa06   : > { %12464 = vmatprep.subr.mxu1 %v18099_v40 }
 0xa07   : > { %12465 = vmatpush3.msra.mxu1 %v5339_v51 }
 0xa08   : > { %12466 = vmatprep.subr.mxu1 %v18099_v40 }
 0xa09   : > { %12467 = vmatpush3.msra.mxu1 %v12444_v50  ;;  %v5848_v50 = vld [vmem:[%s18129_s27] sm:$0xff] }
 0xa0a   : > { %12468 = vmatprep.subr.mxu1 %v18099_v40  ;;  %12554 = vmatpush3.msra.mxu0 %v5848_v50 }
 0xa0b   : > { %12469 = vmatpush3.msra.mxu1 %v5329_v52  ;;  %6447 = vmatprep.subr.mxu0 %v18099_v40  ;;  %v5388_v52 = vld [vmem:[#allocation9 + $0x378] sm:$0xff] }
 0xa0c   : > { %12470 = vmatprep.subr.mxu1 %v18099_v40 }
 0xa0d   : > { %12471 = vmatpush3.msra.mxu1 %v12441_v54  ;;  %v10718_v54 = vld [vmem:[%s18129_s27 + $0x30] sm:$0xff] }
 0xa0e   : > { %12472 = vmatprep.subr.mxu1 %v18099_v40 }
 0xa0f   : > { %12473 = vmatpush3.msra.mxu1 %v5319_v32  ;;  %v10717_v32 = vld [vmem:[%s18129_s27 + $0x28] sm:$0xff] }
 0xa10   : > { %12474 = vmatprep.subr.mxu1 %v18099_v40 }
 0xa11   : > { %12475 = vmatpush3.msra.mxu1 %v12438_v1  ;;  %v5385_v1 = vld [vmem:[#allocation9 + $0x360] sm:$0xff] }
 0xa12   : > { %12476 = vmatprep.subr.mxu1 %v18099_v40 }
 0xa13   : > { %12477 = vmatpush3.msra.mxu1 %v5309_v17  ;;  %v5386_v17 = vld [vmem:[#allocation9 + $0x368] sm:$0xff] }
 0xa14   : > { %12479 = vmatmul.mubr.msk.f32.vlgmr.msra.gmra.mxu1 %vm3887_vm3, %v5369_v57  ;;  %12624 = vmatprep.subr.mxu1 %v18099_v40 }
 0xa15   : > { %12481 = vmatprep.mubr.msk.f32.mxu1 %vm13581_vm2, %v18099_v40  ;;  %12625 = vmatpush3.msk.msra.mxu1 %vm5922_vm4, %v10719_v20 }
 0xa16   : > { %12626 = vmatprep.subr.mxu1 %v18099_v40 }
 0xa17   : > { %12627 = vmatpush3.msra.mxu1 %v10718_v54 }
 0xa18   : > { %12482 = vmatmul.mubr.msk.f32.gmra.mxu1 %vm3887_vm3, %v5370_v38  ;;  %12628 = vmatprep.subr.mxu1 %v18099_v40 }
 0xa19   : > { %12484 = vmatprep.mubr.msk.f32.mxu1 %vm13581_vm2, %v18099_v40  ;;  %12629 = vmatpush3.msra.mxu1 %v10717_v32 }
 0xa1a   : > { %12630 = vmatprep.subr.mxu1 %v18099_v40 }
 0xa1b   : > { %12631 = vmatpush3.msra.mxu1 %v10716_v27 }
 0xa1c   : > { %12485 = vmatmul.mubr.msk.f32.gmra.mxu1 %vm3887_vm3, %v5371_v14  ;;  %6683 = vmatprep.subr.mxu1 %v18099_v40  ;;  %v5700_v14 = vpop.permute.xlu0 %5699 }
 0xa1d   : > { %12487 = vmatprep.mubr.msk.f32.mxu1 %vm13581_vm2, %v18099_v40 }
 0xa20   : > { %12488 = vmatmul.mubr.msk.f32.gmra.mxu1 %vm3887_vm3, %v5372_v15 }
 0xa21   : > { %12490 = vmatprep.mubr.msk.f32.mxu1 %vm13581_vm2, %v18099_v40 }
 0xa24   : > { %12491 = vmatmul.mubr.msk.f32.gmra.mxu1 %vm3887_vm3, %v5373_v33 }
 0xa25   : > { %12493 = vmatprep.mubr.msk.f32.mxu1 %vm13581_vm2, %v18099_v40 }
 0xa28   : > { %12494 = vmatmul.mubr.msk.f32.gmra.mxu1 %vm3887_vm3, %v5374_v4 }
 0xa29   : > { %12496 = vmatprep.mubr.msk.f32.mxu1 %vm13581_vm2, %v18099_v40 }
 0xa2c   : > { %12497 = vmatmul.mubr.msk.f32.gmra.mxu1 %vm3887_vm3, %v5375_v13 }
 0xa2d   : > { %12499 = vmatprep.mubr.msk.f32.mxu1 %vm13581_vm2, %v18099_v40 }
 0xa30   : > { %12500 = vmatmul.mubr.msk.f32.gmra.mxu1 %vm3887_vm3, %v5376_v36  ;;  %v5705_v36 = vpop.permute.xlu1 %5704 }
 0xa31   : > { %12502 = vmatprep.mubr.msk.f32.mxu1 %vm13581_vm2, %v18099_v40 }
 0xa34   : > { %12503 = vmatmul.mubr.msk.f32.gmra.mxu1 %vm3887_vm3, %v5377_v12  ;;  %v5715_v46 = vpop.permute.xlu1 %5714 }
 0xa35   : > { %12505 = vmatprep.mubr.msk.f32.mxu1 %vm13581_vm2, %v18099_v40 }
 0xa38   : > { %12506 = vmatmul.mubr.msk.f32.gmra.mxu1 %vm3887_vm3, %v5378_v49 }
 0xa39   : > { %12508 = vmatprep.mubr.msk.f32.mxu1 %vm13581_vm2, %v18099_v40 }
 0xa3c   : > { %12509 = vmatmul.mubr.msk.f32.gmra.mxu1 %vm3887_vm3, %v5379_v21 }
 0xa3d   : > { %12511 = vmatprep.mubr.msk.f32.mxu1 %vm13581_vm2, %v18099_v40 }
 0xa40   : > { %12512 = vmatmul.mubr.msk.f32.gmra.mxu1 %vm3887_vm3, %v5380_v45 }
 0xa41   : > { %12514 = vmatprep.mubr.msk.f32.mxu1 %vm13581_vm2, %v18099_v40 }
 0xa44   : > { %12515 = vmatmul.mubr.msk.f32.gmra.mxu1 %vm3887_vm3, %v5381_v18  ;;  %v5710_v18 = vpop.permute.xlu0 %5709 }
 0xa45   : > { %12517 = vmatprep.mubr.msk.f32.mxu1 %vm13581_vm2, %v18099_v40 }
 0xa48   : > { %12518 = vmatmul.mubr.msk.f32.gmra.mxu1 %vm3887_vm3, %v5382_v39  ;;  %v5720_v32 = vpop.permute.xlu0 %5719 }
 0xa49   : > { %12520 = vmatprep.mubr.msk.f32.mxu1 %vm13581_vm2, %v18099_v40 }
 0xa4c   : > { %12521 = vmatmul.mubr.msk.f32.gmra.mxu1 %vm3887_vm3, %v5383_v42 }
 0xa4d   : > { %12523 = vmatprep.mubr.msk.f32.mxu1 %vm13581_vm2, %v18099_v40 }
 0xa50   : > { %12524 = vmatmul.mubr.msk.f32.gmra.mxu1 %vm3887_vm3, %v5384_v10 }
 0xa51   : > { %12526 = vmatprep.mubr.msk.f32.mxu1 %vm13581_vm2, %v18099_v40 }
 0xa54   : > { %12527 = vmatmul.mubr.msk.f32.gmra.mxu1 %vm3887_vm3, %v5385_v1 }
 0xa55   : > { %12529 = vmatprep.mubr.msk.f32.mxu1 %vm13581_vm2, %v18099_v40 }
 0xa58   : > { %12530 = vmatmul.mubr.msk.f32.gmra.mxu1 %vm3887_vm3, %v5386_v17 }
 0xa59   : > { %12532 = vmatprep.mubr.msk.f32.mxu1 %vm13581_vm2, %v18099_v40 }
 0xa5c   : > { %12533 = vmatmul.mubr.msk.f32.gmra.mxu1 %vm3887_vm3, %v5387_v7 }
 0xa5d   : > { %12535 = vmatprep.mubr.msk.f32.mxu1 %vm13581_vm2, %v18099_v40 }
 0xa60   : > { %12536 = vmatmul.mubr.msk.f32.gmra.mxu1 %vm3887_vm3, %v5388_v52 }
 0xa61   : > { %12538 = vmatprep.mubr.msk.f32.mxu1 %vm13581_vm2, %v18099_v40 }
 0xa64   : > { %12539 = vmatmul.mubr.msk.f32.gmra.mxu1 %vm3887_vm3, %v5389_v47  ;;  %v5725_v47 = vpop.permute.xlu1 %5724 }
 0xa65   : > { %12541 = vmatprep.mubr.msk.f32.mxu1 %vm13581_vm2, %v18099_v40 }
 0xa68   : > { %12542 = vmatmul.mubr.msk.f32.gmra.mxu1 %vm3887_vm3, %v5390_v28 }
 0xa69   : > { %12544 = vmatprep.mubr.msk.f32.mxu1 %vm13581_vm2, %v18099_v40 }
 0xa6c   : > { %12545 = vmatmul.mubr.msk.f32.gmra.mxu1 %vm3887_vm3, %v5391_v56 }
 0xa6d   : > { %12632 = vmatprep.mubr.msk.f32.mxu1 %vm13581_vm2, %v18099_v40 }
 0xad4   : > { %v5527_v51 = vpop.f32.mrf.mxu1 }
 0xad5   : > { %v5641_v41 = vadd.f32 %v5527_v51, %v16083_v26 }
 0xad6   : > { %v12480_v5 = vpop.f32.mrf.mxu1 }
 0xad7   : > { %v5802_v2 = vadd.f32 %v5690_v48, %v5641_v41  ;;  %v5730_v48 = vpop.permute.xlu0 %5729 }
 0xad8   : > { %v5532_v62 = vpop.f32.mrf.mxu1 }
 0xad9   : > { %v16261_v37 = vmax.f32 %v5802_v2, 0.0  ;;  %v5642_v58 = vadd.f32 %v5532_v62, %v16086_v8 }
 0xada   : > { %v12483_v57 = vpop.f32.mrf.mxu1 }
 0xadb   : > { %v5803_v20 = vadd.f32 %v5695_v6, %v5642_v58  ;;  %12556 = vmatmul.mubr.msk.f32.vlgmr.msra.gmra.mxu0 %vm5852_vm5, %v16261_v37  ;;  %12633 = vmatmul.mubr.msk.f32.vlgmr.msra.gmra.mxu1 %vm5852_vm5, %v16261_v37  ;;  %v5735_v6 = vpop.permute.xlu1 %5734 }
 0xadc   : > { %v5537_v38 = vpop.f32.mrf.mxu1  ;;  %12558 = vmatprep.mubr.msk.f32.mxu0 %vm13581_vm2, %v18099_v40  ;;  %12635 = vmatprep.mubr.msk.f32.mxu1 %vm13581_vm2, %v18099_v40 }
 0xadd   : > { %v16272_v26 = vmax.f32 %v5803_v20, 0.0  ;;  %v5643_v8 = vadd.f32 %v5537_v38, %v16089_v29 }
 0xade   : > { %v12486_v15 = vpop.f32.mrf.mxu1 }
 0xadf   : > { %v5804_v33 = vadd.f32 %v5700_v14, %v5643_v8  ;;  %12559 = vmatmul.mubr.msk.f32.gmra.mxu0 %vm5852_vm5, %v16272_v26  ;;  %12636 = vmatmul.mubr.msk.f32.gmra.mxu1 %vm5852_vm5, %v16272_v26  ;;  %v5740_v14 = vpop.permute.xlu0 %5739 }
 0xae0   : > { %v5542_v4 = vpop.f32.mrf.mxu1  ;;  %12561 = vmatprep.mubr.msk.f32.mxu0 %vm13581_vm2, %v18099_v40  ;;  %12638 = vmatprep.mubr.msk.f32.mxu1 %vm13581_vm2, %v18099_v40 }
 0xae1   : > { %v16283_v13 = vmax.f32 %v5804_v33, 0.0  ;;  %v5644_v29 = vadd.f32 %v5542_v4, %v16092_v30 }
 0xae2   : > { %v12489_v12 = vpop.f32.mrf.mxu1 }
 0xae3   : > { %v5805_v49 = vadd.f32 %v5705_v36, %v5644_v29  ;;  %12562 = vmatmul.mubr.msk.f32.gmra.mxu0 %vm5852_vm5, %v16283_v13  ;;  %12639 = vmatmul.mubr.msk.f32.gmra.mxu1 %vm5852_vm5, %v16283_v13  ;;  %v5745_v36 = vpop.permute.xlu1 %5744 }
 0xae4   : > { %v5547_v21 = vpop.f32.mrf.mxu1  ;;  %12564 = vmatprep.mubr.msk.f32.mxu0 %vm13581_vm2, %v18099_v40  ;;  %12641 = vmatprep.mubr.msk.f32.mxu1 %vm13581_vm2, %v18099_v40 }
 0xae5   : > { %v16294_v45 = vmax.f32 %v5805_v49, 0.0  ;;  %v5645_v30 = vadd.f32 %v5547_v21, %v16095_v60 }
 0xae6   : > { %v12492_v39 = vpop.f32.mrf.mxu1 }
 0xae7   : > { %v5806_v42 = vadd.f32 %v5710_v18, %v5645_v30  ;;  %12565 = vmatmul.mubr.msk.f32.gmra.mxu0 %vm5852_vm5, %v16294_v45  ;;  %12642 = vmatmul.mubr.msk.f32.gmra.mxu1 %vm5852_vm5, %v16294_v45  ;;  %v5750_v18 = vpop.permute.xlu0 %5749 }
 0xae8   : > { %v5552_v10 = vpop.f32.mrf.mxu1  ;;  %12567 = vmatprep.mubr.msk.f32.mxu0 %vm13581_vm2, %v18099_v40  ;;  %12644 = vmatprep.mubr.msk.f32.mxu1 %vm13581_vm2, %v18099_v40 }
 0xae9   : > { %v16305_v1 = vmax.f32 %v5806_v42, 0.0  ;;  %v5646_v60 = vadd.f32 %v5552_v10, %v16098_v0 }
 0xaea   : > { %v12495_v17 = vpop.f32.mrf.mxu1 }
 0xaeb   : > { %v5807_v53 = vadd.f32 %v5715_v46, %v5646_v60  ;;  %12568 = vmatmul.mubr.msk.f32.gmra.mxu0 %vm5852_vm5, %v16305_v1  ;;  %12645 = vmatmul.mubr.msk.f32.gmra.mxu1 %vm5852_vm5, %v16305_v1  ;;  %v5755_v46 = vpop.permute.xlu1 %5754 }
 0xaec   : > { %v5557_v54 = vpop.f32.mrf.mxu1  ;;  %12570 = vmatprep.mubr.msk.f32.mxu0 %vm13581_vm2, %v18099_v40  ;;  %12647 = vmatprep.mubr.msk.f32.mxu1 %vm13581_vm2, %v18099_v40 }
 0xaed   : > { %v16316_v34 = vmax.f32 %v5807_v53, 0.0  ;;  %v5647_v0 = vadd.f32 %v5557_v54, %v16101_v63 }
 0xaee   : > { %v12498_v7 = vpop.f32.mrf.mxu1 }
 0xaef   : > { %v5808_v50 = vadd.f32 %v5720_v32, %v5647_v0  ;;  %12571 = vmatmul.mubr.msk.f32.gmra.mxu0 %vm5852_vm5, %v16316_v34  ;;  %12648 = vmatmul.mubr.msk.f32.gmra.mxu1 %vm5852_vm5, %v16316_v34  ;;  %v5760_v32 = vpop.permute.xlu0 %5759 }
 0xaf0   : > { %v5562_v27 = vpop.f32.mrf.mxu1  ;;  %12573 = vmatprep.mubr.msk.f32.mxu0 %vm13581_vm2, %v18099_v40  ;;  %12650 = vmatprep.mubr.msk.f32.mxu1 %vm13581_vm2, %v18099_v40 }
 0xaf1   : > { %v16327_v52 = vmax.f32 %v5808_v50, 0.0  ;;  %v5648_v63 = vadd.f32 %v5562_v27, %v16104_v44 }
 0xaf2   : > { %v12501_v28 = vpop.f32.mrf.mxu1 }
 0xaf3   : > { %v5809_v56 = vadd.f32 %v5725_v47, %v5648_v63  ;;  %12574 = vmatmul.mubr.msk.f32.gmra.mxu0 %vm5852_vm5, %v16327_v52  ;;  %12651 = vmatmul.mubr.msk.f32.gmra.mxu1 %vm5852_vm5, %v16327_v52  ;;  %v5765_v47 = vpop.permute.xlu1 %5764 }
 0xaf4   : > { %v5567_v51 = vpop.f32.mrf.mxu1  ;;  %12576 = vmatprep.mubr.msk.f32.mxu0 %vm13581_vm2, %v18099_v40  ;;  %12653 = vmatprep.mubr.msk.f32.mxu1 %vm13581_vm2, %v18099_v40 }
 0xaf5   : > { %v16338_v41 = vmax.f32 %v5809_v56, 0.0  ;;  %v5649_v44 = vadd.f32 %v5567_v51, %v16107_v3 }
 0xaf6   : > { %v12504_v5 = vpop.f32.mrf.mxu1 }
 0xaf7   : > { %v5810_v2 = vadd.f32 %v5730_v48, %v5649_v44  ;;  %12577 = vmatmul.mubr.msk.f32.gmra.mxu0 %vm5852_vm5, %v16338_v41  ;;  %12654 = vmatmul.mubr.msk.f32.gmra.mxu1 %vm5852_vm5, %v16338_v41  ;;  %v5770_v48 = vpop.permute.xlu0 %5769 }
 0xaf8   : > { %v5572_v62 = vpop.f32.mrf.mxu1  ;;  %12579 = vmatprep.mubr.msk.f32.mxu0 %vm13581_vm2, %v18099_v40  ;;  %12656 = vmatprep.mubr.msk.f32.mxu1 %vm13581_vm2, %v18099_v40 }
 0xaf9   : > { %v16349_v58 = vmax.f32 %v5810_v2, 0.0  ;;  %v5650_v3 = vadd.f32 %v5572_v62, %v16110_v25 }
 0xafa   : > { %v12507_v57 = vpop.f32.mrf.mxu1 }
 0xafb   : > { %v5811_v20 = vadd.f32 %v5735_v6, %v5650_v3  ;;  %12580 = vmatmul.mubr.msk.f32.gmra.mxu0 %vm5852_vm5, %v16349_v58  ;;  %12657 = vmatmul.mubr.msk.f32.gmra.mxu1 %vm5852_vm5, %v16349_v58  ;;  %v5775_v6 = vpop.permute.xlu1 %5774 }
 0xafc   : > { %v5577_v38 = vpop.f32.mrf.mxu1  ;;  %12582 = vmatprep.mubr.msk.f32.mxu0 %vm13581_vm2, %v18099_v40  ;;  %12659 = vmatprep.mubr.msk.f32.mxu1 %vm13581_vm2, %v18099_v40 }
 0xafd   : > { %v16360_v8 = vmax.f32 %v5811_v20, 0.0  ;;  %v5651_v25 = vadd.f32 %v5577_v38, %v16113_v19 }
 0xafe   : > { %v12510_v15 = vpop.f32.mrf.mxu1 }
 0xaff   : > { %v5812_v33 = vadd.f32 %v5740_v14, %v5651_v25  ;;  %12583 = vmatmul.mubr.msk.f32.gmra.mxu0 %vm5852_vm5, %v16360_v8  ;;  %12660 = vmatmul.mubr.msk.f32.gmra.mxu1 %vm5852_vm5, %v16360_v8  ;;  %v5780_v14 = vpop.permute.xlu0 %5779 }
 0xb00   : > { %v5582_v4 = vpop.f32.mrf.mxu1  ;;  %12585 = vmatprep.mubr.msk.f32.mxu0 %vm13581_vm2, %v18099_v40  ;;  %12662 = vmatprep.mubr.msk.f32.mxu1 %vm13581_vm2, %v18099_v40 }
 0xb01   : > { %v16371_v29 = vmax.f32 %v5812_v33, 0.0  ;;  %v5652_v19 = vadd.f32 %v5582_v4, %v16116_v61 }
 0xb02   : > { %v12513_v12 = vpop.f32.mrf.mxu1 }
 0xb03   : > { %v5813_v49 = vadd.f32 %v5745_v36, %v5652_v19  ;;  %12586 = vmatmul.mubr.msk.f32.gmra.mxu0 %vm5852_vm5, %v16371_v29  ;;  %12663 = vmatmul.mubr.msk.f32.gmra.mxu1 %vm5852_vm5, %v16371_v29  ;;  %v5785_v36 = vpop.permute.xlu1 %5784 }
 0xb04   : > { %v5587_v21 = vpop.f32.mrf.mxu1  ;;  %12588 = vmatprep.mubr.msk.f32.mxu0 %vm13581_vm2, %v18099_v40  ;;  %12665 = vmatprep.mubr.msk.f32.mxu1 %vm13581_vm2, %v18099_v40 }
 0xb05   : > { %v16382_v30 = vmax.f32 %v5813_v49, 0.0  ;;  %v5653_v61 = vadd.f32 %v5587_v21, %v16119_v9 }
 0xb06   : > { %v12516_v39 = vpop.f32.mrf.mxu1 }
 0xb07   : > { %v5814_v42 = vadd.f32 %v5750_v18, %v5653_v61  ;;  %12589 = vmatmul.mubr.msk.f32.gmra.mxu0 %vm5852_vm5, %v16382_v30  ;;  %12666 = vmatmul.mubr.msk.f32.gmra.mxu1 %vm5852_vm5, %v16382_v30  ;;  %v5790_v18 = vpop.permute.xlu0 %5789 }
 0xb08   : > { %v5592_v10 = vpop.f32.mrf.mxu1  ;;  %12591 = vmatprep.mubr.msk.f32.mxu0 %vm13581_vm2, %v18099_v40  ;;  %12668 = vmatprep.mubr.msk.f32.mxu1 %vm13581_vm2, %v18099_v40 }
 0xb09   : > { %v16393_v60 = vmax.f32 %v5814_v42, 0.0  ;;  %v5654_v9 = vadd.f32 %v5592_v10, %v16122_v31 }
 0xb0a   : > { %v12519_v17 = vpop.f32.mrf.mxu1 }
 0xb0b   : > { %v5815_v53 = vadd.f32 %v5755_v46, %v5654_v9  ;;  %12592 = vmatmul.mubr.msk.f32.gmra.mxu0 %vm5852_vm5, %v16393_v60  ;;  %12669 = vmatmul.mubr.msk.f32.gmra.mxu1 %vm5852_vm5, %v16393_v60  ;;  %v5795_v46 = vpop.permute.xlu1 %5794 }
 0xb0c   : > { %v5597_v54 = vpop.f32.mrf.mxu1  ;;  %12594 = vmatprep.mubr.msk.f32.mxu0 %vm13581_vm2, %v18099_v40  ;;  %12671 = vmatprep.mubr.msk.f32.mxu1 %vm13581_vm2, %v18099_v40 }
 0xb0d   : > { %v16404_v0 = vmax.f32 %v5815_v53, 0.0  ;;  %v5655_v31 = vadd.f32 %v5597_v54, %v16125_v55 }
 0xb0e   : > { %v12522_v7 = vpop.f32.mrf.mxu1 }
 0xb0f   : > { %v5816_v50 = vadd.f32 %v5760_v32, %v5655_v31  ;;  %12595 = vmatmul.mubr.msk.f32.gmra.mxu0 %vm5852_vm5, %v16404_v0  ;;  %12672 = vmatmul.mubr.msk.f32.gmra.mxu1 %vm5852_vm5, %v16404_v0  ;;  %v5800_v32 = vpop.permute.xlu0 %5799 }
 0xb10   : > { %v5602_v27 = vpop.f32.mrf.mxu1  ;;  %12597 = vmatprep.mubr.msk.f32.mxu0 %vm13581_vm2, %v18099_v40  ;;  %12674 = vmatprep.mubr.msk.f32.mxu1 %vm13581_vm2, %v18099_v40 }
 0xb11   : > { %v16415_v63 = vmax.f32 %v5816_v50, 0.0  ;;  %v5656_v55 = vadd.f32 %v5602_v27, %v16128_v24 }
 0xb12   : > { %v12525_v28 = vpop.f32.mrf.mxu1 }
 0xb13   : > { %v5817_v56 = vadd.f32 %v5765_v47, %v5656_v55  ;;  %12598 = vmatmul.mubr.msk.f32.gmra.mxu0 %vm5852_vm5, %v16415_v63  ;;  %12675 = vmatmul.mubr.msk.f32.gmra.mxu1 %vm5852_vm5, %v16415_v63  ;;  %v6107_v55 = vld [vmem:[#allocation12 + $0x8] sm:$0xff] }
 0xb14   : > { %v5607_v51 = vpop.f32.mrf.mxu1  ;;  %12600 = vmatprep.mubr.msk.f32.mxu0 %vm13581_vm2, %v18099_v40  ;;  %12677 = vmatprep.mubr.msk.f32.mxu1 %vm13581_vm2, %v18099_v40 }
 0xb15   : > { %v16426_v44 = vmax.f32 %v5817_v56, 0.0  ;;  %v5657_v24 = vadd.f32 %v5607_v51, %v16131_v23 }
 0xb16   : > { %v12528_v5 = vpop.f32.mrf.mxu1 }
 0xb17   : > { %v5818_v2 = vadd.f32 %v5770_v48, %v5657_v24  ;;  %12601 = vmatmul.mubr.msk.f32.gmra.mxu0 %vm5852_vm5, %v16426_v44  ;;  %12678 = vmatmul.mubr.msk.f32.gmra.mxu1 %vm5852_vm5, %v16426_v44 }
 0xb18   : > { %v5612_v62 = vpop.f32.mrf.mxu1  ;;  %12603 = vmatprep.mubr.msk.f32.mxu0 %vm13581_vm2, %v18099_v40  ;;  %12680 = vmatprep.mubr.msk.f32.mxu1 %vm13581_vm2, %v18099_v40 }
 0xb19   : > { %v16437_v3 = vmax.f32 %v5818_v2, 0.0  ;;  %v5658_v23 = vadd.f32 %v5612_v62, %v16133_v16 }
 0xb1a   : > { %v12531_v57 = vpop.f32.mrf.mxu1 }
 0xb1b   : > { %v5819_v20 = vadd.f32 %v5775_v6, %v5658_v23  ;;  %12604 = vmatmul.mubr.msk.f32.gmra.mxu0 %vm5852_vm5, %v16437_v3  ;;  %12681 = vmatmul.mubr.msk.f32.gmra.mxu1 %vm5852_vm5, %v16437_v3 }
 0xb1c   : > { %v5617_v38 = vpop.f32.mrf.mxu1  ;;  %12606 = vmatprep.mubr.msk.f32.mxu0 %vm13581_vm2, %v18099_v40  ;;  %12683 = vmatprep.mubr.msk.f32.mxu1 %vm13581_vm2, %v18099_v40 }
 0xb1d   : > { %v16448_v25 = vmax.f32 %v5819_v20, 0.0  ;;  %v5659_v16 = vadd.f32 %v5617_v38, %v16135_v35 }
 0xb1e   : > { %v12534_v15 = vpop.f32.mrf.mxu1 }
 0xb1f   : > { %v5820_v33 = vadd.f32 %v5780_v14, %v5659_v16  ;;  %12607 = vmatmul.mubr.msk.f32.gmra.mxu0 %vm5852_vm5, %v16448_v25  ;;  %12684 = vmatmul.mubr.msk.f32.gmra.mxu1 %vm5852_vm5, %v16448_v25 }
 0xb20   : > { %v5622_v4 = vpop.f32.mrf.mxu1  ;;  %12609 = vmatprep.mubr.msk.f32.mxu0 %vm13581_vm2, %v18099_v40  ;;  %12686 = vmatprep.mubr.msk.f32.mxu1 %vm13581_vm2, %v18099_v40 }
 0xb21   : > { %v16459_v19 = vmax.f32 %v5820_v33, 0.0  ;;  %v5660_v35 = vadd.f32 %v5622_v4, %v16137_v11 }
 0xb22   : > { %v12537_v12 = vpop.f32.mrf.mxu1 }
 0xb23   : > { %v5821_v49 = vadd.f32 %v5785_v36, %v5660_v35  ;;  %12610 = vmatmul.mubr.msk.f32.gmra.mxu0 %vm5852_vm5, %v16459_v19  ;;  %12687 = vmatmul.mubr.msk.f32.gmra.mxu1 %vm5852_vm5, %v16459_v19 }
 0xb24   : > { %v5627_v21 = vpop.f32.mrf.mxu1  ;;  %12612 = vmatprep.mubr.msk.f32.mxu0 %vm13581_vm2, %v18099_v40  ;;  %12689 = vmatprep.mubr.msk.f32.mxu1 %vm13581_vm2, %v18099_v40 }
 0xb25   : > { %v16470_v61 = vmax.f32 %v5821_v49, 0.0  ;;  %v5661_v11 = vadd.f32 %v5627_v21, %v16139_v59 }
 0xb26   : > { %v12540_v39 = vpop.f32.mrf.mxu1 }
 0xb27   : > { %v5822_v42 = vadd.f32 %v5790_v18, %v5661_v11  ;;  %12613 = vmatmul.mubr.msk.f32.gmra.mxu0 %vm5852_vm5, %v16470_v61  ;;  %12690 = vmatmul.mubr.msk.f32.gmra.mxu1 %vm5852_vm5, %v16470_v61 }
 0xb28   : > { %v5632_v10 = vpop.f32.mrf.mxu1  ;;  %12615 = vmatprep.mubr.msk.f32.mxu0 %vm13581_vm2, %v18099_v40  ;;  %12692 = vmatprep.mubr.msk.f32.mxu1 %vm13581_vm2, %v18099_v40 }
 0xb29   : > { %v16481_v9 = vmax.f32 %v5822_v42, 0.0  ;;  %v5662_v59 = vadd.f32 %v5632_v10, %v16141_v43 }
 0xb2a   : > { %v12543_v17 = vpop.f32.mrf.mxu1 }
 0xb2b   : > { %v5823_v53 = vadd.f32 %v5795_v46, %v5662_v59  ;;  %12616 = vmatmul.mubr.msk.f32.gmra.mxu0 %vm5852_vm5, %v16481_v9  ;;  %12693 = vmatmul.mubr.msk.f32.gmra.mxu1 %vm5852_vm5, %v16481_v9 }
 0xb2c   : > { %v5637_v54 = vpop.f32.mrf.mxu1  ;;  %12618 = vmatprep.mubr.msk.f32.mxu0 %vm13581_vm2, %v18099_v40  ;;  %12695 = vmatprep.mubr.msk.f32.mxu1 %vm13581_vm2, %v18099_v40 }
 0xb2d   : > { %v16492_v31 = vmax.f32 %v5823_v53, 0.0  ;;  %v5663_v43 = vadd.f32 %v5637_v54, %v16143_v22  ;;  %v6338_v22 = vld [vmem:[#allocation12 + $0x158] sm:$0xff] }
 0xb2e   : > { %v12546_v7 = vpop.f32.mrf.mxu1 }
 0xb2f   : > { %v5824_v50 = vadd.f32 %v5800_v32, %v5663_v43  ;;  %12619 = vmatmul.mubr.msk.f32.gmra.mxu0 %vm5852_vm5, %v16492_v31  ;;  %12696 = vmatmul.mubr.msk.f32.gmra.mxu1 %vm5852_vm5, %v16492_v31 }
 0xb30   : > { %12621 = vmatprep.mubr.msk.f32.mxu0 %vm13581_vm2, %v18099_v40  ;;  %12698 = vmatprep.mubr.msk.f32.mxu1 %vm13581_vm2, %v18099_v40 }
 0xb31   : > { %v16503_v27 = vmax.f32 %v5824_v50, 0.0 }
 0xb33   : > { %18130 = vst [vmem:[#allocation20_spill] sm:$0xff] %v16503_v27  ;;  %12622 = vmatmul.mubr.msk.f32.gmra.mxu0 %vm5852_vm5, %v16503_v27  ;;  %12699 = vmatmul.mubr.msk.f32.gmra.mxu1 %vm5852_vm5, %v16503_v27 }
 0xb34   : > { %10745 = vmatprep.mubr.msk.f32.mxu0 %vm6379_vm6, %v6338_v22  ;;  %10767 = vmatprep.mubr.msk.f32.mxu1 %vm6379_vm6, %v6107_v55 }
 0xb9b   : > { %v16511_v47 = vpop.f32.mrf.mxu0  ;;  %v16513_v28 = vpop.f32.mrf.mxu1 }
 0xb9d   : > { %v12557_v56 = vpop.f32.mrf.mxu0  ;;  %v12634_v51 = vpop.f32.mrf.mxu1 }
 0xb9f   : > { %v16515_v24 = vpop.f32.mrf.mxu0  ;;  %v16517_v48 = vpop.f32.mrf.mxu1 }
 0xba1   : > { %v12560_v5 = vpop.f32.mrf.mxu0  ;;  %v12637_v2 = vpop.f32.mrf.mxu1 }
 0xba3   : > { %v16519_v62 = vpop.f32.mrf.mxu0  ;;  %v16521_v23 = vpop.f32.mrf.mxu1 }
 0xba5   : > { %v12563_v6 = vpop.f32.mrf.mxu0  ;;  %v12640_v57 = vpop.f32.mrf.mxu1 }
 0xba7   : > { %v16523_v20 = vpop.f32.mrf.mxu0  ;;  %v16525_v38 = vpop.f32.mrf.mxu1 }
 0xba9   : > { %v12566_v16 = vpop.f32.mrf.mxu0  ;;  %v12643_v14 = vpop.f32.mrf.mxu1 }
 0xbab   : > { %v16527_v15 = vpop.f32.mrf.mxu0  ;;  %v16529_v33 = vpop.f32.mrf.mxu1 }
 0xbad   : > { %v12569_v4 = vpop.f32.mrf.mxu0  ;;  %v12646_v35 = vpop.f32.mrf.mxu1 }
 0xbaf   : > { %v16531_v36 = vpop.f32.mrf.mxu0  ;;  %v16533_v12 = vpop.f32.mrf.mxu1 }
 0xbb1   : > { %v12572_v49 = vpop.f32.mrf.mxu0  ;;  %v12649_v21 = vpop.f32.mrf.mxu1 }
 0xbb3   : > { %v16535_v11 = vpop.f32.mrf.mxu0  ;;  %v16537_v18 = vpop.f32.mrf.mxu1 }
 0xbb5   : > { %v12575_v39 = vpop.f32.mrf.mxu0  ;;  %v12652_v42 = vpop.f32.mrf.mxu1 }
 0xbb7   : > { %v16539_v10 = vpop.f32.mrf.mxu0  ;;  %v16541_v59 = vpop.f32.mrf.mxu1 }
 0xbb9   : > { %v12578_v46 = vpop.f32.mrf.mxu0  ;;  %v12655_v17 = vpop.f32.mrf.mxu1 }
 0xbbb   : > { %v16543_v53 = vpop.f32.mrf.mxu0  ;;  %v16545_v54 = vpop.f32.mrf.mxu1 }
 0xbbd   : > { %v12581_v43 = vpop.f32.mrf.mxu0  ;;  %v12658_v32 = vpop.f32.mrf.mxu1 }
 0xbbf   : > { %v6037_v7 = vpop.f32.mrf.mxu0  ;;  %v6267_v50 = vpop.f32.mrf.mxu1 }
 0xbc1   : > { %v12584_v22 = vpop.f32.mrf.mxu0  ;;  %v12661_v55 = vpop.f32.mrf.mxu1 }
 0xbc3   : > { %v6042_v56 = vpop.f32.mrf.mxu0  ;;  %v6272_v51 = vpop.f32.mrf.mxu1 }
 0xbc5   : > { %v12587_v5 = vpop.f32.mrf.mxu0  ;;  %v12664_v2 = vpop.f32.mrf.mxu1 }
 0xbc7   : > { %v6047_v6 = vpop.f32.mrf.mxu0  ;;  %v6277_v57 = vpop.f32.mrf.mxu1 }
 0xbc9   : > { %v12590_v16 = vpop.f32.mrf.mxu0  ;;  %v12667_v14 = vpop.f32.mrf.mxu1 }
 0xbca   : > { %v18131_v16 = vmov 0.0  }
 0xbcb   : > { %v6052_v4 = vpop.f32.mrf.mxu0  ;;  %v6282_v35 = vpop.f32.mrf.mxu1 }
 0xbcd   : > { %v12593_v49 = vpop.f32.mrf.mxu0  ;;  %v12670_v21 = vpop.f32.mrf.mxu1 }
 0xbcf   : > { %v6057_v39 = vpop.f32.mrf.mxu0  ;;  %v6287_v42 = vpop.f32.mrf.mxu1 }
 0xbd1   : > { %v12596_v46 = vpop.f32.mrf.mxu0  ;;  %v12673_v17 = vpop.f32.mrf.mxu1 }
 0xbd2   : > { %v6108_v17 = vld [vmem:[#allocation12 + $0x10] sm:$0xff] }
 0xbd3   : > { %v6062_v43 = vpop.f32.mrf.mxu0  ;;  %v6292_v32 = vpop.f32.mrf.mxu1 }
 0xbd5   : > { %v12599_v22 = vpop.f32.mrf.mxu0  ;;  %v12676_v55 = vpop.f32.mrf.mxu1 }
 0xbd6   : > { %v10790_v22 = vld [vmem:[%s18129_s27 + $0x50] sm:$0xff]  ;;  %v6341_v55 = vld [vmem:[#allocation12 + $0x170] sm:$0xff] }
 0xbd7   : > { %v6067_v40 = vpop.f32.mrf.mxu0  ;;  %v6297_v27 = vpop.f32.mrf.mxu1 }
 0xbd8   : > { %6448 = vmatpush1.msra.mxu0 %v6297_v27  ;;  %6684 = vmatpush1.msra.mxu1 %v6067_v40 }
 0xbd9   : > { %v12602_v5 = vpop.f32.mrf.mxu0  ;;  %v12679_v2 = vpop.f32.mrf.mxu1  ;;  %6449 = vmatprep.subr.mxu0 %v18131_v16  ;;  %6685 = vmatprep.subr.mxu1 %v18131_v16 }
 0xbda   : > { %6450 = vmatpush1.msra.mxu0 %v6292_v32  ;;  %6686 = vmatpush1.msra.mxu1 %v6062_v43  ;;  %v6342_v43 = vld [vmem:[#allocation12 + $0x178] sm:$0xff]  ;;  %v6111_v32 = vld [vmem:[#allocation12 + $0x28] sm:$0xff]  ;;  %v6110_v5 = vld [vmem:[#allocation12 + $0x20] sm:$0xff] }
 0xbdb   : > { %v16549_v14 = vpop.f32.mrf.mxu0  ;;  %v16551_v49 = vpop.f32.mrf.mxu1  ;;  %6451 = vmatprep.subr.mxu0 %v18131_v16  ;;  %6687 = vmatprep.subr.mxu1 %v18131_v16  ;;  %v6344_v2 = vld [vmem:[#allocation12 + $0x188] sm:$0xff] }
 0xbdc   : > { %6452 = vmatpush1.msra.mxu0 %v6287_v42  ;;  %6688 = vmatpush1.msra.mxu1 %v6057_v39 }
 0xbdd   : > { %v12605_v27 = vpop.f32.mrf.mxu0  ;;  %v12682_v40 = vpop.f32.mrf.mxu1  ;;  %6453 = vmatprep.subr.mxu0 %v18131_v16  ;;  %6689 = vmatprep.subr.mxu1 %v18131_v16 }
 0xbde   : > { %6454 = vmatpush1.msra.mxu0 %v6282_v35  ;;  %6690 = vmatpush1.msra.mxu1 %v6052_v4  ;;  %v6343_v27 = vld [vmem:[#allocation12 + $0x180] sm:$0xff]  ;;  %v6112_v40 = vld [vmem:[#allocation12 + $0x30] sm:$0xff] }
 0xbdf   : > { %v16557_v21 = vpop.f32.mrf.mxu0  ;;  %v16559_v46 = vpop.f32.mrf.mxu1  ;;  %6455 = vmatprep.subr.mxu0 %v18131_v16  ;;  %6691 = vmatprep.subr.mxu1 %v18131_v16 }
 0xbe0   : > { %6456 = vmatpush1.msra.mxu0 %v6277_v57  ;;  %6692 = vmatpush1.msra.mxu1 %v6047_v6 }
 0xbe1   : > { %v12608_v42 = vpop.f32.mrf.mxu0  ;;  %v12685_v39 = vpop.f32.mrf.mxu1  ;;  %6457 = vmatprep.subr.mxu0 %v18131_v16  ;;  %6693 = vmatprep.subr.mxu1 %v18131_v16 }
 0xbe2   : > { %6458 = vmatpush1.msra.mxu0 %v6272_v51  ;;  %6694 = vmatpush1.msra.mxu1 %v6042_v56  ;;  %v10788_v42 = vld [vmem:[%s18129_s27 + $0x40] sm:$0xff]  ;;  %v6345_v39 = vld [vmem:[#allocation12 + $0x190] sm:$0xff] }
 0xbe3   : > { %v16565_v35 = vpop.f32.mrf.mxu0  ;;  %v16567_v4 = vpop.f32.mrf.mxu1  ;;  %6459 = vmatprep.subr.mxu0 %v18131_v16  ;;  %6695 = vmatprep.subr.mxu1 %v18131_v16 }
 0xbe4   : > { %6460 = vmatpush1.msra.mxu0 %v6267_v50  ;;  %6696 = vmatpush1.msra.mxu1 %v6037_v7 }
 0xbe5   : > { %v12611_v57 = vpop.f32.mrf.mxu0  ;;  %v12688_v6 = vpop.f32.mrf.mxu1  ;;  %6461 = vmatprep.subr.mxu0 %v18131_v16  ;;  %6697 = vmatprep.subr.mxu1 %v18131_v16 }
 0xbe6   : > { %6462 = vmatpush1.msra.mxu0 %v16545_v54  ;;  %6698 = vmatpush1.msra.mxu1 %v16543_v53  ;;  %v6117_v57 = vld [vmem:[#allocation12 + $0x58] sm:$0xff]  ;;  %v6347_v6 = vld [vmem:[#allocation12 + $0x1a0] sm:$0xff] }
 0xbe7   : > { %v16575_v56 = vpop.f32.mrf.mxu0  ;;  %v6317_v51 = vpop.f32.mrf.mxu1  ;;  %6463 = vmatprep.subr.mxu0 %v18131_v16  ;;  %6699 = vmatprep.subr.mxu1 %v18131_v16 }
 0xbe8   : > { %6464 = vmatpush1.msra.mxu0 %v16541_v59  ;;  %6700 = vmatpush1.msra.mxu1 %v16539_v10 }
 0xbe9   : > { %v12614_v7 = vpop.f32.mrf.mxu0  ;;  %v12691_v50 = vpop.f32.mrf.mxu1  ;;  %6465 = vmatprep.subr.mxu0 %v18131_v16  ;;  %6701 = vmatprep.subr.mxu1 %v18131_v16 }
 0xbea   : > { %6466 = vmatpush1.msra.mxu0 %v16537_v18  ;;  %6702 = vmatpush1.msra.mxu1 %v16535_v11  ;;  %v6119_v7 = vld [vmem:[#allocation12 + $0x68] sm:$0xff]  ;;  %v6349_v50 = vld [vmem:[#allocation12 + $0x1b0] sm:$0xff] }
 0xbeb   : > { %v6092_v53 = vpop.f32.mrf.mxu0  ;;  %v6322_v54 = vpop.f32.mrf.mxu1  ;;  %6467 = vmatprep.subr.mxu0 %v18131_v16  ;;  %6703 = vmatprep.subr.mxu1 %v18131_v16 }
 0xbec   : > { %6468 = vmatpush1.msra.mxu0 %v16533_v12  ;;  %6704 = vmatpush1.msra.mxu1 %v16531_v36 }
 0xbed   : > { %v12617_v10 = vpop.f32.mrf.mxu0  ;;  %v12694_v59 = vpop.f32.mrf.mxu1  ;;  %6469 = vmatprep.subr.mxu0 %v18131_v16  ;;  %6705 = vmatprep.subr.mxu1 %v18131_v16 }
 0xbee   : > { %6470 = vmatpush1.msra.mxu0 %v16529_v33  ;;  %6706 = vmatpush1.msra.mxu1 %v16527_v15  ;;  %v6121_v10 = vld [vmem:[#allocation12 + $0x78] sm:$0xff]  ;;  %v6351_v59 = vld [vmem:[#allocation12 + $0x1c0] sm:$0xff] }
 0xbef   : > { %v6097_v11 = vpop.f32.mrf.mxu0  ;;  %v6327_v18 = vpop.f32.mrf.mxu1  ;;  %6471 = vmatprep.subr.mxu0 %v18131_v16  ;;  %6707 = vmatprep.subr.mxu1 %v18131_v16 }
 0xbf0   : > { %6472 = vmatpush1.msra.mxu0 %v16525_v38  ;;  %6708 = vmatpush1.msra.mxu1 %v16523_v20 }
 0xbf1   : > { %v12620_v36 = vpop.f32.mrf.mxu0  ;;  %v12697_v12 = vpop.f32.mrf.mxu1  ;;  %6473 = vmatprep.subr.mxu0 %v18131_v16  ;;  %6709 = vmatprep.subr.mxu1 %v18131_v16 }
 0xbf2   : > { %6474 = vmatpush1.msra.mxu0 %v16521_v23  ;;  %6710 = vmatpush1.msra.mxu1 %v16519_v62  ;;  %v10791_v62 = vld [vmem:[%s18129_s27 + $0x58] sm:$0x3f]  ;;  %v6123_v36 = vld [vmem:[#allocation12 + $0x88] sm:$0xff]  ;;  %v6353_v12 = vld [vmem:[#allocation12 + $0x1d0] sm:$0xff] }
 0xbf3   : > { %v6102_v15 = vpop.f32.mrf.mxu0  ;;  %v6332_v33 = vpop.f32.mrf.mxu1  ;;  %6475 = vmatprep.subr.mxu0 %v18131_v16  ;;  %6711 = vmatprep.subr.mxu1 %v18131_v16  ;;  %v6339_v23 = vld [vmem:[#allocation12 + $0x160] sm:$0xff] }
 0xbf4   : > { %6476 = vmatpush1.msra.mxu0 %v16517_v48  ;;  %6712 = vmatpush1.msra.mxu1 %v16515_v24  ;;  %v6340_v24 = vld [vmem:[#allocation12 + $0x168] sm:$0xff]  ;;  %v6109_v48 = vld [vmem:[#allocation12 + $0x18] sm:$0xff] }
 0xbf5   : > { %v12623_v20 = vpop.f32.mrf.mxu0  ;;  %v12700_v38 = vpop.f32.mrf.mxu1  ;;  %6477 = vmatprep.subr.mxu0 %v18131_v16  ;;  %6713 = vmatprep.subr.mxu1 %v18131_v16 }
 0xbf6   : > { %6478 = vmatpush1.msra.mxu0 %v16513_v28  ;;  %6714 = vmatpush1.msra.mxu1 %v16511_v47  ;;  %v6337_v47 = vld [vmem:[#allocation12 + $0x150] sm:$0xff]  ;;  %v6106_v28 = vld [vmem:[#allocation12] sm:$0xff]  ;;  %v6125_v20 = vld [vmem:[#allocation12 + $0x98] sm:$0xff] }
 0xbf7   : > { %6497 = vmatprep.subr.mxu0 %v18131_v16  ;;  %6733 = vmatprep.subr.mxu1 %v18131_v16  ;;  %v6355_v38 = vld [vmem:[#allocation12 + $0x1e0] sm:$0xff] }
 0xbf8   : > { %10744 = vmatpush2.msk.msra.mxu0 %vm6443_vm7, %v6332_v33  ;;  %10766 = vmatpush2.msk.msra.mxu1 %vm6443_vm7, %v6102_v15  ;;  %v6122_v15 = vld [vmem:[#allocation12 + $0x80] sm:$0xff]  ;;  %v6356_v33 = vld [vmem:[#allocation12 + $0x1e8] sm:$0xff] }
 0xbf9   : > { %6499 = vmatprep.subr.mxu0 %v18131_v16  ;;  %6735 = vmatprep.subr.mxu1 %v18131_v16 }
 0xbfa   : > { %6500 = vmatpush2.msra.mxu0 %v6327_v18  ;;  %6736 = vmatpush2.msra.mxu1 %v6097_v11  ;;  %v6120_v11 = vld [vmem:[#allocation12 + $0x70] sm:$0xff]  ;;  %v6354_v18 = vld [vmem:[#allocation12 + $0x1d8] sm:$0xff] }
 0xbfb   : > { %6501 = vmatprep.subr.mxu0 %v18131_v16  ;;  %6737 = vmatprep.subr.mxu1 %v18131_v16 }
 0xbfc   : > { %6502 = vmatpush2.msra.mxu0 %v6322_v54  ;;  %6738 = vmatpush2.msra.mxu1 %v6092_v53  ;;  %v6118_v53 = vld [vmem:[#allocation12 + $0x60] sm:$0xff]  ;;  %v6352_v54 = vld [vmem:[#allocation12 + $0x1c8] sm:$0xff] }
 0xbfd   : > { %6503 = vmatprep.subr.mxu0 %v18131_v16  ;;  %6739 = vmatprep.subr.mxu1 %v18131_v16 }
 0xbfe   : > { %6504 = vmatpush2.msra.mxu0 %v6317_v51  ;;  %6740 = vmatpush2.msra.mxu1 %v16575_v56  ;;  %v6116_v56 = vld [vmem:[#allocation12 + $0x50] sm:$0xff]  ;;  %v6350_v51 = vld [vmem:[#allocation12 + $0x1b8] sm:$0xff] }
 0xbff   : > { %6505 = vmatprep.subr.mxu0 %v18131_v16  ;;  %6741 = vmatprep.subr.mxu1 %v18131_v16 }
 0xc00   : > { %6506 = vmatpush2.msra.mxu0 %v16567_v4  ;;  %6742 = vmatpush2.msra.mxu1 %v16565_v35  ;;  %v6114_v35 = vld [vmem:[#allocation12 + $0x40] sm:$0xff]  ;;  %v6348_v4 = vld [vmem:[#allocation12 + $0x1a8] sm:$0xff] }
 0xc01   : > { %6507 = vmatprep.subr.mxu0 %v18131_v16  ;;  %6743 = vmatprep.subr.mxu1 %v18131_v16 }
 0xc02   : > { %6508 = vmatpush2.msra.mxu0 %v16559_v46  ;;  %6744 = vmatpush2.msra.mxu1 %v16557_v21  ;;  %v6346_v21 = vld [vmem:[#allocation12 + $0x198] sm:$0xff]  ;;  %v6115_v46 = vld [vmem:[#allocation12 + $0x48] sm:$0xff] }
 0xc03   : > { %6509 = vmatprep.subr.mxu0 %v18131_v16  ;;  %6745 = vmatprep.subr.mxu1 %v18131_v16 }
 0xc04   : > { %6510 = vmatpush2.msra.mxu0 %v16551_v49  ;;  %6746 = vmatpush2.msra.mxu1 %v16549_v14  ;;  %v6113_v14 = vld [vmem:[#allocation12 + $0x38] sm:$0xff]  ;;  %v10789_v49 = vld [vmem:[%s18129_s27 + $0x48] sm:$0xff] }
 0xc05   : > { %6512 = vmatmul.mubr.f32.vlgmr.msra.gmra.mxu0 %v6337_v47  ;;  %6748 = vmatmul.mubr.f32.vlgmr.msra.gmra.mxu1 %v6106_v28  ;;  %v6124_v47 = vld [vmem:[#allocation12 + $0x90] sm:$0xff]  ;;  %v6358_v28 = vld [vmem:[#allocation12 + $0x1f8] sm:$0xff] }
 0xc06   : > { %10746 = vmatprep.mubr.msk.f32.mxu0 %vm6379_vm6, %v6340_v24  ;;  %10768 = vmatprep.mubr.msk.f32.mxu1 %vm6379_vm6, %v6109_v48  ;;  %v6127_v24 = vld [vmem:[#allocation12 + $0xa8] sm:$0xff]  ;;  %v6357_v48 = vld [vmem:[#allocation12 + $0x1f0] sm:$0xff] }
 0xc07   : > { %12701 = vmatprep.subr.mxu0 %v18131_v16  ;;  %7150 = vmatprep.subr.mxu1 %v18131_v16 }
 0xc08   : > { %12702 = vmatpush3.msk.msra.mxu0 %vm5922_vm4, %v10791_v62  ;;  %v6126_v62 = vld [vmem:[#allocation12 + $0xa0] sm:$0xff] }
 0xc09   : > { %6517 = vmatmul.mubr.f32.gmra.mxu0 %v6339_v23  ;;  %6753 = vmatmul.mubr.f32.gmra.mxu1 %v6108_v17  ;;  %v6360_v23 = vld [vmem:[#allocation12 + $0x208] sm:$0xff]  ;;  %v6129_v17 = vld [vmem:[#allocation12 + $0xb8] sm:$0xff] }
 0xc0a   : > { %10747 = vmatprep.mubr.msk.f32.mxu0 %vm6379_vm6, %v6342_v43  ;;  %10769 = vmatprep.mubr.msk.f32.mxu1 %vm6379_vm6, %v6111_v32  ;;  %v6359_v43 = vld [vmem:[#allocation12 + $0x200] sm:$0xff]  ;;  %v6128_v32 = vld [vmem:[#allocation12 + $0xb0] sm:$0xff] }
 0xc0b   : > { %12703 = vmatprep.subr.mxu0 %v18131_v16 }
 0xc0c   : > { %12704 = vmatpush3.msra.mxu0 %v10790_v22  ;;  %v6362_v22 = vld [vmem:[#allocation12 + $0x218] sm:$0xff] }
 0xc0d   : > { %6522 = vmatmul.mubr.f32.gmra.mxu0 %v6341_v55  ;;  %6758 = vmatmul.mubr.f32.gmra.mxu1 %v6110_v5  ;;  %v6131_v55 = vld [vmem:[#allocation12 + $0xc8] sm:$0xff]  ;;  %v6361_v5 = vld [vmem:[#allocation12 + $0x210] sm:$0xff] }
 0xc0e   : > { %10748 = vmatprep.mubr.msk.f32.mxu0 %vm6379_vm6, %v6344_v2  ;;  %10770 = vmatprep.mubr.msk.f32.mxu1 %vm6379_vm6, %v6113_v14  ;;  %v6130_v2 = vld [vmem:[#allocation12 + $0xc0] sm:$0xff]  ;;  %v6364_v14 = vld [vmem:[#allocation12 + $0x228] sm:$0xff] }
 0xc0f   : > { %12705 = vmatprep.subr.mxu0 %v18131_v16 }
 0xc10   : > { %12706 = vmatpush3.msra.mxu0 %v10789_v49  ;;  %v6133_v49 = vld [vmem:[#allocation12 + $0xd8] sm:$0xff] }
 0xc11   : > { %6527 = vmatmul.mubr.f32.gmra.mxu0 %v6343_v27  ;;  %6763 = vmatmul.mubr.f32.gmra.mxu1 %v6112_v40  ;;  %v6363_v27 = vld [vmem:[#allocation12 + $0x220] sm:$0xff]  ;;  %v6132_v40 = vld [vmem:[#allocation12 + $0xd0] sm:$0xff] }
 0xc12   : > { %10749 = vmatprep.mubr.msk.f32.mxu0 %vm6379_vm6, %v6346_v21  ;;  %10771 = vmatprep.mubr.msk.f32.mxu1 %vm6379_vm6, %v6115_v46  ;;  %v6366_v21 = vld [vmem:[#allocation12 + $0x238] sm:$0xff]  ;;  %v6135_v46 = vld [vmem:[#allocation12 + $0xe8] sm:$0xff] }
 0xc13   : > { %12707 = vmatprep.subr.mxu0 %v18131_v16 }
 0xc14   : > { %12708 = vmatpush3.msra.mxu0 %v10788_v42  ;;  %v6365_v42 = vld [vmem:[#allocation12 + $0x230] sm:$0xff] }
 0xc15   : > { %6532 = vmatmul.mubr.f32.gmra.mxu0 %v6345_v39  ;;  %6768 = vmatmul.mubr.f32.gmra.mxu1 %v6114_v35  ;;  %v6134_v39 = vld [vmem:[#allocation12 + $0xe0] sm:$0xff]  ;;  %v6368_v35 = vld [vmem:[#allocation12 + $0x248] sm:$0xff] }
 0xc16   : > { %10750 = vmatprep.mubr.msk.f32.mxu0 %vm6379_vm6, %v6348_v4  ;;  %10772 = vmatprep.mubr.msk.f32.mxu1 %vm6379_vm6, %v6117_v57  ;;  %v6137_v4 = vld [vmem:[#allocation12 + $0xf8] sm:$0xff]  ;;  %v6367_v57 = vld [vmem:[#allocation12 + $0x240] sm:$0xff] }
 0xc17   : > { %12778 = vmatprep.subr.mxu0 %v18131_v16 }
 0xc19   : > { %6537 = vmatmul.mubr.f32.gmra.mxu0 %v6347_v6  ;;  %6773 = vmatmul.mubr.f32.gmra.mxu1 %v6116_v56  ;;  %v6136_v6 = vld [vmem:[#allocation12 + $0xf0] sm:$0xff]  ;;  %v6370_v56 = vld [vmem:[#allocation12 + $0x258] sm:$0xff] }
 0xc1a   : > { %10751 = vmatprep.mubr.msk.f32.mxu0 %vm6379_vm6, %v6350_v51  ;;  %10773 = vmatprep.mubr.msk.f32.mxu1 %vm6379_vm6, %v6119_v7  ;;  %v6139_v51 = vld [vmem:[#allocation12 + $0x108] sm:$0xff]  ;;  %v6369_v7 = vld [vmem:[#allocation12 + $0x250] sm:$0xff] }
 0xc1d   : > { %6542 = vmatmul.mubr.f32.gmra.mxu0 %v6349_v50  ;;  %6778 = vmatmul.mubr.f32.gmra.mxu1 %v6118_v53  ;;  %v6138_v50 = vld [vmem:[#allocation12 + $0x100] sm:$0xff]  ;;  %v6372_v53 = vld [vmem:[#allocation12 + $0x268] sm:$0xff] }
 0xc1e   : > { %10752 = vmatprep.mubr.msk.f32.mxu0 %vm6379_vm6, %v6352_v54  ;;  %10774 = vmatprep.mubr.msk.f32.mxu1 %vm6379_vm6, %v6121_v10  ;;  %v6141_v54 = vld [vmem:[#allocation12 + $0x118] sm:$0xff]  ;;  %v6371_v10 = vld [vmem:[#allocation12 + $0x260] sm:$0xff] }
 0xc21   : > { %6547 = vmatmul.mubr.f32.gmra.mxu0 %v6351_v59  ;;  %6783 = vmatmul.mubr.f32.gmra.mxu1 %v6120_v11  ;;  %v6140_v59 = vld [vmem:[#allocation12 + $0x110] sm:$0xff]  ;;  %v6374_v11 = vld [vmem:[#allocation12 + $0x278] sm:$0xff] }
 0xc22   : > { %10753 = vmatprep.mubr.msk.f32.mxu0 %vm6379_vm6, %v6354_v18  ;;  %10775 = vmatprep.mubr.msk.f32.mxu1 %vm6379_vm6, %v6123_v36  ;;  %v6143_v18 = vld [vmem:[#allocation12 + $0x128] sm:$0xff]  ;;  %v6373_v36 = vld [vmem:[#allocation12 + $0x270] sm:$0xff] }
 0xc25   : > { %6552 = vmatmul.mubr.f32.gmra.mxu0 %v6353_v12  ;;  %6788 = vmatmul.mubr.f32.gmra.mxu1 %v6122_v15  ;;  %v6142_v12 = vld [vmem:[#allocation12 + $0x120] sm:$0xff]  ;;  %v6376_v15 = vld [vmem:[#allocation12 + $0x288] sm:$0xff] }
 0xc26   : > { %10754 = vmatprep.mubr.msk.f32.mxu0 %vm6379_vm6, %v6356_v33  ;;  %10776 = vmatprep.mubr.msk.f32.mxu1 %vm6379_vm6, %v6125_v20  ;;  %v6145_v33 = vld [vmem:[#allocation12 + $0x138] sm:$0xff]  ;;  %v6375_v20 = vld [vmem:[#allocation12 + $0x280] sm:$0xff] }
 0xc29   : > { %6557 = vmatmul.mubr.f32.gmra.mxu0 %v6355_v38  ;;  %6793 = vmatmul.mubr.f32.gmra.mxu1 %v6124_v47  ;;  %v6144_v38 = vld [vmem:[#allocation12 + $0x130] sm:$0xff]  ;;  %v6378_v47 = vld [vmem:[#allocation12 + $0x298] sm:$0xff] }
 0xc2a   : > { %10755 = vmatprep.mubr.msk.f32.mxu0 %vm6379_vm6, %v6358_v28  ;;  %10777 = vmatprep.mubr.msk.f32.mxu1 %vm6379_vm6, %v6127_v24  ;;  %v6147_v28 = vld [vmem:[#allocation12 + $0x148] sm:$0xff]  ;;  %v6377_v24 = vld [vmem:[#allocation12 + $0x290] sm:$0xff] }
 0xc2d   : > { %6562 = vmatmul.mubr.f32.gmra.mxu0 %v6357_v48  ;;  %6798 = vmatmul.mubr.f32.gmra.mxu1 %v6126_v62  ;;  %v6146_v48 = vld [vmem:[#allocation12 + $0x140] sm:$0xff] }
 0xc2e   : > { %10756 = vmatprep.mubr.msk.f32.mxu0 %vm6379_vm6, %v6360_v23  ;;  %10778 = vmatprep.mubr.msk.f32.mxu1 %vm6379_vm6, %v6129_v17  ;;  %v10841_v62 = vld [vmem:[%s18129_s27 + $0x78] sm:$0x3f]  ;;  %v10840_v23 = vld [vmem:[%s18129_s27 + $0x70] sm:$0xff]  ;;  %v10839_v17 = vld [vmem:[%s18129_s27 + $0x68] sm:$0xff] }
 0xc31   : > { %6567 = vmatmul.mubr.f32.gmra.mxu0 %v6359_v43  ;;  %6803 = vmatmul.mubr.f32.gmra.mxu1 %v6128_v32  ;;  %v10838_v43 = vld [vmem:[%s18129_s27 + $0x60] sm:$0xff]  ;;  %v18132_v32 = vld [vmem:[#allocation20_spill] sm:$0xff] }
 0xc32   : > { %10757 = vmatprep.mubr.msk.f32.mxu0 %vm6379_vm6, %v6362_v22  ;;  %10779 = vmatprep.mubr.msk.f32.mxu1 %vm6379_vm6, %v6131_v55  ;;  %v10891_v22 = vld [vmem:[%s18129_s27 + $0x98] sm:$0x3f]  ;;  %v10890_v55 = vld [vmem:[%s18129_s27 + $0x90] sm:$0xff] }
 0xc35   : > { %6572 = vmatmul.mubr.f32.gmra.mxu0 %v6361_v5  ;;  %6808 = vmatmul.mubr.f32.gmra.mxu1 %v6130_v2  ;;  %v10889_v5 = vld [vmem:[%s18129_s27 + $0x88] sm:$0xff]  ;;  %v10888_v2 = vld [vmem:[%s18129_s27 + $0x80] sm:$0xff] }
 0xc36   : > { %10758 = vmatprep.mubr.msk.f32.mxu0 %vm6379_vm6, %v6364_v14  ;;  %10780 = vmatprep.mubr.msk.f32.mxu1 %vm6379_vm6, %v6133_v49 }
 0xc39   : > { %6577 = vmatmul.mubr.f32.gmra.mxu0 %v6363_v27  ;;  %6813 = vmatmul.mubr.f32.gmra.mxu1 %v6132_v40 }
 0xc3a   : > { %10759 = vmatprep.mubr.msk.f32.mxu0 %vm6379_vm6, %v6366_v21  ;;  %10781 = vmatprep.mubr.msk.f32.mxu1 %vm6379_vm6, %v6135_v46 }
 0xc3d   : > { %6582 = vmatmul.mubr.f32.gmra.mxu0 %v6365_v42  ;;  %6818 = vmatmul.mubr.f32.gmra.mxu1 %v6134_v39 }
 0xc3e   : > { %10760 = vmatprep.mubr.msk.f32.mxu0 %vm6379_vm6, %v6368_v35  ;;  %10782 = vmatprep.mubr.msk.f32.mxu1 %vm6379_vm6, %v6137_v4 }
 0xc41   : > { %6587 = vmatmul.mubr.f32.gmra.mxu0 %v6367_v57  ;;  %6823 = vmatmul.mubr.f32.gmra.mxu1 %v6136_v6 }
 0xc42   : > { %10761 = vmatprep.mubr.msk.f32.mxu0 %vm6379_vm6, %v6370_v56  ;;  %10783 = vmatprep.mubr.msk.f32.mxu1 %vm6379_vm6, %v6139_v51 }
 0xc45   : > { %6592 = vmatmul.mubr.f32.gmra.mxu0 %v6369_v7  ;;  %6828 = vmatmul.mubr.f32.gmra.mxu1 %v6138_v50 }
 0xc46   : > { %10762 = vmatprep.mubr.msk.f32.mxu0 %vm6379_vm6, %v6372_v53  ;;  %10784 = vmatprep.mubr.msk.f32.mxu1 %vm6379_vm6, %v6141_v54 }
 0xc49   : > { %6597 = vmatmul.mubr.f32.gmra.mxu0 %v6371_v10  ;;  %6833 = vmatmul.mubr.f32.gmra.mxu1 %v6140_v59 }
 0xc4a   : > { %10763 = vmatprep.mubr.msk.f32.mxu0 %vm6379_vm6, %v6374_v11  ;;  %10785 = vmatprep.mubr.msk.f32.mxu1 %vm6379_vm6, %v6143_v18 }
 0xc4d   : > { %6602 = vmatmul.mubr.f32.gmra.mxu0 %v6373_v36  ;;  %6838 = vmatmul.mubr.f32.gmra.mxu1 %v6142_v12 }
 0xc4e   : > { %10764 = vmatprep.mubr.msk.f32.mxu0 %vm6379_vm6, %v6376_v15  ;;  %10786 = vmatprep.mubr.msk.f32.mxu1 %vm6379_vm6, %v6145_v33 }
 0xc51   : > { %6607 = vmatmul.mubr.f32.gmra.mxu0 %v6375_v20  ;;  %6843 = vmatmul.mubr.f32.gmra.mxu1 %v6144_v38 }
 0xc52   : > { %10765 = vmatprep.mubr.msk.f32.mxu0 %vm6379_vm6, %v6378_v47  ;;  %10787 = vmatprep.mubr.msk.f32.mxu1 %vm6379_vm6, %v6147_v28 }
 0xc55   : > { %6612 = vmatmul.mubr.f32.gmra.mxu0 %v6377_v24  ;;  %6848 = vmatmul.mubr.f32.gmra.mxu1 %v6146_v48 }
 0xc56   : > { %12709 = vmatprep.mubr.msk.f32.mxu0 %vm13581_vm2, %v18131_v16 }
 0xc59   : > { %12710 = vmatmul.mubr.msk.f32.vlgmr.msra.gmra.mxu0 %vm5852_vm5, %v16261_v37 }
 0xc5a   : > { %12712 = vmatprep.mubr.msk.f32.mxu0 %vm13581_vm2, %v18131_v16  ;;  %12779 = vmatpush3.msk.msra.mxu0 %vm5922_vm4, %v10841_v62 }
 0xc5b   : > { %12780 = vmatprep.subr.mxu0 %v18131_v16 }
 0xc5c   : > { %12781 = vmatpush3.msra.mxu0 %v10840_v23 }
 0xc5d   : > { %12713 = vmatmul.mubr.msk.f32.gmra.mxu0 %vm5852_vm5, %v16272_v26  ;;  %12782 = vmatprep.subr.mxu0 %v18131_v16 }
 0xc5e   : > { %12715 = vmatprep.mubr.msk.f32.mxu0 %vm13581_vm2, %v18131_v16  ;;  %12783 = vmatpush3.msra.mxu0 %v10839_v17 }
 0xc5f   : > { %12784 = vmatprep.subr.mxu0 %v18131_v16 }
 0xc60   : > { %12785 = vmatpush3.msra.mxu0 %v10838_v43 }
 0xc61   : > { %12716 = vmatmul.mubr.msk.f32.gmra.mxu0 %vm5852_vm5, %v16283_v13  ;;  %12855 = vmatprep.subr.mxu0 %v18131_v16 }
 0xc62   : > { %12718 = vmatprep.mubr.msk.f32.mxu0 %vm13581_vm2, %v18131_v16 }
 0xc65   : > { %12719 = vmatmul.mubr.msk.f32.gmra.mxu0 %vm5852_vm5, %v16294_v45 }
 0xc66   : > { %12721 = vmatprep.mubr.msk.f32.mxu0 %vm13581_vm2, %v18131_v16 }
 0xc69   : > { %12722 = vmatmul.mubr.msk.f32.gmra.mxu0 %vm5852_vm5, %v16305_v1 }
 0xc6a   : > { %12724 = vmatprep.mubr.msk.f32.mxu0 %vm13581_vm2, %v18131_v16 }
 0xc6d   : > { %12725 = vmatmul.mubr.msk.f32.gmra.mxu0 %vm5852_vm5, %v16316_v34 }
 0xc6e   : > { %12727 = vmatprep.mubr.msk.f32.mxu0 %vm13581_vm2, %v18131_v16 }
 0xc71   : > { %12728 = vmatmul.mubr.msk.f32.gmra.mxu0 %vm5852_vm5, %v16327_v52 }
 0xc72   : > { %12730 = vmatprep.mubr.msk.f32.mxu0 %vm13581_vm2, %v18131_v16 }
 0xc75   : > { %12731 = vmatmul.mubr.msk.f32.gmra.mxu0 %vm5852_vm5, %v16338_v41 }
 0xc76   : > { %12733 = vmatprep.mubr.msk.f32.mxu0 %vm13581_vm2, %v18131_v16 }
 0xc79   : > { %12734 = vmatmul.mubr.msk.f32.gmra.mxu0 %vm5852_vm5, %v16349_v58 }
 0xc7a   : > { %12736 = vmatprep.mubr.msk.f32.mxu0 %vm13581_vm2, %v18131_v16 }
 0xc7d   : > { %12737 = vmatmul.mubr.msk.f32.gmra.mxu0 %vm5852_vm5, %v16360_v8 }
 0xc7e   : > { %12739 = vmatprep.mubr.msk.f32.mxu0 %vm13581_vm2, %v18131_v16 }
 0xc81   : > { %12740 = vmatmul.mubr.msk.f32.gmra.mxu0 %vm5852_vm5, %v16371_v29 }
 0xc82   : > { %12742 = vmatprep.mubr.msk.f32.mxu0 %vm13581_vm2, %v18131_v16 }
 0xc85   : > { %12743 = vmatmul.mubr.msk.f32.gmra.mxu0 %vm5852_vm5, %v16382_v30 }
 0xc86   : > { %12745 = vmatprep.mubr.msk.f32.mxu0 %vm13581_vm2, %v18131_v16 }
 0xc89   : > { %12746 = vmatmul.mubr.msk.f32.gmra.mxu0 %vm5852_vm5, %v16393_v60 }
 0xc8a   : > { %12748 = vmatprep.mubr.msk.f32.mxu0 %vm13581_vm2, %v18131_v16 }
 0xc8d   : > { %12749 = vmatmul.mubr.msk.f32.gmra.mxu0 %vm5852_vm5, %v16404_v0 }
 0xc8e   : > { %12751 = vmatprep.mubr.msk.f32.mxu0 %vm13581_vm2, %v18131_v16 }
 0xc91   : > { %12752 = vmatmul.mubr.msk.f32.gmra.mxu0 %vm5852_vm5, %v16415_v63 }
 0xc92   : > { %12754 = vmatprep.mubr.msk.f32.mxu0 %vm13581_vm2, %v18131_v16 }
 0xc95   : > { %12755 = vmatmul.mubr.msk.f32.gmra.mxu0 %vm5852_vm5, %v16426_v44 }
 0xc96   : > { %12757 = vmatprep.mubr.msk.f32.mxu0 %vm13581_vm2, %v18131_v16 }
 0xc99   : > { %12758 = vmatmul.mubr.msk.f32.gmra.mxu0 %vm5852_vm5, %v16437_v3 }
 0xc9a   : > { %12760 = vmatprep.mubr.msk.f32.mxu0 %vm13581_vm2, %v18131_v16 }
 0xc9d   : > { %12761 = vmatmul.mubr.msk.f32.gmra.mxu0 %vm5852_vm5, %v16448_v25 }
 0xc9e   : > { %12763 = vmatprep.mubr.msk.f32.mxu0 %vm13581_vm2, %v18131_v16 }
 0xca1   : > { %12764 = vmatmul.mubr.msk.f32.gmra.mxu0 %vm5852_vm5, %v16459_v19 }
 0xca2   : > { %12766 = vmatprep.mubr.msk.f32.mxu0 %vm13581_vm2, %v18131_v16 }
 0xca5   : > { %12767 = vmatmul.mubr.msk.f32.gmra.mxu0 %vm5852_vm5, %v16470_v61 }
 0xca6   : > { %12769 = vmatprep.mubr.msk.f32.mxu0 %vm13581_vm2, %v18131_v16 }
 0xca9   : > { %12770 = vmatmul.mubr.msk.f32.gmra.mxu0 %vm5852_vm5, %v16481_v9 }
 0xcaa   : > { %12772 = vmatprep.mubr.msk.f32.mxu0 %vm13581_vm2, %v18131_v16 }
 0xcad   : > { %12773 = vmatmul.mubr.msk.f32.gmra.mxu0 %vm5852_vm5, %v16492_v31 }
 0xcae   : > { %12775 = vmatprep.mubr.msk.f32.mxu0 %vm13581_vm2, %v18131_v16 }
 0xcb1   : > { %12776 = vmatmul.mubr.msk.f32.gmra.mxu0 %vm5852_vm5, %v18132_v32 }
 0xcb2   : > { %12786 = vmatprep.mubr.msk.f32.mxu0 %vm13581_vm2, %v18131_v16 }
 0xcb5   : > { %12787 = vmatmul.mubr.msk.f32.vlgmr.msra.gmra.mxu0 %vm5852_vm5, %v16261_v37 }
 0xcb6   : > { %12789 = vmatprep.mubr.msk.f32.mxu0 %vm13581_vm2, %v18131_v16  ;;  %12856 = vmatpush3.msk.msra.mxu0 %vm5922_vm4, %v10891_v22 }
 0xcb7   : > { %12857 = vmatprep.subr.mxu0 %v18131_v16 }
 0xcb8   : > { %12858 = vmatpush3.msra.mxu0 %v10890_v55 }
 0xcb9   : > { %12790 = vmatmul.mubr.msk.f32.gmra.mxu0 %vm5852_vm5, %v16272_v26  ;;  %12859 = vmatprep.subr.mxu0 %v18131_v16 }
 0xcba   : > { %12792 = vmatprep.mubr.msk.f32.mxu0 %vm13581_vm2, %v18131_v16  ;;  %12860 = vmatpush3.msra.mxu0 %v10889_v5 }
 0xcbb   : > { %12861 = vmatprep.subr.mxu0 %v18131_v16 }
 0xcbc   : > { %12862 = vmatpush3.msra.mxu0 %v10888_v2 }
 0xcbd   : > { %12793 = vmatmul.mubr.msk.f32.gmra.mxu0 %vm5852_vm5, %v16283_v13  ;;  %12932 = vmatprep.subr.mxu0 %v18131_v16 }
 0xcbe   : > { %12795 = vmatprep.mubr.msk.f32.mxu0 %vm13581_vm2, %v18131_v16 }
 0xcc1   : > { %12796 = vmatmul.mubr.msk.f32.gmra.mxu0 %vm5852_vm5, %v16294_v45 }
 0xcc2   : > { %12798 = vmatprep.mubr.msk.f32.mxu0 %vm13581_vm2, %v18131_v16 }
 0xcc5   : > { %v6513_v14 = vpop.f32.mrf.mxu0  ;;  %12799 = vmatmul.mubr.msk.f32.gmra.mxu0 %vm5852_vm5, %v16305_v1  ;;  %v6749_v49 = vpop.f32.mrf.mxu1 }
 0xcc6   : > { %12801 = vmatprep.mubr.msk.f32.mxu0 %vm13581_vm2, %v18131_v16  ;;  %v16839_v27 = vadd.f32 %v6749_v49, %v6513_v14 }
 0xcc7   : > { %v6515_v40 = vpop.f32.mrf.mxu0  ;;  %v6751_v21 = vpop.f32.mrf.mxu1 }
 0xcc9   : > { %v6518_v46 = vpop.f32.mrf.mxu0  ;;  %12802 = vmatmul.mubr.msk.f32.gmra.mxu0 %vm5852_vm5, %v16316_v34  ;;  %v6754_v42 = vpop.f32.mrf.mxu1 }
 0xcca   : > { %12804 = vmatprep.mubr.msk.f32.mxu0 %vm13581_vm2, %v18131_v16  ;;  %v16845_v39 = vadd.f32 %v6754_v42, %v6518_v46 }
 0xccb   : > { %v6520_v35 = vpop.f32.mrf.mxu0  ;;  %v6756_v4 = vpop.f32.mrf.mxu1 }
 0xccd   : > { %v6523_v57 = vpop.f32.mrf.mxu0  ;;  %12805 = vmatmul.mubr.msk.f32.gmra.mxu0 %vm5852_vm5, %v16327_v52  ;;  %v6759_v6 = vpop.f32.mrf.mxu1 }
 0xcce   : > { %12807 = vmatprep.mubr.msk.f32.mxu0 %vm13581_vm2, %v18131_v16  ;;  %v16851_v56 = vadd.f32 %v6759_v6, %v6523_v57 }
 0xccf   : > { %v6525_v51 = vpop.f32.mrf.mxu0  ;;  %v6761_v7 = vpop.f32.mrf.mxu1 }
 0xcd1   : > { %v6528_v50 = vpop.f32.mrf.mxu0  ;;  %12808 = vmatmul.mubr.msk.f32.gmra.mxu0 %vm5852_vm5, %v16338_v41  ;;  %v6764_v53 = vpop.f32.mrf.mxu1 }
 0xcd2   : > { %12810 = vmatprep.mubr.msk.f32.mxu0 %vm13581_vm2, %v18131_v16  ;;  %v16857_v54 = vadd.f32 %v6764_v53, %v6528_v50 }
 0xcd3   : > { %v6530_v10 = vpop.f32.mrf.mxu0  ;;  %v6766_v59 = vpop.f32.mrf.mxu1 }
 0xcd5   : > { %v6533_v11 = vpop.f32.mrf.mxu0  ;;  %12811 = vmatmul.mubr.msk.f32.gmra.mxu0 %vm5852_vm5, %v16349_v58  ;;  %v6769_v18 = vpop.f32.mrf.mxu1 }
 0xcd6   : > { %12813 = vmatprep.mubr.msk.f32.mxu0 %vm13581_vm2, %v18131_v16  ;;  %v16863_v36 = vadd.f32 %v6769_v18, %v6533_v11 }
 0xcd7   : > { %v6535_v12 = vpop.f32.mrf.mxu0  ;;  %v6771_v15 = vpop.f32.mrf.mxu1 }
 0xcd9   : > { %v6538_v33 = vpop.f32.mrf.mxu0  ;;  %12814 = vmatmul.mubr.msk.f32.gmra.mxu0 %vm5852_vm5, %v16360_v8  ;;  %v6774_v20 = vpop.f32.mrf.mxu1 }
 0xcda   : > { %12816 = vmatprep.mubr.msk.f32.mxu0 %vm13581_vm2, %v18131_v16  ;;  %v16869_v38 = vadd.f32 %v6774_v20, %v6538_v33 }
 0xcdb   : > { %v6540_v47 = vpop.f32.mrf.mxu0  ;;  %v6776_v28 = vpop.f32.mrf.mxu1 }
 0xcdd   : > { %v6543_v24 = vpop.f32.mrf.mxu0  ;;  %12817 = vmatmul.mubr.msk.f32.gmra.mxu0 %vm5852_vm5, %v16371_v29  ;;  %v6779_v48 = vpop.f32.mrf.mxu1 }
 0xcde   : > { %12819 = vmatprep.mubr.msk.f32.mxu0 %vm13581_vm2, %v18131_v16  ;;  %v16875_v62 = vadd.f32 %v6779_v48, %v6543_v24 }
 0xcdf   : > { %v6545_v23 = vpop.f32.mrf.mxu0  ;;  %v6781_v17 = vpop.f32.mrf.mxu1 }
 0xce1   : > { %v6548_v43 = vpop.f32.mrf.mxu0  ;;  %12820 = vmatmul.mubr.msk.f32.gmra.mxu0 %vm5852_vm5, %v16382_v30  ;;  %v6784_v22 = vpop.f32.mrf.mxu1 }
 0xce2   : > { %12822 = vmatprep.mubr.msk.f32.mxu0 %vm13581_vm2, %v18131_v16  ;;  %v16881_v55 = vadd.f32 %v6784_v22, %v6548_v43 }
 0xce3   : > { %v6550_v5 = vpop.f32.mrf.mxu0  ;;  %v6786_v2 = vpop.f32.mrf.mxu1 }
 0xce5   : > { %v6553_v14 = vpop.f32.mrf.mxu0  ;;  %12823 = vmatmul.mubr.msk.f32.gmra.mxu0 %vm5852_vm5, %v16393_v60  ;;  %v6789_v49 = vpop.f32.mrf.mxu1 }
 0xce6   : > { %12825 = vmatprep.mubr.msk.f32.mxu0 %vm13581_vm2, %v18131_v16  ;;  %v16887_v40 = vadd.f32 %v6789_v49, %v6553_v14 }
 0xce7   : > { %v6555_v21 = vpop.f32.mrf.mxu0  ;;  %v6791_v46 = vpop.f32.mrf.mxu1 }
 0xce9   : > { %v6558_v42 = vpop.f32.mrf.mxu0  ;;  %12826 = vmatmul.mubr.msk.f32.gmra.mxu0 %vm5852_vm5, %v16404_v0  ;;  %v6794_v35 = vpop.f32.mrf.mxu1 }
 0xcea   : > { %12828 = vmatprep.mubr.msk.f32.mxu0 %vm13581_vm2, %v18131_v16  ;;  %v16893_v4 = vadd.f32 %v6794_v35, %v6558_v42  ;;  %v7043_v35 = vld [vmem:[#allocation12 + $0x2a8] sm:$0xff] }
 0xceb   : > { %v6560_v57 = vpop.f32.mrf.mxu0  ;;  %v6796_v6 = vpop.f32.mrf.mxu1  ;;  %10817 = vmatprep.mubr.msk.f32.mxu1 %vm6379_vm6, %v7043_v35 }
 0xced   : > { %v6563_v51 = vpop.f32.mrf.mxu0  ;;  %12829 = vmatmul.mubr.msk.f32.gmra.mxu0 %vm5852_vm5, %v16415_v63  ;;  %v6799_v7 = vpop.f32.mrf.mxu1 }
 0xcee   : > { %12831 = vmatprep.mubr.msk.f32.mxu0 %vm13581_vm2, %v18131_v16  ;;  %v16899_v50 = vadd.f32 %v6799_v7, %v6563_v51 }
 0xcef   : > { %v6565_v53 = vpop.f32.mrf.mxu0  ;;  %v6801_v10 = vpop.f32.mrf.mxu1 }
 0xcf1   : > { %v6568_v59 = vpop.f32.mrf.mxu0  ;;  %12832 = vmatmul.mubr.msk.f32.gmra.mxu0 %vm5852_vm5, %v16426_v44  ;;  %v6804_v11 = vpop.f32.mrf.mxu1 }
 0xcf2   : > { %12834 = vmatprep.mubr.msk.f32.mxu0 %vm13581_vm2, %v18131_v16  ;;  %v16905_v18 = vadd.f32 %v6804_v11, %v6568_v59 }
 0xcf3   : > { %v6570_v12 = vpop.f32.mrf.mxu0  ;;  %v6806_v15 = vpop.f32.mrf.mxu1 }
 0xcf5   : > { %v6573_v33 = vpop.f32.mrf.mxu0  ;;  %12835 = vmatmul.mubr.msk.f32.gmra.mxu0 %vm5852_vm5, %v16437_v3  ;;  %v6809_v20 = vpop.f32.mrf.mxu1 }
 0xcf6   : > { %12837 = vmatprep.mubr.msk.f32.mxu0 %vm13581_vm2, %v18131_v16  ;;  %v16911_v47 = vadd.f32 %v6809_v20, %v6573_v33 }
 0xcf7   : > { %v6575_v28 = vpop.f32.mrf.mxu0  ;;  %v6811_v24 = vpop.f32.mrf.mxu1 }
 0xcf9   : > { %v6578_v48 = vpop.f32.mrf.mxu0  ;;  %12838 = vmatmul.mubr.msk.f32.gmra.mxu0 %vm5852_vm5, %v16448_v25  ;;  %v6814_v23 = vpop.f32.mrf.mxu1 }
 0xcfa   : > { %12840 = vmatprep.mubr.msk.f32.mxu0 %vm13581_vm2, %v18131_v16  ;;  %v16917_v17 = vadd.f32 %v6814_v23, %v6578_v48 }
 0xcfb   : > { %v6580_v43 = vpop.f32.mrf.mxu0  ;;  %v6816_v22 = vpop.f32.mrf.mxu1 }
 0xcfd   : > { %v6583_v5 = vpop.f32.mrf.mxu0  ;;  %12841 = vmatmul.mubr.msk.f32.gmra.mxu0 %vm5852_vm5, %v16459_v19  ;;  %v6819_v2 = vpop.f32.mrf.mxu1 }
 0xcfe   : > { %12843 = vmatprep.mubr.msk.f32.mxu0 %vm13581_vm2, %v18131_v16  ;;  %v16923_v14 = vadd.f32 %v6819_v2, %v6583_v5 }
 0xcff   : > { %v6585_v49 = vpop.f32.mrf.mxu0  ;;  %v6821_v21 = vpop.f32.mrf.mxu1 }
 0xd01   : > { %v6588_v46 = vpop.f32.mrf.mxu0  ;;  %12844 = vmatmul.mubr.msk.f32.gmra.mxu0 %vm5852_vm5, %v16470_v61  ;;  %v6824_v42 = vpop.f32.mrf.mxu1 }
 0xd02   : > { %12846 = vmatprep.mubr.msk.f32.mxu0 %vm13581_vm2, %v18131_v16  ;;  %v16929_v57 = vadd.f32 %v6824_v42, %v6588_v46 }
 0xd03   : > { %v6590_v6 = vpop.f32.mrf.mxu0  ;;  %v6826_v51 = vpop.f32.mrf.mxu1 }
 0xd05   : > { %v6593_v7 = vpop.f32.mrf.mxu0  ;;  %12847 = vmatmul.mubr.msk.f32.gmra.mxu0 %vm5852_vm5, %v16481_v9  ;;  %v6829_v53 = vpop.f32.mrf.mxu1 }
 0xd06   : > { %12849 = vmatprep.mubr.msk.f32.mxu0 %vm13581_vm2, %v18131_v16  ;;  %v16936_v10 = vadd.f32 %v6829_v53, %v6593_v7 }
 0xd07   : > { %v6595_v59 = vpop.f32.mrf.mxu0  ;;  %v6831_v11 = vpop.f32.mrf.mxu1 }
 0xd09   : > { %v6598_v12 = vpop.f32.mrf.mxu0  ;;  %12850 = vmatmul.mubr.msk.f32.gmra.mxu0 %vm5852_vm5, %v16492_v31  ;;  %v6834_v15 = vpop.f32.mrf.mxu1 }
 0xd0a   : > { %12852 = vmatprep.mubr.msk.f32.mxu0 %vm13581_vm2, %v18131_v16  ;;  %v16942_v33 = vadd.f32 %v6834_v15, %v6598_v12 }
 0xd0b   : > { %v6600_v20 = vpop.f32.mrf.mxu0  ;;  %v6836_v28 = vpop.f32.mrf.mxu1 }
 0xd0d   : > { %v6603_v24 = vpop.f32.mrf.mxu0  ;;  %12853 = vmatmul.mubr.msk.f32.gmra.mxu0 %vm5852_vm5, %v18132_v32  ;;  %v6839_v48 = vpop.f32.mrf.mxu1 }
 0xd0e   : > { %12863 = vmatprep.mubr.msk.f32.mxu0 %vm13581_vm2, %v18131_v16  ;;  %v16948_v23 = vadd.f32 %v6839_v48, %v6603_v24 }
 0xd0f   : > { %v6605_v43 = vpop.f32.mrf.mxu0  ;;  %v6841_v22 = vpop.f32.mrf.mxu1 }
 0xd11   : > { %v6608_v5 = vpop.f32.mrf.mxu0  ;;  %12864 = vmatmul.mubr.msk.f32.vlgmr.msra.gmra.mxu0 %vm5852_vm5, %v16261_v37  ;;  %v6844_v2 = vpop.f32.mrf.mxu1 }
 0xd12   : > { %12866 = vmatprep.mubr.msk.f32.mxu0 %vm13581_vm2, %v18131_v16  ;;  %v16954_v49 = vadd.f32 %v6844_v2, %v6608_v5 }
 0xd13   : > { %v6610_v21 = vpop.f32.mrf.mxu0  ;;  %v6846_v46 = vpop.f32.mrf.mxu1 }
 0xd15   : > { %v6613_v42 = vpop.f32.mrf.mxu0  ;;  %12867 = vmatmul.mubr.msk.f32.gmra.mxu0 %vm5852_vm5, %v16272_v26  ;;  %v6849_v35 = vpop.f32.mrf.mxu1 }
 0xd16   : > { %12869 = vmatprep.mubr.msk.f32.mxu0 %vm13581_vm2, %v18131_v16  ;;  %v16960_v6 = vadd.f32 %v6849_v35, %v6613_v42 }
 0xd17   : > { %v6615_v51 = vpop.f32.mrf.mxu0  ;;  %v6851_v37 = vpop.f32.mrf.mxu1 }
 0xd19   : > { %v16962_v7 = vpop.f32.mrf.mxu0  ;;  %12870 = vmatmul.mubr.msk.f32.gmra.mxu0 %vm5852_vm5, %v16283_v13 }
 0xd1a   : > { %12872 = vmatprep.mubr.msk.f32.mxu0 %vm13581_vm2, %v18131_v16 }
 0xd1b   : > { %v12711_v53 = vpop.f32.mrf.mxu0 }
 0xd1d   : > { %v16968_v59 = vpop.f32.mrf.mxu0  ;;  %12873 = vmatmul.mubr.msk.f32.gmra.mxu0 %vm5852_vm5, %v16294_v45 }
 0xd1e   : > { %12875 = vmatprep.mubr.msk.f32.mxu0 %vm13581_vm2, %v18131_v16 }
 0xd1f   : > { %v12714_v26 = vpop.f32.mrf.mxu0 }
 0xd21   : > { %v16974_v11 = vpop.f32.mrf.mxu0  ;;  %12876 = vmatmul.mubr.msk.f32.gmra.mxu0 %vm5852_vm5, %v16305_v1 }
 0xd22   : > { %12878 = vmatprep.mubr.msk.f32.mxu0 %vm13581_vm2, %v18131_v16 }
 0xd23   : > { %v12717_v13 = vpop.f32.mrf.mxu0 }
 0xd25   : > { %v16980_v12 = vpop.f32.mrf.mxu0  ;;  %12879 = vmatmul.mubr.msk.f32.gmra.mxu0 %vm5852_vm5, %v16316_v34 }
 0xd26   : > { %12881 = vmatprep.mubr.msk.f32.mxu0 %vm13581_vm2, %v18131_v16 }
 0xd27   : > { %v12720_v45 = vpop.f32.mrf.mxu0 }
 0xd29   : > { %v16986_v15 = vpop.f32.mrf.mxu0  ;;  %12882 = vmatmul.mubr.msk.f32.gmra.mxu0 %vm5852_vm5, %v16327_v52 }
 0xd2a   : > { %12884 = vmatprep.mubr.msk.f32.mxu0 %vm13581_vm2, %v18131_v16 }
 0xd2b   : > { %v12723_v1 = vpop.f32.mrf.mxu0 }
 0xd2d   : > { %v16992_v20 = vpop.f32.mrf.mxu0  ;;  %12885 = vmatmul.mubr.msk.f32.gmra.mxu0 %vm5852_vm5, %v16338_v41 }
 0xd2e   : > { %12887 = vmatprep.mubr.msk.f32.mxu0 %vm13581_vm2, %v18131_v16 }
 0xd2f   : > { %v12726_v34 = vpop.f32.mrf.mxu0 }
 0xd31   : > { %v16998_v28 = vpop.f32.mrf.mxu0  ;;  %12888 = vmatmul.mubr.msk.f32.gmra.mxu0 %vm5852_vm5, %v16349_v58 }
 0xd32   : > { %12890 = vmatprep.mubr.msk.f32.mxu0 %vm13581_vm2, %v18131_v16 }
 0xd33   : > { %v12729_v52 = vpop.f32.mrf.mxu0 }
 0xd35   : > { %v17004_v24 = vpop.f32.mrf.mxu0  ;;  %12891 = vmatmul.mubr.msk.f32.gmra.mxu0 %vm5852_vm5, %v16360_v8 }
 0xd36   : > { %12893 = vmatprep.mubr.msk.f32.mxu0 %vm13581_vm2, %v18131_v16 }
 0xd37   : > { %v12732_v41 = vpop.f32.mrf.mxu0 }
 0xd39   : > { %v6967_v48 = vpop.f32.mrf.mxu0  ;;  %12894 = vmatmul.mubr.msk.f32.gmra.mxu0 %vm5852_vm5, %v16371_v29 }
 0xd3a   : > { %12896 = vmatprep.mubr.msk.f32.mxu0 %vm13581_vm2, %v18131_v16 }
 0xd3b   : > { %v12735_v58 = vpop.f32.mrf.mxu0 }
 0xd3d   : > { %v6972_v43 = vpop.f32.mrf.mxu0  ;;  %12897 = vmatmul.mubr.msk.f32.gmra.mxu0 %vm5852_vm5, %v16382_v30 }
 0xd3e   : > { %12899 = vmatprep.mubr.msk.f32.mxu0 %vm13581_vm2, %v18131_v16 }
 0xd3f   : > { %v12738_v8 = vpop.f32.mrf.mxu0 }
 0xd41   : > { %v6977_v22 = vpop.f32.mrf.mxu0  ;;  %12900 = vmatmul.mubr.msk.f32.gmra.mxu0 %vm5852_vm5, %v16393_v60 }
 0xd42   : > { %12902 = vmatprep.mubr.msk.f32.mxu0 %vm13581_vm2, %v18131_v16 }
 0xd43   : > { %v12741_v29 = vpop.f32.mrf.mxu0 }
 0xd45   : > { %v6982_v5 = vpop.f32.mrf.mxu0  ;;  %12903 = vmatmul.mubr.msk.f32.gmra.mxu0 %vm5852_vm5, %v16404_v0 }
 0xd46   : > { %12905 = vmatprep.mubr.msk.f32.mxu0 %vm13581_vm2, %v18131_v16 }
 0xd47   : > { %v12744_v30 = vpop.f32.mrf.mxu0 }
 0xd49   : > { %v6987_v2 = vpop.f32.mrf.mxu0  ;;  %12906 = vmatmul.mubr.msk.f32.gmra.mxu0 %vm5852_vm5, %v16415_v63 }
 0xd4a   : > { %12908 = vmatprep.mubr.msk.f32.mxu0 %vm13581_vm2, %v18131_v16 }
 0xd4b   : > { %v12747_v60 = vpop.f32.mrf.mxu0 }
 0xd4d   : > { %v6992_v21 = vpop.f32.mrf.mxu0  ;;  %12909 = vmatmul.mubr.msk.f32.gmra.mxu0 %vm5852_vm5, %v16426_v44 }
 0xd4e   : > { %12911 = vmatprep.mubr.msk.f32.mxu0 %vm13581_vm2, %v18131_v16 }
 0xd4f   : > { %v12750_v0 = vpop.f32.mrf.mxu0 }
 0xd51   : > { %v6997_v46 = vpop.f32.mrf.mxu0  ;;  %12912 = vmatmul.mubr.msk.f32.gmra.mxu0 %vm5852_vm5, %v16437_v3 }
 0xd52   : > { %12914 = vmatprep.mubr.msk.f32.mxu0 %vm13581_vm2, %v18131_v16 }
 0xd53   : > { %v12753_v63 = vpop.f32.mrf.mxu0 }
 0xd55   : > { %v7002_v42 = vpop.f32.mrf.mxu0  ;;  %12915 = vmatmul.mubr.msk.f32.gmra.mxu0 %vm5852_vm5, %v16448_v25 }
 0xd56   : > { %7151 = vmatpush1.msra.mxu1 %v7002_v42  ;;  %12917 = vmatprep.mubr.msk.f32.mxu0 %vm13581_vm2, %v18131_v16  ;;  %v7052_v42 = vld [vmem:[#allocation12 + $0x2f0] sm:$0xff] }
 0xd57   : > { %v12756_v44 = vpop.f32.mrf.mxu0  ;;  %7152 = vmatprep.subr.mxu1 %v18131_v16 }
 0xd58   : > { %7153 = vmatpush1.msra.mxu1 %v6997_v46  ;;  %v7053_v46 = vld [vmem:[#allocation12 + $0x2f8] sm:$0xff] }
 0xd59   : > { %v17043_v35 = vpop.f32.mrf.mxu0  ;;  %7154 = vmatprep.subr.mxu1 %v18131_v16  ;;  %12918 = vmatmul.mubr.msk.f32.gmra.mxu0 %vm5852_vm5, %v16459_v19 }
 0xd5a   : > { %7155 = vmatpush1.msra.mxu1 %v6992_v21  ;;  %12920 = vmatprep.mubr.msk.f32.mxu0 %vm13581_vm2, %v18131_v16  ;;  %v7050_v21 = vld [vmem:[#allocation12 + $0x2e0] sm:$0xff] }
 0xd5b   : > { %v12759_v3 = vpop.f32.mrf.mxu0  ;;  %7156 = vmatprep.subr.mxu1 %v18131_v16 }
 0xd5c   : > { %7157 = vmatpush1.msra.mxu1 %v6987_v2  ;;  %v7051_v2 = vld [vmem:[#allocation12 + $0x2e8] sm:$0xff] }
 0xd5d   : > { %v7012_v25 = vpop.f32.mrf.mxu0  ;;  %7158 = vmatprep.subr.mxu1 %v18131_v16  ;;  %12921 = vmatmul.mubr.msk.f32.gmra.mxu0 %vm5852_vm5, %v16470_v61 }
 0xd5e   : > { %7159 = vmatpush1.msra.mxu1 %v6982_v5  ;;  %12923 = vmatprep.mubr.msk.f32.mxu0 %vm13581_vm2, %v18131_v16  ;;  %v7048_v5 = vld [vmem:[#allocation12 + $0x2d0] sm:$0xff] }
 0xd5f   : > { %v12762_v51 = vpop.f32.mrf.mxu0  ;;  %7160 = vmatprep.subr.mxu1 %v18131_v16 }
 0xd60   : > { %7161 = vmatpush1.msra.mxu1 %v6977_v22  ;;  %v7049_v22 = vld [vmem:[#allocation12 + $0x2d8] sm:$0xff] }
 0xd61   : > { %v7017_v19 = vpop.f32.mrf.mxu0  ;;  %7162 = vmatprep.subr.mxu1 %v18131_v16  ;;  %12924 = vmatmul.mubr.msk.f32.gmra.mxu0 %vm5852_vm5, %v16481_v9 }
 0xd62   : > { %7163 = vmatpush1.msra.mxu1 %v6972_v43  ;;  %12926 = vmatprep.mubr.msk.f32.mxu0 %vm13581_vm2, %v18131_v16  ;;  %v7046_v43 = vld [vmem:[#allocation12 + $0x2c0] sm:$0xff] }
 0xd63   : > { %v12765_v37 = vpop.f32.mrf.mxu0  ;;  %7164 = vmatprep.subr.mxu1 %v18131_v16 }
 0xd64   : > { %7165 = vmatpush1.msra.mxu1 %v6967_v48  ;;  %v7047_v48 = vld [vmem:[#allocation12 + $0x2c8] sm:$0xff] }
 0xd65   : > { %v7022_v61 = vpop.f32.mrf.mxu0  ;;  %7166 = vmatprep.subr.mxu1 %v18131_v16  ;;  %12927 = vmatmul.mubr.msk.f32.gmra.mxu0 %vm5852_vm5, %v16492_v31 }
 0xd66   : > { %7167 = vmatpush1.msra.mxu1 %v17004_v24  ;;  %12929 = vmatprep.mubr.msk.f32.mxu0 %vm13581_vm2, %v18131_v16  ;;  %v7044_v24 = vld [vmem:[#allocation12 + $0x2b0] sm:$0xff] }
 0xd67   : > { %v12768_v9 = vpop.f32.mrf.mxu0  ;;  %7168 = vmatprep.subr.mxu1 %v18131_v16 }
 0xd68   : > { %7169 = vmatpush1.msra.mxu1 %v16998_v28  ;;  %v7045_v28 = vld [vmem:[#allocation12 + $0x2b8] sm:$0xff] }
 0xd69   : > { %v7027_v53 = vpop.f32.mrf.mxu0  ;;  %7170 = vmatprep.subr.mxu1 %v18131_v16  ;;  %12930 = vmatmul.mubr.msk.f32.gmra.mxu0 %vm5852_vm5, %v18132_v32 }
 0xd6a   : > { %7171 = vmatpush1.msra.mxu1 %v16992_v20  ;;  %12936 = vmatprep.mubr.msk.f32.mxu0 %vm13581_vm2, %v18131_v16  ;;  %v7042_v20 = vld [vmem:[#allocation12 + $0x2a0] sm:$0xff] }
 0xd6b   : > { %v12771_v31 = vpop.f32.mrf.mxu0  ;;  %7172 = vmatprep.subr.mxu1 %v18131_v16 }
 0xd6c   : > { %7173 = vmatpush1.msra.mxu1 %v16986_v15 }
 0xd6d   : > { %v7032_v26 = vpop.f32.mrf.mxu0  ;;  %7174 = vmatprep.subr.mxu1 %v18131_v16 }
 0xd6e   : > { %7175 = vmatpush1.msra.mxu1 %v16980_v12 }
 0xd6f   : > { %v12774_v13 = vpop.f32.mrf.mxu0  ;;  %7176 = vmatprep.subr.mxu1 %v18131_v16 }
 0xd70   : > { %7177 = vmatpush1.msra.mxu1 %v16974_v11 }
 0xd71   : > { %v7037_v32 = vpop.f32.mrf.mxu0  ;;  %7178 = vmatprep.subr.mxu1 %v18131_v16 }
 0xd72   : > { %7179 = vmatpush1.msra.mxu1 %v16968_v59 }
 0xd73   : > { %v12777_v45 = vpop.f32.mrf.mxu0  ;;  %7180 = vmatprep.subr.mxu1 %v18131_v16 }
 0xd74   : > { %7181 = vmatpush1.msra.mxu1 %v16962_v7 }
 0xd75   : > { %7200 = vmatprep.subr.mxu1 %v18131_v16  ;;  %v17088_v15 = vpop.f32.mrf.mxu0 }
 0xd76   : > { %10816 = vmatpush2.msk.msra.mxu1 %vm6443_vm7, %v7037_v32  ;;  %v7061_v32 = vld [vmem:[#allocation12 + $0x338] sm:$0xff] }
 0xd77   : > { %7202 = vmatprep.subr.mxu1 %v18131_v16  ;;  %v12788_v12 = vpop.f32.mrf.mxu0 }
 0xd78   : > { %7203 = vmatpush2.msra.mxu1 %v7032_v26  ;;  %v7058_v26 = vld [vmem:[#allocation12 + $0x320] sm:$0xff]  ;;  %v7060_v12 = vld [vmem:[#allocation12 + $0x330] sm:$0xff] }
 0xd79   : > { %7204 = vmatprep.subr.mxu1 %v18131_v16  ;;  %v17093_v11 = vpop.f32.mrf.mxu0 }
 0xd7a   : > { %7205 = vmatpush2.msra.mxu1 %v7027_v53  ;;  %v7059_v53 = vld [vmem:[#allocation12 + $0x328] sm:$0xff] }
 0xd7b   : > { %7206 = vmatprep.subr.mxu1 %v18131_v16  ;;  %v12791_v59 = vpop.f32.mrf.mxu0 }
 0xd7c   : > { %7207 = vmatpush2.msra.mxu1 %v7022_v61  ;;  %v7056_v61 = vld [vmem:[#allocation12 + $0x310] sm:$0xff] }
 0xd7d   : > { %7208 = vmatprep.subr.mxu1 %v18131_v16  ;;  %v17097_v7 = vpop.f32.mrf.mxu0 }
 0xd7e   : > { %7209 = vmatpush2.msra.mxu1 %v7017_v19  ;;  %v7057_v19 = vld [vmem:[#allocation12 + $0x318] sm:$0xff] }
 0xd7f   : > { %7210 = vmatprep.subr.mxu1 %v18131_v16  ;;  %v12794_v1 = vpop.f32.mrf.mxu0 }
 0xd80   : > { %7211 = vmatpush2.msra.mxu1 %v7012_v25  ;;  %v7054_v25 = vld [vmem:[#allocation12 + $0x300] sm:$0xff]  ;;  %v7063_v1 = vld [vmem:[#allocation12 + $0x348] sm:$0xff] }
 0xd81   : > { %7212 = vmatprep.subr.mxu1 %v18131_v16  ;;  %v17101_v34 = vpop.f32.mrf.mxu0 }
 0xd82   : > { %7213 = vmatpush2.msra.mxu1 %v17043_v35  ;;  %v7055_v35 = vld [vmem:[#allocation12 + $0x308] sm:$0xff] }
 0xd83   : > { %7215 = vmatmul.mubr.f32.vlgmr.msra.gmra.mxu1 %v7042_v20  ;;  %v12797_v52 = vpop.f32.mrf.mxu0  ;;  %7638 = vmatprep.subr.mxu1 %v18131_v16 }
 0xd84   : > { %10818 = vmatprep.mubr.msk.f32.mxu1 %vm6379_vm6, %v7045_v28  ;;  %v7062_v28 = vld [vmem:[#allocation12 + $0x340] sm:$0xff] }
 0xd85   : > { %v17106_v41 = vpop.f32.mrf.mxu0 }
 0xd87   : > { %7220 = vmatmul.mubr.f32.gmra.mxu1 %v7044_v24  ;;  %v12800_v58 = vpop.f32.mrf.mxu0  ;;  %v7065_v24 = vld [vmem:[#allocation12 + $0x358] sm:$0xff] }
 0xd88   : > { %10819 = vmatprep.mubr.msk.f32.mxu1 %vm6379_vm6, %v7047_v48  ;;  %v7064_v58 = vld [vmem:[#allocation12 + $0x350] sm:$0xff] }
 0xd89   : > { %v17109_v8 = vpop.f32.mrf.mxu0 }
 0xd8b   : > { %7225 = vmatmul.mubr.f32.gmra.mxu1 %v7046_v43  ;;  %v12803_v29 = vpop.f32.mrf.mxu0 }
 0xd8c   : > { %10820 = vmatprep.mubr.msk.f32.mxu1 %vm6379_vm6, %v7049_v22  ;;  %v7067_v22 = vld [vmem:[#allocation12 + $0x368] sm:$0xff] }
 0xd8d   : > { %v17112_v30 = vpop.f32.mrf.mxu0 }
 0xd8f   : > { %7230 = vmatmul.mubr.f32.gmra.mxu1 %v7048_v5  ;;  %v12806_v60 = vpop.f32.mrf.mxu0  ;;  %v7066_v5 = vld [vmem:[#allocation12 + $0x360] sm:$0xff] }
 0xd90   : > { %10821 = vmatprep.mubr.msk.f32.mxu1 %vm6379_vm6, %v7051_v2  ;;  %v7069_v60 = vld [vmem:[#allocation12 + $0x378] sm:$0xff] }
 0xd91   : > { %v17115_v0 = vpop.f32.mrf.mxu0 }
 0xd93   : > { %7235 = vmatmul.mubr.f32.gmra.mxu1 %v7050_v21  ;;  %v12809_v63 = vpop.f32.mrf.mxu0 }
 0xd94   : > { %10822 = vmatprep.mubr.msk.f32.mxu1 %vm6379_vm6, %v7053_v46  ;;  %v7068_v46 = vld [vmem:[#allocation12 + $0x370] sm:$0xff] }
 0xd95   : > { %v17118_v44 = vpop.f32.mrf.mxu0 }
 0xd97   : > { %7240 = vmatmul.mubr.f32.gmra.mxu1 %v7052_v42  ;;  %v12812_v3 = vpop.f32.mrf.mxu0  ;;  %v7071_v42 = vld [vmem:[#allocation12 + $0x388] sm:$0xff] }
 0xd98   : > { %10823 = vmatprep.mubr.msk.f32.mxu1 %vm6379_vm6, %v7055_v35  ;;  %v7070_v3 = vld [vmem:[#allocation12 + $0x380] sm:$0xff] }
 0xd99   : > { %v17121_v51 = vpop.f32.mrf.mxu0 }
 0xd9b   : > { %7245 = vmatmul.mubr.f32.gmra.mxu1 %v7054_v25  ;;  %v12815_v37 = vpop.f32.mrf.mxu0 }
 0xd9c   : > { %10824 = vmatprep.mubr.msk.f32.mxu1 %vm6379_vm6, %v7057_v19  ;;  %v7073_v19 = vld [vmem:[#allocation12 + $0x398] sm:$0xff] }
 0xd9d   : > { %v7465_v9 = vpop.f32.mrf.mxu0 }
 0xd9f   : > { %7250 = vmatmul.mubr.f32.gmra.mxu1 %v7056_v61  ;;  %v12818_v31 = vpop.f32.mrf.mxu0  ;;  %v7072_v61 = vld [vmem:[#allocation12 + $0x390] sm:$0xff] }
 0xda0   : > { %10825 = vmatprep.mubr.msk.f32.mxu1 %vm6379_vm6, %v7059_v53  ;;  %v7075_v31 = vld [vmem:[#allocation12 + $0x3a8] sm:$0xff] }
 0xda1   : > { %v7470_v13 = vpop.f32.mrf.mxu0 }
 0xda3   : > { %7255 = vmatmul.mubr.f32.gmra.mxu1 %v7058_v26  ;;  %v12821_v45 = vpop.f32.mrf.mxu0 }
 0xda4   : > { %10826 = vmatprep.mubr.msk.f32.mxu1 %vm6379_vm6, %v7061_v32  ;;  %v7077_v32 = vld [vmem:[#allocation12 + $0x3b8] sm:$0xff] }
 0xda5   : > { %v7475_v59 = vpop.f32.mrf.mxu0 }
 0xda7   : > { %7260 = vmatmul.mubr.f32.gmra.mxu1 %v7060_v12  ;;  %v12824_v20 = vpop.f32.mrf.mxu0 }
 0xda8   : > { %10827 = vmatprep.mubr.msk.f32.mxu1 %vm6379_vm6, %v7063_v1 }
 0xda9   : > { %v7480_v52 = vpop.f32.mrf.mxu0 }
 0xdab   : > { %7265 = vmatmul.mubr.f32.gmra.mxu1 %v7062_v28  ;;  %v12827_v48 = vpop.f32.mrf.mxu0 }
 0xdac   : > { %10828 = vmatprep.mubr.msk.f32.mxu1 %vm6379_vm6, %v7065_v24  ;;  %v7531_v24 = vld [vmem:[#allocation12 + $0x3f8] sm:$0xff] }
 0xdad   : > { %v7485_v43 = vpop.f32.mrf.mxu0 }
 0xdaf   : > { %7270 = vmatmul.mubr.f32.gmra.mxu1 %v7064_v58  ;;  %v12830_v29 = vpop.f32.mrf.mxu0 }
 0xdb0   : > { %10829 = vmatprep.mubr.msk.f32.mxu1 %vm6379_vm6, %v7067_v22  ;;  %v7530_v22 = vld [vmem:[#allocation12 + $0x3f0] sm:$0xff] }
 0xdb1   : > { %v7490_v2 = vpop.f32.mrf.mxu0 }
 0xdb2   : > { %7639 = vmatpush1.msra.mxu1 %v7490_v2 }
 0xdb3   : > { %7275 = vmatmul.mubr.f32.gmra.mxu1 %v7066_v5  ;;  %v12833_v21 = vpop.f32.mrf.mxu0  ;;  %7640 = vmatprep.subr.mxu1 %v18131_v16  ;;  %v7533_v5 = vld [vmem:[#allocation12 + $0x408] sm:$0xff] }
 0xdb4   : > { %7641 = vmatpush1.msra.mxu1 %v7485_v43  ;;  %10830 = vmatprep.mubr.msk.f32.mxu1 %vm6379_vm6, %v7069_v60  ;;  %v7532_v60 = vld [vmem:[#allocation12 + $0x400] sm:$0xff] }
 0xdb5   : > { %v17131_v63 = vpop.f32.mrf.mxu0  ;;  %7642 = vmatprep.subr.mxu1 %v18131_v16 }
 0xdb6   : > { %7643 = vmatpush1.msra.mxu1 %v7480_v52 }
 0xdb7   : > { %7280 = vmatmul.mubr.f32.gmra.mxu1 %v7068_v46  ;;  %v12836_v35 = vpop.f32.mrf.mxu0  ;;  %7644 = vmatprep.subr.mxu1 %v18131_v16  ;;  %v7535_v46 = vld [vmem:[#allocation12 + $0x418] sm:$0xff] }
 0xdb8   : > { %7645 = vmatpush1.msra.mxu1 %v7475_v59  ;;  %10831 = vmatprep.mubr.msk.f32.mxu1 %vm6379_vm6, %v7071_v42  ;;  %v7534_v35 = vld [vmem:[#allocation12 + $0x410] sm:$0xff] }
 0xdb9   : > { %v17136_v25 = vpop.f32.mrf.mxu0  ;;  %7646 = vmatprep.subr.mxu1 %v18131_v16 }
 0xdba   : > { %7647 = vmatpush1.msra.mxu1 %v7470_v13  ;;  %v7074_v13 = vld [vmem:[#allocation12 + $0x3a0] sm:$0xff] }
 0xdbb   : > { %7285 = vmatmul.mubr.f32.gmra.mxu1 %v7070_v3  ;;  %v12839_v37 = vpop.f32.mrf.mxu0  ;;  %7648 = vmatprep.subr.mxu1 %v18131_v16 }
 0xdbc   : > { %7649 = vmatpush1.msra.mxu1 %v7465_v9  ;;  %10832 = vmatprep.mubr.msk.f32.mxu1 %vm6379_vm6, %v7073_v19  ;;  %v7536_v19 = vld [vmem:[#allocation12 + $0x420] sm:$0xff] }
 0xdbd   : > { %v17141_v53 = vpop.f32.mrf.mxu0  ;;  %7650 = vmatprep.subr.mxu1 %v18131_v16 }
 0xdbe   : > { %7651 = vmatpush1.msra.mxu1 %v17121_v51  ;;  %v7076_v51 = vld [vmem:[#allocation12 + $0x3b0] sm:$0xff] }
 0xdbf   : > { %7290 = vmatmul.mubr.f32.gmra.mxu1 %v7072_v61  ;;  %v12842_v26 = vpop.f32.mrf.mxu0  ;;  %7652 = vmatprep.subr.mxu1 %v18131_v16  ;;  %v7539_v61 = vld [vmem:[#allocation12 + $0x438] sm:$0xff] }
 0xdc0   : > { %7653 = vmatpush1.msra.mxu1 %v17118_v44  ;;  %10833 = vmatprep.mubr.msk.f32.mxu1 %vm6379_vm6, %v7075_v31  ;;  %v7079_v44 = vld [vmem:[#allocation12 + $0x3c8] sm:$0xff]  ;;  %v7538_v31 = vld [vmem:[#allocation12 + $0x430] sm:$0xff] }
 0xdc1   : > { %v7510_v9 = vpop.f32.mrf.mxu0  ;;  %7654 = vmatprep.subr.mxu1 %v18131_v16 }
 0xdc2   : > { %7655 = vmatpush1.msra.mxu1 %v17115_v0  ;;  %v7078_v0 = vld [vmem:[#allocation12 + $0x3c0] sm:$0xff] }
 0xdc3   : > { %7295 = vmatmul.mubr.f32.gmra.mxu1 %v7074_v13  ;;  %v12845_v45 = vpop.f32.mrf.mxu0  ;;  %7656 = vmatprep.subr.mxu1 %v18131_v16  ;;  %v7541_v13 = vld [vmem:[#allocation12 + $0x448] sm:$0xff] }
 0xdc4   : > { %7657 = vmatpush1.msra.mxu1 %v17112_v30  ;;  %10834 = vmatprep.mubr.msk.f32.mxu1 %vm6379_vm6, %v7077_v32  ;;  %v7081_v30 = vld [vmem:[#allocation12 + $0x3d8] sm:$0xff]  ;;  %v7540_v32 = vld [vmem:[#allocation12 + $0x440] sm:$0xff] }
 0xdc5   : > { %v7515_v12 = vpop.f32.mrf.mxu0  ;;  %7658 = vmatprep.subr.mxu1 %v18131_v16 }
 0xdc6   : > { %7659 = vmatpush1.msra.mxu1 %v17109_v8  ;;  %v7080_v8 = vld [vmem:[#allocation12 + $0x3d0] sm:$0xff] }
 0xdc7   : > { %7300 = vmatmul.mubr.f32.gmra.mxu1 %v7076_v51  ;;  %v12848_v59 = vpop.f32.mrf.mxu0  ;;  %7660 = vmatprep.subr.mxu1 %v18131_v16  ;;  %v7543_v51 = vld [vmem:[#allocation12 + $0x458] sm:$0xff] }
 0xdc8   : > { %7661 = vmatpush1.msra.mxu1 %v17106_v41  ;;  %10835 = vmatprep.mubr.msk.f32.mxu1 %vm6379_vm6, %v7079_v44  ;;  %v7083_v41 = vld [vmem:[#allocation12 + $0x3e8] sm:$0xff]  ;;  %v7542_v44 = vld [vmem:[#allocation12 + $0x450] sm:$0xff] }
 0xdc9   : > { %v7520_v1 = vpop.f32.mrf.mxu0  ;;  %7662 = vmatprep.subr.mxu1 %v18131_v16 }
 0xdca   : > { %7663 = vmatpush1.msra.mxu1 %v17101_v34  ;;  %v7082_v34 = vld [vmem:[#allocation12 + $0x3e0] sm:$0xff] }
 0xdcb   : > { %7305 = vmatmul.mubr.f32.gmra.mxu1 %v7078_v0  ;;  %v12851_v20 = vpop.f32.mrf.mxu0  ;;  %7664 = vmatprep.subr.mxu1 %v18131_v16  ;;  %v7545_v0 = vld [vmem:[#allocation12 + $0x468] sm:$0xff] }
 0xdcc   : > { %7665 = vmatpush1.msra.mxu1 %v17097_v7  ;;  %10836 = vmatprep.mubr.msk.f32.mxu1 %vm6379_vm6, %v7081_v30  ;;  %v7544_v30 = vld [vmem:[#allocation12 + $0x460] sm:$0xff] }
 0xdcd   : > { %v7525_v28 = vpop.f32.mrf.mxu0  ;;  %7666 = vmatprep.subr.mxu1 %v18131_v16 }
 0xdce   : > { %7667 = vmatpush1.msra.mxu1 %v17093_v11 }
 0xdcf   : > { %7310 = vmatmul.mubr.f32.gmra.mxu1 %v7080_v8  ;;  %v12854_v52 = vpop.f32.mrf.mxu0  ;;  %7668 = vmatprep.subr.mxu1 %v18131_v16  ;;  %v7547_v8 = vld [vmem:[#allocation12 + $0x478] sm:$0xff] }
 0xdd0   : > { %7669 = vmatpush1.msra.mxu1 %v17088_v15  ;;  %10837 = vmatprep.mubr.msk.f32.mxu1 %vm6379_vm6, %v7083_v41  ;;  %v7546_v41 = vld [vmem:[#allocation12 + $0x470] sm:$0xff] }
 0xdd1   : > { %7688 = vmatprep.subr.mxu1 %v18131_v16  ;;  %v17169_v7 = vpop.f32.mrf.mxu0 }
 0xdd2   : > { %10866 = vmatpush2.msk.msra.mxu1 %vm6443_vm7, %v7525_v28 }
 0xdd3   : > { %7315 = vmatmul.mubr.f32.gmra.mxu1 %v7082_v34  ;;  %7690 = vmatprep.subr.mxu1 %v18131_v16  ;;  %v12865_v11 = vpop.f32.mrf.mxu0  ;;  %v7549_v34 = vld [vmem:[#allocation12 + $0x488] sm:$0xff] }
 0xdd4   : > { %7691 = vmatpush2.msra.mxu1 %v7520_v1  ;;  %10867 = vmatprep.mubr.msk.f32.mxu1 %vm6379_vm6, %v7531_v24  ;;  %v7548_v11 = vld [vmem:[#allocation12 + $0x480] sm:$0xff] }
 0xdd5   : > { %7692 = vmatprep.subr.mxu1 %v18131_v16  ;;  %v17175_v15 = vpop.f32.mrf.mxu0 }
 0xdd6   : > { %7693 = vmatpush2.msra.mxu1 %v7515_v12 }
 0xdd7   : > { %7694 = vmatprep.subr.mxu1 %v18131_v16  ;;  %v12868_v48 = vpop.f32.mrf.mxu0 }
 0xdd8   : > { %7695 = vmatpush2.msra.mxu1 %v7510_v9 }
 0xdd9   : > { %7696 = vmatprep.subr.mxu1 %v18131_v16  ;;  %v17179_v58 = vpop.f32.mrf.mxu0 }
 0xdda   : > { %7697 = vmatpush2.msra.mxu1 %v17141_v53 }
 0xddb   : > { %7698 = vmatprep.subr.mxu1 %v18131_v16  ;;  %v12871_v43 = vpop.f32.mrf.mxu0 }
 0xddc   : > { %7699 = vmatpush2.msra.mxu1 %v17136_v25  ;;  %v7537_v25 = vld [vmem:[#allocation12 + $0x428] sm:$0xff]  ;;  %v7551_v43 = vld [vmem:[#allocation12 + $0x498] sm:$0xff] }
 0xddd   : > { %7700 = vmatprep.subr.mxu1 %v18131_v16  ;;  %v17185_v29 = vpop.f32.mrf.mxu0 }
 0xdde   : > { %7701 = vmatpush2.msra.mxu1 %v17131_v63 }
 0xddf   : > { %7703 = vmatmul.mubr.f32.vlgmr.msra.gmra.mxu1 %v7530_v22  ;;  %v12874_v2 = vpop.f32.mrf.mxu0  ;;  %8126 = vmatprep.subr.mxu1 %v18131_v16 }
 0xde0   : > { %10868 = vmatprep.mubr.msk.f32.mxu1 %vm6379_vm6, %v7533_v5  ;;  %v7550_v5 = vld [vmem:[#allocation12 + $0x490] sm:$0xff] }
 0xde1   : > { %v17190_v21 = vpop.f32.mrf.mxu0 }
 0xde3   : > { %7708 = vmatmul.mubr.f32.gmra.mxu1 %v7532_v60  ;;  %v12877_v42 = vpop.f32.mrf.mxu0  ;;  %v7553_v60 = vld [vmem:[#allocation12 + $0x4a8] sm:$0xff] }
 0xde4   : > { %10869 = vmatprep.mubr.msk.f32.mxu1 %vm6379_vm6, %v7535_v46  ;;  %v7552_v42 = vld [vmem:[#allocation12 + $0x4a0] sm:$0xff] }
 0xde5   : > { %v17193_v3 = vpop.f32.mrf.mxu0 }
 0xde7   : > { %7713 = vmatmul.mubr.f32.gmra.mxu1 %v7534_v35  ;;  %v12880_v63 = vpop.f32.mrf.mxu0 }
 0xde8   : > { %10870 = vmatprep.mubr.msk.f32.mxu1 %vm6379_vm6, %v7537_v25  ;;  %v7555_v25 = vld [vmem:[#allocation12 + $0x4b8] sm:$0xff] }
 0xde9   : > { %v17196_v37 = vpop.f32.mrf.mxu0 }
 0xdeb   : > { %7718 = vmatmul.mubr.f32.gmra.mxu1 %v7536_v19  ;;  %v12883_v53 = vpop.f32.mrf.mxu0  ;;  %v7554_v19 = vld [vmem:[#allocation12 + $0x4b0] sm:$0xff] }
 0xdec   : > { %10871 = vmatprep.mubr.msk.f32.mxu1 %vm6379_vm6, %v7539_v61  ;;  %v7557_v53 = vld [vmem:[#allocation12 + $0x4c8] sm:$0xff] }
 0xded   : > { %v17199_v26 = vpop.f32.mrf.mxu0 }
 0xdef   : > { %7723 = vmatmul.mubr.f32.gmra.mxu1 %v7538_v31  ;;  %v12886_v9 = vpop.f32.mrf.mxu0 }
 0xdf0   : > { %10872 = vmatprep.mubr.msk.f32.mxu1 %vm6379_vm6, %v7541_v13  ;;  %v7556_v13 = vld [vmem:[#allocation12 + $0x4c0] sm:$0xff] }
 0xdf1   : > { %v17202_v45 = vpop.f32.mrf.mxu0 }
 0xdf3   : > { %7728 = vmatmul.mubr.f32.gmra.mxu1 %v7540_v32  ;;  %v12889_v12 = vpop.f32.mrf.mxu0  ;;  %v7559_v32 = vld [vmem:[#allocation12 + $0x4d8] sm:$0xff] }
 0xdf4   : > { %10873 = vmatprep.mubr.msk.f32.mxu1 %vm6379_vm6, %v7543_v51  ;;  %v7558_v12 = vld [vmem:[#allocation12 + $0x4d0] sm:$0xff] }
 0xdf5   : > { %v17205_v59 = vpop.f32.mrf.mxu0 }
 0xdf7   : > { %7733 = vmatmul.mubr.f32.gmra.mxu1 %v7542_v44  ;;  %v12892_v1 = vpop.f32.mrf.mxu0 }
 0xdf8   : > { %10874 = vmatprep.mubr.msk.f32.mxu1 %vm6379_vm6, %v7545_v0  ;;  %v7561_v0 = vld [vmem:[#allocation12 + $0x4e8] sm:$0xff] }
 0xdf9   : > { %v7953_v20 = vpop.f32.mrf.mxu0 }
 0xdfb   : > { %7738 = vmatmul.mubr.f32.gmra.mxu1 %v7544_v30  ;;  %v12895_v28 = vpop.f32.mrf.mxu0  ;;  %v7560_v30 = vld [vmem:[#allocation12 + $0x4e0] sm:$0xff] }
 0xdfc   : > { %10875 = vmatprep.mubr.msk.f32.mxu1 %vm6379_vm6, %v7547_v8  ;;  %v7563_v28 = vld [vmem:[#allocation12 + $0x4f8] sm:$0xff] }
 0xdfd   : > { %v7958_v52 = vpop.f32.mrf.mxu0 }
 0xdff   : > { %7743 = vmatmul.mubr.f32.gmra.mxu1 %v7546_v41  ;;  %v12898_v24 = vpop.f32.mrf.mxu0 }
 0xe00   : > { %10876 = vmatprep.mubr.msk.f32.mxu1 %vm6379_vm6, %v7549_v34 }
 0xe01   : > { %v7963_v48 = vpop.f32.mrf.mxu0 }
 0xe03   : > { %7748 = vmatmul.mubr.f32.gmra.mxu1 %v7548_v11  ;;  %v12901_v22 = vpop.f32.mrf.mxu0 }
 0xe04   : > { %10877 = vmatprep.mubr.msk.f32.mxu1 %vm6379_vm6, %v7551_v43 }
 0xe05   : > { %v7968_v2 = vpop.f32.mrf.mxu0 }
 0xe07   : > { %7753 = vmatmul.mubr.f32.gmra.mxu1 %v7550_v5  ;;  %v12904_v46 = vpop.f32.mrf.mxu0 }
 0xe08   : > { %10878 = vmatprep.mubr.msk.f32.mxu1 %vm6379_vm6, %v7553_v60  ;;  %v8020_v60 = vld [vmem:[#allocation12 + $0x550] sm:$0xff]  ;;  %v8023_v46 = vld [vmem:[#allocation12 + $0x568] sm:$0xff] }
 0xe09   : > { %v7973_v35 = vpop.f32.mrf.mxu0 }
 0xe0b   : > { %7758 = vmatmul.mubr.f32.gmra.mxu1 %v7552_v42  ;;  %v12907_v63 = vpop.f32.mrf.mxu0  ;;  %v8022_v42 = vld [vmem:[#allocation12 + $0x560] sm:$0xff] }
 0xe0c   : > { %10879 = vmatprep.mubr.msk.f32.mxu1 %vm6379_vm6, %v7555_v25 }
 0xe0d   : > { %v7978_v61 = vpop.f32.mrf.mxu0 }
 0xe0e   : > { %8127 = vmatpush1.msra.mxu1 %v7978_v61 }
 0xe0f   : > { %7763 = vmatmul.mubr.f32.gmra.mxu1 %v7554_v19  ;;  %v12910_v31 = vpop.f32.mrf.mxu0  ;;  %8128 = vmatprep.subr.mxu1 %v18131_v16  ;;  %v8024_v19 = vld [vmem:[#allocation12 + $0x570] sm:$0xff] }
 0xe10   : > { %8129 = vmatpush1.msra.mxu1 %v7973_v35  ;;  %10880 = vmatprep.mubr.msk.f32.mxu1 %vm6379_vm6, %v7557_v53  ;;  %v8025_v35 = vld [vmem:[#allocation12 + $0x578] sm:$0xff]  ;;  %v8027_v53 = vld [vmem:[#allocation12 + $0x588] sm:$0xff] }
 0xe11   : > { %v17215_v9 = vpop.f32.mrf.mxu0  ;;  %8130 = vmatprep.subr.mxu1 %v18131_v16 }
 0xe12   : > { %8131 = vmatpush1.msra.mxu1 %v7968_v2 }
 0xe13   : > { %7768 = vmatmul.mubr.f32.gmra.mxu1 %v7556_v13  ;;  %v12913_v51 = vpop.f32.mrf.mxu0  ;;  %8132 = vmatprep.subr.mxu1 %v18131_v16 }
 0xe14   : > { %8133 = vmatpush1.msra.mxu1 %v7963_v48  ;;  %10881 = vmatprep.mubr.msk.f32.mxu1 %vm6379_vm6, %v7559_v32  ;;  %v8029_v51 = vld [vmem:[#allocation12 + $0x598] sm:$0xff] }
 0xe15   : > { %v17220_v44 = vpop.f32.mrf.mxu0  ;;  %8134 = vmatprep.subr.mxu1 %v18131_v16 }
 0xe16   : > { %8135 = vmatpush1.msra.mxu1 %v7958_v52  ;;  %v7562_v52 = vld [vmem:[#allocation12 + $0x4f0] sm:$0xff] }
 0xe17   : > { %7773 = vmatmul.mubr.f32.gmra.mxu1 %v7558_v12  ;;  %v12916_v1 = vpop.f32.mrf.mxu0  ;;  %8136 = vmatprep.subr.mxu1 %v18131_v16 }
 0xe18   : > { %8137 = vmatpush1.msra.mxu1 %v7953_v20  ;;  %10882 = vmatprep.mubr.msk.f32.mxu1 %vm6379_vm6, %v7561_v0  ;;  %v7565_v20 = vld [vmem:[#allocation12 + $0x508] sm:$0xff] }
 0xe19   : > { %v7993_v8 = vpop.f32.mrf.mxu0  ;;  %8138 = vmatprep.subr.mxu1 %v18131_v16  ;;  %v8031_v1 = vld [vmem:[#allocation12 + $0x5a8] sm:$0xff] }
 0xe1a   : > { %8139 = vmatpush1.msra.mxu1 %v17205_v59  ;;  %v7564_v59 = vld [vmem:[#allocation12 + $0x500] sm:$0xff] }
 0xe1b   : > { %7778 = vmatmul.mubr.f32.gmra.mxu1 %v7560_v30  ;;  %v12919_v41 = vpop.f32.mrf.mxu0  ;;  %8140 = vmatprep.subr.mxu1 %v18131_v16 }
 0xe1c   : > { %8141 = vmatpush1.msra.mxu1 %v17202_v45  ;;  %10883 = vmatprep.mubr.msk.f32.mxu1 %vm6379_vm6, %v7563_v28  ;;  %v7567_v45 = vld [vmem:[#allocation12 + $0x518] sm:$0xff] }
 0xe1d   : > { %v7998_v34 = vpop.f32.mrf.mxu0  ;;  %8142 = vmatprep.subr.mxu1 %v18131_v16  ;;  %v8033_v41 = vld [vmem:[#allocation12 + $0x5b8] sm:$0xff] }
 0xe1e   : > { %8143 = vmatpush1.msra.mxu1 %v17199_v26  ;;  %v7566_v26 = vld [vmem:[#allocation12 + $0x510] sm:$0xff] }
 0xe1f   : > { %7783 = vmatmul.mubr.f32.gmra.mxu1 %v7562_v52  ;;  %v12922_v24 = vpop.f32.mrf.mxu0  ;;  %8144 = vmatprep.subr.mxu1 %v18131_v16 }
 0xe20   : > { %8145 = vmatpush1.msra.mxu1 %v17196_v37  ;;  %10884 = vmatprep.mubr.msk.f32.mxu1 %vm6379_vm6, %v7565_v20  ;;  %v7569_v37 = vld [vmem:[#allocation12 + $0x528] sm:$0xff] }
 0xe21   : > { %v8003_v11 = vpop.f32.mrf.mxu0  ;;  %8146 = vmatprep.subr.mxu1 %v18131_v16  ;;  %v8035_v24 = vld [vmem:[#allocation12 + $0x5c8] sm:$0xff] }
 0xe22   : > { %8147 = vmatpush1.msra.mxu1 %v17193_v3  ;;  %v7568_v3 = vld [vmem:[#allocation12 + $0x520] sm:$0xff] }
 0xe23   : > { %7788 = vmatmul.mubr.f32.gmra.mxu1 %v7564_v59  ;;  %v12925_v48 = vpop.f32.mrf.mxu0  ;;  %8148 = vmatprep.subr.mxu1 %v18131_v16 }
 0xe24   : > { %8149 = vmatpush1.msra.mxu1 %v17190_v21  ;;  %10885 = vmatprep.mubr.msk.f32.mxu1 %vm6379_vm6, %v7567_v45  ;;  %v7571_v21 = vld [vmem:[#allocation12 + $0x538] sm:$0xff] }
 0xe25   : > { %v8008_v43 = vpop.f32.mrf.mxu0  ;;  %8150 = vmatprep.subr.mxu1 %v18131_v16  ;;  %v8037_v48 = vld [vmem:[#allocation12 + $0x5d8] sm:$0xff] }
 0xe26   : > { %8151 = vmatpush1.msra.mxu1 %v17185_v29  ;;  %v7570_v29 = vld [vmem:[#allocation12 + $0x530] sm:$0xff] }
 0xe27   : > { %7793 = vmatmul.mubr.f32.gmra.mxu1 %v7566_v26  ;;  %v12928_v22 = vpop.f32.mrf.mxu0  ;;  %8152 = vmatprep.subr.mxu1 %v18131_v16 }
 0xe28   : > { %8153 = vmatpush1.msra.mxu1 %v17179_v58  ;;  %10886 = vmatprep.mubr.msk.f32.mxu1 %vm6379_vm6, %v7569_v37  ;;  %v8019_v58 = vld [vmem:[#allocation12 + $0x548] sm:$0xff] }
 0xe29   : > { %v8013_v5 = vpop.f32.mrf.mxu0  ;;  %8154 = vmatprep.subr.mxu1 %v18131_v16  ;;  %v8039_v22 = vld [vmem:[#allocation12 + $0x5e8] sm:$0xff] }
 0xe2a   : > { %8155 = vmatpush1.msra.mxu1 %v17175_v15  ;;  %v8021_v15 = vld [vmem:[#allocation12 + $0x558] sm:$0xff] }
 0xe2b   : > { %7798 = vmatmul.mubr.f32.gmra.mxu1 %v7568_v3  ;;  %v12931_v2 = vpop.f32.mrf.mxu0  ;;  %8156 = vmatprep.subr.mxu1 %v18131_v16 }
 0xe2c   : > { %8157 = vmatpush1.msra.mxu1 %v17169_v7  ;;  %10887 = vmatprep.mubr.msk.f32.mxu1 %vm6379_vm6, %v7571_v21  ;;  %v8018_v7 = vld [vmem:[#allocation12 + $0x540] sm:$0xff]  ;;  %v8041_v2 = vld [vmem:[#allocation12 + $0x5f8] sm:$0xff] }
 0xe2d   : > { %8176 = vmatprep.subr.mxu1 %v18131_v16 }
 0xe2e   : > { %10916 = vmatpush2.msk.msra.mxu1 %vm6443_vm7, %v8013_v5  ;;  %v8038_v5 = vld [vmem:[#allocation12 + $0x5e0] sm:$0xff] }
 0xe2f   : > { %7803 = vmatmul.mubr.f32.gmra.mxu1 %v7570_v29  ;;  %8178 = vmatprep.subr.mxu1 %v18131_v16 }
 0xe30   : > { %8179 = vmatpush2.msra.mxu1 %v8008_v43  ;;  %10917 = vmatprep.mubr.msk.f32.mxu1 %vm6379_vm6, %v8019_v58  ;;  %v8036_v43 = vld [vmem:[#allocation12 + $0x5d0] sm:$0xff] }
 0xe31   : > { %8180 = vmatprep.subr.mxu1 %v18131_v16  ;;  %v8040_v58 = vld [vmem:[#allocation12 + $0x5f0] sm:$0xff] }
 0xe32   : > { %8181 = vmatpush2.msra.mxu1 %v8003_v11  ;;  %v8034_v11 = vld [vmem:[#allocation12 + $0x5c0] sm:$0xff] }
 0xe33   : > { %8182 = vmatprep.subr.mxu1 %v18131_v16 }
 0xe34   : > { %8183 = vmatpush2.msra.mxu1 %v7998_v34  ;;  %v8032_v34 = vld [vmem:[#allocation12 + $0x5b0] sm:$0xff] }
 0xe35   : > { %8184 = vmatprep.subr.mxu1 %v18131_v16 }
 0xe36   : > { %8185 = vmatpush2.msra.mxu1 %v7993_v8  ;;  %v8030_v8 = vld [vmem:[#allocation12 + $0x5a0] sm:$0xff] }
 0xe37   : > { %8186 = vmatprep.subr.mxu1 %v18131_v16 }
 0xe38   : > { %8187 = vmatpush2.msra.mxu1 %v17220_v44  ;;  %v8028_v44 = vld [vmem:[#allocation12 + $0x590] sm:$0xff] }
 0xe39   : > { %8188 = vmatprep.subr.mxu1 %v18131_v16 }
 0xe3a   : > { %8189 = vmatpush2.msra.mxu1 %v17215_v9  ;;  %v8026_v9 = vld [vmem:[#allocation12 + $0x580] sm:$0xff] }
 0xe3b   : > { %8191 = vmatmul.mubr.f32.vlgmr.msra.gmra.mxu1 %v8018_v7  ;;  %12999 = vmatprep.subr.mxu1 %v18131_v16 }
 0xe3c   : > { %10918 = vmatprep.mubr.msk.f32.mxu1 %vm6379_vm6, %v8021_v15  ;;  %v8043_v15 = vld [vmem:[#allocation12 + $0x608] sm:$0xff] }
 0xe3f   : > { %8196 = vmatmul.mubr.f32.gmra.mxu1 %v8020_v60 }
 0xe40   : > { %10919 = vmatprep.mubr.msk.f32.mxu1 %vm6379_vm6, %v8023_v46  ;;  %v8042_v46 = vld [vmem:[#allocation12 + $0x600] sm:$0xff] }
 0xe43   : > { %v7216_v25 = vpop.f32.mrf.mxu1  ;;  %8201 = vmatmul.mubr.f32.gmra.mxu1 %v8022_v42 }
 0xe44   : > { %v17265_v63 = vadd.f32 %v7216_v25, %v16839_v27  ;;  %10920 = vmatprep.mubr.msk.f32.mxu1 %vm6379_vm6, %v8025_v35  ;;  %v8045_v35 = vld [vmem:[#allocation12 + $0x618] sm:$0xff] }
 0xe45   : > { %v7218_v61 = vpop.f32.mrf.mxu1 }
 0xe47   : > { %v7221_v31 = vpop.f32.mrf.mxu1  ;;  %8206 = vmatmul.mubr.f32.gmra.mxu1 %v8024_v19  ;;  %v8044_v19 = vld [vmem:[#allocation12 + $0x610] sm:$0xff] }
 0xe48   : > { %v17269_v13 = vadd.f32 %v7221_v31, %v16845_v39  ;;  %10921 = vmatprep.mubr.msk.f32.mxu1 %vm6379_vm6, %v8027_v53  ;;  %v8047_v53 = vld [vmem:[#allocation12 + $0x628] sm:$0xff] }
 0xe49   : > { %v7223_v32 = vpop.f32.mrf.mxu1 }
 0xe4a   : > { %v10961_v32 = vld [vmem:[%s18133_s25 + $0x18] sm:$0x3f] }
 0xe4b   : > { %v7226_v12 = vpop.f32.mrf.mxu1  ;;  %8211 = vmatmul.mubr.f32.gmra.mxu1 %v8026_v9  ;;  %v8046_v9 = vld [vmem:[#allocation12 + $0x620] sm:$0xff] }
 0xe4c   : > { %v17273_v27 = vadd.f32 %v7226_v12, %v16851_v56  ;;  %10922 = vmatprep.mubr.msk.f32.mxu1 %vm6379_vm6, %v8029_v51  ;;  %13000 = vmatpush3.msk.msra.mxu1 %vm5922_vm4, %v10961_v32 }
 0xe4d   : > { %v7228_v0 = vpop.f32.mrf.mxu1  ;;  %13001 = vmatprep.subr.mxu1 %v18131_v16 }
 0xe4f   : > { %v7231_v30 = vpop.f32.mrf.mxu1  ;;  %8216 = vmatmul.mubr.f32.gmra.mxu1 %v8028_v44 }
 0xe50   : > { %v17277_v39 = vadd.f32 %v7231_v30, %v16857_v54  ;;  %10923 = vmatprep.mubr.msk.f32.mxu1 %vm6379_vm6, %v8031_v1  ;;  %v8051_v1 = vld [vmem:[#allocation12 + $0x648] sm:$0xff] }
 0xe51   : > { %v7233_v28 = vpop.f32.mrf.mxu1 }
 0xe52   : > { %v8050_v28 = vld [vmem:[#allocation12 + $0x640] sm:$0xff] }
 0xe53   : > { %v7236_v52 = vpop.f32.mrf.mxu1  ;;  %8221 = vmatmul.mubr.f32.gmra.mxu1 %v8030_v8 }
 0xe54   : > { %v17281_v56 = vadd.f32 %v7236_v52, %v16863_v36  ;;  %10924 = vmatprep.mubr.msk.f32.mxu1 %vm6379_vm6, %v8033_v41  ;;  %v8053_v52 = vld [vmem:[#allocation12 + $0x658] sm:$0xff] }
 0xe55   : > { %v7238_v20 = vpop.f32.mrf.mxu1 }
 0xe56   : > { %v8052_v20 = vld [vmem:[#allocation12 + $0x650] sm:$0xff] }
 0xe57   : > { %v7241_v59 = vpop.f32.mrf.mxu1  ;;  %8226 = vmatmul.mubr.f32.gmra.mxu1 %v8032_v34 }
 0xe58   : > { %v17285_v54 = vadd.f32 %v7241_v59, %v16869_v38  ;;  %10925 = vmatprep.mubr.msk.f32.mxu1 %vm6379_vm6, %v8035_v24  ;;  %v8055_v59 = vld [vmem:[#allocation12 + $0x668] sm:$0xff] }
 0xe59   : > { %v7243_v45 = vpop.f32.mrf.mxu1 }
 0xe5b   : > { %v7246_v26 = vpop.f32.mrf.mxu1  ;;  %8231 = vmatmul.mubr.f32.gmra.mxu1 %v8034_v11 }
 0xe5c   : > { %v17289_v36 = vadd.f32 %v7246_v26, %v16875_v62  ;;  %10926 = vmatprep.mubr.msk.f32.mxu1 %vm6379_vm6, %v8037_v48  ;;  %v8485_v48 = vld [vmem:[%s18133_s25] sm:$0xff]  ;;  %v10960_v26 = vld [vmem:[%s18133_s25 + $0x10] sm:$0xff] }
 0xe5d   : > { %v7248_v37 = vpop.f32.mrf.mxu1  ;;  %13002 = vmatpush3.msra.mxu1 %v10960_v26 }
 0xe5e   : > { %v8057_v37 = vld [vmem:[#allocation12 + $0x678] sm:$0xff]  ;;  %9282 = vmatprep.subr.mxu1 %v18131_v16 }
 0xe5f   : > { %v7251_v3 = vpop.f32.mrf.mxu1  ;;  %8236 = vmatmul.mubr.f32.gmra.mxu1 %v8036_v43 }
 0xe60   : > { %v17293_v38 = vadd.f32 %v7251_v3, %v16881_v55  ;;  %10927 = vmatprep.mubr.msk.f32.mxu1 %vm6379_vm6, %v8039_v22  ;;  %v8056_v3 = vld [vmem:[#allocation12 + $0x670] sm:$0xff] }
 0xe61   : > { %v7253_v21 = vpop.f32.mrf.mxu1 }
 0xe62   : > { %v8059_v21 = vld [vmem:[#allocation12 + $0x688] sm:$0xff] }
 0xe63   : > { %v7256_v29 = vpop.f32.mrf.mxu1  ;;  %8241 = vmatmul.mubr.f32.gmra.mxu1 %v8038_v5 }
 0xe64   : > { %v17297_v62 = vadd.f32 %v7256_v29, %v16887_v40  ;;  %10928 = vmatprep.mubr.msk.f32.mxu1 %vm6379_vm6, %v8041_v2 }
 0xe65   : > { %v7258_v7 = vpop.f32.mrf.mxu1 }
 0xe67   : > { %v7261_v60 = vpop.f32.mrf.mxu1  ;;  %8246 = vmatmul.mubr.f32.gmra.mxu1 %v8040_v58  ;;  %v8058_v58 = vld [vmem:[#allocation12 + $0x680] sm:$0xff] }
 0xe68   : > { %v17301_v55 = vadd.f32 %v7261_v60, %v16893_v4  ;;  %10929 = vmatprep.mubr.msk.f32.mxu1 %vm6379_vm6, %v8043_v15 }
 0xe69   : > { %v7263_v42 = vpop.f32.mrf.mxu1 }
 0xe6b   : > { %v7266_v25 = vpop.f32.mrf.mxu1  ;;  %8251 = vmatmul.mubr.f32.gmra.mxu1 %v8042_v46 }
 0xe6c   : > { %v17305_v40 = vadd.f32 %v7266_v25, %v16899_v50  ;;  %10930 = vmatprep.mubr.msk.f32.mxu1 %vm6379_vm6, %v8045_v35  ;;  %v8049_v50 = vld [vmem:[#allocation12 + $0x638] sm:$0xff] }
 0xe6d   : > { %v7268_v61 = vpop.f32.mrf.mxu1 }
 0xe6f   : > { %v7271_v31 = vpop.f32.mrf.mxu1  ;;  %8256 = vmatmul.mubr.f32.gmra.mxu1 %v8044_v19 }
 0xe70   : > { %v17309_v4 = vadd.f32 %v7271_v31, %v16905_v18  ;;  %10931 = vmatprep.mubr.msk.f32.mxu1 %vm6379_vm6, %v8047_v53  ;;  %v8048_v18 = vld [vmem:[#allocation12 + $0x630] sm:$0xff] }
 0xe71   : > { %v7273_v51 = vpop.f32.mrf.mxu1 }
 0xe73   : > { %v7276_v12 = vpop.f32.mrf.mxu1  ;;  %8261 = vmatmul.mubr.f32.gmra.mxu1 %v8046_v9 }
 0xe74   : > { %v17318_v44 = vadd.f32 %v7276_v12, %v16911_v47  ;;  %10932 = vmatprep.mubr.msk.f32.mxu1 %vm6379_vm6, %v8049_v50 }
 0xe75   : > { %v7278_v0 = vpop.f32.mrf.mxu1 }
 0xe77   : > { %v7281_v30 = vpop.f32.mrf.mxu1  ;;  %8266 = vmatmul.mubr.f32.gmra.mxu1 %v8048_v18 }
 0xe78   : > { %v17322_v8 = vadd.f32 %v7281_v30, %v16917_v17  ;;  %10933 = vmatprep.mubr.msk.f32.mxu1 %vm6379_vm6, %v8051_v1  ;;  %v8486_v17 = vld [vmem:[%s18133_s25 + $0x8] sm:$0x3f] }
 0xe79   : > { %v7283_v41 = vpop.f32.mrf.mxu1  ;;  %12933 = vmatpush3.msk.msra.mxu0 %vm5922_vm4, %v8486_v17 }
 0xe7a   : > { %12934 = vmatprep.subr.mxu0 %v18131_v16 }
 0xe7b   : > { %v7286_v34 = vpop.f32.mrf.mxu1  ;;  %8271 = vmatmul.mubr.f32.gmra.mxu1 %v8050_v28  ;;  %12935 = vmatpush3.msra.mxu0 %v8485_v48 }
 0xe7c   : > { %v17326_v47 = vadd.f32 %v7286_v34, %v16923_v14  ;;  %10934 = vmatprep.mubr.msk.f32.mxu1 %vm6379_vm6, %v8053_v52  ;;  %v8054_v14 = vld [vmem:[#allocation12 + $0x660] sm:$0xff]  ;;  %9049 = vmatprep.subr.mxu0 %v18131_v16 }
 0xe7d   : > { %v7288_v24 = vpop.f32.mrf.mxu1 }
 0xe7f   : > { %v7291_v11 = vpop.f32.mrf.mxu1  ;;  %8276 = vmatmul.mubr.f32.gmra.mxu1 %v8052_v20 }
 0xe80   : > { %v17334_v45 = vadd.f32 %v7291_v11, %v16929_v57  ;;  %10935 = vmatprep.mubr.msk.f32.mxu1 %vm6379_vm6, %v8055_v59 }
 0xe81   : > { %v7293_v43 = vpop.f32.mrf.mxu1 }
 0xe83   : > { %v7296_v57 = vpop.f32.mrf.mxu1  ;;  %8281 = vmatmul.mubr.f32.gmra.mxu1 %v8054_v14 }
 0xe84   : > { %v17347_v22 = vadd.f32 %v7296_v57, %v16936_v10  ;;  %10936 = vmatprep.mubr.msk.f32.mxu1 %vm6379_vm6, %v8057_v37 }
 0xe85   : > { %v7298_v5 = vpop.f32.mrf.mxu1 }
 0xe87   : > { %v7301_v2 = vpop.f32.mrf.mxu1  ;;  %8286 = vmatmul.mubr.f32.gmra.mxu1 %v8056_v3 }
 0xe88   : > { %v17351_v29 = vadd.f32 %v7301_v2, %v16942_v33  ;;  %10937 = vmatprep.mubr.msk.f32.mxu1 %vm6379_vm6, %v8059_v21 }
 0xe89   : > { %v7303_v7 = vpop.f32.mrf.mxu1 }
 0xe8b   : > { %v7306_v15 = vpop.f32.mrf.mxu1  ;;  %8291 = vmatmul.mubr.f32.gmra.mxu1 %v8058_v58 }
 0xe8c   : > { %v17355_v60 = vadd.f32 %v7306_v15, %v16948_v23  ;;  %13003 = vmatprep.mubr.msk.f32.mxu1 %vm13581_vm2, %v18131_v16 }
 0xe8d   : > { %v7308_v10 = vpop.f32.mrf.mxu1 }
 0xe8f   : > { %v7311_v46 = vpop.f32.mrf.mxu1 }
 0xe90   : > { %v17360_v42 = vadd.f32 %v7311_v46, %v16954_v49 }
 0xe91   : > { %v7313_v35 = vpop.f32.mrf.mxu1 }
 0xe93   : > { %v7316_v33 = vpop.f32.mrf.mxu1 }
 0xe94   : > { %v17363_v25 = vadd.f32 %v7316_v33, %v16960_v6 }
 0xe95   : > { %v7318_v19 = vpop.f32.mrf.mxu1 }
 0xe9f   : > { %v7704_v61 = vpop.f32.mrf.mxu1 }
 0xea0   : > { %v17366_v53 = vadd.f32 %v7704_v61, %v17265_v63 }
 0xea1   : > { %v7706_v23 = vpop.f32.mrf.mxu1 }
 0xea3   : > { %v7709_v31 = vpop.f32.mrf.mxu1 }
 0xea4   : > { %v17369_v9 = vadd.f32 %v7709_v31, %v17269_v13 }
 0xea5   : > { %v7711_v32 = vpop.f32.mrf.mxu1 }
 0xea7   : > { %v7714_v51 = vpop.f32.mrf.mxu1 }
 0xea8   : > { %v17372_v49 = vadd.f32 %v7714_v51, %v17273_v27 }
 0xea9   : > { %v7716_v50 = vpop.f32.mrf.mxu1 }
 0xeaa   : > { %v8341_v50 = vpop.permute.xlu1 %8340 }
 0xeab   : > { %v7719_v12 = vpop.f32.mrf.mxu1 }
 0xeac   : > { %v17375_v6 = vadd.f32 %v7719_v12, %v17277_v39 }
 0xead   : > { %v7721_v18 = vpop.f32.mrf.mxu1 }
 0xeaf   : > { %v7724_v0 = vpop.f32.mrf.mxu1 }
 0xeb0   : > { %v17378_v63 = vadd.f32 %v7724_v0, %v17281_v56 }
 0xeb1   : > { %v7726_v1 = vpop.f32.mrf.mxu1 }
 0xeb3   : > { %v7729_v30 = vpop.f32.mrf.mxu1 }
 0xeb4   : > { %v17381_v13 = vadd.f32 %v7729_v30, %v17285_v54 }
 0xeb5   : > { %v7731_v28 = vpop.f32.mrf.mxu1 }
 0xeb7   : > { %v7734_v41 = vpop.f32.mrf.mxu1 }
 0xeb8   : > { %v17384_v27 = vadd.f32 %v7734_v41, %v17289_v36  ;;  %v8351_v41 = vpop.permute.xlu1 %8350 }
 0xeb9   : > { %v7736_v52 = vpop.f32.mrf.mxu1 }
 0xebb   : > { %v7739_v34 = vpop.f32.mrf.mxu1 }
 0xebc   : > { %v17387_v39 = vadd.f32 %v7739_v34, %v17293_v38 }
 0xebd   : > { %v7741_v20 = vpop.f32.mrf.mxu1 }
 0xebf   : > { %v7744_v24 = vpop.f32.mrf.mxu1 }
 0xec0   : > { %v17390_v56 = vadd.f32 %v7744_v24, %v17297_v62 }
 0xec1   : > { %v7746_v59 = vpop.f32.mrf.mxu1 }
 0xec3   : > { %v7749_v17 = vpop.f32.mrf.mxu1 }
 0xec4   : > { %v17393_v54 = vadd.f32 %v7749_v17, %v17301_v55 }
 0xec5   : > { %v7751_v11 = vpop.f32.mrf.mxu1 }
 0xec7   : > { %v7754_v14 = vpop.f32.mrf.mxu1 }
 0xec8   : > { %v17396_v36 = vadd.f32 %v7754_v14, %v17305_v40 }
 0xec9   : > { %v7756_v48 = vpop.f32.mrf.mxu1 }
 0xecb   : > { %v7759_v26 = vpop.f32.mrf.mxu1 }
 0xecc   : > { %v17399_v38 = vadd.f32 %v7759_v26, %v17309_v4  ;;  %v8361_v26 = vpop.permute.xlu1 %8360 }
 0xecd   : > { %v7761_v43 = vpop.f32.mrf.mxu1 }
 0xecf   : > { %v7764_v37 = vpop.f32.mrf.mxu1 }
 0xed0   : > { %v17402_v62 = vadd.f32 %v7764_v37, %v17318_v44 }
 0xed1   : > { %v7766_v57 = vpop.f32.mrf.mxu1 }
 0xed3   : > { %v7769_v3 = vpop.f32.mrf.mxu1 }
 0xed4   : > { %v17405_v55 = vadd.f32 %v7769_v3, %v17322_v8 }
 0xed5   : > { %v7771_v5 = vpop.f32.mrf.mxu1 }
 0xed7   : > { %v7774_v21 = vpop.f32.mrf.mxu1 }
 0xed8   : > { %v17408_v40 = vadd.f32 %v7774_v21, %v17326_v47 }
 0xed9   : > { %v7776_v2 = vpop.f32.mrf.mxu1 }
 0xedb   : > { %v7779_v58 = vpop.f32.mrf.mxu1 }
 0xedc   : > { %v17411_v4 = vadd.f32 %v7779_v58, %v17334_v45 }
 0xedd   : > { %v7781_v7 = vpop.f32.mrf.mxu1 }
 0xedf   : > { %v7784_v15 = vpop.f32.mrf.mxu1 }
 0xee0   : > { %v17414_v44 = vadd.f32 %v7784_v15, %v17347_v22  ;;  %v8371_v15 = vpop.permute.xlu1 %8370 }
 0xee1   : > { %v7786_v10 = vpop.f32.mrf.mxu1 }
 0xee3   : > { %v7789_v46 = vpop.f32.mrf.mxu1 }
 0xee4   : > { %v17417_v8 = vadd.f32 %v7789_v46, %v17351_v29 }
 0xee5   : > { %v7791_v35 = vpop.f32.mrf.mxu1 }
 0xee7   : > { %v7794_v33 = vpop.f32.mrf.mxu1 }
 0xee8   : > { %v17420_v47 = vadd.f32 %v7794_v33, %v17355_v60 }
 0xee9   : > { %v7796_v19 = vpop.f32.mrf.mxu1 }
 0xeeb   : > { %v7799_v61 = vpop.f32.mrf.mxu1 }
 0xeec   : > { %v17423_v45 = vadd.f32 %v7799_v61, %v17360_v42  ;;  %v8346_v42 = vpop.permute.xlu0 %8345 }
 0xeed   : > { %v7801_v23 = vpop.f32.mrf.mxu1 }
 0xeef   : > { %v7804_v31 = vpop.f32.mrf.mxu1 }
 0xef0   : > { %v17426_v22 = vadd.f32 %v7804_v31, %v17363_v25  ;;  %v8356_v59 = vpop.permute.xlu0 %8355 }
 0xef1   : > { %v7806_v32 = vpop.f32.mrf.mxu1 }
 0xef4   : > { %v8366_v5 = vpop.permute.xlu0 %8365 }
 0xef8   : > { %v8376_v19 = vpop.permute.xlu0 %8375 }
 0xefb   : > { %v8192_v51 = vpop.f32.mrf.mxu1 }
 0xefc   : > { %v8296_v29 = vadd.f32 %v8192_v51, %v17366_v53  ;;  %v8381_v51 = vpop.permute.xlu1 %8380 }
 0xefd   : > { %v8194_v12 = vpop.f32.mrf.mxu1 }
 0xefe   : > { %v8443_v18 = vadd.f32 %v8341_v50, %v8296_v29 }
 0xeff   : > { %v8197_v0 = vpop.f32.mrf.mxu1 }
 0xf00   : > { %v17429_v60 = vmax.f32 %v8443_v18, 0.0  ;;  %v8297_v1 = vadd.f32 %v8197_v0, %v17369_v9  ;;  %v8386_v0 = vpop.permute.xlu0 %8385 }
 0xf01   : > { %v8199_v30 = vpop.f32.mrf.mxu1 }
 0xf02   : > { %v8444_v28 = vadd.f32 %v8346_v42, %v8297_v1  ;;  %12937 = vmatmul.mubr.msk.f32.vlgmr.msra.gmra.mxu0 %vm8487_vm8, %v17429_v60  ;;  %13004 = vmatmul.mubr.msk.f32.vlgmr.msra.gmra.mxu1 %vm8487_vm8, %v17429_v60 }
 0xf03   : > { %v8202_v25 = vpop.f32.mrf.mxu1  ;;  %12939 = vmatprep.mubr.msk.f32.mxu0 %vm13581_vm2, %v18131_v16  ;;  %13006 = vmatprep.mubr.msk.f32.mxu1 %vm13581_vm2, %v18131_v16 }
 0xf04   : > { %v17440_v53 = vmax.f32 %v8444_v28, 0.0  ;;  %v8298_v9 = vadd.f32 %v8202_v25, %v17372_v49  ;;  %v8391_v25 = vpop.permute.xlu1 %8390 }
 0xf05   : > { %v8204_v52 = vpop.f32.mrf.mxu1 }
 0xf06   : > { %v8445_v34 = vadd.f32 %v8351_v41, %v8298_v9  ;;  %12940 = vmatmul.mubr.msk.f32.gmra.mxu0 %vm8487_vm8, %v17440_v53  ;;  %13007 = vmatmul.mubr.msk.f32.gmra.mxu1 %vm8487_vm8, %v17440_v53 }
 0xf07   : > { %v8207_v20 = vpop.f32.mrf.mxu1  ;;  %12942 = vmatprep.mubr.msk.f32.mxu0 %vm13581_vm2, %v18131_v16  ;;  %13009 = vmatprep.mubr.msk.f32.mxu1 %vm13581_vm2, %v18131_v16 }
 0xf08   : > { %v17451_v24 = vmax.f32 %v8445_v34, 0.0  ;;  %v8299_v49 = vadd.f32 %v8207_v20, %v17375_v6  ;;  %v8396_v20 = vpop.permute.xlu0 %8395 }
 0xf09   : > { %v8209_v17 = vpop.f32.mrf.mxu1 }
 0xf0a   : > { %v8446_v11 = vadd.f32 %v8356_v59, %v8299_v49  ;;  %12943 = vmatmul.mubr.msk.f32.gmra.mxu0 %vm8487_vm8, %v17451_v24  ;;  %13010 = vmatmul.mubr.msk.f32.gmra.mxu1 %vm8487_vm8, %v17451_v24 }
 0xf0b   : > { %v8212_v14 = vpop.f32.mrf.mxu1  ;;  %12945 = vmatprep.mubr.msk.f32.mxu0 %vm13581_vm2, %v18131_v16  ;;  %13012 = vmatprep.mubr.msk.f32.mxu1 %vm13581_vm2, %v18131_v16 }
 0xf0c   : > { %v17462_v48 = vmax.f32 %v8446_v11, 0.0  ;;  %v8300_v6 = vadd.f32 %v8212_v14, %v17378_v63  ;;  %v8401_v14 = vpop.permute.xlu1 %8400 }
 0xf0d   : > { %v8214_v43 = vpop.f32.mrf.mxu1 }
 0xf0e   : > { %v8447_v37 = vadd.f32 %v8361_v26, %v8300_v6  ;;  %12946 = vmatmul.mubr.msk.f32.gmra.mxu0 %vm8487_vm8, %v17462_v48  ;;  %13013 = vmatmul.mubr.msk.f32.gmra.mxu1 %vm8487_vm8, %v17462_v48 }
 0xf0f   : > { %v8217_v57 = vpop.f32.mrf.mxu1  ;;  %12948 = vmatprep.mubr.msk.f32.mxu0 %vm13581_vm2, %v18131_v16  ;;  %13015 = vmatprep.mubr.msk.f32.mxu1 %vm13581_vm2, %v18131_v16 }
 0xf10   : > { %v17473_v3 = vmax.f32 %v8447_v37, 0.0  ;;  %v8301_v63 = vadd.f32 %v8217_v57, %v17381_v13  ;;  %v8406_v57 = vpop.permute.xlu0 %8405 }
 0xf11   : > { %v8219_v21 = vpop.f32.mrf.mxu1 }
 0xf12   : > { %v8448_v2 = vadd.f32 %v8366_v5, %v8301_v63  ;;  %12949 = vmatmul.mubr.msk.f32.gmra.mxu0 %vm8487_vm8, %v17473_v3  ;;  %13016 = vmatmul.mubr.msk.f32.gmra.mxu1 %vm8487_vm8, %v17473_v3 }
 0xf13   : > { %v8222_v58 = vpop.f32.mrf.mxu1  ;;  %12951 = vmatprep.mubr.msk.f32.mxu0 %vm13581_vm2, %v18131_v16  ;;  %13018 = vmatprep.mubr.msk.f32.mxu1 %vm13581_vm2, %v18131_v16 }
 0xf14   : > { %v17484_v7 = vmax.f32 %v8448_v2, 0.0  ;;  %v8302_v13 = vadd.f32 %v8222_v58, %v17384_v27  ;;  %v8411_v58 = vpop.permute.xlu1 %8410 }
 0xf15   : > { %v8224_v10 = vpop.f32.mrf.mxu1 }
 0xf16   : > { %v8449_v46 = vadd.f32 %v8371_v15, %v8302_v13  ;;  %12952 = vmatmul.mubr.msk.f32.gmra.mxu0 %vm8487_vm8, %v17484_v7  ;;  %13019 = vmatmul.mubr.msk.f32.gmra.mxu1 %vm8487_vm8, %v17484_v7 }
 0xf17   : > { %v8227_v35 = vpop.f32.mrf.mxu1  ;;  %12954 = vmatprep.mubr.msk.f32.mxu0 %vm13581_vm2, %v18131_v16  ;;  %13021 = vmatprep.mubr.msk.f32.mxu1 %vm13581_vm2, %v18131_v16 }
 0xf18   : > { %v17495_v33 = vmax.f32 %v8449_v46, 0.0  ;;  %v8303_v27 = vadd.f32 %v8227_v35, %v17387_v39  ;;  %v8416_v35 = vpop.permute.xlu0 %8415 }
 0xf19   : > { %v8229_v61 = vpop.f32.mrf.mxu1 }
 0xf1a   : > { %v8450_v23 = vadd.f32 %v8376_v19, %v8303_v27  ;;  %12955 = vmatmul.mubr.msk.f32.gmra.mxu0 %vm8487_vm8, %v17495_v33  ;;  %13022 = vmatmul.mubr.msk.f32.gmra.mxu1 %vm8487_vm8, %v17495_v33 }
 0xf1b   : > { %v8232_v31 = vpop.f32.mrf.mxu1  ;;  %12957 = vmatprep.mubr.msk.f32.mxu0 %vm13581_vm2, %v18131_v16  ;;  %13024 = vmatprep.mubr.msk.f32.mxu1 %vm13581_vm2, %v18131_v16 }
 0xf1c   : > { %v17506_v32 = vmax.f32 %v8450_v23, 0.0  ;;  %v8304_v39 = vadd.f32 %v8232_v31, %v17390_v56  ;;  %v8421_v31 = vpop.permute.xlu1 %8420 }
 0xf1d   : > { %v8234_v29 = vpop.f32.mrf.mxu1 }
 0xf1e   : > { %v8451_v50 = vadd.f32 %v8381_v51, %v8304_v39  ;;  %12958 = vmatmul.mubr.msk.f32.gmra.mxu0 %vm8487_vm8, %v17506_v32  ;;  %13025 = vmatmul.mubr.msk.f32.gmra.mxu1 %vm8487_vm8, %v17506_v32 }
 0xf1f   : > { %v8237_v12 = vpop.f32.mrf.mxu1  ;;  %12960 = vmatprep.mubr.msk.f32.mxu0 %vm13581_vm2, %v18131_v16  ;;  %13027 = vmatprep.mubr.msk.f32.mxu1 %vm13581_vm2, %v18131_v16 }
 0xf20   : > { %v17517_v18 = vmax.f32 %v8451_v50, 0.0  ;;  %v8305_v56 = vadd.f32 %v8237_v12, %v17393_v54  ;;  %v8426_v12 = vpop.permute.xlu0 %8425 }
 0xf21   : > { %v8239_v1 = vpop.f32.mrf.mxu1 }
 0xf22   : > { %v8452_v42 = vadd.f32 %v8386_v0, %v8305_v56  ;;  %12961 = vmatmul.mubr.msk.f32.gmra.mxu0 %vm8487_vm8, %v17517_v18  ;;  %13028 = vmatmul.mubr.msk.f32.gmra.mxu1 %vm8487_vm8, %v17517_v18 }
 0xf23   : > { %v8242_v30 = vpop.f32.mrf.mxu1  ;;  %12963 = vmatprep.mubr.msk.f32.mxu0 %vm13581_vm2, %v18131_v16  ;;  %13030 = vmatprep.mubr.msk.f32.mxu1 %vm13581_vm2, %v18131_v16 }
 0xf24   : > { %v17528_v28 = vmax.f32 %v8452_v42, 0.0  ;;  %v8306_v54 = vadd.f32 %v8242_v30, %v17396_v36  ;;  %v8431_v30 = vpop.permute.xlu1 %8430 }
 0xf25   : > { %v8244_v9 = vpop.f32.mrf.mxu1 }
 0xf26   : > { %v8453_v41 = vadd.f32 %v8391_v25, %v8306_v54  ;;  %12964 = vmatmul.mubr.msk.f32.gmra.mxu0 %vm8487_vm8, %v17528_v28  ;;  %13031 = vmatmul.mubr.msk.f32.gmra.mxu1 %vm8487_vm8, %v17528_v28 }
 0xf27   : > { %v8247_v52 = vpop.f32.mrf.mxu1  ;;  %12966 = vmatprep.mubr.msk.f32.mxu0 %vm13581_vm2, %v18131_v16  ;;  %13033 = vmatprep.mubr.msk.f32.mxu1 %vm13581_vm2, %v18131_v16 }
 0xf28   : > { %v17539_v34 = vmax.f32 %v8453_v41, 0.0  ;;  %v8307_v36 = vadd.f32 %v8247_v52, %v17399_v38  ;;  %v8436_v52 = vpop.permute.xlu0 %8435 }
 0xf29   : > { %v8249_v49 = vpop.f32.mrf.mxu1 }
 0xf2a   : > { %v8454_v59 = vadd.f32 %v8396_v20, %v8307_v36  ;;  %12967 = vmatmul.mubr.msk.f32.gmra.mxu0 %vm8487_vm8, %v17539_v34  ;;  %13034 = vmatmul.mubr.msk.f32.gmra.mxu1 %vm8487_vm8, %v17539_v34 }
 0xf2b   : > { %v8252_v17 = vpop.f32.mrf.mxu1  ;;  %12969 = vmatprep.mubr.msk.f32.mxu0 %vm13581_vm2, %v18131_v16  ;;  %13036 = vmatprep.mubr.msk.f32.mxu1 %vm13581_vm2, %v18131_v16 }
 0xf2c   : > { %v17550_v11 = vmax.f32 %v8454_v59, 0.0  ;;  %v8308_v38 = vadd.f32 %v8252_v17, %v17402_v62  ;;  %v8441_v17 = vpop.permute.xlu1 %8440 }
 0xf2d   : > { %v8254_v6 = vpop.f32.mrf.mxu1 }
 0xf2e   : > { %v8455_v26 = vadd.f32 %v8401_v14, %v8308_v38  ;;  %12970 = vmatmul.mubr.msk.f32.gmra.mxu0 %vm8487_vm8, %v17550_v11  ;;  %13037 = vmatmul.mubr.msk.f32.gmra.mxu1 %vm8487_vm8, %v17550_v11 }
 0xf2f   : > { %v8257_v43 = vpop.f32.mrf.mxu1  ;;  %12972 = vmatprep.mubr.msk.f32.mxu0 %vm13581_vm2, %v18131_v16  ;;  %13039 = vmatprep.mubr.msk.f32.mxu1 %vm13581_vm2, %v18131_v16 }
 0xf30   : > { %v17561_v37 = vmax.f32 %v8455_v26, 0.0  ;;  %v8309_v62 = vadd.f32 %v8257_v43, %v17405_v55  ;;  %v8725_v26 = vld [vmem:[#allocation13 + $0x8] sm:$0xff] }
 0xf31   : > { %v8259_v63 = vpop.f32.mrf.mxu1 }
 0xf32   : > { %v8456_v5 = vadd.f32 %v8406_v57, %v8309_v62  ;;  %12973 = vmatmul.mubr.msk.f32.gmra.mxu0 %vm8487_vm8, %v17561_v37  ;;  %13040 = vmatmul.mubr.msk.f32.gmra.mxu1 %vm8487_vm8, %v17561_v37 }
 0xf33   : > { %v8262_v21 = vpop.f32.mrf.mxu1  ;;  %12975 = vmatprep.mubr.msk.f32.mxu0 %vm13581_vm2, %v18131_v16  ;;  %13042 = vmatprep.mubr.msk.f32.mxu1 %vm13581_vm2, %v18131_v16 }
 0xf34   : > { %v17572_v2 = vmax.f32 %v8456_v5, 0.0  ;;  %v8310_v55 = vadd.f32 %v8262_v21, %v17408_v40 }
 0xf35   : > { %v8264_v13 = vpop.f32.mrf.mxu1 }
 0xf36   : > { %v8457_v15 = vadd.f32 %v8411_v58, %v8310_v55  ;;  %12976 = vmatmul.mubr.msk.f32.gmra.mxu0 %vm8487_vm8, %v17572_v2  ;;  %13043 = vmatmul.mubr.msk.f32.gmra.mxu1 %vm8487_vm8, %v17572_v2 }
 0xf37   : > { %v8267_v10 = vpop.f32.mrf.mxu1  ;;  %12978 = vmatprep.mubr.msk.f32.mxu0 %vm13581_vm2, %v18131_v16  ;;  %13045 = vmatprep.mubr.msk.f32.mxu1 %vm13581_vm2, %v18131_v16 }
 0xf38   : > { %v17583_v46 = vmax.f32 %v8457_v15, 0.0  ;;  %v8311_v40 = vadd.f32 %v8267_v10, %v17411_v4 }
 0xf39   : > { %v8269_v27 = vpop.f32.mrf.mxu1 }
 0xf3a   : > { %v8458_v19 = vadd.f32 %v8416_v35, %v8311_v40  ;;  %12979 = vmatmul.mubr.msk.f32.gmra.mxu0 %vm8487_vm8, %v17583_v46  ;;  %13046 = vmatmul.mubr.msk.f32.gmra.mxu1 %vm8487_vm8, %v17583_v46 }
 0xf3b   : > { %v8272_v61 = vpop.f32.mrf.mxu1  ;;  %12981 = vmatprep.mubr.msk.f32.mxu0 %vm13581_vm2, %v18131_v16  ;;  %13048 = vmatprep.mubr.msk.f32.mxu1 %vm13581_vm2, %v18131_v16 }
 0xf3c   : > { %v17594_v23 = vmax.f32 %v8458_v19, 0.0  ;;  %v8312_v4 = vadd.f32 %v8272_v61, %v17414_v44 }
 0xf3d   : > { %v8274_v39 = vpop.f32.mrf.mxu1 }
 0xf3e   : > { %v8459_v51 = vadd.f32 %v8421_v31, %v8312_v4  ;;  %12982 = vmatmul.mubr.msk.f32.gmra.mxu0 %vm8487_vm8, %v17594_v23  ;;  %13049 = vmatmul.mubr.msk.f32.gmra.mxu1 %vm8487_vm8, %v17594_v23 }
 0xf3f   : > { %v8277_v29 = vpop.f32.mrf.mxu1  ;;  %12984 = vmatprep.mubr.msk.f32.mxu0 %vm13581_vm2, %v18131_v16  ;;  %13051 = vmatprep.mubr.msk.f32.mxu1 %vm13581_vm2, %v18131_v16 }
 0xf40   : > { %v17605_v50 = vmax.f32 %v8459_v51, 0.0  ;;  %v8313_v44 = vadd.f32 %v8277_v29, %v17417_v8 }
 0xf41   : > { %v8279_v56 = vpop.f32.mrf.mxu1 }
 0xf42   : > { %v8460_v0 = vadd.f32 %v8426_v12, %v8313_v44  ;;  %12985 = vmatmul.mubr.msk.f32.gmra.mxu0 %vm8487_vm8, %v17605_v50  ;;  %13052 = vmatmul.mubr.msk.f32.gmra.mxu1 %vm8487_vm8, %v17605_v50 }
 0xf43   : > { %v8282_v1 = vpop.f32.mrf.mxu1  ;;  %12987 = vmatprep.mubr.msk.f32.mxu0 %vm13581_vm2, %v18131_v16  ;;  %13054 = vmatprep.mubr.msk.f32.mxu1 %vm13581_vm2, %v18131_v16 }
 0xf44   : > { %v17616_v42 = vmax.f32 %v8460_v0, 0.0  ;;  %v8314_v8 = vadd.f32 %v8282_v1, %v17420_v47 }
 0xf45   : > { %v8284_v54 = vpop.f32.mrf.mxu1 }
 0xf46   : > { %v8461_v25 = vadd.f32 %v8431_v30, %v8314_v8  ;;  %12988 = vmatmul.mubr.msk.f32.gmra.mxu0 %vm8487_vm8, %v17616_v42  ;;  %13055 = vmatmul.mubr.msk.f32.gmra.mxu1 %vm8487_vm8, %v17616_v42 }
 0xf47   : > { %v8287_v9 = vpop.f32.mrf.mxu1  ;;  %12990 = vmatprep.mubr.msk.f32.mxu0 %vm13581_vm2, %v18131_v16  ;;  %13057 = vmatprep.mubr.msk.f32.mxu1 %vm13581_vm2, %v18131_v16 }
 0xf48   : > { %v17627_v41 = vmax.f32 %v8461_v25, 0.0  ;;  %v8315_v47 = vadd.f32 %v8287_v9, %v17423_v45 }
 0xf49   : > { %v8289_v36 = vpop.f32.mrf.mxu1 }
 0xf4a   : > { %v8462_v20 = vadd.f32 %v8436_v52, %v8315_v47  ;;  %12991 = vmatmul.mubr.msk.f32.gmra.mxu0 %vm8487_vm8, %v17627_v41  ;;  %13058 = vmatmul.mubr.msk.f32.gmra.mxu1 %vm8487_vm8, %v17627_v41 }
 0xf4b   : > { %v8292_v49 = vpop.f32.mrf.mxu1  ;;  %12993 = vmatprep.mubr.msk.f32.mxu0 %vm13581_vm2, %v18131_v16  ;;  %13060 = vmatprep.mubr.msk.f32.mxu1 %vm13581_vm2, %v18131_v16 }
 0xf4c   : > { %v17638_v59 = vmax.f32 %v8462_v20, 0.0  ;;  %v8316_v45 = vadd.f32 %v8292_v49, %v17426_v22  ;;  %v8944_v22 = vld [vmem:[#allocation13 + $0x158] sm:$0xff] }
 0xf4d   : > { %v8294_v38 = vpop.f32.mrf.mxu1 }
 0xf4e   : > { %v8463_v14 = vadd.f32 %v8441_v17, %v8316_v45  ;;  %12994 = vmatmul.mubr.msk.f32.gmra.mxu0 %vm8487_vm8, %v17638_v59  ;;  %13061 = vmatmul.mubr.msk.f32.gmra.mxu1 %vm8487_vm8, %v17638_v59 }
 0xf4f   : > { %12996 = vmatprep.mubr.msk.f32.mxu0 %vm13581_vm2, %v18131_v16  ;;  %13063 = vmatprep.mubr.msk.f32.mxu1 %vm13581_vm2, %v18131_v16 }
 0xf50   : > { %v17649_v6 = vmax.f32 %v8463_v14, 0.0 }
 0xf52   : > { %12997 = vmatmul.mubr.msk.f32.gmra.mxu0 %vm8487_vm8, %v17649_v6  ;;  %13064 = vmatmul.mubr.msk.f32.gmra.mxu1 %vm8487_vm8, %v17649_v6 }
 0xf53   : > { %10984 = vmatprep.mubr.msk.f32.mxu0 %vm8985_vm9, %v8944_v22  ;;  %11005 = vmatprep.mubr.msk.f32.mxu1 %vm8985_vm9, %v8725_v26 }
 0xfc2   : > { %v17657_v43 = vpop.f32.mrf.mxu0  ;;  %v17659_v62 = vpop.f32.mrf.mxu1 }
 0xfc4   : > { %v12938_v57 = vpop.f32.mrf.mxu0  ;;  %v13005_v63 = vpop.f32.mrf.mxu1 }
 0xfc6   : > { %v17661_v5 = vpop.f32.mrf.mxu0  ;;  %v17663_v21 = vpop.f32.mrf.mxu1 }
 0xfc8   : > { %v12941_v55 = vpop.f32.mrf.mxu0  ;;  %v13008_v58 = vpop.f32.mrf.mxu1 }
 0xfca   : > { %v17665_v13 = vpop.f32.mrf.mxu0  ;;  %v17667_v15 = vpop.f32.mrf.mxu1 }
 0xfcc   : > { %v12944_v10 = vpop.f32.mrf.mxu0  ;;  %v13011_v40 = vpop.f32.mrf.mxu1 }
 0xfce   : > { %v17669_v35 = vpop.f32.mrf.mxu0  ;;  %v17671_v27 = vpop.f32.mrf.mxu1 }
 0xfd0   : > { %v12947_v19 = vpop.f32.mrf.mxu0  ;;  %v13014_v61 = vpop.f32.mrf.mxu1 }
 0xfd2   : > { %v17673_v4 = vpop.f32.mrf.mxu0  ;;  %v17675_v31 = vpop.f32.mrf.mxu1 }
 0xfd4   : > { %v12950_v39 = vpop.f32.mrf.mxu0  ;;  %v13017_v51 = vpop.f32.mrf.mxu1 }
 0xfd6   : > { %v17677_v29 = vpop.f32.mrf.mxu0  ;;  %v17679_v44 = vpop.f32.mrf.mxu1 }
 0xfd8   : > { %v12953_v12 = vpop.f32.mrf.mxu0  ;;  %v13020_v56 = vpop.f32.mrf.mxu1 }
 0xfda   : > { %v17681_v0 = vpop.f32.mrf.mxu0  ;;  %v17683_v1 = vpop.f32.mrf.mxu1 }
 0xfdc   : > { %v12956_v8 = vpop.f32.mrf.mxu0  ;;  %v13023_v30 = vpop.f32.mrf.mxu1 }
 0xfde   : > { %v17685_v54 = vpop.f32.mrf.mxu0  ;;  %v17687_v25 = vpop.f32.mrf.mxu1 }
 0xfe0   : > { %v12959_v9 = vpop.f32.mrf.mxu0  ;;  %v13026_v47 = vpop.f32.mrf.mxu1 }
 0xfe2   : > { %v17689_v52 = vpop.f32.mrf.mxu0  ;;  %v17691_v36 = vpop.f32.mrf.mxu1 }
 0xfe4   : > { %v12962_v20 = vpop.f32.mrf.mxu0  ;;  %v13029_v49 = vpop.f32.mrf.mxu1 }
 0xfe6   : > { %v8665_v45 = vpop.f32.mrf.mxu0  ;;  %v8883_v17 = vpop.f32.mrf.mxu1 }
 0xfe8   : > { %v12965_v38 = vpop.f32.mrf.mxu0  ;;  %v13032_v14 = vpop.f32.mrf.mxu1 }
 0xfea   : > { %v8670_v22 = vpop.f32.mrf.mxu0  ;;  %v8888_v26 = vpop.f32.mrf.mxu1 }
 0xfec   : > { %v12968_v57 = vpop.f32.mrf.mxu0  ;;  %v13035_v63 = vpop.f32.mrf.mxu1 }
 0xfee   : > { %v8675_v55 = vpop.f32.mrf.mxu0  ;;  %v8893_v58 = vpop.f32.mrf.mxu1 }
 0xff0   : > { %v12971_v10 = vpop.f32.mrf.mxu0  ;;  %v13038_v40 = vpop.f32.mrf.mxu1 }
 0xff2   : > { %v8680_v19 = vpop.f32.mrf.mxu0  ;;  %v8898_v61 = vpop.f32.mrf.mxu1 }
 0xff4   : > { %v12974_v39 = vpop.f32.mrf.mxu0  ;;  %v13041_v51 = vpop.f32.mrf.mxu1 }
 0xff6   : > { %v8685_v12 = vpop.f32.mrf.mxu0  ;;  %v8903_v56 = vpop.f32.mrf.mxu1 }
 0xff8   : > { %v12977_v8 = vpop.f32.mrf.mxu0  ;;  %v13044_v30 = vpop.f32.mrf.mxu1 }
 0xffa   : > { %v8690_v9 = vpop.f32.mrf.mxu0  ;;  %v8908_v47 = vpop.f32.mrf.mxu1 }
 0xffc   : > { %v12980_v20 = vpop.f32.mrf.mxu0  ;;  %v13047_v49 = vpop.f32.mrf.mxu1 }
 0xffd   : > { %v8952_v20 = vld [vmem:[#allocation13 + $0x198] sm:$0xff]  ;;  %v8733_v49 = vld [vmem:[#allocation13 + $0x48] sm:$0xff] }
 0xffe   : > { %v8695_v38 = vpop.f32.mrf.mxu0  ;;  %v8913_v14 = vpop.f32.mrf.mxu1 }
 0xfff   : > { %9050 = vmatpush1.msra.mxu0 %v8913_v14  ;;  %9283 = vmatpush1.msra.mxu1 %v8695_v38  ;;  %v8951_v38 = vld [vmem:[#allocation13 + $0x190] sm:$0xff]  ;;  %v8732_v14 = vld [vmem:[#allocation13 + $0x40] sm:$0xff] }
0x1000   : > { %v12983_v57 = vpop.f32.mrf.mxu0  ;;  %v13050_v63 = vpop.f32.mrf.mxu1  ;;  %9051 = vmatprep.subr.mxu0 %v18131_v16  ;;  %9284 = vmatprep.subr.mxu1 %v18131_v16 }
0x1001   : > { %9052 = vmatpush1.msra.mxu0 %v8908_v47  ;;  %9285 = vmatpush1.msra.mxu1 %v8690_v9  ;;  %v8954_v57 = vld [vmem:[#allocation13 + $0x1a8] sm:$0xff]  ;;  %v8735_v63 = vld [vmem:[#allocation13 + $0x58] sm:$0xff] }
0x1002   : > { %v17695_v10 = vpop.f32.mrf.mxu0  ;;  %v17697_v40 = vpop.f32.mrf.mxu1  ;;  %9053 = vmatprep.subr.mxu0 %v18131_v16  ;;  %9286 = vmatprep.subr.mxu1 %v18131_v16 }
0x1003   : > { %9054 = vmatpush1.msra.mxu0 %v8903_v56  ;;  %9287 = vmatpush1.msra.mxu1 %v8685_v12 }
0x1004   : > { %v12986_v39 = vpop.f32.mrf.mxu0  ;;  %v13053_v51 = vpop.f32.mrf.mxu1  ;;  %9055 = vmatprep.subr.mxu0 %v18131_v16  ;;  %9288 = vmatprep.subr.mxu1 %v18131_v16 }
0x1005   : > { %9056 = vmatpush1.msra.mxu0 %v8898_v61  ;;  %9289 = vmatpush1.msra.mxu1 %v8680_v19  ;;  %v8956_v39 = vld [vmem:[#allocation13 + $0x1b8] sm:$0xff]  ;;  %v8737_v51 = vld [vmem:[#allocation13 + $0x68] sm:$0xff] }
0x1006   : > { %v17703_v8 = vpop.f32.mrf.mxu0  ;;  %v17705_v30 = vpop.f32.mrf.mxu1  ;;  %9057 = vmatprep.subr.mxu0 %v18131_v16  ;;  %9290 = vmatprep.subr.mxu1 %v18131_v16 }
0x1007   : > { %9058 = vmatpush1.msra.mxu0 %v8893_v58  ;;  %9291 = vmatpush1.msra.mxu1 %v8675_v55  ;;  %v8949_v55 = vld [vmem:[#allocation13 + $0x180] sm:$0xff]  ;;  %v8730_v58 = vld [vmem:[#allocation13 + $0x30] sm:$0xff] }
0x1008   : > { %v12989_v56 = vpop.f32.mrf.mxu0  ;;  %v13056_v12 = vpop.f32.mrf.mxu1  ;;  %9059 = vmatprep.subr.mxu0 %v18131_v16  ;;  %9292 = vmatprep.subr.mxu1 %v18131_v16 }
0x1009   : > { %9060 = vmatpush1.msra.mxu0 %v8888_v26  ;;  %9293 = vmatpush1.msra.mxu1 %v8670_v22  ;;  %v8958_v56 = vld [vmem:[#allocation13 + $0x1c8] sm:$0xff]  ;;  %v8739_v12 = vld [vmem:[#allocation13 + $0x78] sm:$0xff] }
0x100a   : > { %v8710_v61 = vpop.f32.mrf.mxu0  ;;  %v8928_v19 = vpop.f32.mrf.mxu1  ;;  %9061 = vmatprep.subr.mxu0 %v18131_v16  ;;  %9294 = vmatprep.subr.mxu1 %v18131_v16 }
0x100b   : > { %9062 = vmatpush1.msra.mxu0 %v8883_v17  ;;  %9295 = vmatpush1.msra.mxu1 %v8665_v45 }
0x100c   : > { %v12992_v9 = vpop.f32.mrf.mxu0  ;;  %v13059_v47 = vpop.f32.mrf.mxu1  ;;  %9063 = vmatprep.subr.mxu0 %v18131_v16  ;;  %9296 = vmatprep.subr.mxu1 %v18131_v16 }
0x100d   : > { %9064 = vmatpush1.msra.mxu0 %v17691_v36  ;;  %9297 = vmatpush1.msra.mxu1 %v17689_v52  ;;  %v8960_v9 = vld [vmem:[#allocation13 + $0x1d8] sm:$0xff]  ;;  %v8741_v47 = vld [vmem:[#allocation13 + $0x88] sm:$0xff] }
0x100e   : > { %v8715_v26 = vpop.f32.mrf.mxu0  ;;  %v8933_v22 = vpop.f32.mrf.mxu1  ;;  %9065 = vmatprep.subr.mxu0 %v18131_v16  ;;  %9298 = vmatprep.subr.mxu1 %v18131_v16 }
0x100f   : > { %9066 = vmatpush1.msra.mxu0 %v17687_v25  ;;  %9299 = vmatpush1.msra.mxu1 %v17685_v54 }
0x1010   : > { %v12995_v45 = vpop.f32.mrf.mxu0  ;;  %v13062_v17 = vpop.f32.mrf.mxu1  ;;  %9067 = vmatprep.subr.mxu0 %v18131_v16  ;;  %9300 = vmatprep.subr.mxu1 %v18131_v16 }
0x1011   : > { %9068 = vmatpush1.msra.mxu0 %v17683_v1  ;;  %9301 = vmatpush1.msra.mxu1 %v17681_v0  ;;  %v8950_v0 = vld [vmem:[#allocation13 + $0x188] sm:$0xff]  ;;  %v8731_v1 = vld [vmem:[#allocation13 + $0x38] sm:$0xff] }
0x1012   : > { %v8720_v52 = vpop.f32.mrf.mxu0  ;;  %v8938_v36 = vpop.f32.mrf.mxu1  ;;  %9069 = vmatprep.subr.mxu0 %v18131_v16  ;;  %9302 = vmatprep.subr.mxu1 %v18131_v16  ;;  %v8962_v45 = vld [vmem:[#allocation13 + $0x1e8] sm:$0xff]  ;;  %v8743_v17 = vld [vmem:[#allocation13 + $0x98] sm:$0xff] }
0x1013   : > { %9070 = vmatpush1.msra.mxu0 %v17679_v44  ;;  %9303 = vmatpush1.msra.mxu1 %v17677_v29  ;;  %v8947_v29 = vld [vmem:[#allocation13 + $0x170] sm:$0xff]  ;;  %v8728_v44 = vld [vmem:[#allocation13 + $0x20] sm:$0xff] }
0x1014   : > { %v12998_v54 = vpop.f32.mrf.mxu0  ;;  %v13065_v25 = vpop.f32.mrf.mxu1  ;;  %9071 = vmatprep.subr.mxu0 %v18131_v16  ;;  %9304 = vmatprep.subr.mxu1 %v18131_v16 }
0x1015   : > { %9072 = vmatpush1.msra.mxu0 %v17675_v31  ;;  %9305 = vmatpush1.msra.mxu1 %v17673_v4  ;;  %v8729_v4 = vld [vmem:[#allocation13 + $0x28] sm:$0xff]  ;;  %v11026_v31 = vld [vmem:[%s18133_s25 + $0x20] sm:$0xff] }
0x1016   : > { %9073 = vmatprep.subr.mxu0 %v18131_v16  ;;  %9306 = vmatprep.subr.mxu1 %v18131_v16  ;;  %v8964_v54 = vld [vmem:[#allocation13 + $0x1f8] sm:$0xff]  ;;  %v8745_v25 = vld [vmem:[#allocation13 + $0xa8] sm:$0xff] }
0x1017   : > { %9074 = vmatpush1.msra.mxu0 %v17671_v27  ;;  %9307 = vmatpush1.msra.mxu1 %v17669_v35  ;;  %v8726_v35 = vld [vmem:[#allocation13 + $0x10] sm:$0xff]  ;;  %v8948_v27 = vld [vmem:[#allocation13 + $0x178] sm:$0xff] }
0x1018   : > { %9075 = vmatprep.subr.mxu0 %v18131_v16  ;;  %9308 = vmatprep.subr.mxu1 %v18131_v16 }
0x1019   : > { %9076 = vmatpush1.msra.mxu0 %v17667_v15  ;;  %9309 = vmatpush1.msra.mxu1 %v17665_v13  ;;  %v11027_v13 = vld [vmem:[%s18133_s25 + $0x28] sm:$0x3f] }
0x101a   : > { %9077 = vmatprep.subr.mxu0 %v18131_v16  ;;  %9310 = vmatprep.subr.mxu1 %v18131_v16  ;;  %v8945_v15 = vld [vmem:[#allocation13 + $0x160] sm:$0xff] }
0x101b   : > { %9078 = vmatpush1.msra.mxu0 %v17663_v21  ;;  %9311 = vmatpush1.msra.mxu1 %v17661_v5  ;;  %v8946_v5 = vld [vmem:[#allocation13 + $0x168] sm:$0xff]  ;;  %v8727_v21 = vld [vmem:[#allocation13 + $0x18] sm:$0xff] }
0x101c   : > { %9079 = vmatprep.subr.mxu0 %v18131_v16  ;;  %9312 = vmatprep.subr.mxu1 %v18131_v16 }
0x101d   : > { %9080 = vmatpush1.msra.mxu0 %v17659_v62  ;;  %9313 = vmatpush1.msra.mxu1 %v17657_v43  ;;  %v8943_v43 = vld [vmem:[#allocation13 + $0x150] sm:$0xff]  ;;  %v8724_v62 = vld [vmem:[#allocation13] sm:$0xff] }
0x101e   : > { %9103 = vmatprep.subr.mxu0 %v18131_v16  ;;  %9336 = vmatprep.subr.mxu1 %v18131_v16 }
0x101f   : > { %9104 = vmatpush2.msra.mxu0 %v8938_v36  ;;  %9337 = vmatpush2.msra.mxu1 %v8720_v52  ;;  %v8961_v52 = vld [vmem:[#allocation13 + $0x1e0] sm:$0xff]  ;;  %v8742_v36 = vld [vmem:[#allocation13 + $0x90] sm:$0xff] }
0x1020   : > { %9105 = vmatprep.subr.mxu0 %v18131_v16  ;;  %9338 = vmatprep.subr.mxu1 %v18131_v16 }
0x1021   : > { %9106 = vmatpush2.msra.mxu0 %v8933_v22  ;;  %9339 = vmatpush2.msra.mxu1 %v8715_v26  ;;  %v8959_v26 = vld [vmem:[#allocation13 + $0x1d0] sm:$0xff]  ;;  %v8740_v22 = vld [vmem:[#allocation13 + $0x80] sm:$0xff] }
0x1022   : > { %9107 = vmatprep.subr.mxu0 %v18131_v16  ;;  %9340 = vmatprep.subr.mxu1 %v18131_v16 }
0x1023   : > { %9108 = vmatpush2.msra.mxu0 %v8928_v19  ;;  %9341 = vmatpush2.msra.mxu1 %v8710_v61  ;;  %v8957_v61 = vld [vmem:[#allocation13 + $0x1c0] sm:$0xff]  ;;  %v8738_v19 = vld [vmem:[#allocation13 + $0x70] sm:$0xff] }
0x1024   : > { %9109 = vmatprep.subr.mxu0 %v18131_v16  ;;  %9342 = vmatprep.subr.mxu1 %v18131_v16 }
0x1025   : > { %9110 = vmatpush2.msra.mxu0 %v17705_v30  ;;  %9343 = vmatpush2.msra.mxu1 %v17703_v8  ;;  %v8955_v8 = vld [vmem:[#allocation13 + $0x1b0] sm:$0xff]  ;;  %v8736_v30 = vld [vmem:[#allocation13 + $0x60] sm:$0xff] }
0x1026   : > { %9111 = vmatprep.subr.mxu0 %v18131_v16  ;;  %9344 = vmatprep.subr.mxu1 %v18131_v16 }
0x1027   : > { %9112 = vmatpush2.msra.mxu0 %v17697_v40  ;;  %9345 = vmatpush2.msra.mxu1 %v17695_v10  ;;  %v8953_v10 = vld [vmem:[#allocation13 + $0x1a0] sm:$0xff]  ;;  %v8734_v40 = vld [vmem:[#allocation13 + $0x50] sm:$0xff] }
0x1028   : > { %9114 = vmatmul.mubr.f32.vlgmr.msra.gmra.mxu0 %v8943_v43  ;;  %9347 = vmatmul.mubr.f32.vlgmr.msra.gmra.mxu1 %v8724_v62  ;;  %v8963_v43 = vld [vmem:[#allocation13 + $0x1f0] sm:$0xff]  ;;  %v8744_v62 = vld [vmem:[#allocation13 + $0xa0] sm:$0xff] }
0x1029   : > { %10985 = vmatprep.mubr.msk.f32.mxu0 %vm8985_vm9, %v8946_v5  ;;  %11006 = vmatprep.mubr.msk.f32.mxu1 %vm8985_vm9, %v8727_v21  ;;  %v8966_v5 = vld [vmem:[#allocation13 + $0x208] sm:$0xff]  ;;  %v8747_v21 = vld [vmem:[#allocation13 + $0xb8] sm:$0xff] }
0x102a   : > { %13066 = vmatprep.subr.mxu0 %v18131_v16  ;;  %9734 = vmatprep.subr.mxu1 %v18131_v16 }
0x102b   : > { %13067 = vmatpush3.msk.msra.mxu0 %vm5922_vm4, %v11027_v13  ;;  %v8965_v13 = vld [vmem:[#allocation13 + $0x200] sm:$0xff] }
0x102c   : > { %9119 = vmatmul.mubr.f32.gmra.mxu0 %v8945_v15  ;;  %9352 = vmatmul.mubr.f32.gmra.mxu1 %v8726_v35  ;;  %v8746_v15 = vld [vmem:[#allocation13 + $0xb0] sm:$0xff]  ;;  %v8968_v35 = vld [vmem:[#allocation13 + $0x218] sm:$0xff] }
0x102d   : > { %10986 = vmatprep.mubr.msk.f32.mxu0 %vm8985_vm9, %v8948_v27  ;;  %11007 = vmatprep.mubr.msk.f32.mxu1 %vm8985_vm9, %v8729_v4  ;;  %v8749_v27 = vld [vmem:[#allocation13 + $0xc8] sm:$0xff]  ;;  %v8967_v4 = vld [vmem:[#allocation13 + $0x210] sm:$0xff] }
0x102e   : > { %13068 = vmatprep.subr.mxu0 %v18131_v16 }
0x102f   : > { %13069 = vmatpush3.msra.mxu0 %v11026_v31  ;;  %v8748_v31 = vld [vmem:[#allocation13 + $0xc0] sm:$0xff] }
0x1030   : > { %9124 = vmatmul.mubr.f32.gmra.mxu0 %v8947_v29  ;;  %9357 = vmatmul.mubr.f32.gmra.mxu1 %v8728_v44  ;;  %v8970_v29 = vld [vmem:[#allocation13 + $0x228] sm:$0xff]  ;;  %v8751_v44 = vld [vmem:[#allocation13 + $0xd8] sm:$0xff] }
0x1031   : > { %10987 = vmatprep.mubr.msk.f32.mxu0 %vm8985_vm9, %v8950_v0  ;;  %11008 = vmatprep.mubr.msk.f32.mxu1 %vm8985_vm9, %v8731_v1  ;;  %v8969_v0 = vld [vmem:[#allocation13 + $0x220] sm:$0xff]  ;;  %v8750_v1 = vld [vmem:[#allocation13 + $0xd0] sm:$0xff] }
0x1034   : > { %9129 = vmatmul.mubr.f32.gmra.mxu0 %v8949_v55  ;;  %9362 = vmatmul.mubr.f32.gmra.mxu1 %v8730_v58  ;;  %v8972_v55 = vld [vmem:[#allocation13 + $0x238] sm:$0xff]  ;;  %v8753_v58 = vld [vmem:[#allocation13 + $0xe8] sm:$0xff] }
0x1035   : > { %10988 = vmatprep.mubr.msk.f32.mxu0 %vm8985_vm9, %v8952_v20  ;;  %11009 = vmatprep.mubr.msk.f32.mxu1 %vm8985_vm9, %v8733_v49  ;;  %v8971_v20 = vld [vmem:[#allocation13 + $0x230] sm:$0xff]  ;;  %v8752_v49 = vld [vmem:[#allocation13 + $0xe0] sm:$0xff] }
0x1038   : > { %9134 = vmatmul.mubr.f32.gmra.mxu0 %v8951_v38  ;;  %9367 = vmatmul.mubr.f32.gmra.mxu1 %v8732_v14  ;;  %v8974_v38 = vld [vmem:[#allocation13 + $0x248] sm:$0xff]  ;;  %v8755_v14 = vld [vmem:[#allocation13 + $0xf8] sm:$0xff] }
0x1039   : > { %10989 = vmatprep.mubr.msk.f32.mxu0 %vm8985_vm9, %v8954_v57  ;;  %11010 = vmatprep.mubr.msk.f32.mxu1 %vm8985_vm9, %v8735_v63  ;;  %v8973_v57 = vld [vmem:[#allocation13 + $0x240] sm:$0xff]  ;;  %v8754_v63 = vld [vmem:[#allocation13 + $0xf0] sm:$0xff] }
0x103c   : > { %9139 = vmatmul.mubr.f32.gmra.mxu0 %v8953_v10  ;;  %9372 = vmatmul.mubr.f32.gmra.mxu1 %v8734_v40  ;;  %v8976_v10 = vld [vmem:[#allocation13 + $0x258] sm:$0xff]  ;;  %v8757_v40 = vld [vmem:[#allocation13 + $0x108] sm:$0xff] }
0x103d   : > { %10990 = vmatprep.mubr.msk.f32.mxu0 %vm8985_vm9, %v8956_v39  ;;  %11011 = vmatprep.mubr.msk.f32.mxu1 %vm8985_vm9, %v8737_v51  ;;  %v8975_v39 = vld [vmem:[#allocation13 + $0x250] sm:$0xff]  ;;  %v8756_v51 = vld [vmem:[#allocation13 + $0x100] sm:$0xff] }
0x1040   : > { %9144 = vmatmul.mubr.f32.gmra.mxu0 %v8955_v8  ;;  %9377 = vmatmul.mubr.f32.gmra.mxu1 %v8736_v30  ;;  %v8978_v8 = vld [vmem:[#allocation13 + $0x268] sm:$0xff]  ;;  %v8759_v30 = vld [vmem:[#allocation13 + $0x118] sm:$0xff] }
0x1041   : > { %10991 = vmatprep.mubr.msk.f32.mxu0 %vm8985_vm9, %v8958_v56  ;;  %11012 = vmatprep.mubr.msk.f32.mxu1 %vm8985_vm9, %v8739_v12  ;;  %v8977_v56 = vld [vmem:[#allocation13 + $0x260] sm:$0xff]  ;;  %v8758_v12 = vld [vmem:[#allocation13 + $0x110] sm:$0xff] }
0x1044   : > { %9149 = vmatmul.mubr.f32.gmra.mxu0 %v8957_v61  ;;  %9382 = vmatmul.mubr.f32.gmra.mxu1 %v8738_v19  ;;  %v8980_v61 = vld [vmem:[#allocation13 + $0x278] sm:$0xff]  ;;  %v8761_v19 = vld [vmem:[#allocation13 + $0x128] sm:$0xff] }
0x1045   : > { %10992 = vmatprep.mubr.msk.f32.mxu0 %vm8985_vm9, %v8960_v9  ;;  %11013 = vmatprep.mubr.msk.f32.mxu1 %vm8985_vm9, %v8741_v47  ;;  %v8979_v9 = vld [vmem:[#allocation13 + $0x270] sm:$0xff]  ;;  %v8760_v47 = vld [vmem:[#allocation13 + $0x120] sm:$0xff] }
0x1048   : > { %9154 = vmatmul.mubr.f32.gmra.mxu0 %v8959_v26  ;;  %9387 = vmatmul.mubr.f32.gmra.mxu1 %v8740_v22  ;;  %v8982_v26 = vld [vmem:[#allocation13 + $0x288] sm:$0xff]  ;;  %v8763_v22 = vld [vmem:[#allocation13 + $0x138] sm:$0xff] }
0x1049   : > { %10993 = vmatprep.mubr.msk.f32.mxu0 %vm8985_vm9, %v8962_v45  ;;  %11014 = vmatprep.mubr.msk.f32.mxu1 %vm8985_vm9, %v8743_v17  ;;  %v8981_v45 = vld [vmem:[#allocation13 + $0x280] sm:$0xff]  ;;  %v8762_v17 = vld [vmem:[#allocation13 + $0x130] sm:$0xff] }
0x104c   : > { %9159 = vmatmul.mubr.f32.gmra.mxu0 %v8961_v52  ;;  %9392 = vmatmul.mubr.f32.gmra.mxu1 %v8742_v36  ;;  %v8984_v52 = vld [vmem:[#allocation13 + $0x298] sm:$0xff]  ;;  %v8765_v36 = vld [vmem:[#allocation13 + $0x148] sm:$0xff] }
0x104d   : > { %10994 = vmatprep.mubr.msk.f32.mxu0 %vm8985_vm9, %v8964_v54  ;;  %11015 = vmatprep.mubr.msk.f32.mxu1 %vm8985_vm9, %v8745_v25  ;;  %v8983_v54 = vld [vmem:[#allocation13 + $0x290] sm:$0xff]  ;;  %v8764_v25 = vld [vmem:[#allocation13 + $0x140] sm:$0xff] }
0x1050   : > { %9164 = vmatmul.mubr.f32.gmra.mxu0 %v8963_v43  ;;  %9397 = vmatmul.mubr.f32.gmra.mxu1 %v8744_v62 }
0x1051   : > { %10995 = vmatprep.mubr.msk.f32.mxu0 %vm8985_vm9, %v8966_v5  ;;  %11016 = vmatprep.mubr.msk.f32.mxu1 %vm8985_vm9, %v8747_v21 }
0x1054   : > { %9169 = vmatmul.mubr.f32.gmra.mxu0 %v8965_v13  ;;  %9402 = vmatmul.mubr.f32.gmra.mxu1 %v8746_v15 }
0x1055   : > { %10996 = vmatprep.mubr.msk.f32.mxu0 %vm8985_vm9, %v8968_v35  ;;  %11017 = vmatprep.mubr.msk.f32.mxu1 %vm8985_vm9, %v8749_v27 }
0x1058   : > { %9174 = vmatmul.mubr.f32.gmra.mxu0 %v8967_v4  ;;  %9407 = vmatmul.mubr.f32.gmra.mxu1 %v8748_v31 }
0x1059   : > { %10997 = vmatprep.mubr.msk.f32.mxu0 %vm8985_vm9, %v8970_v29  ;;  %11018 = vmatprep.mubr.msk.f32.mxu1 %vm8985_vm9, %v8751_v44 }
0x105c   : > { %9179 = vmatmul.mubr.f32.gmra.mxu0 %v8969_v0  ;;  %9412 = vmatmul.mubr.f32.gmra.mxu1 %v8750_v1 }
0x105d   : > { %10998 = vmatprep.mubr.msk.f32.mxu0 %vm8985_vm9, %v8972_v55  ;;  %11019 = vmatprep.mubr.msk.f32.mxu1 %vm8985_vm9, %v8753_v58 }
0x1060   : > { %9184 = vmatmul.mubr.f32.gmra.mxu0 %v8971_v20  ;;  %9417 = vmatmul.mubr.f32.gmra.mxu1 %v8752_v49 }
0x1061   : > { %10999 = vmatprep.mubr.msk.f32.mxu0 %vm8985_vm9, %v8974_v38  ;;  %11020 = vmatprep.mubr.msk.f32.mxu1 %vm8985_vm9, %v8755_v14 }
0x1064   : > { %9189 = vmatmul.mubr.f32.gmra.mxu0 %v8973_v57  ;;  %9422 = vmatmul.mubr.f32.gmra.mxu1 %v8754_v63 }
0x1065   : > { %11000 = vmatprep.mubr.msk.f32.mxu0 %vm8985_vm9, %v8976_v10  ;;  %11021 = vmatprep.mubr.msk.f32.mxu1 %vm8985_vm9, %v8757_v40 }
0x1068   : > { %9194 = vmatmul.mubr.f32.gmra.mxu0 %v8975_v39  ;;  %9427 = vmatmul.mubr.f32.gmra.mxu1 %v8756_v51 }
0x1069   : > { %11001 = vmatprep.mubr.msk.f32.mxu0 %vm8985_vm9, %v8978_v8  ;;  %11022 = vmatprep.mubr.msk.f32.mxu1 %vm8985_vm9, %v8759_v30 }
0x106c   : > { %9199 = vmatmul.mubr.f32.gmra.mxu0 %v8977_v56  ;;  %9432 = vmatmul.mubr.f32.gmra.mxu1 %v8758_v12 }
0x106d   : > { %11002 = vmatprep.mubr.msk.f32.mxu0 %vm8985_vm9, %v8980_v61  ;;  %11023 = vmatprep.mubr.msk.f32.mxu1 %vm8985_vm9, %v8761_v19 }
0x1070   : > { %9204 = vmatmul.mubr.f32.gmra.mxu0 %v8979_v9  ;;  %9437 = vmatmul.mubr.f32.gmra.mxu1 %v8760_v47 }
0x1071   : > { %11003 = vmatprep.mubr.msk.f32.mxu0 %vm8985_vm9, %v8982_v26  ;;  %11024 = vmatprep.mubr.msk.f32.mxu1 %vm8985_vm9, %v8763_v22 }
0x1074   : > { %9209 = vmatmul.mubr.f32.gmra.mxu0 %v8981_v45  ;;  %9442 = vmatmul.mubr.f32.gmra.mxu1 %v8762_v17 }
0x1075   : > { %11004 = vmatprep.mubr.msk.f32.mxu0 %vm8985_vm9, %v8984_v52  ;;  %11025 = vmatprep.mubr.msk.f32.mxu1 %vm8985_vm9, %v8765_v36 }
0x1078   : > { %9214 = vmatmul.mubr.f32.gmra.mxu0 %v8983_v54  ;;  %9447 = vmatmul.mubr.f32.gmra.mxu1 %v8764_v25 }
0x1079   : > { %13070 = vmatprep.mubr.msk.f32.mxu0 %vm13581_vm2, %v18131_v16 }
0x107c   : > { %13071 = vmatmul.mubr.msk.f32.vlgmr.msra.gmra.mxu0 %vm8487_vm8, %v17429_v60 }
0x107d   : > { %13073 = vmatprep.mubr.msk.f32.mxu0 %vm13581_vm2, %v18131_v16 }
0x1080   : > { %13074 = vmatmul.mubr.msk.f32.gmra.mxu0 %vm8487_vm8, %v17440_v53 }
0x1081   : > { %13076 = vmatprep.mubr.msk.f32.mxu0 %vm13581_vm2, %v18131_v16 }
0x1084   : > { %13077 = vmatmul.mubr.msk.f32.gmra.mxu0 %vm8487_vm8, %v17451_v24 }
0x1085   : > { %13079 = vmatprep.mubr.msk.f32.mxu0 %vm13581_vm2, %v18131_v16 }
0x1088   : > { %13080 = vmatmul.mubr.msk.f32.gmra.mxu0 %vm8487_vm8, %v17462_v48 }
0x1089   : > { %13082 = vmatprep.mubr.msk.f32.mxu0 %vm13581_vm2, %v18131_v16 }
0x108c   : > { %13083 = vmatmul.mubr.msk.f32.gmra.mxu0 %vm8487_vm8, %v17473_v3 }
0x108d   : > { %13085 = vmatprep.mubr.msk.f32.mxu0 %vm13581_vm2, %v18131_v16 }
0x1090   : > { %13086 = vmatmul.mubr.msk.f32.gmra.mxu0 %vm8487_vm8, %v17484_v7 }
0x1091   : > { %13088 = vmatprep.mubr.msk.f32.mxu0 %vm13581_vm2, %v18131_v16 }
0x1094   : > { %13089 = vmatmul.mubr.msk.f32.gmra.mxu0 %vm8487_vm8, %v17495_v33 }
0x1095   : > { %13091 = vmatprep.mubr.msk.f32.mxu0 %vm13581_vm2, %v18131_v16 }
0x1098   : > { %13092 = vmatmul.mubr.msk.f32.gmra.mxu0 %vm8487_vm8, %v17506_v32 }
0x1099   : > { %13094 = vmatprep.mubr.msk.f32.mxu0 %vm13581_vm2, %v18131_v16 }
0x109c   : > { %13095 = vmatmul.mubr.msk.f32.gmra.mxu0 %vm8487_vm8, %v17517_v18 }
0x109d   : > { %13097 = vmatprep.mubr.msk.f32.mxu0 %vm13581_vm2, %v18131_v16 }
0x10a0   : > { %13098 = vmatmul.mubr.msk.f32.gmra.mxu0 %vm8487_vm8, %v17528_v28 }
0x10a1   : > { %13100 = vmatprep.mubr.msk.f32.mxu0 %vm13581_vm2, %v18131_v16 }
0x10a4   : > { %13101 = vmatmul.mubr.msk.f32.gmra.mxu0 %vm8487_vm8, %v17539_v34 }
0x10a5   : > { %13103 = vmatprep.mubr.msk.f32.mxu0 %vm13581_vm2, %v18131_v16 }
0x10a8   : > { %13104 = vmatmul.mubr.msk.f32.gmra.mxu0 %vm8487_vm8, %v17550_v11 }
0x10a9   : > { %13106 = vmatprep.mubr.msk.f32.mxu0 %vm13581_vm2, %v18131_v16 }
0x10ac   : > { %13107 = vmatmul.mubr.msk.f32.gmra.mxu0 %vm8487_vm8, %v17561_v37 }
0x10ad   : > { %13109 = vmatprep.mubr.msk.f32.mxu0 %vm13581_vm2, %v18131_v16 }
0x10b0   : > { %13110 = vmatmul.mubr.msk.f32.gmra.mxu0 %vm8487_vm8, %v17572_v2 }
0x10b1   : > { %13112 = vmatprep.mubr.msk.f32.mxu0 %vm13581_vm2, %v18131_v16 }
0x10b4   : > { %13113 = vmatmul.mubr.msk.f32.gmra.mxu0 %vm8487_vm8, %v17583_v46 }
0x10b5   : > { %13115 = vmatprep.mubr.msk.f32.mxu0 %vm13581_vm2, %v18131_v16 }
0x10b8   : > { %13116 = vmatmul.mubr.msk.f32.gmra.mxu0 %vm8487_vm8, %v17594_v23 }
0x10b9   : > { %13118 = vmatprep.mubr.msk.f32.mxu0 %vm13581_vm2, %v18131_v16 }
0x10bc   : > { %13119 = vmatmul.mubr.msk.f32.gmra.mxu0 %vm8487_vm8, %v17605_v50 }
0x10bd   : > { %13121 = vmatprep.mubr.msk.f32.mxu0 %vm13581_vm2, %v18131_v16 }
0x10c0   : > { %13122 = vmatmul.mubr.msk.f32.gmra.mxu0 %vm8487_vm8, %v17616_v42 }
0x10c1   : > { %13124 = vmatprep.mubr.msk.f32.mxu0 %vm13581_vm2, %v18131_v16 }
0x10c4   : > { %13125 = vmatmul.mubr.msk.f32.gmra.mxu0 %vm8487_vm8, %v17627_v41 }
0x10c5   : > { %13127 = vmatprep.mubr.msk.f32.mxu0 %vm13581_vm2, %v18131_v16 }
0x10c8   : > { %13128 = vmatmul.mubr.msk.f32.gmra.mxu0 %vm8487_vm8, %v17638_v59 }
0x10c9   : > { %13130 = vmatprep.mubr.msk.f32.mxu0 %vm13581_vm2, %v18131_v16 }
0x10cc   : > { %13131 = vmatmul.mubr.msk.f32.gmra.mxu0 %vm8487_vm8, %v17649_v6 }
0x10e8   : > { %v9115_v60 = vpop.f32.mrf.mxu0  ;;  %v9348_v53 = vpop.f32.mrf.mxu1 }
0x10e9   : > { %v17897_v24 = vadd.f32 %v9348_v53, %v9115_v60 }
0x10ea   : > { %v9117_v48 = vpop.f32.mrf.mxu0  ;;  %v9350_v3 = vpop.f32.mrf.mxu1 }
0x10ec   : > { %v9120_v7 = vpop.f32.mrf.mxu0  ;;  %v9353_v33 = vpop.f32.mrf.mxu1 }
0x10ed   : > { %v17899_v32 = vadd.f32 %v9353_v33, %v9120_v7 }
0x10ee   : > { %v9122_v18 = vpop.f32.mrf.mxu0  ;;  %v9355_v28 = vpop.f32.mrf.mxu1 }
0x10f0   : > { %v9125_v34 = vpop.f32.mrf.mxu0  ;;  %v9358_v11 = vpop.f32.mrf.mxu1 }
0x10f1   : > { %v17901_v37 = vadd.f32 %v9358_v11, %v9125_v34  ;;  %v9630_v11 = vld [vmem:[#allocation13 + $0x2a8] sm:$0xff] }
0x10f2   : > { %v9127_v2 = vpop.f32.mrf.mxu0  ;;  %v9360_v46 = vpop.f32.mrf.mxu1  ;;  %11050 = vmatprep.mubr.msk.f32.mxu1 %vm8985_vm9, %v9630_v11 }
0x10f4   : > { %v9130_v23 = vpop.f32.mrf.mxu0  ;;  %v9363_v50 = vpop.f32.mrf.mxu1 }
0x10f5   : > { %v17903_v42 = vadd.f32 %v9363_v50, %v9130_v23 }
0x10f6   : > { %v9132_v41 = vpop.f32.mrf.mxu0  ;;  %v9365_v59 = vpop.f32.mrf.mxu1 }
0x10f8   : > { %v9135_v6 = vpop.f32.mrf.mxu0  ;;  %v9368_v43 = vpop.f32.mrf.mxu1 }
0x10f9   : > { %v17905_v62 = vadd.f32 %v9368_v43, %v9135_v6 }
0x10fa   : > { %v9137_v5 = vpop.f32.mrf.mxu0  ;;  %v9370_v21 = vpop.f32.mrf.mxu1 }
0x10fc   : > { %v9140_v13 = vpop.f32.mrf.mxu0  ;;  %v9373_v15 = vpop.f32.mrf.mxu1 }
0x10fd   : > { %v17907_v35 = vadd.f32 %v9373_v15, %v9140_v13 }
0x10fe   : > { %v9142_v27 = vpop.f32.mrf.mxu0  ;;  %v9375_v4 = vpop.f32.mrf.mxu1 }
0x1100   : > { %v9145_v31 = vpop.f32.mrf.mxu0  ;;  %v9378_v29 = vpop.f32.mrf.mxu1 }
0x1101   : > { %v17909_v44 = vadd.f32 %v9378_v29, %v9145_v31 }
0x1102   : > { %v9147_v0 = vpop.f32.mrf.mxu0  ;;  %v9380_v1 = vpop.f32.mrf.mxu1 }
0x1104   : > { %v9150_v55 = vpop.f32.mrf.mxu0  ;;  %v9383_v58 = vpop.f32.mrf.mxu1 }
0x1105   : > { %v17911_v20 = vadd.f32 %v9383_v58, %v9150_v55 }
0x1106   : > { %v9152_v49 = vpop.f32.mrf.mxu0  ;;  %v9385_v38 = vpop.f32.mrf.mxu1 }
0x1108   : > { %v9155_v14 = vpop.f32.mrf.mxu0  ;;  %v9388_v57 = vpop.f32.mrf.mxu1 }
0x1109   : > { %v17913_v63 = vadd.f32 %v9388_v57, %v9155_v14 }
0x110a   : > { %v9157_v10 = vpop.f32.mrf.mxu0  ;;  %v9390_v40 = vpop.f32.mrf.mxu1 }
0x110c   : > { %v9160_v39 = vpop.f32.mrf.mxu0  ;;  %v9393_v51 = vpop.f32.mrf.mxu1 }
0x110d   : > { %v17915_v8 = vadd.f32 %v9393_v51, %v9160_v39 }
0x110e   : > { %v9162_v30 = vpop.f32.mrf.mxu0  ;;  %v9395_v56 = vpop.f32.mrf.mxu1 }
0x1110   : > { %v9165_v12 = vpop.f32.mrf.mxu0  ;;  %v9398_v61 = vpop.f32.mrf.mxu1 }
0x1111   : > { %v17917_v19 = vadd.f32 %v9398_v61, %v9165_v12 }
0x1112   : > { %v9167_v9 = vpop.f32.mrf.mxu0  ;;  %v9400_v47 = vpop.f32.mrf.mxu1 }
0x1114   : > { %v9170_v26 = vpop.f32.mrf.mxu0  ;;  %v9403_v22 = vpop.f32.mrf.mxu1 }
0x1115   : > { %v17919_v45 = vadd.f32 %v9403_v22, %v9170_v26 }
0x1116   : > { %v9172_v17 = vpop.f32.mrf.mxu0  ;;  %v9405_v52 = vpop.f32.mrf.mxu1 }
0x1118   : > { %v9175_v36 = vpop.f32.mrf.mxu0  ;;  %v9408_v54 = vpop.f32.mrf.mxu1 }
0x1119   : > { %v17921_v25 = vadd.f32 %v9408_v54, %v9175_v36 }
0x111a   : > { %v9177_v60 = vpop.f32.mrf.mxu0  ;;  %v9410_v53 = vpop.f32.mrf.mxu1 }
0x111c   : > { %v9180_v48 = vpop.f32.mrf.mxu0  ;;  %v9413_v3 = vpop.f32.mrf.mxu1 }
0x111d   : > { %v17923_v7 = vadd.f32 %v9413_v3, %v9180_v48 }
0x111e   : > { %v9182_v33 = vpop.f32.mrf.mxu0  ;;  %v9415_v18 = vpop.f32.mrf.mxu1 }
0x1120   : > { %v9185_v28 = vpop.f32.mrf.mxu0  ;;  %v9418_v34 = vpop.f32.mrf.mxu1 }
0x1121   : > { %v17925_v2 = vadd.f32 %v9418_v34, %v9185_v28 }
0x1122   : > { %v9187_v46 = vpop.f32.mrf.mxu0  ;;  %v9420_v23 = vpop.f32.mrf.mxu1 }
0x1124   : > { %v9190_v50 = vpop.f32.mrf.mxu0  ;;  %v9423_v41 = vpop.f32.mrf.mxu1 }
0x1125   : > { %v17928_v59 = vadd.f32 %v9423_v41, %v9190_v50 }
0x1126   : > { %v9192_v6 = vpop.f32.mrf.mxu0  ;;  %v9425_v43 = vpop.f32.mrf.mxu1 }
0x1128   : > { %v9195_v5 = vpop.f32.mrf.mxu0  ;;  %v9428_v21 = vpop.f32.mrf.mxu1 }
0x1129   : > { %v17930_v13 = vadd.f32 %v9428_v21, %v9195_v5 }
0x112a   : > { %v9197_v15 = vpop.f32.mrf.mxu0  ;;  %v9430_v27 = vpop.f32.mrf.mxu1 }
0x112c   : > { %v9200_v4 = vpop.f32.mrf.mxu0  ;;  %v9433_v31 = vpop.f32.mrf.mxu1 }
0x112d   : > { %v17932_v29 = vadd.f32 %v9433_v31, %v9200_v4 }
0x112e   : > { %v9202_v0 = vpop.f32.mrf.mxu0  ;;  %v9435_v1 = vpop.f32.mrf.mxu1 }
0x1130   : > { %v9205_v55 = vpop.f32.mrf.mxu0  ;;  %v9438_v58 = vpop.f32.mrf.mxu1 }
0x1131   : > { %v17934_v49 = vadd.f32 %v9438_v58, %v9205_v55 }
0x1132   : > { %v9207_v38 = vpop.f32.mrf.mxu0  ;;  %v9440_v14 = vpop.f32.mrf.mxu1 }
0x1134   : > { %v9210_v57 = vpop.f32.mrf.mxu0  ;;  %v9443_v10 = vpop.f32.mrf.mxu1 }
0x1135   : > { %v17936_v40 = vadd.f32 %v9443_v10, %v9210_v57 }
0x1136   : > { %v9212_v39 = vpop.f32.mrf.mxu0  ;;  %v9445_v51 = vpop.f32.mrf.mxu1 }
0x1138   : > { %v9215_v30 = vpop.f32.mrf.mxu0  ;;  %v9448_v56 = vpop.f32.mrf.mxu1 }
0x1139   : > { %v17938_v12 = vadd.f32 %v9448_v56, %v9215_v30 }
0x113a   : > { %v9217_v61 = vpop.f32.mrf.mxu0  ;;  %v9450_v9 = vpop.f32.mrf.mxu1 }
0x113c   : > { %v17940_v47 = vpop.f32.mrf.mxu0 }
0x113e   : > { %v13072_v26 = vpop.f32.mrf.mxu0 }
0x113f   : > { %v9629_v26 = vld [vmem:[#allocation13 + $0x2a0] sm:$0xff] }
0x1140   : > { %v17942_v22 = vpop.f32.mrf.mxu0 }
0x1142   : > { %v13075_v17 = vpop.f32.mrf.mxu0 }
0x1143   : > { %v9634_v17 = vld [vmem:[#allocation13 + $0x2c8] sm:$0xff] }
0x1144   : > { %v17944_v52 = vpop.f32.mrf.mxu0 }
0x1146   : > { %v13078_v36 = vpop.f32.mrf.mxu0 }
0x1147   : > { %v9636_v36 = vld [vmem:[#allocation13 + $0x2d8] sm:$0xff] }
0x1148   : > { %v9539_v54 = vpop.f32.mrf.mxu0 }
0x114a   : > { %v13081_v60 = vpop.f32.mrf.mxu0 }
0x114b   : > { %v9638_v60 = vld [vmem:[#allocation13 + $0x2e8] sm:$0xff] }
0x114c   : > { %v9544_v53 = vpop.f32.mrf.mxu0 }
0x114e   : > { %v13084_v48 = vpop.f32.mrf.mxu0 }
0x114f   : > { %v9639_v48 = vld [vmem:[#allocation13 + $0x2f0] sm:$0xff] }
0x1150   : > { %v9549_v3 = vpop.f32.mrf.mxu0 }
0x1152   : > { %v13087_v33 = vpop.f32.mrf.mxu0 }
0x1153   : > { %v9641_v33 = vld [vmem:[#allocation13 + $0x300] sm:$0xff] }
0x1154   : > { %v9554_v18 = vpop.f32.mrf.mxu0 }
0x1156   : > { %v13090_v28 = vpop.f32.mrf.mxu0 }
0x1157   : > { %v9643_v28 = vld [vmem:[#allocation13 + $0x310] sm:$0xff] }
0x1158   : > { %v9559_v34 = vpop.f32.mrf.mxu0 }
0x115a   : > { %v13093_v11 = vpop.f32.mrf.mxu0 }
0x115b   : > { %v9645_v11 = vld [vmem:[#allocation13 + $0x320] sm:$0xff] }
0x115c   : > { %v9564_v46 = vpop.f32.mrf.mxu0 }
0x115e   : > { %v13096_v23 = vpop.f32.mrf.mxu0 }
0x115f   : > { %v9647_v23 = vld [vmem:[#allocation13 + $0x330] sm:$0xff] }
0x1160   : > { %v9569_v50 = vpop.f32.mrf.mxu0 }
0x1162   : > { %v13099_v41 = vpop.f32.mrf.mxu0 }
0x1163   : > { %v9649_v41 = vld [vmem:[#allocation13 + $0x340] sm:$0xff] }
0x1164   : > { %v9574_v6 = vpop.f32.mrf.mxu0 }
0x1166   : > { %v13102_v43 = vpop.f32.mrf.mxu0 }
0x1167   : > { %v9651_v43 = vld [vmem:[#allocation13 + $0x350] sm:$0xff] }
0x1168   : > { %v9579_v5 = vpop.f32.mrf.mxu0 }
0x116a   : > { %v13105_v21 = vpop.f32.mrf.mxu0 }
0x116b   : > { %v9653_v21 = vld [vmem:[#allocation13 + $0x360] sm:$0xff] }
0x116c   : > { %v9584_v15 = vpop.f32.mrf.mxu0 }
0x116e   : > { %v13108_v27 = vpop.f32.mrf.mxu0 }
0x116f   : > { %v9655_v27 = vld [vmem:[#allocation13 + $0x370] sm:$0xff] }
0x1170   : > { %v9589_v4 = vpop.f32.mrf.mxu0 }
0x1172   : > { %v13111_v31 = vpop.f32.mrf.mxu0 }
0x1173   : > { %v9657_v31 = vld [vmem:[#allocation13 + $0x380] sm:$0xff] }
0x1174   : > { %v9594_v0 = vpop.f32.mrf.mxu0 }
0x1176   : > { %v13114_v1 = vpop.f32.mrf.mxu0 }
0x1177   : > { %v9659_v1 = vld [vmem:[#allocation13 + $0x390] sm:$0xff] }
0x1178   : > { %v9599_v55 = vpop.f32.mrf.mxu0 }
0x1179   : > { %9735 = vmatpush1.msra.mxu1 %v9599_v55  ;;  %v9662_v55 = vld [vmem:[#allocation13 + $0x3a8] sm:$0xff] }
0x117a   : > { %v13117_v58 = vpop.f32.mrf.mxu0  ;;  %9736 = vmatprep.subr.mxu1 %v18131_v16 }
0x117b   : > { %9737 = vmatpush1.msra.mxu1 %v9594_v0  ;;  %v9660_v0 = vld [vmem:[#allocation13 + $0x398] sm:$0xff]  ;;  %v9661_v58 = vld [vmem:[#allocation13 + $0x3a0] sm:$0xff] }
0x117c   : > { %v9604_v38 = vpop.f32.mrf.mxu0  ;;  %9738 = vmatprep.subr.mxu1 %v18131_v16 }
0x117d   : > { %9739 = vmatpush1.msra.mxu1 %v9589_v4  ;;  %v9658_v4 = vld [vmem:[#allocation13 + $0x388] sm:$0xff] }
0x117e   : > { %v13120_v14 = vpop.f32.mrf.mxu0  ;;  %9740 = vmatprep.subr.mxu1 %v18131_v16 }
0x117f   : > { %9741 = vmatpush1.msra.mxu1 %v9584_v15  ;;  %v9656_v15 = vld [vmem:[#allocation13 + $0x378] sm:$0xff]  ;;  %v9663_v14 = vld [vmem:[#allocation13 + $0x3b0] sm:$0xff] }
0x1180   : > { %v9609_v57 = vpop.f32.mrf.mxu0  ;;  %9742 = vmatprep.subr.mxu1 %v18131_v16 }
0x1181   : > { %9743 = vmatpush1.msra.mxu1 %v9579_v5  ;;  %v9654_v5 = vld [vmem:[#allocation13 + $0x368] sm:$0xff] }
0x1182   : > { %v13123_v10 = vpop.f32.mrf.mxu0  ;;  %9744 = vmatprep.subr.mxu1 %v18131_v16 }
0x1183   : > { %9745 = vmatpush1.msra.mxu1 %v9574_v6  ;;  %v9652_v6 = vld [vmem:[#allocation13 + $0x358] sm:$0xff]  ;;  %v9665_v10 = vld [vmem:[#allocation13 + $0x3c0] sm:$0xff] }
0x1184   : > { %v9614_v39 = vpop.f32.mrf.mxu0  ;;  %9746 = vmatprep.subr.mxu1 %v18131_v16 }
0x1185   : > { %9747 = vmatpush1.msra.mxu1 %v9569_v50  ;;  %v9650_v50 = vld [vmem:[#allocation13 + $0x348] sm:$0xff] }
0x1186   : > { %v13126_v51 = vpop.f32.mrf.mxu0  ;;  %9748 = vmatprep.subr.mxu1 %v18131_v16 }
0x1187   : > { %9749 = vmatpush1.msra.mxu1 %v9564_v46  ;;  %v9648_v46 = vld [vmem:[#allocation13 + $0x338] sm:$0xff]  ;;  %v9667_v51 = vld [vmem:[#allocation13 + $0x3d0] sm:$0xff] }
0x1188   : > { %v9619_v30 = vpop.f32.mrf.mxu0  ;;  %9750 = vmatprep.subr.mxu1 %v18131_v16 }
0x1189   : > { %9751 = vmatpush1.msra.mxu1 %v9559_v34  ;;  %v9646_v34 = vld [vmem:[#allocation13 + $0x328] sm:$0xff] }
0x118a   : > { %v13129_v56 = vpop.f32.mrf.mxu0  ;;  %9752 = vmatprep.subr.mxu1 %v18131_v16 }
0x118b   : > { %9753 = vmatpush1.msra.mxu1 %v9554_v18  ;;  %v9644_v18 = vld [vmem:[#allocation13 + $0x318] sm:$0xff]  ;;  %v9669_v56 = vld [vmem:[#allocation13 + $0x3e0] sm:$0xff] }
0x118c   : > { %v9624_v61 = vpop.f32.mrf.mxu0  ;;  %9754 = vmatprep.subr.mxu1 %v18131_v16 }
0x118d   : > { %9755 = vmatpush1.msra.mxu1 %v9549_v3  ;;  %v9642_v3 = vld [vmem:[#allocation13 + $0x308] sm:$0xff] }
0x118e   : > { %v13132_v9 = vpop.f32.mrf.mxu0  ;;  %9756 = vmatprep.subr.mxu1 %v18131_v16 }
0x118f   : > { %9757 = vmatpush1.msra.mxu1 %v9544_v53  ;;  %v9640_v53 = vld [vmem:[#allocation13 + $0x2f8] sm:$0xff] }
0x1190   : > { %9758 = vmatprep.subr.mxu1 %v18131_v16 }
0x1191   : > { %9759 = vmatpush1.msra.mxu1 %v9539_v54  ;;  %v9635_v54 = vld [vmem:[#allocation13 + $0x2d0] sm:$0xff] }
0x1192   : > { %9760 = vmatprep.subr.mxu1 %v18131_v16 }
0x1193   : > { %9761 = vmatpush1.msra.mxu1 %v17944_v52  ;;  %v9633_v52 = vld [vmem:[#allocation13 + $0x2c0] sm:$0xff] }
0x1194   : > { %9762 = vmatprep.subr.mxu1 %v18131_v16 }
0x1195   : > { %9763 = vmatpush1.msra.mxu1 %v17942_v22  ;;  %v9632_v22 = vld [vmem:[#allocation13 + $0x2b8] sm:$0xff] }
0x1196   : > { %9764 = vmatprep.subr.mxu1 %v18131_v16 }
0x1197   : > { %9765 = vmatpush1.msra.mxu1 %v17940_v47  ;;  %v9631_v47 = vld [vmem:[#allocation13 + $0x2b0] sm:$0xff] }
0x1198   : > { %9788 = vmatprep.subr.mxu1 %v18131_v16 }
0x1199   : > { %9789 = vmatpush2.msra.mxu1 %v9624_v61 }
0x119a   : > { %9790 = vmatprep.subr.mxu1 %v18131_v16 }
0x119b   : > { %9791 = vmatpush2.msra.mxu1 %v9619_v30  ;;  %v9670_v30 = vld [vmem:[#allocation13 + $0x3e8] sm:$0xff] }
0x119c   : > { %9792 = vmatprep.subr.mxu1 %v18131_v16 }
0x119d   : > { %9793 = vmatpush2.msra.mxu1 %v9614_v39  ;;  %v9668_v39 = vld [vmem:[#allocation13 + $0x3d8] sm:$0xff] }
0x119e   : > { %9794 = vmatprep.subr.mxu1 %v18131_v16 }
0x119f   : > { %9795 = vmatpush2.msra.mxu1 %v9609_v57  ;;  %v9666_v57 = vld [vmem:[#allocation13 + $0x3c8] sm:$0xff] }
0x11a0   : > { %9796 = vmatprep.subr.mxu1 %v18131_v16  ;;  %v9637_v16 = vld [vmem:[#allocation13 + $0x2e0] sm:$0xff] }
0x11a1   : > { %9797 = vmatpush2.msra.mxu1 %v9604_v38  ;;  %v9664_v38 = vld [vmem:[#allocation13 + $0x3b8] sm:$0xff] }
0x11a2   : > { %9799 = vmatmul.mubr.f32.vlgmr.msra.gmra.mxu1 %v9629_v26  ;;  %v9949_v26 = vpop.permute.xlu0 %9948 }
0x11a3   : > { %11051 = vmatprep.mubr.msk.f32.mxu1 %vm8985_vm9, %v9632_v22 }
0x11a6   : > { %9804 = vmatmul.mubr.f32.gmra.mxu1 %v9631_v47 }
0x11a7   : > { %11052 = vmatprep.mubr.msk.f32.mxu1 %vm8985_vm9, %v9634_v17 }
0x11aa   : > { %9809 = vmatmul.mubr.f32.gmra.mxu1 %v9633_v52 }
0x11ab   : > { %11053 = vmatprep.mubr.msk.f32.mxu1 %vm8985_vm9, %v9636_v36 }
0x11ae   : > { %9814 = vmatmul.mubr.f32.gmra.mxu1 %v9635_v54  ;;  %v9954_v54 = vpop.permute.xlu1 %9953 }
0x11af   : > { %11054 = vmatprep.mubr.msk.f32.mxu1 %vm8985_vm9, %v9638_v60 }
0x11b2   : > { %9819 = vmatmul.mubr.f32.gmra.mxu1 %v9637_v16 }
0x11b3   : > { %11055 = vmatprep.mubr.msk.f32.mxu1 %vm8985_vm9, %v9640_v53 }
0x11b6   : > { %9824 = vmatmul.mubr.f32.gmra.mxu1 %v9639_v48 }
0x11b7   : > { %11056 = vmatprep.mubr.msk.f32.mxu1 %vm8985_vm9, %v9642_v3  ;;  %v9959_v3 = vpop.permute.xlu0 %9958 }
0x11ba   : > { %9829 = vmatmul.mubr.f32.gmra.mxu1 %v9641_v33 }
0x11bb   : > { %11057 = vmatprep.mubr.msk.f32.mxu1 %vm8985_vm9, %v9644_v18 }
0x11be   : > { %9834 = vmatmul.mubr.f32.gmra.mxu1 %v9643_v28 }
0x11bf   : > { %11058 = vmatprep.mubr.msk.f32.mxu1 %vm8985_vm9, %v9646_v34 }
0x11c2   : > { %9839 = vmatmul.mubr.f32.gmra.mxu1 %v9645_v11  ;;  %v9964_v11 = vpop.permute.xlu1 %9963 }
0x11c3   : > { %11059 = vmatprep.mubr.msk.f32.mxu1 %vm8985_vm9, %v9648_v46 }
0x11c6   : > { %9844 = vmatmul.mubr.f32.gmra.mxu1 %v9647_v23 }
0x11c7   : > { %11060 = vmatprep.mubr.msk.f32.mxu1 %vm8985_vm9, %v9650_v50 }
0x11ca   : > { %9849 = vmatmul.mubr.f32.gmra.mxu1 %v9649_v41 }
0x11cb   : > { %11061 = vmatprep.mubr.msk.f32.mxu1 %vm8985_vm9, %v9652_v6  ;;  %v9969_v6 = vpop.permute.xlu0 %9968 }
0x11ce   : > { %9854 = vmatmul.mubr.f32.gmra.mxu1 %v9651_v43 }
0x11cf   : > { %11062 = vmatprep.mubr.msk.f32.mxu1 %vm8985_vm9, %v9654_v5 }
0x11d2   : > { %9859 = vmatmul.mubr.f32.gmra.mxu1 %v9653_v21 }
0x11d3   : > { %11063 = vmatprep.mubr.msk.f32.mxu1 %vm8985_vm9, %v9656_v15 }
0x11d6   : > { %9864 = vmatmul.mubr.f32.gmra.mxu1 %v9655_v27  ;;  %v9974_v27 = vpop.permute.xlu1 %9973 }
0x11d7   : > { %11064 = vmatprep.mubr.msk.f32.mxu1 %vm8985_vm9, %v9658_v4 }
0x11da   : > { %9869 = vmatmul.mubr.f32.gmra.mxu1 %v9657_v31 }
0x11db   : > { %11065 = vmatprep.mubr.msk.f32.mxu1 %vm8985_vm9, %v9660_v0 }
0x11de   : > { %9874 = vmatmul.mubr.f32.gmra.mxu1 %v9659_v1 }
0x11df   : > { %11066 = vmatprep.mubr.msk.f32.mxu1 %vm8985_vm9, %v9662_v55  ;;  %v9979_v55 = vpop.permute.xlu0 %9978 }
0x11e2   : > { %9879 = vmatmul.mubr.f32.gmra.mxu1 %v9661_v58 }
0x11e3   : > { %11067 = vmatprep.mubr.msk.f32.mxu1 %vm8985_vm9, %v9664_v38 }
0x11e6   : > { %9884 = vmatmul.mubr.f32.gmra.mxu1 %v9663_v14 }
0x11e7   : > { %11068 = vmatprep.mubr.msk.f32.mxu1 %vm8985_vm9, %v9666_v57 }
0x11ea   : > { %9889 = vmatmul.mubr.f32.gmra.mxu1 %v9665_v10  ;;  %v9984_v10 = vpop.permute.xlu1 %9983 }
0x11eb   : > { %11069 = vmatprep.mubr.msk.f32.mxu1 %vm8985_vm9, %v9668_v39 }
0x11ee   : > { %9894 = vmatmul.mubr.f32.gmra.mxu1 %v9667_v51 }
0x11ef   : > { %11070 = vmatprep.mubr.msk.f32.mxu1 %vm8985_vm9, %v9670_v30 }
0x11f2   : > { %9899 = vmatmul.mubr.f32.gmra.mxu1 %v9669_v56 }
0x1262   : > { %v9800_v61 = vpop.f32.mrf.mxu1 }
0x1263   : > { %v9904_v9 = vadd.f32 %v9800_v61, %v17897_v24  ;;  %v9989_v61 = vpop.permute.xlu0 %9988 }
0x1264   : > { %v9802_v22 = vpop.f32.mrf.mxu1 }
0x1265   : > { %v10051_v47 = vadd.f32 %v9949_v26, %v9904_v9 }
0x1266   : > { %v9805_v17 = vpop.f32.mrf.mxu1 }
0x1267   : > { %v10072_v52 = vmax.f32 %v10051_v47, 0.0  ;;  %v9905_v36 = vadd.f32 %v9805_v17, %v17899_v32  ;;  %v9994_v17 = vpop.permute.xlu1 %9993 }
0x1268   : > { %v9807_v60 = vpop.f32.mrf.mxu1 }
0x1269   : > { %10094 = vst.msk [vmem:[%s17995_s26] sm:$0xff] %vm10093_vm10, %v10072_v52  ;;  %v10052_v24 = vadd.f32 %v9954_v54, %v9905_v36 }
0x126a   : > { %v9810_v16 = vpop.f32.mrf.mxu1 }
0x126b   : > { %v10073_v53 = vmax.f32 %v10052_v24, 0.0  ;;  %v9906_v48 = vadd.f32 %v9810_v16, %v17901_v37  ;;  %v9999_v24 = vpop.permute.xlu0 %9998 }
0x126c   : > { %v9812_v33 = vpop.f32.mrf.mxu1 }
0x126d   : > { %10095 = vst.msk [vmem:[%s17995_s26 + $0x8] sm:$0xff] %vm10093_vm10, %v10073_v53  ;;  %v10053_v18 = vadd.f32 %v9959_v3, %v9906_v48  ;;  %v10004_v33 = vpop.permute.xlu1 %10003 }
0x126e   : > { %v9815_v28 = vpop.f32.mrf.mxu1 }
0x126f   : > { %v10074_v34 = vmax.f32 %v10053_v18, 0.0  ;;  %v9907_v32 = vadd.f32 %v9815_v28, %v17903_v42 }
0x1270   : > { %v9817_v46 = vpop.f32.mrf.mxu1 }
0x1271   : > { %10096 = vst.msk [vmem:[%s17995_s26 + $0x10] sm:$0xff] %vm10093_vm10, %v10074_v34  ;;  %v10054_v23 = vadd.f32 %v9964_v11, %v9907_v32  ;;  %v10009_v11 = vpop.permute.xlu0 %10008 }
0x1272   : > { %v9820_v50 = vpop.f32.mrf.mxu1 }
0x1273   : > { %v10075_v41 = vmax.f32 %v10054_v23, 0.0  ;;  %v9908_v37 = vadd.f32 %v9820_v50, %v17905_v62 }
0x1274   : > { %v9822_v43 = vpop.f32.mrf.mxu1 }
0x1275   : > { %10097 = vst.msk [vmem:[%s17995_s26 + $0x18] sm:$0xff] %vm10093_vm10, %v10075_v41  ;;  %v10055_v5 = vadd.f32 %v9969_v6, %v9908_v37  ;;  %v10014_v37 = vpop.permute.xlu1 %10013 }
0x1276   : > { %v9825_v21 = vpop.f32.mrf.mxu1 }
0x1277   : > { %v10076_v15 = vmax.f32 %v10055_v5, 0.0  ;;  %v9909_v42 = vadd.f32 %v9825_v21, %v17907_v35 }
0x1278   : > { %v9827_v4 = vpop.f32.mrf.mxu1 }
0x1279   : > { %10098 = vst.msk [vmem:[%s17995_s26 + $0x20] sm:$0xff] %vm10093_vm10, %v10076_v15  ;;  %v10056_v31 = vadd.f32 %v9974_v27, %v9909_v42  ;;  %v10019_v15 = vpop.permute.xlu0 %10018 }
0x127a   : > { %v9830_v0 = vpop.f32.mrf.mxu1 }
0x127b   : > { %v10077_v1 = vmax.f32 %v10056_v31, 0.0  ;;  %v9910_v62 = vadd.f32 %v9830_v0, %v17909_v44  ;;  %v10024_v0 = vpop.permute.xlu1 %10023 }
0x127c   : > { %v9832_v58 = vpop.f32.mrf.mxu1 }
0x127d   : > { %10099 = vst.msk [vmem:[%s17995_s26 + $0x28] sm:$0xff] %vm10093_vm10, %v10077_v1  ;;  %v10057_v38 = vadd.f32 %v9979_v55, %v9910_v62 }
0x127e   : > { %v9835_v14 = vpop.f32.mrf.mxu1 }
0x127f   : > { %v10078_v57 = vmax.f32 %v10057_v38, 0.0  ;;  %v9911_v35 = vadd.f32 %v9835_v14, %v17911_v20  ;;  %v10029_v38 = vpop.permute.xlu0 %10028 }
0x1280   : > { %v9837_v39 = vpop.f32.mrf.mxu1 }
0x1281   : > { %10100 = vst.msk [vmem:[%s17995_s26 + $0x30] sm:$0xff] %vm10093_vm10, %v10078_v57  ;;  %v10058_v51 = vadd.f32 %v9984_v10, %v9911_v35  ;;  %v10034_v39 = vpop.permute.xlu1 %10033 }
0x1282   : > { %v9840_v30 = vpop.f32.mrf.mxu1 }
0x1283   : > { %v10079_v56 = vmax.f32 %v10058_v51, 0.0  ;;  %v9912_v44 = vadd.f32 %v9840_v30, %v17913_v63 }
0x1284   : > { %v9842_v9 = vpop.f32.mrf.mxu1 }
0x1285   : > { %10101 = vst.msk [vmem:[%s17995_s26 + $0x38] sm:$0xff] %vm10093_vm10, %v10079_v56  ;;  %v10059_v26 = vadd.f32 %v9989_v61, %v9912_v44  ;;  %v10039_v61 = vpop.permute.xlu0 %10038 }
0x1286   : > { %v9845_v22 = vpop.f32.mrf.mxu1 }
0x1287   : > { %v10080_v47 = vmax.f32 %v10059_v26, 0.0  ;;  %v9913_v20 = vadd.f32 %v9845_v22, %v17915_v8 }
0x1288   : > { %v9847_v52 = vpop.f32.mrf.mxu1 }
0x1289   : > { %10102 = vst.msk [vmem:[%s17995_s26 + $0x40] sm:$0xff] %vm10093_vm10, %v10080_v47  ;;  %v10060_v36 = vadd.f32 %v9994_v17, %v9913_v20  ;;  %v10044_v20 = vpop.permute.xlu1 %10043 }
0x128a   : > { %v9850_v54 = vpop.f32.mrf.mxu1 }
0x128b   : > { %v10081_v60 = vmax.f32 %v10060_v36, 0.0  ;;  %v9914_v63 = vadd.f32 %v9850_v54, %v17917_v19 }
0x128c   : > { %v9852_v16 = vpop.f32.mrf.mxu1 }
0x128d   : > { %10103 = vst.msk [vmem:[%s17995_s26 + $0x48] sm:$0xff] %vm10093_vm10, %v10081_v60  ;;  %v10061_v53 = vadd.f32 %v9999_v24, %v9914_v63  ;;  %v10049_v60 = vpop.permute.xlu0 %10048 }
0x128e   : > { %v9855_v48 = vpop.f32.mrf.mxu1 }
0x128f   : > { %v10082_v3 = vmax.f32 %v10061_v53, 0.0  ;;  %v9915_v8 = vadd.f32 %v9855_v48, %v17919_v45 }
0x1290   : > { %v9857_v18 = vpop.f32.mrf.mxu1 }
0x1291   : > { %10104 = vst.msk [vmem:[%s17995_s26 + $0x50] sm:$0xff] %vm10093_vm10, %v10082_v3  ;;  %v10062_v28 = vadd.f32 %v10004_v33, %v9915_v8 }
0x1292   : > { %v9860_v34 = vpop.f32.mrf.mxu1 }
0x1293   : > { %v10083_v32 = vmax.f32 %v10062_v28, 0.0  ;;  %v9916_v19 = vadd.f32 %v9860_v34, %v17921_v25 }
0x1294   : > { %v9862_v46 = vpop.f32.mrf.mxu1 }
0x1295   : > { %10105 = vst.msk [vmem:[%s17995_s26 + $0x58] sm:$0xff] %vm10093_vm10, %v10083_v32  ;;  %v10063_v23 = vadd.f32 %v10009_v11, %v9916_v19 }
0x1296   : > { %v9865_v50 = vpop.f32.mrf.mxu1 }
0x1297   : > { %v10084_v41 = vmax.f32 %v10063_v23, 0.0  ;;  %v9917_v45 = vadd.f32 %v9865_v50, %v17923_v7 }
0x1298   : > { %v9867_v6 = vpop.f32.mrf.mxu1 }
0x1299   : > { %10106 = vst.msk [vmem:[%s17995_s26 + $0x60] sm:$0xff] %vm10093_vm10, %v10084_v41  ;;  %v10064_v43 = vadd.f32 %v10014_v37, %v9917_v45 }
0x129a   : > { %v9870_v5 = vpop.f32.mrf.mxu1 }
0x129b   : > { %v10085_v21 = vmax.f32 %v10064_v43, 0.0  ;;  %v9918_v25 = vadd.f32 %v9870_v5, %v17925_v2 }
0x129c   : > { %v9872_v42 = vpop.f32.mrf.mxu1 }
0x129d   : > { %10107 = vst.msk [vmem:[%s17995_s26 + $0x68] sm:$0xff] %vm10093_vm10, %v10085_v21  ;;  %v10065_v27 = vadd.f32 %v10019_v15, %v9918_v25 }
0x129e   : > { %v9875_v4 = vpop.f32.mrf.mxu1 }
0x129f   : > { %v10086_v31 = vmax.f32 %v10065_v27, 0.0  ;;  %v9919_v7 = vadd.f32 %v9875_v4, %v17928_v59 }
0x12a0   : > { %v9877_v1 = vpop.f32.mrf.mxu1 }
0x12a1   : > { %10108 = vst.msk [vmem:[%s17995_s26 + $0x70] sm:$0xff] %vm10093_vm10, %v10086_v31  ;;  %v10066_v62 = vadd.f32 %v10024_v0, %v9919_v7 }
0x12a2   : > { %v9880_v55 = vpop.f32.mrf.mxu1 }
0x12a3   : > { %v10087_v58 = vmax.f32 %v10066_v62, 0.0  ;;  %v9920_v2 = vadd.f32 %v9880_v55, %v17930_v13 }
0x12a4   : > { %v9882_v14 = vpop.f32.mrf.mxu1 }
0x12a5   : > { %10109 = vst.msk [vmem:[%s17995_s26 + $0x78] sm:$0xff] %vm10093_vm10, %v10087_v58  ;;  %v10067_v57 = vadd.f32 %v10029_v38, %v9920_v2 }
0x12a6   : > { %v9885_v35 = vpop.f32.mrf.mxu1 }
0x12a7   : > { %v10088_v10 = vmax.f32 %v10067_v57, 0.0  ;;  %v9921_v59 = vadd.f32 %v9885_v35, %v17932_v29 }
0x12a8   : > { %v9887_v51 = vpop.f32.mrf.mxu1 }
0x12a9   : > { %10110 = vst.msk [vmem:[%s17995_s26 + $0x80] sm:$0xff] %vm10093_vm10, %v10088_v10  ;;  %v10068_v30 = vadd.f32 %v10034_v39, %v9921_v59 }
0x12aa   : > { %v9890_v56 = vpop.f32.mrf.mxu1 }
0x12ab   : > { %v10089_v44 = vmax.f32 %v10068_v30, 0.0  ;;  %v9922_v13 = vadd.f32 %v9890_v56, %v17934_v49 }
0x12ac   : > { %v9892_v9 = vpop.f32.mrf.mxu1 }
0x12ad   : > { %10111 = vst.msk [vmem:[%s17995_s26 + $0x88] sm:$0xff] %vm10093_vm10, %v10089_v44  ;;  %v10069_v26 = vadd.f32 %v10039_v61, %v9922_v13 }
0x12ae   : > { %v9895_v22 = vpop.f32.mrf.mxu1 }
0x12af   : > { %v10090_v47 = vmax.f32 %v10069_v26, 0.0  ;;  %v9923_v29 = vadd.f32 %v9895_v22, %v17936_v40 }
0x12b0   : > { %v9897_v17 = vpop.f32.mrf.mxu1 }
0x12b1   : > { %10112 = vst.msk [vmem:[%s17995_s26 + $0x90] sm:$0xff] %vm10093_vm10, %v10090_v47  ;;  %v10070_v52 = vadd.f32 %v10044_v20, %v9923_v29 }
0x12b2   : > { %v9900_v36 = vpop.f32.mrf.mxu1 }
0x12b3   : > { %v10091_v54 = vmax.f32 %v10070_v52, 0.0  ;;  %v9924_v49 = vadd.f32 %v9900_v36, %v17938_v12 }
0x12b4   : > { %v9902_v63 = vpop.f32.mrf.mxu1 }
0x12b5   : > { %10113 = vst.msk [vmem:[%s17995_s26 + $0x98] sm:$0xff] %vm10093_vm10, %v10091_v54  ;;  %v10071_v24 = vadd.f32 %v10049_v60, %v9924_v49 }
0x12b7   : > { %v10092_v16 = vmax.f32 %v10071_v24, 0.0 }
0x12b9   : > { %10114 = vst.msk [vmem:[%s17995_s26 + $0xa0] sm:$0xff] %vm10093_vm10, %v10092_v16 }
0x12ba PF: > { %p29_p11 = scmp.ge.s32.totalorder %s13777_s28, 4   ;;  %s18135_s18 = smov %s13557_s19 }
0x12bb   : > { %s18136_s19 = smov %s13561_s20  ;;  %s18137_s20 = smov %s13788_s15 }
0x12bc   : > { %s18138_s21 = smov %s13777_s28  ;;  %31 = sbr.rel (!%p29_p11) target bundleno = 13 (0xd), region = 174 }
0x12c1   :  { %10136 = vsyncpa [#allocation3], 1 }
0x12c2   :  { %10138 = vsyncpa [#allocation3 + $0x1], 1 }
0x12c3   :  { %10139 = vsyncpa [#allocation5], 1 }
0x12c4   :  { %10140 = vsyncpa [#allocation8], 1 }
0x12c5   :  { %10141 = vsyncpa [#allocation11], 1 }
0x12c6   :  { %10142 = vsyncpa [#allocation14], 1 }

</bundles_post_ra>
